<compile_context>
chip_gen: v6e
topology: v6e:2x2x1
jax: 0.10.0
libtpu: 0.0.40
codegen_flags: <defaults>
</compile_context>

<pallas_src>
import functools

import jax
import jax.numpy as jnp
from jax.experimental import pallas as pl
from jax.experimental.pallas import tpu as pltpu


def _round_up(x, m):
    return (x + m - 1) // m * m


def _tile_for(padded_dim):
    # padded_dim is a multiple of 128; pick the largest tile in {512,256,128}
    # that divides it (bigger tiles -> better pipelining, no extra padding).
    for t in (512, 256, 128):
        if padded_dim % t == 0:
            return t
    return 128


def _vmem():
    return pl.BlockSpec(memory_space=pltpu.MemorySpace.VMEM)


# --------------------------- tiled fused GEMM kernel -------------------------

def _gemm_kernel(a_ref, b_ref, scale_ref, bias_ref, o_ref, acc_ref, *, relu):
    # One (tm, tn) output tile; K is the last ("arbitrary") grid axis.
    @pl.when(pl.program_id(2) == 0)
    def _():
        acc_ref[...] = jnp.zeros_like(acc_ref)

    acc_ref[...] += jnp.dot(a_ref[...], b_ref[...],
                            preferred_element_type=jnp.float32)

    @pl.when(pl.program_id(2) == pl.num_programs(2) - 1)
    def _():
        out = acc_ref[...] * scale_ref[...] + bias_ref[...]   # f32 epilogue
        if relu:
            out = jnp.maximum(out, 0.0)
        o_ref[...] = out


def fused_gemm(a, b, scale, bias, *, relu):
    """relu_opt((a @ b) * scale + bias): tiled, pipelined Pallas GEMM.

    a: (M, K) f32, b: (K, N) f32, scale/bias: (N,) f32.  Operands are cast to
    bf16 for the MXU; accumulation and the epilogue stay f32 (safe on v5e's
    f32-only VPU).  Every dim is zero-padded to a 128 multiple (N padding makes
    the output stores lane-dense); the result is sliced back to (M, N).
    """
    M, K = a.shape
    Kb, N = b.shape
    assert K == Kb
    Mp, Kp, Np = _round_up(M, 128), _round_up(K, 128), _round_up(N, 128)
    tm, tk, tn = _tile_for(Mp), _tile_for(Kp), _tile_for(Np)

    a_p = jnp.pad(a.astype(jnp.bfloat16), ((0, Mp - M), (0, Kp - K)))
    b_p = jnp.pad(b.astype(jnp.bfloat16), ((0, Kp - K), (0, Np - N)))
    scale_p = jnp.pad(scale.astype(jnp.float32), (0, Np - N)).reshape(1, Np)
    bias_p = jnp.pad(bias.astype(jnp.float32), (0, Np - N)).reshape(1, Np)

    grid = (Mp // tm, Np // tn, Kp // tk)
    flops = 2 * Mp * Np * Kp
    bytes_accessed = 2 * (Mp * Kp + Kp * Np) + 4 * Mp * Np

    out = pl.pallas_call(
        functools.partial(_gemm_kernel, relu=relu),
        out_shape=jax.ShapeDtypeStruct((Mp, Np), jnp.float32),
        grid_spec=pltpu.PrefetchScalarGridSpec(
            num_scalar_prefetch=0,
            grid=grid,
            in_specs=[
                pl.BlockSpec((tm, tk), lambda i, j, k: (i, k)),
                pl.BlockSpec((tk, tn), lambda i, j, k: (k, j)),
                pl.BlockSpec((1, tn), lambda i, j, k: (0, j)),
                pl.BlockSpec((1, tn), lambda i, j, k: (0, j)),
            ],
            out_specs=pl.BlockSpec((tm, tn), lambda i, j, k: (i, j)),
            scratch_shapes=[pltpu.VMEM((tm, tn), jnp.float32)],
        ),
        compiler_params=pltpu.CompilerParams(
            # M/N axes shard across v7x's 2 TensorCores; K is the accumulation.
            dimension_semantics=("parallel", "parallel", "arbitrary"),
            # worst-case buffered footprint (512^2 tiles, double-buffered bf16
            # inputs + f32 acc/out) is ~6 MiB, well under v7x's 64 MiB VMEM.
            vmem_limit_bytes=32 * 1024 * 1024,
        ),
        cost_estimate=pl.CostEstimate(flops=flops, transcendentals=0,
                                      bytes_accessed=bytes_accessed),
    )(a_p, b_p, scale_p, bias_p)
    return out[:M, :N]


# ---------------------- Conv2d + BatchNorm2d + ReLU (NHWC) -------------------

def conv_bn_relu(x, w, gamma, beta, mean, var, stride, padding, eps=1e-5):
    """Conv2d(no bias) + BN(eval) + ReLU.  x: NHWC, w: PyTorch (Cout,Cin,KH,KW).
    Returns NHWC so the next stage consumes it without any layout round-trip."""
    N, H, W, Cin = x.shape
    Cout, _, KH, KW = w.shape
    sh, sw = stride
    ph, pw = padding
    Ho = (H + 2 * ph - KH) // sh + 1
    Wo = (W + 2 * pw - KW) // sw + 1

    # TODO(synk): for large inputs, form the im2col patches in-kernel from a
    # row-band DMA (BlockSpec over Ho tiles + shifted reads) instead of
    # materializing the KH*KW-amplified patch matrix in HBM via XLA.
    xp = jnp.pad(x, ((0, 0), (ph, ph), (pw, pw), (0, 0)))
    cols = []
    for kh in range(KH):
        for kw in range(KW):
            cols.append(xp[:, kh: kh + sh * (Ho - 1) + 1: sh,
                           kw: kw + sw * (Wo - 1) + 1: sw, :])
    patches = jnp.concatenate(cols, axis=-1)                # (N,Ho,Wo,KH*KW*Cin)
    patches = patches.reshape(N * Ho * Wo, KH * KW * Cin)

    w2d = w.transpose(2, 3, 1, 0).reshape(KH * KW * Cin, Cout)   # rows=(kh,kw,cin)
    inv_std = 1.0 / jnp.sqrt(var + eps)
    scale = gamma * inv_std
    bias = beta - mean * scale

    out = fused_gemm(patches, w2d, scale, bias, relu=True)  # (N*Ho*Wo, Cout)
    return out.reshape(N, Ho, Wo, Cout)


# --------------------- fused bidirectional LSTM (per layer) ------------------

def _bilstm_kernel(xg_ref, whh_f_ref, whh_b_ref, o_ref):
    # xg: (T, B, 8*Hg) = precomputed x @ W_ih + (b_ih + b_hh) for BOTH
    #     directions; cols [0:4Hg] forward gates, [4Hg:8Hg] backward gates,
    #     gate order (i,f,g,o), each gate padded to a 128-lane block.
    # whh_*: (Hg, 4*Hg) padded recurrent weights.
    # o: (T, B, 2*Hg): [0:Hg] forward h(t), [Hg:2Hg] backward h(t).
    T, B, G2 = xg_ref.shape
    G = G2 // 2
    Hg = G // 4

    def lstm_cell(gates, c):
        i_g = jax.nn.sigmoid(gates[:, 0 * Hg:1 * Hg])
        f_g = jax.nn.sigmoid(gates[:, 1 * Hg:2 * Hg])
        g_g = jnp.tanh(gates[:, 2 * Hg:3 * Hg])
        o_g = jax.nn.sigmoid(gates[:, 3 * Hg:4 * Hg])
        c_new = f_g * c + i_g * g_g
        h_new = o_g * jnp.tanh(c_new)
        return h_new, c_new

    def step(t, carry):
        h_f, c_f, h_b, c_b = carry
        tb = T - 1 - t
        g_f = (xg_ref[pl.ds(t, 1)].reshape(B, G2)[:, :G]
               + jnp.dot(h_f, whh_f_ref[...], preferred_element_type=jnp.float32))
        g_b = (xg_ref[pl.ds(tb, 1)].reshape(B, G2)[:, G:]
               + jnp.dot(h_b, whh_b_ref[...], preferred_element_type=jnp.float32))
        h_f, c_f = lstm_cell(g_f, c_f)
        h_b, c_b = lstm_cell(g_b, c_b)
        o_ref[pl.ds(t, 1), :, 0:Hg] = h_f.reshape(1, B, Hg)
        o_ref[pl.ds(tb, 1), :, Hg:2 * Hg] = h_b.reshape(1, B, Hg)
        return (h_f, c_f, h_b, c_b)

    z = jnp.zeros((B, Hg), jnp.float32)
    jax.lax.fori_loop(0, T, step, (z, z, z, z), unroll=True)


def bilstm_layer(x_tbd, layer):
    """x: (T, B, D) time-major -> (T, B, 2*Hg) padded hidden (real h in the first
    H lanes of each half; padded lanes are exactly zero)."""
    T, B, D = x_tbd.shape
    Hg = layer['whh_f'].shape[0]
    # Hoisted input projection for both directions in a single tiled GEMM.
    xg = fused_gemm(x_tbd.reshape(T * B, D), layer['wih'],
                    jnp.ones((8 * Hg,), jnp.float32), layer['b'],
                    relu=False).reshape(T, B, 8 * Hg)
    return pl.pallas_call(
        _bilstm_kernel,
        out_shape=jax.ShapeDtypeStruct((T, B, 2 * Hg), jnp.float32),
        in_specs=[_vmem(), _vmem(), _vmem()],
        out_specs=_vmem(),
        compiler_params=pltpu.CompilerParams(vmem_limit_bytes=32 * 1024 * 1024),
    )(xg, layer['whh_f'], layer['whh_b'])


# ------------------------------ parameter setup ------------------------------

def _conv_out(h, k, s, p):
    return (h + 2 * p - k) // s + 1


def _pack_gate_cols(w_t, H, Hg):
    # (Din, 4H) with gate blocks [i|f|g|o] each H wide -> (Din, 4*Hg) with each
    # gate left-aligned in its own 128-lane-aligned block (rest zero).
    Din = w_t.shape[0]
    out = jnp.zeros((Din, 4 * Hg), jnp.float32)
    for k in range(4):
        out = out.at[:, k * Hg:k * Hg + H].set(w_t[:, k * H:(k + 1) * H])
    return out


def _pack_lstm_direction(w_ih, w_hh, b_ih, b_hh, H, Hg, din_pad, in_segs):
    # PyTorch shapes: w_ih (4H, Din), w_hh (4H, H), b_* (4H,).  in_segs maps
    # natural input features into the padded input-row space of size din_pad.
    wih_g = _pack_gate_cols(w_ih.T, H, Hg)                  # (Din, 4Hg)
    wih_p = jnp.zeros((din_pad, 4 * Hg), jnp.float32)
    for dst, src, width in in_segs:
        wih_p = wih_p.at[dst:dst + width].set(wih_g[src:src + width])
    whh_p = jnp.zeros((Hg, 4 * Hg), jnp.float32)
    whh_p = whh_p.at[:H].set(_pack_gate_cols(w_hh.T, H, Hg))
    # single bias = b_ih + b_hh (as in PyTorch's gate equation)
    b_p = _pack_gate_cols((b_ih + b_hh).reshape(1, 4 * H), H, Hg).reshape(4 * Hg)
    return wih_p, whh_p, b_p


def init_params(key, num_classes, num_channels, rnn_hidden, input_size):
    def nrm(k, shape, s=0.1):
        return s * jax.random.normal(k, shape, jnp.float32)

    def uni(k, shape, lo=0.5, hi=1.5):
        return jax.random.uniform(k, shape, jnp.float32, lo, hi)

    keys = iter(jax.random.split(key, 64))
    params = {}

    # stem: Conv2d(1, C, 7, stride=2, pad=3, bias=False) + BN + ReLU (+Dropout2d)
    C = num_channels
    params['stem'] = dict(
        w=nrm(next(keys), (C, 1, 7, 7)),
        gamma=uni(next(keys), (C,)), beta=nrm(next(keys), (C,)),
        mean=nrm(next(keys), (C,)), var=uni(next(keys), (C,)))

    # two stages: Conv2d(C, 2C, 5, stride=(2,4), pad=2, bias=False) + BN + ReLU
    stages = []
    for _ in range(2):
        stages.append(dict(
            w=nrm(next(keys), (2 * C, C, 5, 5)),
            gamma=uni(next(keys), (2 * C,)), beta=nrm(next(keys), (2 * C,)),
            mean=nrm(next(keys), (2 * C,)), var=uni(next(keys), (2 * C,))))
        C *= 2
    params['stages'] = stages

    # trace spatial dims to size the RNN / FC (mirrors the module's __init__)
    H, W = input_size
    H, W = _conv_out(H, 7, 2, 3), _conv_out(W, 7, 2, 3)
    for _ in range(2):
        H, W = _conv_out(H, 5, 2, 2), _conv_out(W, 5, 4, 2)
    t, f, c = H, W, C
    rnn_in = c * f

    # 2-layer bidirectional LSTM, packed into the 128-lane-padded gate layout.
    Hh = rnn_hidden
    Hg = _round_up(Hh, 128)
    layers = []
    d_nat = rnn_in
    for li in range(2):
        if li == 0:
            din_pad, segs = d_nat, [(0, 0, d_nat)]
        else:  # layer-2 input is the padded [fwd Hg | bwd Hg] hidden layout
            din_pad, segs = 2 * Hg, [(0, 0, Hh), (Hg, Hh, Hh)]
        wih_dirs, b_dirs, whh = [], [], {}
        for suffix in ('f', 'b'):
            w_ih = nrm(next(keys), (4 * Hh, d_nat))
            w_hh = nrm(next(keys), (4 * Hh, Hh))
            b_ih = nrm(next(keys), (4 * Hh,))
            b_hh = nrm(next(keys), (4 * Hh,))
            wih_p, whh_p, b_p = _pack_lstm_direction(
                w_ih, w_hh, b_ih, b_hh, Hh, Hg, din_pad, segs)
            wih_dirs.append(wih_p)
            b_dirs.append(b_p)
            whh['whh_' + suffix] = whh_p
        layers.append(dict(
            wih=jnp.concatenate(wih_dirs, axis=1),    # (din_pad, 8*Hg)
            b=jnp.concatenate(b_dirs),                # (8*Hg,)
            **whh))                                   # whh_f / whh_b: (Hg, 4*Hg)
        d_nat = 2 * Hh
    params['rnn'] = layers

    # fc: Dropout (identity) + BatchNorm1d(X) + Linear(X, num_classes).
    # BN folded into the Linear; rows scattered into the padded hidden layout.
    X = t * 2 * Hh
    gamma = uni(next(keys), (X,)); beta = nrm(next(keys), (X,))
    mean = nrm(next(keys), (X,)); var = uni(next(keys), (X,))
    w_lin = nrm(next(keys), (num_classes, X)); b_lin = nrm(next(keys), (num_classes,))
    eps = 1e-5
    scale = gamma / jnp.sqrt(var + eps)
    shift = beta - mean * scale
    w_fold = (w_lin * scale[None, :]).T               # (X, num_classes)
    b_fold = shift @ w_lin.T + b_lin                  # (num_classes,)
    Xp = t * 2 * Hg
    w_p = jnp.zeros((Xp, num_classes), jnp.float32)
    for ti in range(t):
        w_p = w_p.at[ti * 2 * Hg: ti * 2 * Hg + Hh].set(
            w_fold[ti * 2 * Hh: ti * 2 * Hh + Hh])
        w_p = w_p.at[ti * 2 * Hg + Hg: ti * 2 * Hg + Hg + Hh].set(
            w_fold[ti * 2 * Hh + Hh: (ti + 1) * 2 * Hh])
    params['fc'] = dict(w=w_p, b=b_fold)
    return params


# ------------------------------- forward pass --------------------------------

def crnn_forward(x, params):
    # x: (N, 1, H, W) NCHW like the PyTorch module; go NHWC once and stay NHWC
    # through the conv stack (channels live on the lane axis).
    x = x.transpose(0, 2, 3, 1)
    s = params['stem']
    x = conv_bn_relu(x, s['w'], s['gamma'], s['beta'], s['mean'], s['var'],
                     stride=(2, 2), padding=(3, 3))
    for st in params['stages']:
        x = conv_bn_relu(x, st['w'], st['gamma'], st['beta'], st['mean'],
                         st['var'], stride=(2, 4), padding=(2, 2))
    n, t, f, c = x.shape
    # NHWC == (n, t, f, c): PyTorch's permute(0,2,3,1).reshape(n, t, c*f) is a
    # plain reshape here (feature order (f, c) matches).
    x = x.reshape(n, t, f * c)
    x = x.transpose(1, 0, 2)                        # time-major (T, N, D)
    for layer in params['rnn']:
        x = bilstm_layer(x, layer)                  # (T, N, 2*Hg) padded hidden
    x = x.transpose(1, 0, 2).reshape(n, -1)         # (N, T*2*Hg) padded features
    fc = params['fc']
    out = fused_gemm(x, fc['w'], jnp.ones((fc['w'].shape[1],), jnp.float32),
                     fc['b'], relu=False)           # (N, num_classes)
    # Matches torch `.squeeze()` (no-op here; drops batch dim only when N == 1).
    return jnp.squeeze(out)


if __name__ == "__main__":
    # Small shapes consistent with the module: batch=2, 1 input channel,
    # input_size=(32, 32), num_channels=8, rnn_hidden=16, num_classes=4.
    NUM_CLASSES, NUM_CHANNELS, RNN_HIDDEN = 4, 8, 16
    INPUT_SIZE, BATCH = (32, 32), 2

    key = jax.random.PRNGKey(0)
    k_x, k_p = jax.random.split(key)
    x = jax.random.uniform(k_x, (BATCH, 1) + INPUT_SIZE, jnp.float32)
    params = init_params(k_p, NUM_CLASSES, NUM_CHANNELS, RNN_HIDDEN, INPUT_SIZE)

    # TODO(synk): Dropout2d/Dropout are stochastic in train mode; implemented
    # here as inference-mode identities (BatchNorm uses running stats).
    out = jax.jit(crnn_forward)(x, params)
    out = jax.block_until_ready(out)
    assert out.shape == (BATCH, NUM_CLASSES) and bool(jnp.all(jnp.isfinite(out)))
    print("KERNEL_OK")
</pallas_src>

<mosaic_0001>
module attributes {stable_mosaic.version = 11 : i64} {
  func.func @_gemm_kernel(%arg0: i32, %arg1: i32, %arg2: i32, %arg3: memref<512x128xbf16, #tpu.memory_space<vmem>>, %arg4: memref<128x128xbf16, #tpu.memory_space<vmem>>, %arg5: memref<1x128xf32, #tpu.memory_space<vmem>>, %arg6: memref<1x128xf32, #tpu.memory_space<vmem>>, %arg7: memref<512x128xf32, #tpu.memory_space<vmem>>, %arg8: memref<512x128xf32, #tpu.memory_space<vmem>>) attributes {dimension_semantics = [#tpu.dimension_semantics<parallel>, #tpu.dimension_semantics<parallel>, #tpu.dimension_semantics<arbitrary>], iteration_bounds = array<i64: 1, 1, 1>, scalar_prefetch = 0 : i64, scratch_operands = 1 : i64, tpu.core_type = #tpu.core_type<tc>, window_params = [{transform_indices = @transform_0, window_bounds = array<i64: 512, 128>}, {transform_indices = @transform_1, window_bounds = array<i64: 128, 128>}, {transform_indices = @transform_2, window_bounds = array<i64: 1, 128>}, {transform_indices = @transform_3, window_bounds = array<i64: 1, 128>}, {transform_indices = @transform_4, window_bounds = array<i64: 512, 128>}]} {
    %c0_i32 = arith.constant 0 : i32
    %0 = arith.cmpi eq, %arg2, %c0_i32 : i32
    %1 = arith.extui %0 : i1 to i32
    %c0_i32_0 = arith.constant 0 : i32
    %2 = arith.cmpi ne, %1, %c0_i32_0 : i32
    scf.if %2 {
      %cst_10 = arith.constant 0.000000e+00 : f32
      %12 = vector.broadcast %cst_10 : f32 to vector<512x128xf32>
      %c0_11 = arith.constant 0 : index
      %c0_12 = arith.constant 0 : index
      %13 = vector.load %arg8[%c0_11, %c0_12] : memref<512x128xf32, #tpu.memory_space<vmem>>, vector<512x128xf32>
      tpu.vector_store %arg8[%c0_11, %c0_12], %12 {strides = array<i32>} : memref<512x128xf32, #tpu.memory_space<vmem>>, vector<512x128xf32>,
    } else {
    }
    %c0 = arith.constant 0 : index
    %c0_1 = arith.constant 0 : index
    %3 = vector.load %arg8[%c0, %c0_1] : memref<512x128xf32, #tpu.memory_space<vmem>>, vector<512x128xf32>
    %c0_2 = arith.constant 0 : index
    %c0_3 = arith.constant 0 : index
    %4 = vector.load %arg3[%c0_2, %c0_3] : memref<512x128xbf16, #tpu.memory_space<vmem>>, vector<512x128xbf16>
    %c0_4 = arith.constant 0 : index
    %c0_5 = arith.constant 0 : index
    %5 = vector.load %arg4[%c0_4, %c0_5] : memref<128x128xbf16, #tpu.memory_space<vmem>>, vector<128x128xbf16>
    %cst = arith.constant dense<0.000000e+00> : vector<512x128xf32>
    %6 = tpu.matmul %4, %5, %cst {dimension_numbers = #tpu.dot_dimension_numbers<[1], [0], [0], [1], [0, 0, 1, 1], [], []>} : vector<512x128xbf16>, vector<128x128xbf16>, vector<512x128xf32> -> vector<512x128xf32>
    %7 = arith.addf %3, %6 : vector<512x128xf32>
    %c0_6 = arith.constant 0 : index
    %c0_7 = arith.constant 0 : index
    %8 = vector.load %arg8[%c0_6, %c0_7] : memref<512x128xf32, #tpu.memory_space<vmem>>, vector<512x128xf32>
    tpu.vector_store %arg8[%c0_6, %c0_7], %7 {strides = array<i32>} : memref<512x128xf32, #tpu.memory_space<vmem>>, vector<512x128xf32>,
    %c0_i32_8 = arith.constant 0 : i32
    %9 = arith.cmpi eq, %arg2, %c0_i32_8 : i32
    %10 = arith.extui %9 : i1 to i32
    %c0_i32_9 = arith.constant 0 : i32
    %11 = arith.cmpi ne, %10, %c0_i32_9 : i32
    scf.if %11 {
      %c0_10 = arith.constant 0 : index
      %c0_11 = arith.constant 0 : index
      %12 = vector.load %arg8[%c0_10, %c0_11] : memref<512x128xf32, #tpu.memory_space<vmem>>, vector<512x128xf32>
      %c0_12 = arith.constant 0 : index
      %c0_13 = arith.constant 0 : index
      %13 = vector.load %arg5[%c0_12, %c0_13] : memref<1x128xf32, #tpu.memory_space<vmem>>, vector<1x128xf32>
      %14 = vector.broadcast %13 : vector<1x128xf32> to vector<512x128xf32>
      %15 = arith.mulf %12, %14 : vector<512x128xf32>
      %c0_14 = arith.constant 0 : index
      %c0_15 = arith.constant 0 : index
      %16 = vector.load %arg6[%c0_14, %c0_15] : memref<1x128xf32, #tpu.memory_space<vmem>>, vector<1x128xf32>
      %17 = vector.broadcast %16 : vector<1x128xf32> to vector<512x128xf32>
      %18 = arith.addf %15, %17 : vector<512x128xf32>
      %cst_16 = arith.constant 0.000000e+00 : f32
      %19 = vector.broadcast %cst_16 : f32 to vector<512x128xf32>
      %20 = arith.maximumf %18, %19 : vector<512x128xf32>
      %c0_17 = arith.constant 0 : index
      %c0_18 = arith.constant 0 : index
      %21 = vector.load %arg7[%c0_17, %c0_18] : memref<512x128xf32, #tpu.memory_space<vmem>>, vector<512x128xf32>
      tpu.vector_store %arg7[%c0_17, %c0_18], %20 {strides = array<i32>} : memref<512x128xf32, #tpu.memory_space<vmem>>, vector<512x128xf32>,
    } else {
    }
    return
  }
  func.func @transform_0(%arg0: i32, %arg1: i32, %arg2: i32) -> (i32, i32) {
    %c0_i32 = arith.constant 0 : i32
    return %arg0, %arg2 : i32, i32
  }
  func.func @transform_1(%arg0: i32, %arg1: i32, %arg2: i32) -> (i32, i32) {
    %c0_i32 = arith.constant 0 : i32
    return %arg2, %arg1 : i32, i32
  }
  func.func @transform_2(%arg0: i32, %arg1: i32, %arg2: i32) -> (i32, i32) {
    %c0_i32 = arith.constant 0 : i32
    %c0_i32_0 = arith.constant 0 : i32
    return %c0_i32, %arg1 : i32, i32
  }
  func.func @transform_3(%arg0: i32, %arg1: i32, %arg2: i32) -> (i32, i32) {
    %c0_i32 = arith.constant 0 : i32
    %c0_i32_0 = arith.constant 0 : i32
    return %c0_i32, %arg1 : i32, i32
  }
  func.func @transform_4(%arg0: i32, %arg1: i32, %arg2: i32) -> (i32, i32) {
    %c0_i32 = arith.constant 0 : i32
    return %arg0, %arg1 : i32, i32
  }
}

module attributes {stable_mosaic.version = 11 : i64} {
  func.func @_gemm_kernel(%arg0: i32, %arg1: i32, %arg2: i32, %arg3: memref<128x256xbf16, #tpu.memory_space<vmem>>, %arg4: memref<256x128xbf16, #tpu.memory_space<vmem>>, %arg5: memref<1x128xf32, #tpu.memory_space<vmem>>, %arg6: memref<1x128xf32, #tpu.memory_space<vmem>>, %arg7: memref<128x128xf32, #tpu.memory_space<vmem>>, %arg8: memref<128x128xf32, #tpu.memory_space<vmem>>) attributes {dimension_semantics = [#tpu.dimension_semantics<parallel>, #tpu.dimension_semantics<parallel>, #tpu.dimension_semantics<arbitrary>], iteration_bounds = array<i64: 1, 1, 1>, scalar_prefetch = 0 : i64, scratch_operands = 1 : i64, tpu.core_type = #tpu.core_type<tc>, window_params = [{transform_indices = @transform_0, window_bounds = array<i64: 128, 256>}, {transform_indices = @transform_1, window_bounds = array<i64: 256, 128>}, {transform_indices = @transform_2, window_bounds = array<i64: 1, 128>}, {transform_indices = @transform_3, window_bounds = array<i64: 1, 128>}, {transform_indices = @transform_4, window_bounds = array<i64: 128, 128>}]} {
    %c0_i32 = arith.constant 0 : i32
    %0 = arith.cmpi eq, %arg2, %c0_i32 : i32
    %1 = arith.extui %0 : i1 to i32
    %c0_i32_0 = arith.constant 0 : i32
    %2 = arith.cmpi ne, %1, %c0_i32_0 : i32
    scf.if %2 {
      %cst_10 = arith.constant 0.000000e+00 : f32
      %12 = vector.broadcast %cst_10 : f32 to vector<128x128xf32>
      %c0_11 = arith.constant 0 : index
      %c0_12 = arith.constant 0 : index
      %13 = vector.load %arg8[%c0_11, %c0_12] : memref<128x128xf32, #tpu.memory_space<vmem>>, vector<128x128xf32>
      tpu.vector_store %arg8[%c0_11, %c0_12], %12 {strides = array<i32>} : memref<128x128xf32, #tpu.memory_space<vmem>>, vector<128x128xf32>,
    } else {
    }
    %c0 = arith.constant 0 : index
    %c0_1 = arith.constant 0 : index
    %3 = vector.load %arg8[%c0, %c0_1] : memref<128x128xf32, #tpu.memory_space<vmem>>, vector<128x128xf32>
    %c0_2 = arith.constant 0 : index
    %c0_3 = arith.constant 0 : index
    %4 = vector.load %arg3[%c0_2, %c0_3] : memref<128x256xbf16, #tpu.memory_space<vmem>>, vector<128x256xbf16>
    %c0_4 = arith.constant 0 : index
    %c0_5 = arith.constant 0 : index
    %5 = vector.load %arg4[%c0_4, %c0_5] : memref<256x128xbf16, #tpu.memory_space<vmem>>, vector<256x128xbf16>
    %cst = arith.constant dense<0.000000e+00> : vector<128x128xf32>
    %6 = tpu.matmul %4, %5, %cst {dimension_numbers = #tpu.dot_dimension_numbers<[1], [0], [0], [1], [0, 0, 1, 1], [], []>} : vector<128x256xbf16>, vector<256x128xbf16>, vector<128x128xf32> -> vector<128x128xf32>
    %7 = arith.addf %3, %6 : vector<128x128xf32>
    %c0_6 = arith.constant 0 : index
    %c0_7 = arith.constant 0 : index
    %8 = vector.load %arg8[%c0_6, %c0_7] : memref<128x128xf32, #tpu.memory_space<vmem>>, vector<128x128xf32>
    tpu.vector_store %arg8[%c0_6, %c0_7], %7 {strides = array<i32>} : memref<128x128xf32, #tpu.memory_space<vmem>>, vector<128x128xf32>,
    %c0_i32_8 = arith.constant 0 : i32
    %9 = arith.cmpi eq, %arg2, %c0_i32_8 : i32
    %10 = arith.extui %9 : i1 to i32
    %c0_i32_9 = arith.constant 0 : i32
    %11 = arith.cmpi ne, %10, %c0_i32_9 : i32
    scf.if %11 {
      %c0_10 = arith.constant 0 : index
      %c0_11 = arith.constant 0 : index
      %12 = vector.load %arg8[%c0_10, %c0_11] : memref<128x128xf32, #tpu.memory_space<vmem>>, vector<128x128xf32>
      %c0_12 = arith.constant 0 : index
      %c0_13 = arith.constant 0 : index
      %13 = vector.load %arg5[%c0_12, %c0_13] : memref<1x128xf32, #tpu.memory_space<vmem>>, vector<1x128xf32>
      %14 = vector.broadcast %13 : vector<1x128xf32> to vector<128x128xf32>
      %15 = arith.mulf %12, %14 : vector<128x128xf32>
      %c0_14 = arith.constant 0 : index
      %c0_15 = arith.constant 0 : index
      %16 = vector.load %arg6[%c0_14, %c0_15] : memref<1x128xf32, #tpu.memory_space<vmem>>, vector<1x128xf32>
      %17 = vector.broadcast %16 : vector<1x128xf32> to vector<128x128xf32>
      %18 = arith.addf %15, %17 : vector<128x128xf32>
      %cst_16 = arith.constant 0.000000e+00 : f32
      %19 = vector.broadcast %cst_16 : f32 to vector<128x128xf32>
      %20 = arith.maximumf %18, %19 : vector<128x128xf32>
      %c0_17 = arith.constant 0 : index
      %c0_18 = arith.constant 0 : index
      %21 = vector.load %arg7[%c0_17, %c0_18] : memref<128x128xf32, #tpu.memory_space<vmem>>, vector<128x128xf32>
      tpu.vector_store %arg7[%c0_17, %c0_18], %20 {strides = array<i32>} : memref<128x128xf32, #tpu.memory_space<vmem>>, vector<128x128xf32>,
    } else {
    }
    return
  }
  func.func @transform_0(%arg0: i32, %arg1: i32, %arg2: i32) -> (i32, i32) {
    %c0_i32 = arith.constant 0 : i32
    return %arg0, %arg2 : i32, i32
  }
  func.func @transform_1(%arg0: i32, %arg1: i32, %arg2: i32) -> (i32, i32) {
    %c0_i32 = arith.constant 0 : i32
    return %arg2, %arg1 : i32, i32
  }
  func.func @transform_2(%arg0: i32, %arg1: i32, %arg2: i32) -> (i32, i32) {
    %c0_i32 = arith.constant 0 : i32
    %c0_i32_0 = arith.constant 0 : i32
    return %c0_i32, %arg1 : i32, i32
  }
  func.func @transform_3(%arg0: i32, %arg1: i32, %arg2: i32) -> (i32, i32) {
    %c0_i32 = arith.constant 0 : i32
    %c0_i32_0 = arith.constant 0 : i32
    return %c0_i32, %arg1 : i32, i32
  }
  func.func @transform_4(%arg0: i32, %arg1: i32, %arg2: i32) -> (i32, i32) {
    %c0_i32 = arith.constant 0 : i32
    return %arg0, %arg1 : i32, i32
  }
}

module attributes {stable_mosaic.version = 11 : i64} {
  func.func @_gemm_kernel(%arg0: i32, %arg1: i32, %arg2: i32, %arg3: memref<128x512xbf16, #tpu.memory_space<vmem>>, %arg4: memref<512x128xbf16, #tpu.memory_space<vmem>>, %arg5: memref<1x128xf32, #tpu.memory_space<vmem>>, %arg6: memref<1x128xf32, #tpu.memory_space<vmem>>, %arg7: memref<128x128xf32, #tpu.memory_space<vmem>>, %arg8: memref<128x128xf32, #tpu.memory_space<vmem>>) attributes {dimension_semantics = [#tpu.dimension_semantics<parallel>, #tpu.dimension_semantics<parallel>, #tpu.dimension_semantics<arbitrary>], iteration_bounds = array<i64: 1, 1, 1>, scalar_prefetch = 0 : i64, scratch_operands = 1 : i64, tpu.core_type = #tpu.core_type<tc>, window_params = [{transform_indices = @transform_0, window_bounds = array<i64: 128, 512>}, {transform_indices = @transform_1, window_bounds = array<i64: 512, 128>}, {transform_indices = @transform_2, window_bounds = array<i64: 1, 128>}, {transform_indices = @transform_3, window_bounds = array<i64: 1, 128>}, {transform_indices = @transform_4, window_bounds = array<i64: 128, 128>}]} {
    %c0_i32 = arith.constant 0 : i32
    %0 = arith.cmpi eq, %arg2, %c0_i32 : i32
    %1 = arith.extui %0 : i1 to i32
    %c0_i32_0 = arith.constant 0 : i32
    %2 = arith.cmpi ne, %1, %c0_i32_0 : i32
    scf.if %2 {
      %cst_10 = arith.constant 0.000000e+00 : f32
      %12 = vector.broadcast %cst_10 : f32 to vector<128x128xf32>
      %c0_11 = arith.constant 0 : index
      %c0_12 = arith.constant 0 : index
      %13 = vector.load %arg8[%c0_11, %c0_12] : memref<128x128xf32, #tpu.memory_space<vmem>>, vector<128x128xf32>
      tpu.vector_store %arg8[%c0_11, %c0_12], %12 {strides = array<i32>} : memref<128x128xf32, #tpu.memory_space<vmem>>, vector<128x128xf32>,
    } else {
    }
    %c0 = arith.constant 0 : index
    %c0_1 = arith.constant 0 : index
    %3 = vector.load %arg8[%c0, %c0_1] : memref<128x128xf32, #tpu.memory_space<vmem>>, vector<128x128xf32>
    %c0_2 = arith.constant 0 : index
    %c0_3 = arith.constant 0 : index
    %4 = vector.load %arg3[%c0_2, %c0_3] : memref<128x512xbf16, #tpu.memory_space<vmem>>, vector<128x512xbf16>
    %c0_4 = arith.constant 0 : index
    %c0_5 = arith.constant 0 : index
    %5 = vector.load %arg4[%c0_4, %c0_5] : memref<512x128xbf16, #tpu.memory_space<vmem>>, vector<512x128xbf16>
    %cst = arith.constant dense<0.000000e+00> : vector<128x128xf32>
    %6 = tpu.matmul %4, %5, %cst {dimension_numbers = #tpu.dot_dimension_numbers<[1], [0], [0], [1], [0, 0, 1, 1], [], []>} : vector<128x512xbf16>, vector<512x128xbf16>, vector<128x128xf32> -> vector<128x128xf32>
    %7 = arith.addf %3, %6 : vector<128x128xf32>
    %c0_6 = arith.constant 0 : index
    %c0_7 = arith.constant 0 : index
    %8 = vector.load %arg8[%c0_6, %c0_7] : memref<128x128xf32, #tpu.memory_space<vmem>>, vector<128x128xf32>
    tpu.vector_store %arg8[%c0_6, %c0_7], %7 {strides = array<i32>} : memref<128x128xf32, #tpu.memory_space<vmem>>, vector<128x128xf32>,
    %c0_i32_8 = arith.constant 0 : i32
    %9 = arith.cmpi eq, %arg2, %c0_i32_8 : i32
    %10 = arith.extui %9 : i1 to i32
    %c0_i32_9 = arith.constant 0 : i32
    %11 = arith.cmpi ne, %10, %c0_i32_9 : i32
    scf.if %11 {
      %c0_10 = arith.constant 0 : index
      %c0_11 = arith.constant 0 : index
      %12 = vector.load %arg8[%c0_10, %c0_11] : memref<128x128xf32, #tpu.memory_space<vmem>>, vector<128x128xf32>
      %c0_12 = arith.constant 0 : index
      %c0_13 = arith.constant 0 : index
      %13 = vector.load %arg5[%c0_12, %c0_13] : memref<1x128xf32, #tpu.memory_space<vmem>>, vector<1x128xf32>
      %14 = vector.broadcast %13 : vector<1x128xf32> to vector<128x128xf32>
      %15 = arith.mulf %12, %14 : vector<128x128xf32>
      %c0_14 = arith.constant 0 : index
      %c0_15 = arith.constant 0 : index
      %16 = vector.load %arg6[%c0_14, %c0_15] : memref<1x128xf32, #tpu.memory_space<vmem>>, vector<1x128xf32>
      %17 = vector.broadcast %16 : vector<1x128xf32> to vector<128x128xf32>
      %18 = arith.addf %15, %17 : vector<128x128xf32>
      %cst_16 = arith.constant 0.000000e+00 : f32
      %19 = vector.broadcast %cst_16 : f32 to vector<128x128xf32>
      %20 = arith.maximumf %18, %19 : vector<128x128xf32>
      %c0_17 = arith.constant 0 : index
      %c0_18 = arith.constant 0 : index
      %21 = vector.load %arg7[%c0_17, %c0_18] : memref<128x128xf32, #tpu.memory_space<vmem>>, vector<128x128xf32>
      tpu.vector_store %arg7[%c0_17, %c0_18], %20 {strides = array<i32>} : memref<128x128xf32, #tpu.memory_space<vmem>>, vector<128x128xf32>,
    } else {
    }
    return
  }
  func.func @transform_0(%arg0: i32, %arg1: i32, %arg2: i32) -> (i32, i32) {
    %c0_i32 = arith.constant 0 : i32
    return %arg0, %arg2 : i32, i32
  }
  func.func @transform_1(%arg0: i32, %arg1: i32, %arg2: i32) -> (i32, i32) {
    %c0_i32 = arith.constant 0 : i32
    return %arg2, %arg1 : i32, i32
  }
  func.func @transform_2(%arg0: i32, %arg1: i32, %arg2: i32) -> (i32, i32) {
    %c0_i32 = arith.constant 0 : i32
    %c0_i32_0 = arith.constant 0 : i32
    return %c0_i32, %arg1 : i32, i32
  }
  func.func @transform_3(%arg0: i32, %arg1: i32, %arg2: i32) -> (i32, i32) {
    %c0_i32 = arith.constant 0 : i32
    %c0_i32_0 = arith.constant 0 : i32
    return %c0_i32, %arg1 : i32, i32
  }
  func.func @transform_4(%arg0: i32, %arg1: i32, %arg2: i32) -> (i32, i32) {
    %c0_i32 = arith.constant 0 : i32
    return %arg0, %arg1 : i32, i32
  }
}

module attributes {stable_mosaic.version = 11 : i64} {
  func.func @_gemm_kernel(%arg0: i32, %arg1: i32, %arg2: i32, %arg3: memref<128x128xbf16, #tpu.memory_space<vmem>>, %arg4: memref<128x512xbf16, #tpu.memory_space<vmem>>, %arg5: memref<1x512xf32, #tpu.memory_space<vmem>>, %arg6: memref<1x512xf32, #tpu.memory_space<vmem>>, %arg7: memref<128x512xf32, #tpu.memory_space<vmem>>, %arg8: memref<128x512xf32, #tpu.memory_space<vmem>>) attributes {dimension_semantics = [#tpu.dimension_semantics<parallel>, #tpu.dimension_semantics<parallel>, #tpu.dimension_semantics<arbitrary>], iteration_bounds = array<i64: 1, 2, 1>, scalar_prefetch = 0 : i64, scratch_operands = 1 : i64, tpu.core_type = #tpu.core_type<tc>, window_params = [{transform_indices = @transform_0, window_bounds = array<i64: 128, 128>}, {transform_indices = @transform_1, window_bounds = array<i64: 128, 512>}, {transform_indices = @transform_2, window_bounds = array<i64: 1, 512>}, {transform_indices = @transform_3, window_bounds = array<i64: 1, 512>}, {transform_indices = @transform_4, window_bounds = array<i64: 128, 512>}]} {
    %c0_i32 = arith.constant 0 : i32
    %0 = arith.cmpi eq, %arg2, %c0_i32 : i32
    %1 = arith.extui %0 : i1 to i32
    %c0_i32_0 = arith.constant 0 : i32
    %2 = arith.cmpi ne, %1, %c0_i32_0 : i32
    scf.if %2 {
      %cst_10 = arith.constant 0.000000e+00 : f32
      %12 = vector.broadcast %cst_10 : f32 to vector<128x512xf32>
      %c0_11 = arith.constant 0 : index
      %c0_12 = arith.constant 0 : index
      %13 = vector.load %arg8[%c0_11, %c0_12] : memref<128x512xf32, #tpu.memory_space<vmem>>, vector<128x512xf32>
      tpu.vector_store %arg8[%c0_11, %c0_12], %12 {strides = array<i32>} : memref<128x512xf32, #tpu.memory_space<vmem>>, vector<128x512xf32>,
    } else {
    }
    %c0 = arith.constant 0 : index
    %c0_1 = arith.constant 0 : index
    %3 = vector.load %arg8[%c0, %c0_1] : memref<128x512xf32, #tpu.memory_space<vmem>>, vector<128x512xf32>
    %c0_2 = arith.constant 0 : index
    %c0_3 = arith.constant 0 : index
    %4 = vector.load %arg3[%c0_2, %c0_3] : memref<128x128xbf16, #tpu.memory_space<vmem>>, vector<128x128xbf16>
    %c0_4 = arith.constant 0 : index
    %c0_5 = arith.constant 0 : index
    %5 = vector.load %arg4[%c0_4, %c0_5] : memref<128x512xbf16, #tpu.memory_space<vmem>>, vector<128x512xbf16>
    %cst = arith.constant dense<0.000000e+00> : vector<128x512xf32>
    %6 = tpu.matmul %4, %5, %cst {dimension_numbers = #tpu.dot_dimension_numbers<[1], [0], [0], [1], [0, 0, 1, 1], [], []>} : vector<128x128xbf16>, vector<128x512xbf16>, vector<128x512xf32> -> vector<128x512xf32>
    %7 = arith.addf %3, %6 : vector<128x512xf32>
    %c0_6 = arith.constant 0 : index
    %c0_7 = arith.constant 0 : index
    %8 = vector.load %arg8[%c0_6, %c0_7] : memref<128x512xf32, #tpu.memory_space<vmem>>, vector<128x512xf32>
    tpu.vector_store %arg8[%c0_6, %c0_7], %7 {strides = array<i32>} : memref<128x512xf32, #tpu.memory_space<vmem>>, vector<128x512xf32>,
    %c0_i32_8 = arith.constant 0 : i32
    %9 = arith.cmpi eq, %arg2, %c0_i32_8 : i32
    %10 = arith.extui %9 : i1 to i32
    %c0_i32_9 = arith.constant 0 : i32
    %11 = arith.cmpi ne, %10, %c0_i32_9 : i32
    scf.if %11 {
      %c0_10 = arith.constant 0 : index
      %c0_11 = arith.constant 0 : index
      %12 = vector.load %arg8[%c0_10, %c0_11] : memref<128x512xf32, #tpu.memory_space<vmem>>, vector<128x512xf32>
      %c0_12 = arith.constant 0 : index
      %c0_13 = arith.constant 0 : index
      %13 = vector.load %arg5[%c0_12, %c0_13] : memref<1x512xf32, #tpu.memory_space<vmem>>, vector<1x512xf32>
      %14 = vector.broadcast %13 : vector<1x512xf32> to vector<128x512xf32>
      %15 = arith.mulf %12, %14 : vector<128x512xf32>
      %c0_14 = arith.constant 0 : index
      %c0_15 = arith.constant 0 : index
      %16 = vector.load %arg6[%c0_14, %c0_15] : memref<1x512xf32, #tpu.memory_space<vmem>>, vector<1x512xf32>
      %17 = vector.broadcast %16 : vector<1x512xf32> to vector<128x512xf32>
      %18 = arith.addf %15, %17 : vector<128x512xf32>
      %c0_16 = arith.constant 0 : index
      %c0_17 = arith.constant 0 : index
      %19 = vector.load %arg7[%c0_16, %c0_17] : memref<128x512xf32, #tpu.memory_space<vmem>>, vector<128x512xf32>
      tpu.vector_store %arg7[%c0_16, %c0_17], %18 {strides = array<i32>} : memref<128x512xf32, #tpu.memory_space<vmem>>, vector<128x512xf32>,
    } else {
    }
    return
  }
  func.func @transform_0(%arg0: i32, %arg1: i32, %arg2: i32) -> (i32, i32) {
    %c0_i32 = arith.constant 0 : i32
    return %arg0, %arg2 : i32, i32
  }
  func.func @transform_1(%arg0: i32, %arg1: i32, %arg2: i32) -> (i32, i32) {
    %c0_i32 = arith.constant 0 : i32
    return %arg2, %arg1 : i32, i32
  }
  func.func @transform_2(%arg0: i32, %arg1: i32, %arg2: i32) -> (i32, i32) {
    %c0_i32 = arith.constant 0 : i32
    %c0_i32_0 = arith.constant 0 : i32
    return %c0_i32, %arg1 : i32, i32
  }
  func.func @transform_3(%arg0: i32, %arg1: i32, %arg2: i32) -> (i32, i32) {
    %c0_i32 = arith.constant 0 : i32
    %c0_i32_0 = arith.constant 0 : i32
    return %c0_i32, %arg1 : i32, i32
  }
  func.func @transform_4(%arg0: i32, %arg1: i32, %arg2: i32) -> (i32, i32) {
    %c0_i32 = arith.constant 0 : i32
    return %arg0, %arg1 : i32, i32
  }
}

module attributes {stable_mosaic.version = 11 : i64} {
  func.func @_bilstm_kernel(%arg0: memref<4x2x1024xf32, #tpu.memory_space<vmem>>, %arg1: memref<128x512xf32, #tpu.memory_space<vmem>>, %arg2: memref<128x512xf32, #tpu.memory_space<vmem>>, %arg3: memref<4x2x256xf32, #tpu.memory_space<vmem>>) attributes {dimension_semantics = [], scalar_prefetch = 0 : i64, scratch_operands = 0 : i64, tpu.core_type = #tpu.core_type<tc>} {
    %cst = arith.constant 0.000000e+00 : f32
    %0 = vector.broadcast %cst : f32 to vector<2x128xf32>
    %c0_i32 = arith.constant 0 : i32
    %c3_i32 = arith.constant 3 : i32
    %1 = arith.subi %c3_i32, %c0_i32 : i32
    %2 = arith.index_cast %c0_i32 : i32 to index
    %c0 = arith.constant 0 : index
    %c0_0 = arith.constant 0 : index
    %3 = vector.load %arg0[%2, %c0, %c0_0] : memref<4x2x1024xf32, #tpu.memory_space<vmem>>, vector<1x2x1024xf32>
    %4 = vector.shape_cast %3 : vector<1x2x1024xf32> to vector<2x1024xf32>
    %5 = vector.extract_strided_slice %4 {offsets = [0, 0], sizes = [2, 512], strides = [1, 1]} : vector<2x1024xf32> to vector<2x512xf32>
    %c0_1 = arith.constant 0 : index
    %c0_2 = arith.constant 0 : index
    %6 = vector.load %arg1[%c0_1, %c0_2] : memref<128x512xf32, #tpu.memory_space<vmem>>, vector<128x512xf32>
    %cst_3 = arith.constant dense<0.000000e+00> : vector<2x512xf32>
    %7 = tpu.matmul %0, %6, %cst_3 {dimension_numbers = #tpu.dot_dimension_numbers<[1], [0], [0], [1], [0, 0, 1, 1], [], []>} : vector<2x128xf32>, vector<128x512xf32>, vector<2x512xf32> -> vector<2x512xf32>
    %8 = arith.addf %5, %7 : vector<2x512xf32>
    %9 = arith.index_cast %1 : i32 to index
    %c0_4 = arith.constant 0 : index
    %c0_5 = arith.constant 0 : index
    %10 = vector.load %arg0[%9, %c0_4, %c0_5] : memref<4x2x1024xf32, #tpu.memory_space<vmem>>, vector<1x2x1024xf32>
    %11 = vector.shape_cast %10 : vector<1x2x1024xf32> to vector<2x1024xf32>
    %12 = vector.extract_strided_slice %11 {offsets = [0, 512], sizes = [2, 512], strides = [1, 1]} : vector<2x1024xf32> to vector<2x512xf32>
    %c0_6 = arith.constant 0 : index
    %c0_7 = arith.constant 0 : index
    %13 = vector.load %arg2[%c0_6, %c0_7] : memref<128x512xf32, #tpu.memory_space<vmem>>, vector<128x512xf32>
    %cst_8 = arith.constant dense<0.000000e+00> : vector<2x512xf32>
    %14 = tpu.matmul %0, %13, %cst_8 {dimension_numbers = #tpu.dot_dimension_numbers<[1], [0], [0], [1], [0, 0, 1, 1], [], []>} : vector<2x128xf32>, vector<128x512xf32>, vector<2x512xf32> -> vector<2x512xf32>
    %15 = arith.addf %12, %14 : vector<2x512xf32>
    %16 = vector.extract_strided_slice %8 {offsets = [0, 0], sizes = [2, 128], strides = [1, 1]} : vector<2x512xf32> to vector<2x128xf32>
    %17 = arith.negf %16 : vector<2x128xf32>
    %18 = math.exp %17 : vector<2x128xf32>
    %cst_9 = arith.constant 1.000000e+00 : f32
    %19 = vector.broadcast %cst_9 : f32 to vector<2x128xf32>
    %20 = arith.addf %19, %18 : vector<2x128xf32>
    %21 = arith.divf %19, %20 : vector<2x128xf32>
    %22 = vector.extract_strided_slice %8 {offsets = [0, 128], sizes = [2, 128], strides = [1, 1]} : vector<2x512xf32> to vector<2x128xf32>
    %23 = arith.negf %22 : vector<2x128xf32>
    %24 = math.exp %23 : vector<2x128xf32>
    %cst_10 = arith.constant 1.000000e+00 : f32
    %25 = vector.broadcast %cst_10 : f32 to vector<2x128xf32>
    %26 = arith.addf %25, %24 : vector<2x128xf32>
    %27 = arith.divf %25, %26 : vector<2x128xf32>
    %28 = vector.extract_strided_slice %8 {offsets = [0, 256], sizes = [2, 128], strides = [1, 1]} : vector<2x512xf32> to vector<2x128xf32>
    %29 = math.tanh %28 : vector<2x128xf32>
    %30 = vector.extract_strided_slice %8 {offsets = [0, 384], sizes = [2, 128], strides = [1, 1]} : vector<2x512xf32> to vector<2x128xf32>
    %31 = arith.negf %30 : vector<2x128xf32>
    %32 = math.exp %31 : vector<2x128xf32>
    %cst_11 = arith.constant 1.000000e+00 : f32
    %33 = vector.broadcast %cst_11 : f32 to vector<2x128xf32>
    %34 = arith.addf %33, %32 : vector<2x128xf32>
    %35 = arith.divf %33, %34 : vector<2x128xf32>
    %36 = arith.mulf %27, %0 : vector<2x128xf32>
    %37 = arith.mulf %21, %29 : vector<2x128xf32>
    %38 = arith.addf %36, %37 : vector<2x128xf32>
    %39 = math.tanh %38 : vector<2x128xf32>
    %40 = arith.mulf %35, %39 : vector<2x128xf32>
    %41 = vector.extract_strided_slice %15 {offsets = [0, 0], sizes = [2, 128], strides = [1, 1]} : vector<2x512xf32> to vector<2x128xf32>
    %42 = arith.negf %41 : vector<2x128xf32>
    %43 = math.exp %42 : vector<2x128xf32>
    %cst_12 = arith.constant 1.000000e+00 : f32
    %44 = vector.broadcast %cst_12 : f32 to vector<2x128xf32>
    %45 = arith.addf %44, %43 : vector<2x128xf32>
    %46 = arith.divf %44, %45 : vector<2x128xf32>
    %47 = vector.extract_strided_slice %15 {offsets = [0, 128], sizes = [2, 128], strides = [1, 1]} : vector<2x512xf32> to vector<2x128xf32>
    %48 = arith.negf %47 : vector<2x128xf32>
    %49 = math.exp %48 : vector<2x128xf32>
    %cst_13 = arith.constant 1.000000e+00 : f32
    %50 = vector.broadcast %cst_13 : f32 to vector<2x128xf32>
    %51 = arith.addf %50, %49 : vector<2x128xf32>
    %52 = arith.divf %50, %51 : vector<2x128xf32>
    %53 = vector.extract_strided_slice %15 {offsets = [0, 256], sizes = [2, 128], strides = [1, 1]} : vector<2x512xf32> to vector<2x128xf32>
    %54 = math.tanh %53 : vector<2x128xf32>
    %55 = vector.extract_strided_slice %15 {offsets = [0, 384], sizes = [2, 128], strides = [1, 1]} : vector<2x512xf32> to vector<2x128xf32>
    %56 = arith.negf %55 : vector<2x128xf32>
    %57 = math.exp %56 : vector<2x128xf32>
    %cst_14 = arith.constant 1.000000e+00 : f32
    %58 = vector.broadcast %cst_14 : f32 to vector<2x128xf32>
    %59 = arith.addf %58, %57 : vector<2x128xf32>
    %60 = arith.divf %58, %59 : vector<2x128xf32>
    %61 = arith.mulf %52, %0 : vector<2x128xf32>
    %62 = arith.mulf %46, %54 : vector<2x128xf32>
    %63 = arith.addf %61, %62 : vector<2x128xf32>
    %64 = math.tanh %63 : vector<2x128xf32>
    %65 = arith.mulf %60, %64 : vector<2x128xf32>
    %66 = vector.shape_cast %40 : vector<2x128xf32> to vector<1x2x128xf32>
    %67 = arith.index_cast %c0_i32 : i32 to index
    %c0_15 = arith.constant 0 : index
    %c0_16 = arith.constant 0 : index
    %68 = vector.load %arg3[%67, %c0_15, %c0_16] : memref<4x2x256xf32, #tpu.memory_space<vmem>>, vector<1x2x128xf32>
    tpu.vector_store %arg3[%67, %c0_15, %c0_16], %66 {strides = array<i32>} : memref<4x2x256xf32, #tpu.memory_space<vmem>>, vector<1x2x128xf32>,
    %69 = vector.shape_cast %65 : vector<2x128xf32> to vector<1x2x128xf32>
    %70 = arith.index_cast %1 : i32 to index
    %c0_17 = arith.constant 0 : index
    %c128 = arith.constant 128 : index
    %71 = vector.load %arg3[%70, %c0_17, %c128] : memref<4x2x256xf32, #tpu.memory_space<vmem>>, vector<1x2x128xf32>
    tpu.vector_store %arg3[%70, %c0_17, %c128], %69 {strides = array<i32>} : memref<4x2x256xf32, #tpu.memory_space<vmem>>, vector<1x2x128xf32>,
    %c1_i32 = arith.constant 1 : i32
    %c3_i32_18 = arith.constant 3 : i32
    %72 = arith.subi %c3_i32_18, %c1_i32 : i32
    %73 = arith.index_cast %c1_i32 : i32 to index
    %c0_19 = arith.constant 0 : index
    %c0_20 = arith.constant 0 : index
    %74 = vector.load %arg0[%73, %c0_19, %c0_20] : memref<4x2x1024xf32, #tpu.memory_space<vmem>>, vector<1x2x1024xf32>
    %75 = vector.shape_cast %74 : vector<1x2x1024xf32> to vector<2x1024xf32>
    %76 = vector.extract_strided_slice %75 {offsets = [0, 0], sizes = [2, 512], strides = [1, 1]} : vector<2x1024xf32> to vector<2x512xf32>
    %c0_21 = arith.constant 0 : index
    %c0_22 = arith.constant 0 : index
    %77 = vector.load %arg1[%c0_21, %c0_22] : memref<128x512xf32, #tpu.memory_space<vmem>>, vector<128x512xf32>
    %cst_23 = arith.constant dense<0.000000e+00> : vector<2x512xf32>
    %78 = tpu.matmul %40, %77, %cst_23 {dimension_numbers = #tpu.dot_dimension_numbers<[1], [0], [0], [1], [0, 0, 1, 1], [], []>} : vector<2x128xf32>, vector<128x512xf32>, vector<2x512xf32> -> vector<2x512xf32>
    %79 = arith.addf %76, %78 : vector<2x512xf32>
    %80 = arith.index_cast %72 : i32 to index
    %c0_24 = arith.constant 0 : index
    %c0_25 = arith.constant 0 : index
    %81 = vector.load %arg0[%80, %c0_24, %c0_25] : memref<4x2x1024xf32, #tpu.memory_space<vmem>>, vector<1x2x1024xf32>
    %82 = vector.shape_cast %81 : vector<1x2x1024xf32> to vector<2x1024xf32>
    %83 = vector.extract_strided_slice %82 {offsets = [0, 512], sizes = [2, 512], strides = [1, 1]} : vector<2x1024xf32> to vector<2x512xf32>
    %c0_26 = arith.constant 0 : index
    %c0_27 = arith.constant 0 : index
    %84 = vector.load %arg2[%c0_26, %c0_27] : memref<128x512xf32, #tpu.memory_space<vmem>>, vector<128x512xf32>
    %cst_28 = arith.constant dense<0.000000e+00> : vector<2x512xf32>
    %85 = tpu.matmul %65, %84, %cst_28 {dimension_numbers = #tpu.dot_dimension_numbers<[1], [0], [0], [1], [0, 0, 1, 1], [], []>} : vector<2x128xf32>, vector<128x512xf32>, vector<2x512xf32> -> vector<2x512xf32>
    %86 = arith.addf %83, %85 : vector<2x512xf32>
    %87 = vector.extract_strided_slice %79 {offsets = [0, 0], sizes = [2, 128], strides = [1, 1]} : vector<2x512xf32> to vector<2x128xf32>
    %88 = arith.negf %87 : vector<2x128xf32>
    %89 = math.exp %88 : vector<2x128xf32>
    %cst_29 = arith.constant 1.000000e+00 : f32
    %90 = vector.broadcast %cst_29 : f32 to vector<2x128xf32>
    %91 = arith.addf %90, %89 : vector<2x128xf32>
    %92 = arith.divf %90, %91 : vector<2x128xf32>
    %93 = vector.extract_strided_slice %79 {offsets = [0, 128], sizes = [2, 128], strides = [1, 1]} : vector<2x512xf32> to vector<2x128xf32>
    %94 = arith.negf %93 : vector<2x128xf32>
    %95 = math.exp %94 : vector<2x128xf32>
    %cst_30 = arith.constant 1.000000e+00 : f32
    %96 = vector.broadcast %cst_30 : f32 to vector<2x128xf32>
    %97 = arith.addf %96, %95 : vector<2x128xf32>
    %98 = arith.divf %96, %97 : vector<2x128xf32>
    %99 = vector.extract_strided_slice %79 {offsets = [0, 256], sizes = [2, 128], strides = [1, 1]} : vector<2x512xf32> to vector<2x128xf32>
    %100 = math.tanh %99 : vector<2x128xf32>
    %101 = vector.extract_strided_slice %79 {offsets = [0, 384], sizes = [2, 128], strides = [1, 1]} : vector<2x512xf32> to vector<2x128xf32>
    %102 = arith.negf %101 : vector<2x128xf32>
    %103 = math.exp %102 : vector<2x128xf32>
    %cst_31 = arith.constant 1.000000e+00 : f32
    %104 = vector.broadcast %cst_31 : f32 to vector<2x128xf32>
    %105 = arith.addf %104, %103 : vector<2x128xf32>
    %106 = arith.divf %104, %105 : vector<2x128xf32>
    %107 = arith.mulf %98, %38 : vector<2x128xf32>
    %108 = arith.mulf %92, %100 : vector<2x128xf32>
    %109 = arith.addf %107, %108 : vector<2x128xf32>
    %110 = math.tanh %109 : vector<2x128xf32>
    %111 = arith.mulf %106, %110 : vector<2x128xf32>
    %112 = vector.extract_strided_slice %86 {offsets = [0, 0], sizes = [2, 128], strides = [1, 1]} : vector<2x512xf32> to vector<2x128xf32>
    %113 = arith.negf %112 : vector<2x128xf32>
    %114 = math.exp %113 : vector<2x128xf32>
    %cst_32 = arith.constant 1.000000e+00 : f32
    %115 = vector.broadcast %cst_32 : f32 to vector<2x128xf32>
    %116 = arith.addf %115, %114 : vector<2x128xf32>
    %117 = arith.divf %115, %116 : vector<2x128xf32>
    %118 = vector.extract_strided_slice %86 {offsets = [0, 128], sizes = [2, 128], strides = [1, 1]} : vector<2x512xf32> to vector<2x128xf32>
    %119 = arith.negf %118 : vector<2x128xf32>
    %120 = math.exp %119 : vector<2x128xf32>
    %cst_33 = arith.constant 1.000000e+00 : f32
    %121 = vector.broadcast %cst_33 : f32 to vector<2x128xf32>
    %122 = arith.addf %121, %120 : vector<2x128xf32>
    %123 = arith.divf %121, %122 : vector<2x128xf32>
    %124 = vector.extract_strided_slice %86 {offsets = [0, 256], sizes = [2, 128], strides = [1, 1]} : vector<2x512xf32> to vector<2x128xf32>
    %125 = math.tanh %124 : vector<2x128xf32>
    %126 = vector.extract_strided_slice %86 {offsets = [0, 384], sizes = [2, 128], strides = [1, 1]} : vector<2x512xf32> to vector<2x128xf32>
    %127 = arith.negf %126 : vector<2x128xf32>
    %128 = math.exp %127 : vector<2x128xf32>
    %cst_34 = arith.constant 1.000000e+00 : f32
    %129 = vector.broadcast %cst_34 : f32 to vector<2x128xf32>
    %130 = arith.addf %129, %128 : vector<2x128xf32>
    %131 = arith.divf %129, %130 : vector<2x128xf32>
    %132 = arith.mulf %123, %63 : vector<2x128xf32>
    %133 = arith.mulf %117, %125 : vector<2x128xf32>
    %134 = arith.addf %132, %133 : vector<2x128xf32>
    %135 = math.tanh %134 : vector<2x128xf32>
    %136 = arith.mulf %131, %135 : vector<2x128xf32>
    %137 = vector.shape_cast %111 : vector<2x128xf32> to vector<1x2x128xf32>
    %138 = arith.index_cast %c1_i32 : i32 to index
    %c0_35 = arith.constant 0 : index
    %c0_36 = arith.constant 0 : index
    %139 = vector.load %arg3[%138, %c0_35, %c0_36] : memref<4x2x256xf32, #tpu.memory_space<vmem>>, vector<1x2x128xf32>
    tpu.vector_store %arg3[%138, %c0_35, %c0_36], %137 {strides = array<i32>} : memref<4x2x256xf32, #tpu.memory_space<vmem>>, vector<1x2x128xf32>,
    %140 = vector.shape_cast %136 : vector<2x128xf32> to vector<1x2x128xf32>
    %141 = arith.index_cast %72 : i32 to index
    %c0_37 = arith.constant 0 : index
    %c128_38 = arith.constant 128 : index
    %142 = vector.load %arg3[%141, %c0_37, %c128_38] : memref<4x2x256xf32, #tpu.memory_space<vmem>>, vector<1x2x128xf32>
    tpu.vector_store %arg3[%141, %c0_37, %c128_38], %140 {strides = array<i32>} : memref<4x2x256xf32, #tpu.memory_space<vmem>>, vector<1x2x128xf32>,
    %c2_i32 = arith.constant 2 : i32
    %c3_i32_39 = arith.constant 3 : i32
    %143 = arith.subi %c3_i32_39, %c2_i32 : i32
    %144 = arith.index_cast %c2_i32 : i32 to index
    %c0_40 = arith.constant 0 : index
    %c0_41 = arith.constant 0 : index
    %145 = vector.load %arg0[%144, %c0_40, %c0_41] : memref<4x2x1024xf32, #tpu.memory_space<vmem>>, vector<1x2x1024xf32>
    %146 = vector.shape_cast %145 : vector<1x2x1024xf32> to vector<2x1024xf32>
    %147 = vector.extract_strided_slice %146 {offsets = [0, 0], sizes = [2, 512], strides = [1, 1]} : vector<2x1024xf32> to vector<2x512xf32>
    %c0_42 = arith.constant 0 : index
    %c0_43 = arith.constant 0 : index
    %148 = vector.load %arg1[%c0_42, %c0_43] : memref<128x512xf32, #tpu.memory_space<vmem>>, vector<128x512xf32>
    %cst_44 = arith.constant dense<0.000000e+00> : vector<2x512xf32>
    %149 = tpu.matmul %111, %148, %cst_44 {dimension_numbers = #tpu.dot_dimension_numbers<[1], [0], [0], [1], [0, 0, 1, 1], [], []>} : vector<2x128xf32>, vector<128x512xf32>, vector<2x512xf32> -> vector<2x512xf32>
    %150 = arith.addf %147, %149 : vector<2x512xf32>
    %151 = arith.index_cast %143 : i32 to index
    %c0_45 = arith.constant 0 : index
    %c0_46 = arith.constant 0 : index
    %152 = vector.load %arg0[%151, %c0_45, %c0_46] : memref<4x2x1024xf32, #tpu.memory_space<vmem>>, vector<1x2x1024xf32>
    %153 = vector.shape_cast %152 : vector<1x2x1024xf32> to vector<2x1024xf32>
    %154 = vector.extract_strided_slice %153 {offsets = [0, 512], sizes = [2, 512], strides = [1, 1]} : vector<2x1024xf32> to vector<2x512xf32>
    %c0_47 = arith.constant 0 : index
    %c0_48 = arith.constant 0 : index
    %155 = vector.load %arg2[%c0_47, %c0_48] : memref<128x512xf32, #tpu.memory_space<vmem>>, vector<128x512xf32>
    %cst_49 = arith.constant dense<0.000000e+00> : vector<2x512xf32>
    %156 = tpu.matmul %136, %155, %cst_49 {dimension_numbers = #tpu.dot_dimension_numbers<[1], [0], [0], [1], [0, 0, 1, 1], [], []>} : vector<2x128xf32>, vector<128x512xf32>, vector<2x512xf32> -> vector<2x512xf32>
    %157 = arith.addf %154, %156 : vector<2x512xf32>
    %158 = vector.extract_strided_slice %150 {offsets = [0, 0], sizes = [2, 128], strides = [1, 1]} : vector<2x512xf32> to vector<2x128xf32>
    %159 = arith.negf %158 : vector<2x128xf32>
    %160 = math.exp %159 : vector<2x128xf32>
    %cst_50 = arith.constant 1.000000e+00 : f32
    %161 = vector.broadcast %cst_50 : f32 to vector<2x128xf32>
    %162 = arith.addf %161, %160 : vector<2x128xf32>
    %163 = arith.divf %161, %162 : vector<2x128xf32>
    %164 = vector.extract_strided_slice %150 {offsets = [0, 128], sizes = [2, 128], strides = [1, 1]} : vector<2x512xf32> to vector<2x128xf32>
    %165 = arith.negf %164 : vector<2x128xf32>
    %166 = math.exp %165 : vector<2x128xf32>
    %cst_51 = arith.constant 1.000000e+00 : f32
    %167 = vector.broadcast %cst_51 : f32 to vector<2x128xf32>
    %168 = arith.addf %167, %166 : vector<2x128xf32>
    %169 = arith.divf %167, %168 : vector<2x128xf32>
    %170 = vector.extract_strided_slice %150 {offsets = [0, 256], sizes = [2, 128], strides = [1, 1]} : vector<2x512xf32> to vector<2x128xf32>
    %171 = math.tanh %170 : vector<2x128xf32>
    %172 = vector.extract_strided_slice %150 {offsets = [0, 384], sizes = [2, 128], strides = [1, 1]} : vector<2x512xf32> to vector<2x128xf32>
    %173 = arith.negf %172 : vector<2x128xf32>
    %174 = math.exp %173 : vector<2x128xf32>
    %cst_52 = arith.constant 1.000000e+00 : f32
    %175 = vector.broadcast %cst_52 : f32 to vector<2x128xf32>
    %176 = arith.addf %175, %174 : vector<2x128xf32>
    %177 = arith.divf %175, %176 : vector<2x128xf32>
    %178 = arith.mulf %169, %109 : vector<2x128xf32>
    %179 = arith.mulf %163, %171 : vector<2x128xf32>
    %180 = arith.addf %178, %179 : vector<2x128xf32>
    %181 = math.tanh %180 : vector<2x128xf32>
    %182 = arith.mulf %177, %181 : vector<2x128xf32>
    %183 = vector.extract_strided_slice %157 {offsets = [0, 0], sizes = [2, 128], strides = [1, 1]} : vector<2x512xf32> to vector<2x128xf32>
    %184 = arith.negf %183 : vector<2x128xf32>
    %185 = math.exp %184 : vector<2x128xf32>
    %cst_53 = arith.constant 1.000000e+00 : f32
    %186 = vector.broadcast %cst_53 : f32 to vector<2x128xf32>
    %187 = arith.addf %186, %185 : vector<2x128xf32>
    %188 = arith.divf %186, %187 : vector<2x128xf32>
    %189 = vector.extract_strided_slice %157 {offsets = [0, 128], sizes = [2, 128], strides = [1, 1]} : vector<2x512xf32> to vector<2x128xf32>
    %190 = arith.negf %189 : vector<2x128xf32>
    %191 = math.exp %190 : vector<2x128xf32>
    %cst_54 = arith.constant 1.000000e+00 : f32
    %192 = vector.broadcast %cst_54 : f32 to vector<2x128xf32>
    %193 = arith.addf %192, %191 : vector<2x128xf32>
    %194 = arith.divf %192, %193 : vector<2x128xf32>
    %195 = vector.extract_strided_slice %157 {offsets = [0, 256], sizes = [2, 128], strides = [1, 1]} : vector<2x512xf32> to vector<2x128xf32>
    %196 = math.tanh %195 : vector<2x128xf32>
    %197 = vector.extract_strided_slice %157 {offsets = [0, 384], sizes = [2, 128], strides = [1, 1]} : vector<2x512xf32> to vector<2x128xf32>
    %198 = arith.negf %197 : vector<2x128xf32>
    %199 = math.exp %198 : vector<2x128xf32>
    %cst_55 = arith.constant 1.000000e+00 : f32
    %200 = vector.broadcast %cst_55 : f32 to vector<2x128xf32>
    %201 = arith.addf %200, %199 : vector<2x128xf32>
    %202 = arith.divf %200, %201 : vector<2x128xf32>
    %203 = arith.mulf %194, %134 : vector<2x128xf32>
    %204 = arith.mulf %188, %196 : vector<2x128xf32>
    %205 = arith.addf %203, %204 : vector<2x128xf32>
    %206 = math.tanh %205 : vector<2x128xf32>
    %207 = arith.mulf %202, %206 : vector<2x128xf32>
    %208 = vector.shape_cast %182 : vector<2x128xf32> to vector<1x2x128xf32>
    %209 = arith.index_cast %c2_i32 : i32 to index
    %c0_56 = arith.constant 0 : index
    %c0_57 = arith.constant 0 : index
    %210 = vector.load %arg3[%209, %c0_56, %c0_57] : memref<4x2x256xf32, #tpu.memory_space<vmem>>, vector<1x2x128xf32>
    tpu.vector_store %arg3[%209, %c0_56, %c0_57], %208 {strides = array<i32>} : memref<4x2x256xf32, #tpu.memory_space<vmem>>, vector<1x2x128xf32>,
    %211 = vector.shape_cast %207 : vector<2x128xf32> to vector<1x2x128xf32>
    %212 = arith.index_cast %143 : i32 to index
    %c0_58 = arith.constant 0 : index
    %c128_59 = arith.constant 128 : index
    %213 = vector.load %arg3[%212, %c0_58, %c128_59] : memref<4x2x256xf32, #tpu.memory_space<vmem>>, vector<1x2x128xf32>
    tpu.vector_store %arg3[%212, %c0_58, %c128_59], %211 {strides = array<i32>} : memref<4x2x256xf32, #tpu.memory_space<vmem>>, vector<1x2x128xf32>,
    %c3_i32_60 = arith.constant 3 : i32
    %c3_i32_61 = arith.constant 3 : i32
    %214 = arith.subi %c3_i32_61, %c3_i32_60 : i32
    %215 = arith.index_cast %c3_i32_60 : i32 to index
    %c0_62 = arith.constant 0 : index
    %c0_63 = arith.constant 0 : index
    %216 = vector.load %arg0[%215, %c0_62, %c0_63] : memref<4x2x1024xf32, #tpu.memory_space<vmem>>, vector<1x2x1024xf32>
    %217 = vector.shape_cast %216 : vector<1x2x1024xf32> to vector<2x1024xf32>
    %218 = vector.extract_strided_slice %217 {offsets = [0, 0], sizes = [2, 512], strides = [1, 1]} : vector<2x1024xf32> to vector<2x512xf32>
    %c0_64 = arith.constant 0 : index
    %c0_65 = arith.constant 0 : index
    %219 = vector.load %arg1[%c0_64, %c0_65] : memref<128x512xf32, #tpu.memory_space<vmem>>, vector<128x512xf32>
    %cst_66 = arith.constant dense<0.000000e+00> : vector<2x512xf32>
    %220 = tpu.matmul %182, %219, %cst_66 {dimension_numbers = #tpu.dot_dimension_numbers<[1], [0], [0], [1], [0, 0, 1, 1], [], []>} : vector<2x128xf32>, vector<128x512xf32>, vector<2x512xf32> -> vector<2x512xf32>
    %221 = arith.addf %218, %220 : vector<2x512xf32>
    %222 = arith.index_cast %214 : i32 to index
    %c0_67 = arith.constant 0 : index
    %c0_68 = arith.constant 0 : index
    %223 = vector.load %arg0[%222, %c0_67, %c0_68] : memref<4x2x1024xf32, #tpu.memory_space<vmem>>, vector<1x2x1024xf32>
    %224 = vector.shape_cast %223 : vector<1x2x1024xf32> to vector<2x1024xf32>
    %225 = vector.extract_strided_slice %224 {offsets = [0, 512], sizes = [2, 512], strides = [1, 1]} : vector<2x1024xf32> to vector<2x512xf32>
    %c0_69 = arith.constant 0 : index
    %c0_70 = arith.constant 0 : index
    %226 = vector.load %arg2[%c0_69, %c0_70] : memref<128x512xf32, #tpu.memory_space<vmem>>, vector<128x512xf32>
    %cst_71 = arith.constant dense<0.000000e+00> : vector<2x512xf32>
    %227 = tpu.matmul %207, %226, %cst_71 {dimension_numbers = #tpu.dot_dimension_numbers<[1], [0], [0], [1], [0, 0, 1, 1], [], []>} : vector<2x128xf32>, vector<128x512xf32>, vector<2x512xf32> -> vector<2x512xf32>
    %228 = arith.addf %225, %227 : vector<2x512xf32>
    %229 = vector.extract_strided_slice %221 {offsets = [0, 0], sizes = [2, 128], strides = [1, 1]} : vector<2x512xf32> to vector<2x128xf32>
    %230 = arith.negf %229 : vector<2x128xf32>
    %231 = math.exp %230 : vector<2x128xf32>
    %cst_72 = arith.constant 1.000000e+00 : f32
    %232 = vector.broadcast %cst_72 : f32 to vector<2x128xf32>
    %233 = arith.addf %232, %231 : vector<2x128xf32>
    %234 = arith.divf %232, %233 : vector<2x128xf32>
    %235 = vector.extract_strided_slice %221 {offsets = [0, 128], sizes = [2, 128], strides = [1, 1]} : vector<2x512xf32> to vector<2x128xf32>
    %236 = arith.negf %235 : vector<2x128xf32>
    %237 = math.exp %236 : vector<2x128xf32>
    %cst_73 = arith.constant 1.000000e+00 : f32
    %238 = vector.broadcast %cst_73 : f32 to vector<2x128xf32>
    %239 = arith.addf %238, %237 : vector<2x128xf32>
    %240 = arith.divf %238, %239 : vector<2x128xf32>
    %241 = vector.extract_strided_slice %221 {offsets = [0, 256], sizes = [2, 128], strides = [1, 1]} : vector<2x512xf32> to vector<2x128xf32>
    %242 = math.tanh %241 : vector<2x128xf32>
    %243 = vector.extract_strided_slice %221 {offsets = [0, 384], sizes = [2, 128], strides = [1, 1]} : vector<2x512xf32> to vector<2x128xf32>
    %244 = arith.negf %243 : vector<2x128xf32>
    %245 = math.exp %244 : vector<2x128xf32>
    %cst_74 = arith.constant 1.000000e+00 : f32
    %246 = vector.broadcast %cst_74 : f32 to vector<2x128xf32>
    %247 = arith.addf %246, %245 : vector<2x128xf32>
    %248 = arith.divf %246, %247 : vector<2x128xf32>
    %249 = arith.mulf %240, %180 : vector<2x128xf32>
    %250 = arith.mulf %234, %242 : vector<2x128xf32>
    %251 = arith.addf %249, %250 : vector<2x128xf32>
    %252 = math.tanh %251 : vector<2x128xf32>
    %253 = arith.mulf %248, %252 : vector<2x128xf32>
    %254 = vector.extract_strided_slice %228 {offsets = [0, 0], sizes = [2, 128], strides = [1, 1]} : vector<2x512xf32> to vector<2x128xf32>
    %255 = arith.negf %254 : vector<2x128xf32>
    %256 = math.exp %255 : vector<2x128xf32>
    %cst_75 = arith.constant 1.000000e+00 : f32
    %257 = vector.broadcast %cst_75 : f32 to vector<2x128xf32>
    %258 = arith.addf %257, %256 : vector<2x128xf32>
    %259 = arith.divf %257, %258 : vector<2x128xf32>
    %260 = vector.extract_strided_slice %228 {offsets = [0, 128], sizes = [2, 128], strides = [1, 1]} : vector<2x512xf32> to vector<2x128xf32>
    %261 = arith.negf %260 : vector<2x128xf32>
    %262 = math.exp %261 : vector<2x128xf32>
    %cst_76 = arith.constant 1.000000e+00 : f32
    %263 = vector.broadcast %cst_76 : f32 to vector<2x128xf32>
    %264 = arith.addf %263, %262 : vector<2x128xf32>
    %265 = arith.divf %263, %264 : vector<2x128xf32>
    %266 = vector.extract_strided_slice %228 {offsets = [0, 256], sizes = [2, 128], strides = [1, 1]} : vector<2x512xf32> to vector<2x128xf32>
    %267 = math.tanh %266 : vector<2x128xf32>
    %268 = vector.extract_strided_slice %228 {offsets = [0, 384], sizes = [2, 128], strides = [1, 1]} : vector<2x512xf32> to vector<2x128xf32>
    %269 = arith.negf %268 : vector<2x128xf32>
    %270 = math.exp %269 : vector<2x128xf32>
    %cst_77 = arith.constant 1.000000e+00 : f32
    %271 = vector.broadcast %cst_77 : f32 to vector<2x128xf32>
    %272 = arith.addf %271, %270 : vector<2x128xf32>
    %273 = arith.divf %271, %272 : vector<2x128xf32>
    %274 = arith.mulf %265, %205 : vector<2x128xf32>
    %275 = arith.mulf %259, %267 : vector<2x128xf32>
    %276 = arith.addf %274, %275 : vector<2x128xf32>
    %277 = math.tanh %276 : vector<2x128xf32>
    %278 = arith.mulf %273, %277 : vector<2x128xf32>
    %279 = vector.shape_cast %253 : vector<2x128xf32> to vector<1x2x128xf32>
    %280 = arith.index_cast %c3_i32_60 : i32 to index
    %c0_78 = arith.constant 0 : index
    %c0_79 = arith.constant 0 : index
    %281 = vector.load %arg3[%280, %c0_78, %c0_79] : memref<4x2x256xf32, #tpu.memory_space<vmem>>, vector<1x2x128xf32>
    tpu.vector_store %arg3[%280, %c0_78, %c0_79], %279 {strides = array<i32>} : memref<4x2x256xf32, #tpu.memory_space<vmem>>, vector<1x2x128xf32>,
    %282 = vector.shape_cast %278 : vector<2x128xf32> to vector<1x2x128xf32>
    %283 = arith.index_cast %214 : i32 to index
    %c0_80 = arith.constant 0 : index
    %c128_81 = arith.constant 128 : index
    %284 = vector.load %arg3[%283, %c0_80, %c128_81] : memref<4x2x256xf32, #tpu.memory_space<vmem>>, vector<1x2x128xf32>
    tpu.vector_store %arg3[%283, %c0_80, %c128_81], %282 {strides = array<i32>} : memref<4x2x256xf32, #tpu.memory_space<vmem>>, vector<1x2x128xf32>,
    %c4_i32 = arith.constant 4 : i32
    return
  }
}

module attributes {stable_mosaic.version = 11 : i64} {
  func.func @_gemm_kernel(%arg0: i32, %arg1: i32, %arg2: i32, %arg3: memref<128x256xbf16, #tpu.memory_space<vmem>>, %arg4: memref<256x512xbf16, #tpu.memory_space<vmem>>, %arg5: memref<1x512xf32, #tpu.memory_space<vmem>>, %arg6: memref<1x512xf32, #tpu.memory_space<vmem>>, %arg7: memref<128x512xf32, #tpu.memory_space<vmem>>, %arg8: memref<128x512xf32, #tpu.memory_space<vmem>>) attributes {dimension_semantics = [#tpu.dimension_semantics<parallel>, #tpu.dimension_semantics<parallel>, #tpu.dimension_semantics<arbitrary>], iteration_bounds = array<i64: 1, 2, 1>, scalar_prefetch = 0 : i64, scratch_operands = 1 : i64, tpu.core_type = #tpu.core_type<tc>, window_params = [{transform_indices = @transform_0, window_bounds = array<i64: 128, 256>}, {transform_indices = @transform_1, window_bounds = array<i64: 256, 512>}, {transform_indices = @transform_2, window_bounds = array<i64: 1, 512>}, {transform_indices = @transform_3, window_bounds = array<i64: 1, 512>}, {transform_indices = @transform_4, window_bounds = array<i64: 128, 512>}]} {
    %c0_i32 = arith.constant 0 : i32
    %0 = arith.cmpi eq, %arg2, %c0_i32 : i32
    %1 = arith.extui %0 : i1 to i32
    %c0_i32_0 = arith.constant 0 : i32
    %2 = arith.cmpi ne, %1, %c0_i32_0 : i32
    scf.if %2 {
      %cst_10 = arith.constant 0.000000e+00 : f32
      %12 = vector.broadcast %cst_10 : f32 to vector<128x512xf32>
      %c0_11 = arith.constant 0 : index
      %c0_12 = arith.constant 0 : index
      %13 = vector.load %arg8[%c0_11, %c0_12] : memref<128x512xf32, #tpu.memory_space<vmem>>, vector<128x512xf32>
      tpu.vector_store %arg8[%c0_11, %c0_12], %12 {strides = array<i32>} : memref<128x512xf32, #tpu.memory_space<vmem>>, vector<128x512xf32>,
    } else {
    }
    %c0 = arith.constant 0 : index
    %c0_1 = arith.constant 0 : index
    %3 = vector.load %arg8[%c0, %c0_1] : memref<128x512xf32, #tpu.memory_space<vmem>>, vector<128x512xf32>
    %c0_2 = arith.constant 0 : index
    %c0_3 = arith.constant 0 : index
    %4 = vector.load %arg3[%c0_2, %c0_3] : memref<128x256xbf16, #tpu.memory_space<vmem>>, vector<128x256xbf16>
    %c0_4 = arith.constant 0 : index
    %c0_5 = arith.constant 0 : index
    %5 = vector.load %arg4[%c0_4, %c0_5] : memref<256x512xbf16, #tpu.memory_space<vmem>>, vector<256x512xbf16>
    %cst = arith.constant dense<0.000000e+00> : vector<128x512xf32>
    %6 = tpu.matmul %4, %5, %cst {dimension_numbers = #tpu.dot_dimension_numbers<[1], [0], [0], [1], [0, 0, 1, 1], [], []>} : vector<128x256xbf16>, vector<256x512xbf16>, vector<128x512xf32> -> vector<128x512xf32>
    %7 = arith.addf %3, %6 : vector<128x512xf32>
    %c0_6 = arith.constant 0 : index
    %c0_7 = arith.constant 0 : index
    %8 = vector.load %arg8[%c0_6, %c0_7] : memref<128x512xf32, #tpu.memory_space<vmem>>, vector<128x512xf32>
    tpu.vector_store %arg8[%c0_6, %c0_7], %7 {strides = array<i32>} : memref<128x512xf32, #tpu.memory_space<vmem>>, vector<128x512xf32>,
    %c0_i32_8 = arith.constant 0 : i32
    %9 = arith.cmpi eq, %arg2, %c0_i32_8 : i32
    %10 = arith.extui %9 : i1 to i32
    %c0_i32_9 = arith.constant 0 : i32
    %11 = arith.cmpi ne, %10, %c0_i32_9 : i32
    scf.if %11 {
      %c0_10 = arith.constant 0 : index
      %c0_11 = arith.constant 0 : index
      %12 = vector.load %arg8[%c0_10, %c0_11] : memref<128x512xf32, #tpu.memory_space<vmem>>, vector<128x512xf32>
      %c0_12 = arith.constant 0 : index
      %c0_13 = arith.constant 0 : index
      %13 = vector.load %arg5[%c0_12, %c0_13] : memref<1x512xf32, #tpu.memory_space<vmem>>, vector<1x512xf32>
      %14 = vector.broadcast %13 : vector<1x512xf32> to vector<128x512xf32>
      %15 = arith.mulf %12, %14 : vector<128x512xf32>
      %c0_14 = arith.constant 0 : index
      %c0_15 = arith.constant 0 : index
      %16 = vector.load %arg6[%c0_14, %c0_15] : memref<1x512xf32, #tpu.memory_space<vmem>>, vector<1x512xf32>
      %17 = vector.broadcast %16 : vector<1x512xf32> to vector<128x512xf32>
      %18 = arith.addf %15, %17 : vector<128x512xf32>
      %c0_16 = arith.constant 0 : index
      %c0_17 = arith.constant 0 : index
      %19 = vector.load %arg7[%c0_16, %c0_17] : memref<128x512xf32, #tpu.memory_space<vmem>>, vector<128x512xf32>
      tpu.vector_store %arg7[%c0_16, %c0_17], %18 {strides = array<i32>} : memref<128x512xf32, #tpu.memory_space<vmem>>, vector<128x512xf32>,
    } else {
    }
    return
  }
  func.func @transform_0(%arg0: i32, %arg1: i32, %arg2: i32) -> (i32, i32) {
    %c0_i32 = arith.constant 0 : i32
    return %arg0, %arg2 : i32, i32
  }
  func.func @transform_1(%arg0: i32, %arg1: i32, %arg2: i32) -> (i32, i32) {
    %c0_i32 = arith.constant 0 : i32
    return %arg2, %arg1 : i32, i32
  }
  func.func @transform_2(%arg0: i32, %arg1: i32, %arg2: i32) -> (i32, i32) {
    %c0_i32 = arith.constant 0 : i32
    %c0_i32_0 = arith.constant 0 : i32
    return %c0_i32, %arg1 : i32, i32
  }
  func.func @transform_3(%arg0: i32, %arg1: i32, %arg2: i32) -> (i32, i32) {
    %c0_i32 = arith.constant 0 : i32
    %c0_i32_0 = arith.constant 0 : i32
    return %c0_i32, %arg1 : i32, i32
  }
  func.func @transform_4(%arg0: i32, %arg1: i32, %arg2: i32) -> (i32, i32) {
    %c0_i32 = arith.constant 0 : i32
    return %arg0, %arg1 : i32, i32
  }
}

module attributes {stable_mosaic.version = 11 : i64} {
  func.func @_gemm_kernel(%arg0: i32, %arg1: i32, %arg2: i32, %arg3: memref<128x512xbf16, #tpu.memory_space<vmem>>, %arg4: memref<512x128xbf16, #tpu.memory_space<vmem>>, %arg5: memref<1x128xf32, #tpu.memory_space<vmem>>, %arg6: memref<1x128xf32, #tpu.memory_space<vmem>>, %arg7: memref<128x128xf32, #tpu.memory_space<vmem>>, %arg8: memref<128x128xf32, #tpu.memory_space<vmem>>) attributes {dimension_semantics = [#tpu.dimension_semantics<parallel>, #tpu.dimension_semantics<parallel>, #tpu.dimension_semantics<arbitrary>], iteration_bounds = array<i64: 1, 1, 2>, scalar_prefetch = 0 : i64, scratch_operands = 1 : i64, tpu.core_type = #tpu.core_type<tc>, window_params = [{transform_indices = @transform_0, window_bounds = array<i64: 128, 512>}, {transform_indices = @transform_1, window_bounds = array<i64: 512, 128>}, {transform_indices = @transform_2, window_bounds = array<i64: 1, 128>}, {transform_indices = @transform_3, window_bounds = array<i64: 1, 128>}, {transform_indices = @transform_4, window_bounds = array<i64: 128, 128>}]} {
    %c0_i32 = arith.constant 0 : i32
    %0 = arith.cmpi eq, %arg2, %c0_i32 : i32
    %1 = arith.extui %0 : i1 to i32
    %c0_i32_0 = arith.constant 0 : i32
    %2 = arith.cmpi ne, %1, %c0_i32_0 : i32
    scf.if %2 {
      %cst_9 = arith.constant 0.000000e+00 : f32
      %12 = vector.broadcast %cst_9 : f32 to vector<128x128xf32>
      %c0_10 = arith.constant 0 : index
      %c0_11 = arith.constant 0 : index
      %13 = vector.load %arg8[%c0_10, %c0_11] : memref<128x128xf32, #tpu.memory_space<vmem>>, vector<128x128xf32>
      tpu.vector_store %arg8[%c0_10, %c0_11], %12 {strides = array<i32>} : memref<128x128xf32, #tpu.memory_space<vmem>>, vector<128x128xf32>,
    } else {
    }
    %c0 = arith.constant 0 : index
    %c0_1 = arith.constant 0 : index
    %3 = vector.load %arg8[%c0, %c0_1] : memref<128x128xf32, #tpu.memory_space<vmem>>, vector<128x128xf32>
    %c0_2 = arith.constant 0 : index
    %c0_3 = arith.constant 0 : index
    %4 = vector.load %arg3[%c0_2, %c0_3] : memref<128x512xbf16, #tpu.memory_space<vmem>>, vector<128x512xbf16>
    %c0_4 = arith.constant 0 : index
    %c0_5 = arith.constant 0 : index
    %5 = vector.load %arg4[%c0_4, %c0_5] : memref<512x128xbf16, #tpu.memory_space<vmem>>, vector<512x128xbf16>
    %cst = arith.constant dense<0.000000e+00> : vector<128x128xf32>
    %6 = tpu.matmul %4, %5, %cst {dimension_numbers = #tpu.dot_dimension_numbers<[1], [0], [0], [1], [0, 0, 1, 1], [], []>} : vector<128x512xbf16>, vector<512x128xbf16>, vector<128x128xf32> -> vector<128x128xf32>
    %7 = arith.addf %3, %6 : vector<128x128xf32>
    %c0_6 = arith.constant 0 : index
    %c0_7 = arith.constant 0 : index
    %8 = vector.load %arg8[%c0_6, %c0_7] : memref<128x128xf32, #tpu.memory_space<vmem>>, vector<128x128xf32>
    tpu.vector_store %arg8[%c0_6, %c0_7], %7 {strides = array<i32>} : memref<128x128xf32, #tpu.memory_space<vmem>>, vector<128x128xf32>,
    %c1_i32 = arith.constant 1 : i32
    %9 = arith.cmpi eq, %arg2, %c1_i32 : i32
    %10 = arith.extui %9 : i1 to i32
    %c0_i32_8 = arith.constant 0 : i32
    %11 = arith.cmpi ne, %10, %c0_i32_8 : i32
    scf.if %11 {
      %c0_9 = arith.constant 0 : index
      %c0_10 = arith.constant 0 : index
      %12 = vector.load %arg8[%c0_9, %c0_10] : memref<128x128xf32, #tpu.memory_space<vmem>>, vector<128x128xf32>
      %c0_11 = arith.constant 0 : index
      %c0_12 = arith.constant 0 : index
      %13 = vector.load %arg5[%c0_11, %c0_12] : memref<1x128xf32, #tpu.memory_space<vmem>>, vector<1x128xf32>
      %14 = vector.broadcast %13 : vector<1x128xf32> to vector<128x128xf32>
      %15 = arith.mulf %12, %14 : vector<128x128xf32>
      %c0_13 = arith.constant 0 : index
      %c0_14 = arith.constant 0 : index
      %16 = vector.load %arg6[%c0_13, %c0_14] : memref<1x128xf32, #tpu.memory_space<vmem>>, vector<1x128xf32>
      %17 = vector.broadcast %16 : vector<1x128xf32> to vector<128x128xf32>
      %18 = arith.addf %15, %17 : vector<128x128xf32>
      %c0_15 = arith.constant 0 : index
      %c0_16 = arith.constant 0 : index
      %19 = vector.load %arg7[%c0_15, %c0_16] : memref<128x128xf32, #tpu.memory_space<vmem>>, vector<128x128xf32>
      tpu.vector_store %arg7[%c0_15, %c0_16], %18 {strides = array<i32>} : memref<128x128xf32, #tpu.memory_space<vmem>>, vector<128x128xf32>,
    } else {
    }
    return
  }
  func.func @transform_0(%arg0: i32, %arg1: i32, %arg2: i32) -> (i32, i32) {
    %c0_i32 = arith.constant 0 : i32
    return %arg0, %arg2 : i32, i32
  }
  func.func @transform_1(%arg0: i32, %arg1: i32, %arg2: i32) -> (i32, i32) {
    %c0_i32 = arith.constant 0 : i32
    return %arg2, %arg1 : i32, i32
  }
  func.func @transform_2(%arg0: i32, %arg1: i32, %arg2: i32) -> (i32, i32) {
    %c0_i32 = arith.constant 0 : i32
    %c0_i32_0 = arith.constant 0 : i32
    return %c0_i32, %arg1 : i32, i32
  }
  func.func @transform_3(%arg0: i32, %arg1: i32, %arg2: i32) -> (i32, i32) {
    %c0_i32 = arith.constant 0 : i32
    %c0_i32_0 = arith.constant 0 : i32
    return %c0_i32, %arg1 : i32, i32
  }
  func.func @transform_4(%arg0: i32, %arg1: i32, %arg2: i32) -> (i32, i32) {
    %c0_i32 = arith.constant 0 : i32
    return %arg0, %arg1 : i32, i32
  }
}

</mosaic_0001>

<bundles_post_ra>
// kernel: crnn_forward.8
= control target key start
LH: loop header
LB: loop body
LE: loop exit
PB: predicated region body
PF: predicated region fallthrough
CT: control target
= control target key end

     0   :  { %s1921_s1 = inlined_call_operand.vmem [shape: bf16[128,128], index: 1, kind: input, shape index: {}]   ;;  %s1922_s0 = inlined_call_operand.vmem [shape: bf16[512,128], index: 0, kind: input, shape index: {}]   ;;  %s1923_s2 = inlined_call_operand.vmem [shape: f32[1,128], index: 2, kind: input, shape index: {}]   ;;  %s1924_s3 = inlined_call_operand.vmem [shape: f32[1,128], index: 3, kind: input, shape index: {}]   ;;  %s1925_s4 = inlined_call_operand.vmem [shape: f32[512,128], index: 4, kind: output, shape index: {}]  }
   0x1   :  { %v1406_v0 = vld [vmem:[%s1921_s1 + $0x38] sm:$0xff]   ;;  %v1407_v1 = vld [vmem:[%s1921_s1 + $0x30] sm:$0xff]   ;;  %v1408_v2 = vld [vmem:[%s1921_s1 + $0x28] sm:$0xff]  }
   0x2   :  { %1310 = vmatprep.subr.bf16.mxu0 %v1406_v0  ;;  %1390 = vmatprep.subr.bf16.mxu1 %v1406_v0  ;;  %v1409_v3 = vld [vmem:[%s1921_s1 + $0x20] sm:$0xff]   ;;  %v1410_v6 = vld [vmem:[%s1921_s1 + $0x18] sm:$0xff]   ;;  %v1411_v7 = vld [vmem:[%s1921_s1 + $0x10] sm:$0xff]  }
   0x3   :  { %1311 = vmatpush3.bf16.msra.mxu0 %v1406_v0  ;;  %1398 = vmatpush3.bf16.msra.mxu1 %v1406_v0  ;;  %v1414_v4 = vld [vmem:[%s1922_s0] sm:$0xff]   ;;  %v1412_v8 = vld [vmem:[%s1921_s1 + $0x8] sm:$0xff]   ;;  %v1418_v12 = vld [vmem:[%s1922_s0 + $0x10] sm:$0xff]  }
   0x4   :  { %1312 = vmatprep.subr.bf16.mxu0 %v1407_v1  ;;  %1391 = vmatprep.subr.bf16.mxu1 %v1407_v1  ;;  %v1415_v5 = vld [vmem:[%s1922_s0 + $0x80] sm:$0xff]   ;;  %v1416_v10 = vld [vmem:[%s1922_s0 + $0x8] sm:$0xff]   ;;  %v1419_v13 = vld [vmem:[%s1922_s0 + $0x90] sm:$0xff]  }
   0x5   :  { %1326 = vmatprep.mubr.bf16.mxu0 %v1414_v4  ;;  %1358 = vmatprep.mubr.bf16.mxu1 %v1415_v5  ;;  %v1413_v9 = vld [vmem:[%s1921_s1] sm:$0xff]   ;;  %v1417_v11 = vld [vmem:[%s1922_s0 + $0x88] sm:$0xff]   ;;  %v1420_v14 = vld [vmem:[%s1922_s0 + $0x18] sm:$0xff]  }
   0x6   :  { %v1421_v15 = vld [vmem:[%s1922_s0 + $0x98] sm:$0xff]   ;;  %v1422_v16 = vld [vmem:[%s1922_s0 + $0x20] sm:$0xff]   ;;  %v1424_v18 = vld [vmem:[%s1922_s0 + $0x28] sm:$0xff]  }
   0x7   :  { %1313 = vmatpush3.bf16.msra.mxu0 %v1407_v1  ;;  %1399 = vmatpush3.bf16.msra.mxu1 %v1407_v1  ;;  %v1423_v17 = vld [vmem:[%s1922_s0 + $0xa0] sm:$0xff]   ;;  %v1425_v19 = vld [vmem:[%s1922_s0 + $0xa8] sm:$0xff]   ;;  %v1426_v20 = vld [vmem:[%s1922_s0 + $0x30] sm:$0xff]  }
   0x8   :  { %1314 = vmatprep.subr.bf16.mxu0 %v1408_v2  ;;  %1392 = vmatprep.subr.bf16.mxu1 %v1408_v2  ;;  %v1427_v21 = vld [vmem:[%s1922_s0 + $0xb0] sm:$0xff]   ;;  %v1428_v22 = vld [vmem:[%s1922_s0 + $0x38] sm:$0xff]   ;;  %v1430_v24 = vld [vmem:[%s1922_s0 + $0x40] sm:$0xff]  }
   0x9   :  { %v1429_v23 = vld [vmem:[%s1922_s0 + $0xb8] sm:$0xff]   ;;  %v1431_v25 = vld [vmem:[%s1922_s0 + $0xc0] sm:$0xff]   ;;  %v1432_v26 = vld [vmem:[%s1922_s0 + $0x48] sm:$0xff]  }
   0xa   :  { %v1433_v27 = vld [vmem:[%s1922_s0 + $0xc8] sm:$0xff]   ;;  %v1434_v28 = vld [vmem:[%s1922_s0 + $0x50] sm:$0xff]   ;;  %v1436_v30 = vld [vmem:[%s1922_s0 + $0x58] sm:$0xff]  }
   0xb   :  { %1315 = vmatpush3.bf16.msra.mxu0 %v1408_v2  ;;  %1400 = vmatpush3.bf16.msra.mxu1 %v1408_v2  ;;  %v1435_v29 = vld [vmem:[%s1922_s0 + $0xd0] sm:$0xff]   ;;  %v1437_v31 = vld [vmem:[%s1922_s0 + $0xd8] sm:$0xff]   ;;  %v1438_v32 = vld [vmem:[%s1922_s0 + $0x60] sm:$0xff]  }
   0xc   :  { %1316 = vmatprep.subr.bf16.mxu0 %v1409_v3  ;;  %1393 = vmatprep.subr.bf16.mxu1 %v1409_v3  ;;  %v1439_v33 = vld [vmem:[%s1922_s0 + $0xe0] sm:$0xff]   ;;  %v1440_v34 = vld [vmem:[%s1922_s0 + $0x68] sm:$0xff]   ;;  %v1442_v36 = vld [vmem:[%s1922_s0 + $0x70] sm:$0xff]  }
   0xd   :  { %v1441_v35 = vld [vmem:[%s1922_s0 + $0xe8] sm:$0xff]   ;;  %v1443_v37 = vld [vmem:[%s1922_s0 + $0xf0] sm:$0xff]   ;;  %v1444_v38 = vld [vmem:[%s1922_s0 + $0x78] sm:$0xff]  }
   0xe   :  { %v1445_v39 = vld [vmem:[%s1922_s0 + $0xf8] sm:$0xff]   ;;  %v1594_v40 = vld [vmem:[%s1923_s2] ss:$0 sm:$0xff] }
   0xf   :  { %1317 = vmatpush3.bf16.msra.mxu0 %v1409_v3  ;;  %1401 = vmatpush3.bf16.msra.mxu1 %v1409_v3  ;;  %v1599_v42 = vld [vmem:[%s1924_s3] ss:$0 sm:$0xff] }
  0x10   :  { %1318 = vmatprep.subr.bf16.mxu0 %v1410_v6  ;;  %1394 = vmatprep.subr.bf16.mxu1 %v1410_v6 }
  0x13   :  { %1319 = vmatpush3.bf16.msra.mxu0 %v1410_v6  ;;  %1402 = vmatpush3.bf16.msra.mxu1 %v1410_v6 }
  0x14   :  { %1320 = vmatprep.subr.bf16.mxu0 %v1411_v7  ;;  %1395 = vmatprep.subr.bf16.mxu1 %v1411_v7 }
  0x17   :  { %1321 = vmatpush3.bf16.msra.mxu0 %v1411_v7  ;;  %1403 = vmatpush3.bf16.msra.mxu1 %v1411_v7 }
  0x18   :  { %1322 = vmatprep.subr.bf16.mxu0 %v1412_v8  ;;  %1396 = vmatprep.subr.bf16.mxu1 %v1412_v8 }
  0x1b   :  { %1323 = vmatpush3.bf16.msra.mxu0 %v1412_v8  ;;  %1404 = vmatpush3.bf16.msra.mxu1 %v1412_v8 }
  0x1c   :  { %1324 = vmatprep.subr.bf16.mxu0 %v1413_v9  ;;  %1397 = vmatprep.subr.bf16.mxu1 %v1413_v9 }
  0x1f   :  { %1325 = vmatpush3.bf16.msra.mxu0 %v1413_v9  ;;  %1405 = vmatpush3.bf16.msra.mxu1 %v1413_v9 }
  0x22   :  { %1327 = vmatmul.mubr.bf16.vlgmr.msra.gmra.mxu0 %v1416_v10  ;;  %1359 = vmatmul.mubr.bf16.vlgmr.msra.gmra.mxu1 %v1417_v11 }
  0x23   :  { %1330 = vmatprep.mubr.bf16.mxu0 %v1418_v12  ;;  %1362 = vmatprep.mubr.bf16.mxu1 %v1419_v13 }
  0x2a   :  { %1331 = vmatmul.mubr.bf16.gmra.mxu0 %v1420_v14  ;;  %1363 = vmatmul.mubr.bf16.gmra.mxu1 %v1421_v15 }
  0x2b   :  { %1334 = vmatprep.mubr.bf16.mxu0 %v1422_v16  ;;  %1366 = vmatprep.mubr.bf16.mxu1 %v1423_v17 }
  0x32   :  { %1335 = vmatmul.mubr.bf16.gmra.mxu0 %v1424_v18  ;;  %1367 = vmatmul.mubr.bf16.gmra.mxu1 %v1425_v19 }
  0x33   :  { %1338 = vmatprep.mubr.bf16.mxu0 %v1426_v20  ;;  %1370 = vmatprep.mubr.bf16.mxu1 %v1427_v21 }
  0x3a   :  { %1339 = vmatmul.mubr.bf16.gmra.mxu0 %v1428_v22  ;;  %1371 = vmatmul.mubr.bf16.gmra.mxu1 %v1429_v23 }
  0x3b   :  { %1342 = vmatprep.mubr.bf16.mxu0 %v1430_v24  ;;  %1374 = vmatprep.mubr.bf16.mxu1 %v1431_v25 }
  0x42   :  { %1343 = vmatmul.mubr.bf16.gmra.mxu0 %v1432_v26  ;;  %1375 = vmatmul.mubr.bf16.gmra.mxu1 %v1433_v27 }
  0x43   :  { %1346 = vmatprep.mubr.bf16.mxu0 %v1434_v28  ;;  %1378 = vmatprep.mubr.bf16.mxu1 %v1435_v29 }
  0x4a   :  { %1347 = vmatmul.mubr.bf16.gmra.mxu0 %v1436_v30  ;;  %1379 = vmatmul.mubr.bf16.gmra.mxu1 %v1437_v31 }
  0x4b   :  { %1350 = vmatprep.mubr.bf16.mxu0 %v1438_v32  ;;  %1382 = vmatprep.mubr.bf16.mxu1 %v1439_v33 }
  0x52   :  { %1351 = vmatmul.mubr.bf16.gmra.mxu0 %v1440_v34  ;;  %1383 = vmatmul.mubr.bf16.gmra.mxu1 %v1441_v35 }
  0x53   :  { %1354 = vmatprep.mubr.bf16.mxu0 %v1442_v36  ;;  %1386 = vmatprep.mubr.bf16.mxu1 %v1443_v37 }
  0x5a   :  { %1355 = vmatmul.mubr.bf16.gmra.mxu0 %v1444_v38  ;;  %1387 = vmatmul.mubr.bf16.gmra.mxu1 %v1445_v39 }
  0xe2   :  { %v1328_v41 = vpop.f32.mrf.mxu0  ;;  %v1360_v43 = vpop.f32.mrf.mxu1 }
  0xe3   :  { %v963_v44 = vmul.f32 %v1328_v41, %v1594_v40  ;;  %v995_v45 = vmul.f32 %v1360_v43, %v1594_v40 }
  0xe4   :  { %v504_v46 = vpop.f32.mrf.mxu0  ;;  %v632_v47 = vpop.f32.mrf.mxu1 }
  0xe5   :  { %v1034_v48 = vadd.f32 %v1599_v42, %v963_v44  ;;  %v1066_v49 = vadd.f32 %v1599_v42, %v995_v45  ;;  %v961_v50 = vmul.f32 %v1594_v40, %v504_v46  ;;  %v993_v51 = vmul.f32 %v1594_v40, %v632_v47 }
  0xe6   :  { %v1329_v52 = vpop.f32.mrf.mxu0  ;;  %v1361_v53 = vpop.f32.mrf.mxu1 }
  0xe7   :  { %v1098_v54 = vmax.f32 %v1034_v48, 0.0  ;;  %v1130_v55 = vmax.f32 %v1066_v49, 0.0  ;;  %v1032_v56 = vadd.f32 %v1599_v42, %v961_v50  ;;  %v1064_v57 = vadd.f32 %v1599_v42, %v993_v51 }
  0xe8   :  { %v964_v58 = vmul.f32 %v1329_v52, %v1594_v40  ;;  %v996_v59 = vmul.f32 %v1361_v53, %v1594_v40  ;;  %v507_v60 = vpop.f32.mrf.mxu0  ;;  %v635_v61 = vpop.f32.mrf.mxu1 }
  0xe9   :  { %1162 = vst [vmem:[%s1925_s4 + $0x10] sm:$0xff] %v1098_v54  ;;  %1194 = vst [vmem:[%s1925_s4 + $0x110] sm:$0xff] %v1130_v55  ;;  %v1096_v62 = vmax.f32 %v1032_v56, 0.0  ;;  %v1128_v63 = vmax.f32 %v1064_v57, 0.0  ;;  %v962_v0 = vmul.f32 %v1594_v40, %v507_v60  ;;  %v994_v1 = vmul.f32 %v1594_v40, %v635_v61 }
  0xea   :  { %v1035_v2 = vadd.f32 %v1599_v42, %v964_v58  ;;  %v1067_v3 = vadd.f32 %v1599_v42, %v996_v59  ;;  %v1332_v4 = vpop.f32.mrf.mxu0  ;;  %v1364_v5 = vpop.f32.mrf.mxu1 }
  0xeb   :  { %1160 = vst [vmem:[%s1925_s4] sm:$0xff] %v1096_v62  ;;  %1192 = vst [vmem:[%s1925_s4 + $0x100] sm:$0xff] %v1128_v63  ;;  %v1033_v6 = vadd.f32 %v1599_v42, %v962_v0  ;;  %v1065_v7 = vadd.f32 %v1599_v42, %v994_v1  ;;  %v967_v8 = vmul.f32 %v1332_v4, %v1594_v40 }
  0xec   :  { %v999_v9 = vmul.f32 %v1364_v5, %v1594_v40  ;;  %v1099_v10 = vmax.f32 %v1035_v2, 0.0  ;;  %v1131_v11 = vmax.f32 %v1067_v3, 0.0  ;;  %v520_v12 = vpop.f32.mrf.mxu0  ;;  %v648_v13 = vpop.f32.mrf.mxu1 }
  0xed   :  { %v1097_v14 = vmax.f32 %v1033_v6, 0.0  ;;  %v1129_v15 = vmax.f32 %v1065_v7, 0.0  ;;  %v1038_v16 = vadd.f32 %v1599_v42, %v967_v8  ;;  %v965_v18 = vmul.f32 %v1594_v40, %v520_v12 }
  0xee   :  { %v1070_v17 = vadd.f32 %v1599_v42, %v999_v9  ;;  %1163 = vst [vmem:[%s1925_s4 + $0x18] sm:$0xff] %v1099_v10  ;;  %1195 = vst [vmem:[%s1925_s4 + $0x118] sm:$0xff] %v1131_v11  ;;  %v997_v19 = vmul.f32 %v1594_v40, %v648_v13  ;;  %v1333_v20 = vpop.f32.mrf.mxu0  ;;  %v1365_v21 = vpop.f32.mrf.mxu1 }
  0xef   :  { %1161 = vst [vmem:[%s1925_s4 + $0x8] sm:$0xff] %v1097_v14  ;;  %1193 = vst [vmem:[%s1925_s4 + $0x108] sm:$0xff] %v1129_v15  ;;  %v1102_v22 = vmax.f32 %v1038_v16, 0.0  ;;  %v968_v24 = vmul.f32 %v1333_v20, %v1594_v40  ;;  %v1000_v25 = vmul.f32 %v1365_v21, %v1594_v40  ;;  %v1036_v26 = vadd.f32 %v1599_v42, %v965_v18 }
  0xf0   :  { %v1134_v23 = vmax.f32 %v1070_v17, 0.0  ;;  %v1068_v27 = vadd.f32 %v1599_v42, %v997_v19  ;;  %v523_v28 = vpop.f32.mrf.mxu0  ;;  %v651_v29 = vpop.f32.mrf.mxu1 }
  0xf1   :  { %1166 = vst [vmem:[%s1925_s4 + $0x30] sm:$0xff] %v1102_v22  ;;  %v1039_v30 = vadd.f32 %v1599_v42, %v968_v24  ;;  %v1071_v31 = vadd.f32 %v1599_v42, %v1000_v25  ;;  %v966_v32 = vmul.f32 %v1594_v40, %v523_v28  ;;  %v998_v33 = vmul.f32 %v1594_v40, %v651_v29 }
  0xf2   :  { %1198 = vst [vmem:[%s1925_s4 + $0x130] sm:$0xff] %v1134_v23  ;;  %v1100_v34 = vmax.f32 %v1036_v26, 0.0  ;;  %v1132_v35 = vmax.f32 %v1068_v27, 0.0  ;;  %v1336_v36 = vpop.f32.mrf.mxu0  ;;  %v1368_v37 = vpop.f32.mrf.mxu1 }
  0xf3   :  { %v1103_v38 = vmax.f32 %v1039_v30, 0.0  ;;  %v1135_v39 = vmax.f32 %v1071_v31, 0.0  ;;  %v1037_v41 = vadd.f32 %v1599_v42, %v966_v32  ;;  %v1069_v43 = vadd.f32 %v1599_v42, %v998_v33 }
  0xf4   :  { %1164 = vst [vmem:[%s1925_s4 + $0x20] sm:$0xff] %v1100_v34  ;;  %1196 = vst [vmem:[%s1925_s4 + $0x120] sm:$0xff] %v1132_v35  ;;  %v971_v44 = vmul.f32 %v1336_v36, %v1594_v40  ;;  %v1003_v45 = vmul.f32 %v1368_v37, %v1594_v40  ;;  %v536_v46 = vpop.f32.mrf.mxu0  ;;  %v664_v47 = vpop.f32.mrf.mxu1 }
  0xf5   :  { %1167 = vst [vmem:[%s1925_s4 + $0x38] sm:$0xff] %v1103_v38  ;;  %1199 = vst [vmem:[%s1925_s4 + $0x138] sm:$0xff] %v1135_v39  ;;  %v1101_v48 = vmax.f32 %v1037_v41, 0.0  ;;  %v1133_v49 = vmax.f32 %v1069_v43, 0.0  ;;  %v969_v50 = vmul.f32 %v1594_v40, %v536_v46  ;;  %v1001_v51 = vmul.f32 %v1594_v40, %v664_v47 }
  0xf6   :  { %v1042_v52 = vadd.f32 %v1599_v42, %v971_v44  ;;  %v1074_v53 = vadd.f32 %v1599_v42, %v1003_v45  ;;  %v1337_v54 = vpop.f32.mrf.mxu0  ;;  %v1369_v55 = vpop.f32.mrf.mxu1 }
  0xf7   :  { %1165 = vst [vmem:[%s1925_s4 + $0x28] sm:$0xff] %v1101_v48  ;;  %1197 = vst [vmem:[%s1925_s4 + $0x128] sm:$0xff] %v1133_v49  ;;  %v1040_v56 = vadd.f32 %v1599_v42, %v969_v50  ;;  %v1072_v57 = vadd.f32 %v1599_v42, %v1001_v51  ;;  %v972_v58 = vmul.f32 %v1337_v54, %v1594_v40 }
  0xf8   :  { %v1004_v59 = vmul.f32 %v1369_v55, %v1594_v40  ;;  %v1106_v60 = vmax.f32 %v1042_v52, 0.0  ;;  %v1138_v61 = vmax.f32 %v1074_v53, 0.0  ;;  %v539_v62 = vpop.f32.mrf.mxu0  ;;  %v667_v63 = vpop.f32.mrf.mxu1 }
  0xf9   :  { %v1104_v0 = vmax.f32 %v1040_v56, 0.0  ;;  %v1136_v1 = vmax.f32 %v1072_v57, 0.0  ;;  %v1043_v2 = vadd.f32 %v1599_v42, %v972_v58  ;;  %v970_v4 = vmul.f32 %v1594_v40, %v539_v62 }
  0xfa   :  { %v1075_v3 = vadd.f32 %v1599_v42, %v1004_v59  ;;  %1170 = vst [vmem:[%s1925_s4 + $0x50] sm:$0xff] %v1106_v60  ;;  %1202 = vst [vmem:[%s1925_s4 + $0x150] sm:$0xff] %v1138_v61  ;;  %v1002_v5 = vmul.f32 %v1594_v40, %v667_v63  ;;  %v1340_v6 = vpop.f32.mrf.mxu0  ;;  %v1372_v7 = vpop.f32.mrf.mxu1 }
  0xfb   :  { %1168 = vst [vmem:[%s1925_s4 + $0x40] sm:$0xff] %v1104_v0  ;;  %1200 = vst [vmem:[%s1925_s4 + $0x140] sm:$0xff] %v1136_v1  ;;  %v1107_v8 = vmax.f32 %v1043_v2, 0.0  ;;  %v975_v10 = vmul.f32 %v1340_v6, %v1594_v40  ;;  %v1007_v11 = vmul.f32 %v1372_v7, %v1594_v40  ;;  %v1041_v12 = vadd.f32 %v1599_v42, %v970_v4 }
  0xfc   :  { %v1139_v9 = vmax.f32 %v1075_v3, 0.0  ;;  %v1073_v13 = vadd.f32 %v1599_v42, %v1002_v5  ;;  %v552_v14 = vpop.f32.mrf.mxu0  ;;  %v680_v15 = vpop.f32.mrf.mxu1 }
  0xfd   :  { %1171 = vst [vmem:[%s1925_s4 + $0x58] sm:$0xff] %v1107_v8  ;;  %v1046_v16 = vadd.f32 %v1599_v42, %v975_v10  ;;  %v1078_v17 = vadd.f32 %v1599_v42, %v1007_v11  ;;  %v973_v18 = vmul.f32 %v1594_v40, %v552_v14  ;;  %v1005_v19 = vmul.f32 %v1594_v40, %v680_v15 }
  0xfe   :  { %1203 = vst [vmem:[%s1925_s4 + $0x158] sm:$0xff] %v1139_v9  ;;  %v1105_v20 = vmax.f32 %v1041_v12, 0.0  ;;  %v1137_v21 = vmax.f32 %v1073_v13, 0.0  ;;  %v1341_v22 = vpop.f32.mrf.mxu0  ;;  %v1373_v23 = vpop.f32.mrf.mxu1 }
  0xff   :  { %v1110_v24 = vmax.f32 %v1046_v16, 0.0  ;;  %v1142_v25 = vmax.f32 %v1078_v17, 0.0  ;;  %v1044_v26 = vadd.f32 %v1599_v42, %v973_v18  ;;  %v1076_v27 = vadd.f32 %v1599_v42, %v1005_v19 }
 0x100   :  { %1169 = vst [vmem:[%s1925_s4 + $0x48] sm:$0xff] %v1105_v20  ;;  %1201 = vst [vmem:[%s1925_s4 + $0x148] sm:$0xff] %v1137_v21  ;;  %v976_v28 = vmul.f32 %v1341_v22, %v1594_v40  ;;  %v1008_v29 = vmul.f32 %v1373_v23, %v1594_v40  ;;  %v555_v30 = vpop.f32.mrf.mxu0  ;;  %v683_v31 = vpop.f32.mrf.mxu1 }
 0x101   :  { %1174 = vst [vmem:[%s1925_s4 + $0x70] sm:$0xff] %v1110_v24  ;;  %1206 = vst [vmem:[%s1925_s4 + $0x170] sm:$0xff] %v1142_v25  ;;  %v1108_v32 = vmax.f32 %v1044_v26, 0.0  ;;  %v1140_v33 = vmax.f32 %v1076_v27, 0.0  ;;  %v974_v34 = vmul.f32 %v1594_v40, %v555_v30  ;;  %v1006_v35 = vmul.f32 %v1594_v40, %v683_v31 }
 0x102   :  { %v1047_v36 = vadd.f32 %v1599_v42, %v976_v28  ;;  %v1079_v37 = vadd.f32 %v1599_v42, %v1008_v29  ;;  %v1344_v38 = vpop.f32.mrf.mxu0  ;;  %v1376_v39 = vpop.f32.mrf.mxu1 }
 0x103   :  { %1172 = vst [vmem:[%s1925_s4 + $0x60] sm:$0xff] %v1108_v32  ;;  %1204 = vst [vmem:[%s1925_s4 + $0x160] sm:$0xff] %v1140_v33  ;;  %v1045_v41 = vadd.f32 %v1599_v42, %v974_v34  ;;  %v1077_v43 = vadd.f32 %v1599_v42, %v1006_v35  ;;  %v979_v44 = vmul.f32 %v1344_v38, %v1594_v40 }
 0x104   :  { %v1011_v45 = vmul.f32 %v1376_v39, %v1594_v40  ;;  %v1111_v46 = vmax.f32 %v1047_v36, 0.0  ;;  %v1143_v47 = vmax.f32 %v1079_v37, 0.0  ;;  %v568_v48 = vpop.f32.mrf.mxu0  ;;  %v696_v49 = vpop.f32.mrf.mxu1 }
 0x105   :  { %v1109_v50 = vmax.f32 %v1045_v41, 0.0  ;;  %v1141_v51 = vmax.f32 %v1077_v43, 0.0  ;;  %v1050_v52 = vadd.f32 %v1599_v42, %v979_v44  ;;  %v977_v54 = vmul.f32 %v1594_v40, %v568_v48 }
 0x106   :  { %v1082_v53 = vadd.f32 %v1599_v42, %v1011_v45  ;;  %1175 = vst [vmem:[%s1925_s4 + $0x78] sm:$0xff] %v1111_v46  ;;  %1207 = vst [vmem:[%s1925_s4 + $0x178] sm:$0xff] %v1143_v47  ;;  %v1009_v55 = vmul.f32 %v1594_v40, %v696_v49  ;;  %v1345_v56 = vpop.f32.mrf.mxu0  ;;  %v1377_v57 = vpop.f32.mrf.mxu1 }
 0x107   :  { %1173 = vst [vmem:[%s1925_s4 + $0x68] sm:$0xff] %v1109_v50  ;;  %1205 = vst [vmem:[%s1925_s4 + $0x168] sm:$0xff] %v1141_v51  ;;  %v1114_v58 = vmax.f32 %v1050_v52, 0.0  ;;  %v980_v60 = vmul.f32 %v1345_v56, %v1594_v40  ;;  %v1012_v61 = vmul.f32 %v1377_v57, %v1594_v40  ;;  %v1048_v62 = vadd.f32 %v1599_v42, %v977_v54 }
 0x108   :  { %v1146_v59 = vmax.f32 %v1082_v53, 0.0  ;;  %v1080_v63 = vadd.f32 %v1599_v42, %v1009_v55  ;;  %v571_v0 = vpop.f32.mrf.mxu0  ;;  %v699_v1 = vpop.f32.mrf.mxu1 }
 0x109   :  { %1178 = vst [vmem:[%s1925_s4 + $0x90] sm:$0xff] %v1114_v58  ;;  %v1051_v2 = vadd.f32 %v1599_v42, %v980_v60  ;;  %v1083_v3 = vadd.f32 %v1599_v42, %v1012_v61  ;;  %v978_v4 = vmul.f32 %v1594_v40, %v571_v0  ;;  %v1010_v5 = vmul.f32 %v1594_v40, %v699_v1 }
 0x10a   :  { %1210 = vst [vmem:[%s1925_s4 + $0x190] sm:$0xff] %v1146_v59  ;;  %v1112_v6 = vmax.f32 %v1048_v62, 0.0  ;;  %v1144_v7 = vmax.f32 %v1080_v63, 0.0  ;;  %v1348_v8 = vpop.f32.mrf.mxu0  ;;  %v1380_v9 = vpop.f32.mrf.mxu1 }
 0x10b   :  { %v1115_v10 = vmax.f32 %v1051_v2, 0.0  ;;  %v1147_v11 = vmax.f32 %v1083_v3, 0.0  ;;  %v1049_v12 = vadd.f32 %v1599_v42, %v978_v4  ;;  %v1081_v13 = vadd.f32 %v1599_v42, %v1010_v5 }
 0x10c   :  { %1176 = vst [vmem:[%s1925_s4 + $0x80] sm:$0xff] %v1112_v6  ;;  %1208 = vst [vmem:[%s1925_s4 + $0x180] sm:$0xff] %v1144_v7  ;;  %v983_v14 = vmul.f32 %v1348_v8, %v1594_v40  ;;  %v1015_v15 = vmul.f32 %v1380_v9, %v1594_v40  ;;  %v584_v16 = vpop.f32.mrf.mxu0  ;;  %v712_v17 = vpop.f32.mrf.mxu1 }
 0x10d   :  { %1179 = vst [vmem:[%s1925_s4 + $0x98] sm:$0xff] %v1115_v10  ;;  %1211 = vst [vmem:[%s1925_s4 + $0x198] sm:$0xff] %v1147_v11  ;;  %v1113_v18 = vmax.f32 %v1049_v12, 0.0  ;;  %v1145_v19 = vmax.f32 %v1081_v13, 0.0  ;;  %v981_v20 = vmul.f32 %v1594_v40, %v584_v16  ;;  %v1013_v21 = vmul.f32 %v1594_v40, %v712_v17 }
 0x10e   :  { %v1054_v22 = vadd.f32 %v1599_v42, %v983_v14  ;;  %v1086_v23 = vadd.f32 %v1599_v42, %v1015_v15  ;;  %v1349_v24 = vpop.f32.mrf.mxu0  ;;  %v1381_v25 = vpop.f32.mrf.mxu1 }
 0x10f   :  { %1177 = vst [vmem:[%s1925_s4 + $0x88] sm:$0xff] %v1113_v18  ;;  %1209 = vst [vmem:[%s1925_s4 + $0x188] sm:$0xff] %v1145_v19  ;;  %v1052_v26 = vadd.f32 %v1599_v42, %v981_v20  ;;  %v1084_v27 = vadd.f32 %v1599_v42, %v1013_v21  ;;  %v984_v28 = vmul.f32 %v1349_v24, %v1594_v40 }
 0x110   :  { %v1016_v29 = vmul.f32 %v1381_v25, %v1594_v40  ;;  %v1118_v30 = vmax.f32 %v1054_v22, 0.0  ;;  %v1150_v31 = vmax.f32 %v1086_v23, 0.0  ;;  %v587_v32 = vpop.f32.mrf.mxu0  ;;  %v715_v33 = vpop.f32.mrf.mxu1 }
 0x111   :  { %v1116_v34 = vmax.f32 %v1052_v26, 0.0  ;;  %v1148_v35 = vmax.f32 %v1084_v27, 0.0  ;;  %v1055_v36 = vadd.f32 %v1599_v42, %v984_v28  ;;  %v982_v38 = vmul.f32 %v1594_v40, %v587_v32 }
 0x112   :  { %v1087_v37 = vadd.f32 %v1599_v42, %v1016_v29  ;;  %1182 = vst [vmem:[%s1925_s4 + $0xb0] sm:$0xff] %v1118_v30  ;;  %1214 = vst [vmem:[%s1925_s4 + $0x1b0] sm:$0xff] %v1150_v31  ;;  %v1014_v39 = vmul.f32 %v1594_v40, %v715_v33  ;;  %v1352_v41 = vpop.f32.mrf.mxu0  ;;  %v1384_v43 = vpop.f32.mrf.mxu1 }
 0x113   :  { %1180 = vst [vmem:[%s1925_s4 + $0xa0] sm:$0xff] %v1116_v34  ;;  %1212 = vst [vmem:[%s1925_s4 + $0x1a0] sm:$0xff] %v1148_v35  ;;  %v1119_v44 = vmax.f32 %v1055_v36, 0.0  ;;  %v987_v46 = vmul.f32 %v1352_v41, %v1594_v40  ;;  %v1019_v47 = vmul.f32 %v1384_v43, %v1594_v40  ;;  %v1053_v48 = vadd.f32 %v1599_v42, %v982_v38 }
 0x114   :  { %v1151_v45 = vmax.f32 %v1087_v37, 0.0  ;;  %v1085_v49 = vadd.f32 %v1599_v42, %v1014_v39  ;;  %v600_v50 = vpop.f32.mrf.mxu0  ;;  %v728_v51 = vpop.f32.mrf.mxu1 }
 0x115   :  { %1183 = vst [vmem:[%s1925_s4 + $0xb8] sm:$0xff] %v1119_v44  ;;  %v1058_v52 = vadd.f32 %v1599_v42, %v987_v46  ;;  %v1090_v53 = vadd.f32 %v1599_v42, %v1019_v47  ;;  %v985_v54 = vmul.f32 %v1594_v40, %v600_v50  ;;  %v1017_v55 = vmul.f32 %v1594_v40, %v728_v51 }
 0x116   :  { %1215 = vst [vmem:[%s1925_s4 + $0x1b8] sm:$0xff] %v1151_v45  ;;  %v1117_v56 = vmax.f32 %v1053_v48, 0.0  ;;  %v1149_v57 = vmax.f32 %v1085_v49, 0.0  ;;  %v1353_v58 = vpop.f32.mrf.mxu0  ;;  %v1385_v59 = vpop.f32.mrf.mxu1 }
 0x117   :  { %v1122_v60 = vmax.f32 %v1058_v52, 0.0  ;;  %v1154_v61 = vmax.f32 %v1090_v53, 0.0  ;;  %v1056_v62 = vadd.f32 %v1599_v42, %v985_v54  ;;  %v1088_v63 = vadd.f32 %v1599_v42, %v1017_v55 }
 0x118   :  { %1181 = vst [vmem:[%s1925_s4 + $0xa8] sm:$0xff] %v1117_v56  ;;  %1213 = vst [vmem:[%s1925_s4 + $0x1a8] sm:$0xff] %v1149_v57  ;;  %v988_v0 = vmul.f32 %v1353_v58, %v1594_v40  ;;  %v1020_v1 = vmul.f32 %v1385_v59, %v1594_v40  ;;  %v603_v2 = vpop.f32.mrf.mxu0  ;;  %v731_v3 = vpop.f32.mrf.mxu1 }
 0x119   :  { %1186 = vst [vmem:[%s1925_s4 + $0xd0] sm:$0xff] %v1122_v60  ;;  %1218 = vst [vmem:[%s1925_s4 + $0x1d0] sm:$0xff] %v1154_v61  ;;  %v1120_v4 = vmax.f32 %v1056_v62, 0.0  ;;  %v1152_v5 = vmax.f32 %v1088_v63, 0.0  ;;  %v986_v6 = vmul.f32 %v1594_v40, %v603_v2  ;;  %v1018_v7 = vmul.f32 %v1594_v40, %v731_v3 }
 0x11a   :  { %v1059_v8 = vadd.f32 %v1599_v42, %v988_v0  ;;  %v1091_v9 = vadd.f32 %v1599_v42, %v1020_v1  ;;  %v1356_v10 = vpop.f32.mrf.mxu0  ;;  %v1388_v11 = vpop.f32.mrf.mxu1 }
 0x11b   :  { %1184 = vst [vmem:[%s1925_s4 + $0xc0] sm:$0xff] %v1120_v4  ;;  %1216 = vst [vmem:[%s1925_s4 + $0x1c0] sm:$0xff] %v1152_v5  ;;  %v1057_v12 = vadd.f32 %v1599_v42, %v986_v6  ;;  %v1089_v13 = vadd.f32 %v1599_v42, %v1018_v7  ;;  %v991_v14 = vmul.f32 %v1356_v10, %v1594_v40 }
 0x11c   :  { %v1023_v15 = vmul.f32 %v1388_v11, %v1594_v40  ;;  %v1123_v16 = vmax.f32 %v1059_v8, 0.0  ;;  %v1155_v17 = vmax.f32 %v1091_v9, 0.0  ;;  %v616_v18 = vpop.f32.mrf.mxu0  ;;  %v744_v19 = vpop.f32.mrf.mxu1 }
 0x11d   :  { %v1121_v20 = vmax.f32 %v1057_v12, 0.0  ;;  %v1153_v21 = vmax.f32 %v1089_v13, 0.0  ;;  %v1062_v22 = vadd.f32 %v1599_v42, %v991_v14  ;;  %v989_v24 = vmul.f32 %v1594_v40, %v616_v18 }
 0x11e   :  { %v1094_v23 = vadd.f32 %v1599_v42, %v1023_v15  ;;  %1187 = vst [vmem:[%s1925_s4 + $0xd8] sm:$0xff] %v1123_v16  ;;  %1219 = vst [vmem:[%s1925_s4 + $0x1d8] sm:$0xff] %v1155_v17  ;;  %v1021_v25 = vmul.f32 %v1594_v40, %v744_v19  ;;  %v1357_v26 = vpop.f32.mrf.mxu0  ;;  %v1389_v27 = vpop.f32.mrf.mxu1 }
 0x11f   :  { %1185 = vst [vmem:[%s1925_s4 + $0xc8] sm:$0xff] %v1121_v20  ;;  %1217 = vst [vmem:[%s1925_s4 + $0x1c8] sm:$0xff] %v1153_v21  ;;  %v1126_v28 = vmax.f32 %v1062_v22, 0.0  ;;  %v992_v30 = vmul.f32 %v1357_v26, %v1594_v40  ;;  %v1024_v31 = vmul.f32 %v1389_v27, %v1594_v40  ;;  %v1060_v32 = vadd.f32 %v1599_v42, %v989_v24 }
 0x120   :  { %v1158_v29 = vmax.f32 %v1094_v23, 0.0  ;;  %v1092_v33 = vadd.f32 %v1599_v42, %v1021_v25  ;;  %v619_v34 = vpop.f32.mrf.mxu0  ;;  %v747_v35 = vpop.f32.mrf.mxu1 }
 0x121   :  { %1190 = vst [vmem:[%s1925_s4 + $0xf0] sm:$0xff] %v1126_v28  ;;  %v1063_v36 = vadd.f32 %v1599_v42, %v992_v30  ;;  %v1095_v37 = vadd.f32 %v1599_v42, %v1024_v31  ;;  %v990_v38 = vmul.f32 %v1594_v40, %v619_v34  ;;  %v1022_v39 = vmul.f32 %v1594_v40, %v747_v35 }
 0x122   :  { %1222 = vst [vmem:[%s1925_s4 + $0x1f0] sm:$0xff] %v1158_v29  ;;  %v1124_v41 = vmax.f32 %v1060_v32, 0.0  ;;  %v1156_v43 = vmax.f32 %v1092_v33, 0.0 }
 0x123   :  { %v1127_v44 = vmax.f32 %v1063_v36, 0.0  ;;  %v1159_v45 = vmax.f32 %v1095_v37, 0.0  ;;  %v1061_v46 = vadd.f32 %v1599_v42, %v990_v38  ;;  %v1093_v47 = vadd.f32 %v1599_v42, %v1022_v39 }
 0x124   :  { %1188 = vst [vmem:[%s1925_s4 + $0xe0] sm:$0xff] %v1124_v41  ;;  %1220 = vst [vmem:[%s1925_s4 + $0x1e0] sm:$0xff] %v1156_v43 }
 0x125   :  { %1191 = vst [vmem:[%s1925_s4 + $0xf8] sm:$0xff] %v1127_v44  ;;  %1223 = vst [vmem:[%s1925_s4 + $0x1f8] sm:$0xff] %v1159_v45  ;;  %v1125_v40 = vmax.f32 %v1061_v46, 0.0  ;;  %v1157_v48 = vmax.f32 %v1093_v47, 0.0 }
 0x127   :  { %1189 = vst [vmem:[%s1925_s4 + $0xe8] sm:$0xff] %v1125_v40  ;;  %1221 = vst [vmem:[%s1925_s4 + $0x1e8] sm:$0xff] %v1157_v48 }

// kernel: crnn_forward.9
= control target key start
LH: loop header
LB: loop body
LE: loop exit
PB: predicated region body
PF: predicated region fallthrough
CT: control target
= control target key end

     0   :  { %s873_s1 = inlined_call_operand.vmem [shape: bf16[256,128], index: 1, kind: input, shape index: {}]   ;;  %s874_s0 = inlined_call_operand.vmem [shape: bf16[128,256], index: 0, kind: input, shape index: {}]   ;;  %s875_s2 = inlined_call_operand.vmem [shape: f32[1,128], index: 2, kind: input, shape index: {}]   ;;  %s876_s3 = inlined_call_operand.vmem [shape: f32[1,128], index: 3, kind: input, shape index: {}]   ;;  %s877_s4 = inlined_call_operand.vmem [shape: f32[128,128], index: 4, kind: output, shape index: {}]  }
   0x1   :  { %v622_v0 = vld [vmem:[%s873_s1 + $0x78] sm:$0xff]   ;;  %v624_v2 = vld [vmem:[%s873_s1 + $0x70] sm:$0xff]   ;;  %v626_v4 = vld [vmem:[%s873_s1 + $0x68] sm:$0xff]  }
   0x2   :  { %v623_v1 = vld [vmem:[%s873_s1 + $0x38] sm:$0xff]   ;;  %542 = vmatprep.subr.bf16.mxu0 %v622_v0  ;;  %606 = vmatprep.subr.bf16.mxu1 %v622_v0  ;;  %v625_v3 = vld [vmem:[%s873_s1 + $0x30] sm:$0xff]   ;;  %v627_v5 = vld [vmem:[%s873_s1 + $0x28] sm:$0xff]  }
   0x3   :  { %543 = vmatpush3.bf16.msra.mxu0 %v623_v1  ;;  %614 = vmatpush3.bf16.msra.mxu1 %v623_v1  ;;  %v628_v6 = vld [vmem:[%s873_s1 + $0x60] sm:$0xff]   ;;  %v630_v8 = vld [vmem:[%s873_s1 + $0x58] sm:$0xff]   ;;  %v632_v10 = vld [vmem:[%s873_s1 + $0x50] sm:$0xff]  }
   0x4   :  { %544 = vmatprep.subr.bf16.mxu0 %v624_v2  ;;  %607 = vmatprep.subr.bf16.mxu1 %v624_v2  ;;  %v629_v7 = vld [vmem:[%s873_s1 + $0x20] sm:$0xff]   ;;  %v631_v9 = vld [vmem:[%s873_s1 + $0x18] sm:$0xff]   ;;  %v633_v13 = vld [vmem:[%s873_s1 + $0x10] sm:$0xff]  }
   0x5   :  { %v640_v11 = vld [vmem:[%s874_s0 + $0x4] ss:$8 sps:$4 sm:$0xff]   ;;  %v638_v18 = vld [vmem:[%s874_s0] ss:$8 sps:$4 sm:$0xff]   ;;  %v644_v20 = vld [vmem:[%s874_s0 + $0x14] ss:$8 sps:$4 sm:$0xff]  }
   0x6   :  { %v643_v12 = vld [vmem:[%s874_s0 + $0x44] ss:$8 sps:$4 sm:$0xff]   ;;  %310 = vmatprep.mubr.bf16.mxu0 %v640_v11  ;;  %v641_v19 = vld [vmem:[%s874_s0 + $0x40] ss:$8 sps:$4 sm:$0xff]   ;;  %v646_v21 = vld [vmem:[%s874_s0 + $0x54] ss:$8 sps:$4 sm:$0xff]  }
   0x7   :  { %545 = vmatpush3.bf16.msra.mxu0 %v625_v3  ;;  %615 = vmatpush3.bf16.msra.mxu1 %v625_v3  ;;  %v634_v14 = vld [vmem:[%s873_s1 + $0x48] sm:$0xff]   ;;  %v636_v16 = vld [vmem:[%s873_s1 + $0x40] sm:$0xff]   ;;  %v648_v22 = vld [vmem:[%s874_s0 + $0x10] ss:$8 sps:$4 sm:$0xff]  }
   0x8   :  { %546 = vmatprep.subr.bf16.mxu0 %v626_v4  ;;  %608 = vmatprep.subr.bf16.mxu1 %v626_v4  ;;  %v635_v15 = vld [vmem:[%s873_s1 + $0x8] sm:$0xff]   ;;  %v637_v17 = vld [vmem:[%s873_s1] sm:$0xff]   ;;  %v649_v23 = vld [vmem:[%s874_s0 + $0x50] ss:$8 sps:$4 sm:$0xff]  }
   0x9   :  { %342 = vmatprep.mubr.bf16.mxu1 %v643_v12  ;;  %v650_v24 = vld [vmem:[%s874_s0 + $0x24] ss:$8 sps:$4 sm:$0xff]   ;;  %v654_v26 = vld [vmem:[%s874_s0 + $0x20] ss:$8 sps:$4 sm:$0xff]   ;;  %v656_v28 = vld [vmem:[%s874_s0 + $0x34] ss:$8 sps:$4 sm:$0xff]  }
   0xa   :  { %v652_v25 = vld [vmem:[%s874_s0 + $0x64] ss:$8 sps:$4 sm:$0xff]   ;;  %v655_v27 = vld [vmem:[%s874_s0 + $0x60] ss:$8 sps:$4 sm:$0xff]   ;;  %v658_v29 = vld [vmem:[%s874_s0 + $0x74] ss:$8 sps:$4 sm:$0xff]  }
   0xb   :  { %547 = vmatpush3.bf16.msra.mxu0 %v627_v5  ;;  %616 = vmatpush3.bf16.msra.mxu1 %v627_v5  ;;  %v660_v30 = vld [vmem:[%s874_s0 + $0x30] ss:$8 sps:$4 sm:$0xff]   ;;  %v786_v35 = vld [vmem:[%s875_s2] ss:$0 sm:$0xff] }
   0xc   :  { %548 = vmatprep.subr.bf16.mxu0 %v628_v6  ;;  %609 = vmatprep.subr.bf16.mxu1 %v628_v6  ;;  %v661_v31 = vld [vmem:[%s874_s0 + $0x70] ss:$8 sps:$4 sm:$0xff]   ;;  %v791_v39 = vld [vmem:[%s876_s3] ss:$0 sm:$0xff] }
   0xf   :  { %549 = vmatpush3.bf16.msra.mxu0 %v629_v7  ;;  %617 = vmatpush3.bf16.msra.mxu1 %v629_v7 }
  0x10   :  { %550 = vmatprep.subr.bf16.mxu0 %v630_v8  ;;  %610 = vmatprep.subr.bf16.mxu1 %v630_v8 }
  0x13   :  { %551 = vmatpush3.bf16.msra.mxu0 %v631_v9  ;;  %618 = vmatpush3.bf16.msra.mxu1 %v631_v9 }
  0x14   :  { %552 = vmatprep.subr.bf16.mxu0 %v632_v10  ;;  %611 = vmatprep.subr.bf16.mxu1 %v632_v10 }
  0x17   :  { %553 = vmatpush3.bf16.msra.mxu0 %v633_v13  ;;  %619 = vmatpush3.bf16.msra.mxu1 %v633_v13 }
  0x18   :  { %554 = vmatprep.subr.bf16.mxu0 %v634_v14  ;;  %612 = vmatprep.subr.bf16.mxu1 %v634_v14 }
  0x1b   :  { %555 = vmatpush3.bf16.msra.mxu0 %v635_v15  ;;  %620 = vmatpush3.bf16.msra.mxu1 %v635_v15 }
  0x1c   :  { %556 = vmatprep.subr.bf16.mxu0 %v636_v16  ;;  %613 = vmatprep.subr.bf16.mxu1 %v636_v16 }
  0x1f   :  { %557 = vmatpush3.bf16.msra.mxu0 %v637_v17  ;;  %621 = vmatpush3.bf16.msra.mxu1 %v637_v17 }
  0x22   :  { %311 = vmatmul.mubr.bf16.vlgmr.msra.gmra.mxu0 %v638_v18  ;;  %343 = vmatmul.mubr.bf16.vlgmr.msra.gmra.mxu1 %v641_v19 }
  0x23   :  { %318 = vmatprep.mubr.bf16.mxu0 %v644_v20  ;;  %350 = vmatprep.mubr.bf16.mxu1 %v646_v21 }
  0x2a   :  { %319 = vmatmul.mubr.bf16.gmra.mxu0 %v648_v22  ;;  %351 = vmatmul.mubr.bf16.gmra.mxu1 %v649_v23 }
  0x2b   :  { %326 = vmatprep.mubr.bf16.mxu0 %v650_v24  ;;  %358 = vmatprep.mubr.bf16.mxu1 %v652_v25 }
  0x32   :  { %327 = vmatmul.mubr.bf16.gmra.mxu0 %v654_v26  ;;  %359 = vmatmul.mubr.bf16.gmra.mxu1 %v655_v27 }
  0x33   :  { %334 = vmatprep.mubr.bf16.mxu0 %v656_v28  ;;  %366 = vmatprep.mubr.bf16.mxu1 %v658_v29 }
  0x3a   :  { %335 = vmatmul.mubr.bf16.gmra.mxu0 %v660_v30  ;;  %367 = vmatmul.mubr.bf16.gmra.mxu1 %v661_v31 }
  0xe2   :  { %v558_v32 = vpop.f32.mrf.mxu0  ;;  %v582_v33 = vpop.f32.mrf.mxu1 }
  0xe4   :  { %v559_v34 = vpop.f32.mrf.mxu0  ;;  %v583_v36 = vpop.f32.mrf.mxu1 }
  0xe5   :  { %v560_v37 = vadd.f32 %v559_v34, %v558_v32  ;;  %v584_v38 = vadd.f32 %v583_v36, %v582_v33 }
  0xe6   :  { %v561_v40 = vpop.f32.mrf.mxu0  ;;  %v585_v41 = vpop.f32.mrf.mxu1 }
  0xe7   :  { %v433_v42 = vmul.f32 %v560_v37, %v786_v35  ;;  %v441_v43 = vmul.f32 %v584_v38, %v786_v35 }
  0xe8   :  { %v562_v44 = vpop.f32.mrf.mxu0  ;;  %v586_v45 = vpop.f32.mrf.mxu1 }
  0xe9   :  { %v456_v46 = vadd.f32 %v791_v39, %v433_v42  ;;  %v464_v47 = vadd.f32 %v791_v39, %v441_v43  ;;  %v563_v48 = vadd.f32 %v562_v44, %v561_v40  ;;  %v587_v49 = vadd.f32 %v586_v45, %v585_v41 }
  0xea   :  { %v564_v50 = vpop.f32.mrf.mxu0  ;;  %v588_v51 = vpop.f32.mrf.mxu1 }
  0xeb   :  { %v472_v52 = vmax.f32 %v456_v46, 0.0  ;;  %v480_v53 = vmax.f32 %v464_v47, 0.0  ;;  %v434_v54 = vmul.f32 %v563_v48, %v786_v35  ;;  %v442_v55 = vmul.f32 %v587_v49, %v786_v35 }
  0xec   :  { %v565_v56 = vpop.f32.mrf.mxu0  ;;  %v589_v57 = vpop.f32.mrf.mxu1 }
  0xed   :  { %488 = vst [vmem:[%s877_s4] sm:$0xff] %v472_v52  ;;  %496 = vst [vmem:[%s877_s4 + $0x40] sm:$0xff] %v480_v53  ;;  %v457_v58 = vadd.f32 %v791_v39, %v434_v54  ;;  %v465_v59 = vadd.f32 %v791_v39, %v442_v55  ;;  %v566_v60 = vadd.f32 %v565_v56, %v564_v50 }
  0xee   :  { %v590_v61 = vadd.f32 %v589_v57, %v588_v51  ;;  %v567_v62 = vpop.f32.mrf.mxu0  ;;  %v591_v63 = vpop.f32.mrf.mxu1 }
  0xef   :  { %v473_v0 = vmax.f32 %v457_v58, 0.0  ;;  %v481_v1 = vmax.f32 %v465_v59, 0.0  ;;  %v435_v2 = vmul.f32 %v566_v60, %v786_v35 }
  0xf0   :  { %v443_v3 = vmul.f32 %v590_v61, %v786_v35  ;;  %v568_v4 = vpop.f32.mrf.mxu0  ;;  %v592_v5 = vpop.f32.mrf.mxu1 }
  0xf1   :  { %489 = vst [vmem:[%s877_s4 + $0x8] sm:$0xff] %v473_v0  ;;  %497 = vst [vmem:[%s877_s4 + $0x48] sm:$0xff] %v481_v1  ;;  %v458_v6 = vadd.f32 %v791_v39, %v435_v2  ;;  %v569_v8 = vadd.f32 %v568_v4, %v567_v62  ;;  %v593_v9 = vadd.f32 %v592_v5, %v591_v63 }
  0xf2   :  { %v466_v7 = vadd.f32 %v791_v39, %v443_v3  ;;  %v570_v10 = vpop.f32.mrf.mxu0  ;;  %v594_v11 = vpop.f32.mrf.mxu1 }
  0xf3   :  { %v474_v12 = vmax.f32 %v458_v6, 0.0  ;;  %v436_v14 = vmul.f32 %v569_v8, %v786_v35  ;;  %v444_v15 = vmul.f32 %v593_v9, %v786_v35 }
  0xf4   :  { %v482_v13 = vmax.f32 %v466_v7, 0.0  ;;  %v571_v16 = vpop.f32.mrf.mxu0  ;;  %v595_v17 = vpop.f32.mrf.mxu1 }
  0xf5   :  { %490 = vst [vmem:[%s877_s4 + $0x10] sm:$0xff] %v474_v12  ;;  %v459_v18 = vadd.f32 %v791_v39, %v436_v14  ;;  %v467_v19 = vadd.f32 %v791_v39, %v444_v15  ;;  %v572_v20 = vadd.f32 %v571_v16, %v570_v10  ;;  %v596_v21 = vadd.f32 %v595_v17, %v594_v11 }
  0xf6   :  { %498 = vst [vmem:[%s877_s4 + $0x50] sm:$0xff] %v482_v13  ;;  %v573_v22 = vpop.f32.mrf.mxu0  ;;  %v597_v23 = vpop.f32.mrf.mxu1 }
  0xf7   :  { %v475_v24 = vmax.f32 %v459_v18, 0.0  ;;  %v483_v25 = vmax.f32 %v467_v19, 0.0  ;;  %v437_v26 = vmul.f32 %v572_v20, %v786_v35  ;;  %v445_v27 = vmul.f32 %v596_v21, %v786_v35 }
  0xf8   :  { %v574_v28 = vpop.f32.mrf.mxu0  ;;  %v598_v29 = vpop.f32.mrf.mxu1 }
  0xf9   :  { %491 = vst [vmem:[%s877_s4 + $0x18] sm:$0xff] %v475_v24  ;;  %499 = vst [vmem:[%s877_s4 + $0x58] sm:$0xff] %v483_v25  ;;  %v460_v30 = vadd.f32 %v791_v39, %v437_v26  ;;  %v468_v31 = vadd.f32 %v791_v39, %v445_v27  ;;  %v575_v32 = vadd.f32 %v574_v28, %v573_v22 }
  0xfa   :  { %v599_v33 = vadd.f32 %v598_v29, %v597_v23  ;;  %v576_v34 = vpop.f32.mrf.mxu0  ;;  %v600_v36 = vpop.f32.mrf.mxu1 }
  0xfb   :  { %v476_v37 = vmax.f32 %v460_v30, 0.0  ;;  %v484_v38 = vmax.f32 %v468_v31, 0.0  ;;  %v438_v40 = vmul.f32 %v575_v32, %v786_v35 }
  0xfc   :  { %v446_v41 = vmul.f32 %v599_v33, %v786_v35  ;;  %v577_v42 = vpop.f32.mrf.mxu0  ;;  %v601_v43 = vpop.f32.mrf.mxu1 }
  0xfd   :  { %492 = vst [vmem:[%s877_s4 + $0x20] sm:$0xff] %v476_v37  ;;  %500 = vst [vmem:[%s877_s4 + $0x60] sm:$0xff] %v484_v38  ;;  %v461_v44 = vadd.f32 %v791_v39, %v438_v40  ;;  %v578_v46 = vadd.f32 %v577_v42, %v576_v34  ;;  %v602_v47 = vadd.f32 %v601_v43, %v600_v36 }
  0xfe   :  { %v469_v45 = vadd.f32 %v791_v39, %v446_v41  ;;  %v579_v48 = vpop.f32.mrf.mxu0  ;;  %v603_v49 = vpop.f32.mrf.mxu1 }
  0xff   :  { %v477_v50 = vmax.f32 %v461_v44, 0.0  ;;  %v439_v52 = vmul.f32 %v578_v46, %v786_v35  ;;  %v447_v53 = vmul.f32 %v602_v47, %v786_v35 }
 0x100   :  { %v485_v51 = vmax.f32 %v469_v45, 0.0  ;;  %v580_v54 = vpop.f32.mrf.mxu0  ;;  %v604_v55 = vpop.f32.mrf.mxu1 }
 0x101   :  { %493 = vst [vmem:[%s877_s4 + $0x28] sm:$0xff] %v477_v50  ;;  %v462_v56 = vadd.f32 %v791_v39, %v439_v52  ;;  %v470_v57 = vadd.f32 %v791_v39, %v447_v53  ;;  %v581_v58 = vadd.f32 %v580_v54, %v579_v48  ;;  %v605_v59 = vadd.f32 %v604_v55, %v603_v49 }
 0x102   :  { %501 = vst [vmem:[%s877_s4 + $0x68] sm:$0xff] %v485_v51 }
 0x103   :  { %v478_v60 = vmax.f32 %v462_v56, 0.0  ;;  %v486_v61 = vmax.f32 %v470_v57, 0.0  ;;  %v440_v62 = vmul.f32 %v581_v58, %v786_v35  ;;  %v448_v63 = vmul.f32 %v605_v59, %v786_v35 }
 0x105   :  { %494 = vst [vmem:[%s877_s4 + $0x30] sm:$0xff] %v478_v60  ;;  %502 = vst [vmem:[%s877_s4 + $0x70] sm:$0xff] %v486_v61  ;;  %v463_v0 = vadd.f32 %v791_v39, %v440_v62  ;;  %v471_v1 = vadd.f32 %v791_v39, %v448_v63 }
 0x107   :  { %v479_v2 = vmax.f32 %v463_v0, 0.0  ;;  %v487_v3 = vmax.f32 %v471_v1, 0.0 }
 0x109   :  { %495 = vst [vmem:[%s877_s4 + $0x38] sm:$0xff] %v479_v2  ;;  %503 = vst [vmem:[%s877_s4 + $0x78] sm:$0xff] %v487_v3 }

// kernel: crnn_forward.10
= control target key start
LH: loop header
LB: loop body
LE: loop exit
PB: predicated region body
PF: predicated region fallthrough
CT: control target
= control target key end

     0   :  { %s1410_s1 = inlined_call_operand.vmem [shape: bf16[512,128], index: 1, kind: input, shape index: {}]   ;;  %s1411_s0 = inlined_call_operand.vmem [shape: bf16[128,512], index: 0, kind: input, shape index: {}]   ;;  %s1412_s2 = inlined_call_operand.vmem [shape: f32[1,128], index: 2, kind: input, shape index: {}]   ;;  %s1413_s3 = inlined_call_operand.vmem [shape: f32[1,128], index: 3, kind: input, shape index: {}]   ;;  %s1414_s4 = inlined_call_operand.vmem [shape: f32[128,128], index: 4, kind: output, shape index: {}]  }
   0x1   :  { %v1023_v0 = vld [vmem:[%s1410_s1 + $0x78] sm:$0xff]   ;;  %v1027_v4 = vld [vmem:[%s1410_s1 + $0x70] sm:$0xff]   ;;  %v1031_v8 = vld [vmem:[%s1410_s1 + $0x68] sm:$0xff]  }
   0x2   :  { %v1024_v1 = vld [vmem:[%s1410_s1 + $0xf8] sm:$0xff]   ;;  %895 = vmatprep.subr.bf16.mxu0 %v1023_v0  ;;  %v1028_v5 = vld [vmem:[%s1410_s1 + $0xf0] sm:$0xff]   ;;  %v1032_v9 = vld [vmem:[%s1410_s1 + $0xe8] sm:$0xff]  }
   0x3   :  { %v1025_v2 = vld [vmem:[%s1410_s1 + $0x38] sm:$0xff]   ;;  %959 = vmatprep.subr.bf16.mxu1 %v1024_v1  ;;  %v1029_v6 = vld [vmem:[%s1410_s1 + $0x30] sm:$0xff]   ;;  %v1033_v10 = vld [vmem:[%s1410_s1 + $0x28] sm:$0xff]  }
   0x4   :  { %v1026_v3 = vld [vmem:[%s1410_s1 + $0xb8] sm:$0xff]   ;;  %896 = vmatpush3.bf16.msra.mxu0 %v1025_v2  ;;  %v1030_v7 = vld [vmem:[%s1410_s1 + $0xb0] sm:$0xff]   ;;  %v1034_v11 = vld [vmem:[%s1410_s1 + $0xa8] sm:$0xff]  }
   0x5   :  { %960 = vmatpush3.bf16.msra.mxu1 %v1026_v3  ;;  %897 = vmatprep.subr.bf16.mxu0 %v1027_v4  ;;  %v1035_v12 = vld [vmem:[%s1410_s1 + $0x60] sm:$0xff]   ;;  %v1039_v16 = vld [vmem:[%s1410_s1 + $0x58] sm:$0xff]   ;;  %v1043_v20 = vld [vmem:[%s1410_s1 + $0x50] sm:$0xff]  }
   0x6   :  { %961 = vmatprep.subr.bf16.mxu1 %v1028_v5  ;;  %v1036_v13 = vld [vmem:[%s1410_s1 + $0xe0] sm:$0xff]   ;;  %v1040_v17 = vld [vmem:[%s1410_s1 + $0xd8] sm:$0xff]   ;;  %v1044_v21 = vld [vmem:[%s1410_s1 + $0xd0] sm:$0xff]  }
   0x7   :  { %v1037_v14 = vld [vmem:[%s1410_s1 + $0x20] sm:$0xff]   ;;  %v1041_v18 = vld [vmem:[%s1410_s1 + $0x18] sm:$0xff]   ;;  %v1045_v22 = vld [vmem:[%s1410_s1 + $0x10] sm:$0xff]  }
   0x8   :  { %898 = vmatpush3.bf16.msra.mxu0 %v1029_v6  ;;  %v1038_v15 = vld [vmem:[%s1410_s1 + $0xa0] sm:$0xff]   ;;  %v1042_v19 = vld [vmem:[%s1410_s1 + $0x98] sm:$0xff]   ;;  %v1046_v23 = vld [vmem:[%s1410_s1 + $0x90] sm:$0xff]  }
   0x9   :  { %962 = vmatpush3.bf16.msra.mxu1 %v1030_v7  ;;  %899 = vmatprep.subr.bf16.mxu0 %v1031_v8  ;;  %v1047_v24 = vld [vmem:[%s1410_s1 + $0x48] sm:$0xff]   ;;  %v1051_v28 = vld [vmem:[%s1410_s1 + $0x40] sm:$0xff]  }
   0xa   :  { %963 = vmatprep.subr.bf16.mxu1 %v1032_v9  ;;  %v1048_v25 = vld [vmem:[%s1410_s1 + $0xc8] sm:$0xff]   ;;  %v1052_v29 = vld [vmem:[%s1410_s1 + $0xc0] sm:$0xff]  }
   0xb   :  { %v1049_v26 = vld [vmem:[%s1410_s1 + $0x8] sm:$0xff]   ;;  %v1053_v30 = vld [vmem:[%s1410_s1] sm:$0xff]  }
   0xc   :  { %900 = vmatpush3.bf16.msra.mxu0 %v1033_v10  ;;  %v1050_v27 = vld [vmem:[%s1410_s1 + $0x88] sm:$0xff]   ;;  %v1054_v31 = vld [vmem:[%s1410_s1 + $0x80] sm:$0xff]  }
   0xd   :  { %964 = vmatpush3.bf16.msra.mxu1 %v1034_v11  ;;  %901 = vmatprep.subr.bf16.mxu0 %v1035_v12  ;;  %v1055_v32 = vld [vmem:[%s1411_s0] ss:$16 sps:$4 sm:$0xff]   ;;  %v1057_v33 = vld [vmem:[%s1411_s0 + $0x4] ss:$16 sps:$4 sm:$0xff]   ;;  %v1058_v34 = vld [vmem:[%s1411_s0 + $0x8] ss:$16 sps:$4 sm:$0xff]  }
   0xe   :  { %965 = vmatprep.subr.bf16.mxu1 %v1036_v13  ;;  %v1060_v35 = vld [vmem:[%s1411_s0 + $0xc] ss:$16 sps:$4 sm:$0xff]   ;;  %534 = vmatprep.mubr.bf16.mxu0 %v1057_v33  ;;  %v1061_v36 = vld [vmem:[%s1411_s0 + $0x24] ss:$16 sps:$4 sm:$0xff]   ;;  %v1065_v38 = vld [vmem:[%s1411_s0 + $0x20] ss:$16 sps:$4 sm:$0xff]  }
   0xf   :  { %631 = vmatprep.mubr.bf16.mxu1 %v1060_v35  ;;  %v1063_v37 = vld [vmem:[%s1411_s0 + $0x2c] ss:$16 sps:$4 sm:$0xff]   ;;  %v1066_v39 = vld [vmem:[%s1411_s0 + $0x28] ss:$16 sps:$4 sm:$0xff]   ;;  %v1067_v40 = vld [vmem:[%s1411_s0 + $0x44] ss:$16 sps:$4 sm:$0xff]  }
  0x10   :  { %902 = vmatpush3.bf16.msra.mxu0 %v1037_v14  ;;  %v1069_v41 = vld [vmem:[%s1411_s0 + $0x4c] ss:$16 sps:$4 sm:$0xff]   ;;  %v1071_v42 = vld [vmem:[%s1411_s0 + $0x40] ss:$16 sps:$4 sm:$0xff]   ;;  %v1072_v43 = vld [vmem:[%s1411_s0 + $0x48] ss:$16 sps:$4 sm:$0xff]  }
  0x11   :  { %966 = vmatpush3.bf16.msra.mxu1 %v1038_v15  ;;  %903 = vmatprep.subr.bf16.mxu0 %v1039_v16  ;;  %v1073_v44 = vld [vmem:[%s1411_s0 + $0x64] ss:$16 sps:$4 sm:$0xff]   ;;  %v1075_v45 = vld [vmem:[%s1411_s0 + $0x6c] ss:$16 sps:$4 sm:$0xff]   ;;  %v1077_v46 = vld [vmem:[%s1411_s0 + $0x60] ss:$16 sps:$4 sm:$0xff]  }
  0x12   :  { %967 = vmatprep.subr.bf16.mxu1 %v1040_v17  ;;  %v1078_v47 = vld [vmem:[%s1411_s0 + $0x68] ss:$16 sps:$4 sm:$0xff]   ;;  %v1079_v48 = vld [vmem:[%s1411_s0 + $0x84] ss:$16 sps:$4 sm:$0xff]   ;;  %v1081_v49 = vld [vmem:[%s1411_s0 + $0x8c] ss:$16 sps:$4 sm:$0xff]  }
  0x13   :  { %v1083_v50 = vld [vmem:[%s1411_s0 + $0x80] ss:$16 sps:$4 sm:$0xff]   ;;  %v1084_v51 = vld [vmem:[%s1411_s0 + $0x88] ss:$16 sps:$4 sm:$0xff]   ;;  %v1085_v52 = vld [vmem:[%s1411_s0 + $0xa4] ss:$16 sps:$4 sm:$0xff]  }
  0x14   :  { %904 = vmatpush3.bf16.msra.mxu0 %v1041_v18  ;;  %v1087_v53 = vld [vmem:[%s1411_s0 + $0xac] ss:$16 sps:$4 sm:$0xff]   ;;  %v1089_v54 = vld [vmem:[%s1411_s0 + $0xa0] ss:$16 sps:$4 sm:$0xff]   ;;  %v1090_v55 = vld [vmem:[%s1411_s0 + $0xa8] ss:$16 sps:$4 sm:$0xff]  }
  0x15   :  { %968 = vmatpush3.bf16.msra.mxu1 %v1042_v19  ;;  %905 = vmatprep.subr.bf16.mxu0 %v1043_v20  ;;  %v1091_v56 = vld [vmem:[%s1411_s0 + $0xc4] ss:$16 sps:$4 sm:$0xff]   ;;  %v1093_v57 = vld [vmem:[%s1411_s0 + $0xcc] ss:$16 sps:$4 sm:$0xff]   ;;  %v1095_v58 = vld [vmem:[%s1411_s0 + $0xc0] ss:$16 sps:$4 sm:$0xff]  }
  0x16   :  { %969 = vmatprep.subr.bf16.mxu1 %v1044_v21  ;;  %v1096_v59 = vld [vmem:[%s1411_s0 + $0xc8] ss:$16 sps:$4 sm:$0xff]   ;;  %v1097_v60 = vld [vmem:[%s1411_s0 + $0xe4] ss:$16 sps:$4 sm:$0xff]   ;;  %v1099_v61 = vld [vmem:[%s1411_s0 + $0xec] ss:$16 sps:$4 sm:$0xff]  }
  0x17   :  { %v1101_v62 = vld [vmem:[%s1411_s0 + $0xe0] ss:$16 sps:$4 sm:$0xff]   ;;  %v1102_v63 = vld [vmem:[%s1411_s0 + $0xe8] ss:$16 sps:$4 sm:$0xff]  }
  0x18   :  { %906 = vmatpush3.bf16.msra.mxu0 %v1045_v22  ;;  %v1323_v7 = vld [vmem:[%s1412_s2] ss:$0 sm:$0xff] }
  0x19   :  { %970 = vmatpush3.bf16.msra.mxu1 %v1046_v23  ;;  %907 = vmatprep.subr.bf16.mxu0 %v1047_v24  ;;  %v1328_v11 = vld [vmem:[%s1413_s3] ss:$0 sm:$0xff] }
  0x1a   :  { %971 = vmatprep.subr.bf16.mxu1 %v1048_v25 }
  0x1c   :  { %908 = vmatpush3.bf16.msra.mxu0 %v1049_v26 }
  0x1d   :  { %972 = vmatpush3.bf16.msra.mxu1 %v1050_v27  ;;  %909 = vmatprep.subr.bf16.mxu0 %v1051_v28 }
  0x1e   :  { %973 = vmatprep.subr.bf16.mxu1 %v1052_v29 }
  0x20   :  { %910 = vmatpush3.bf16.msra.mxu0 %v1053_v30 }
  0x21   :  { %974 = vmatpush3.bf16.msra.mxu1 %v1054_v31 }
  0x23   :  { %535 = vmatmul.mubr.bf16.vlgmr.msra.gmra.mxu0 %v1055_v32 }
  0x24   :  { %632 = vmatmul.mubr.bf16.vlgmr.msra.gmra.mxu1 %v1058_v34  ;;  %542 = vmatprep.mubr.bf16.mxu0 %v1061_v36 }
  0x25   :  { %639 = vmatprep.mubr.bf16.mxu1 %v1063_v37 }
  0x2b   :  { %543 = vmatmul.mubr.bf16.gmra.mxu0 %v1065_v38 }
  0x2c   :  { %640 = vmatmul.mubr.bf16.gmra.mxu1 %v1066_v39  ;;  %550 = vmatprep.mubr.bf16.mxu0 %v1067_v40 }
  0x2d   :  { %647 = vmatprep.mubr.bf16.mxu1 %v1069_v41 }
  0x33   :  { %551 = vmatmul.mubr.bf16.gmra.mxu0 %v1071_v42 }
  0x34   :  { %648 = vmatmul.mubr.bf16.gmra.mxu1 %v1072_v43  ;;  %558 = vmatprep.mubr.bf16.mxu0 %v1073_v44 }
  0x35   :  { %655 = vmatprep.mubr.bf16.mxu1 %v1075_v45 }
  0x3b   :  { %559 = vmatmul.mubr.bf16.gmra.mxu0 %v1077_v46 }
  0x3c   :  { %656 = vmatmul.mubr.bf16.gmra.mxu1 %v1078_v47  ;;  %566 = vmatprep.mubr.bf16.mxu0 %v1079_v48 }
  0x3d   :  { %663 = vmatprep.mubr.bf16.mxu1 %v1081_v49 }
  0x43   :  { %567 = vmatmul.mubr.bf16.gmra.mxu0 %v1083_v50 }
  0x44   :  { %664 = vmatmul.mubr.bf16.gmra.mxu1 %v1084_v51  ;;  %574 = vmatprep.mubr.bf16.mxu0 %v1085_v52 }
  0x45   :  { %671 = vmatprep.mubr.bf16.mxu1 %v1087_v53 }
  0x4b   :  { %575 = vmatmul.mubr.bf16.gmra.mxu0 %v1089_v54 }
  0x4c   :  { %672 = vmatmul.mubr.bf16.gmra.mxu1 %v1090_v55  ;;  %582 = vmatprep.mubr.bf16.mxu0 %v1091_v56 }
  0x4d   :  { %679 = vmatprep.mubr.bf16.mxu1 %v1093_v57 }
  0x53   :  { %583 = vmatmul.mubr.bf16.gmra.mxu0 %v1095_v58 }
  0x54   :  { %680 = vmatmul.mubr.bf16.gmra.mxu1 %v1096_v59  ;;  %590 = vmatprep.mubr.bf16.mxu0 %v1097_v60 }
  0x55   :  { %687 = vmatprep.mubr.bf16.mxu1 %v1099_v61 }
  0x5b   :  { %591 = vmatmul.mubr.bf16.gmra.mxu0 %v1101_v62 }
  0x5c   :  { %688 = vmatmul.mubr.bf16.gmra.mxu1 %v1102_v63 }
  0xe3   :  { %v911_v0 = vpop.f32.mrf.mxu0 }
  0xe4   :  { %v975_v1 = vpop.f32.mrf.mxu1 }
  0xe5   :  { %v912_v2 = vpop.f32.mrf.mxu0 }
  0xe6   :  { %v913_v3 = vadd.f32 %v912_v2, %v911_v0  ;;  %v976_v4 = vpop.f32.mrf.mxu1 }
  0xe7   :  { %v977_v5 = vadd.f32 %v976_v4, %v975_v1  ;;  %v914_v6 = vpop.f32.mrf.mxu0 }
  0xe8   :  { %v978_v8 = vpop.f32.mrf.mxu1 }
  0xe9   :  { %v634_v9 = vadd.f32 %v977_v5, %v913_v3  ;;  %v915_v10 = vpop.f32.mrf.mxu0 }
  0xea   :  { %v916_v12 = vadd.f32 %v915_v10, %v914_v6  ;;  %v979_v13 = vpop.f32.mrf.mxu1 }
  0xeb   :  { %v754_v14 = vmul.f32 %v1323_v7, %v634_v9  ;;  %v980_v15 = vadd.f32 %v979_v13, %v978_v8  ;;  %v917_v16 = vpop.f32.mrf.mxu0 }
  0xec   :  { %v981_v17 = vpop.f32.mrf.mxu1 }
  0xed   :  { %v777_v18 = vadd.f32 %v1328_v11, %v754_v14  ;;  %v637_v19 = vadd.f32 %v980_v15, %v916_v12  ;;  %v918_v20 = vpop.f32.mrf.mxu0 }
  0xee   :  { %v919_v21 = vadd.f32 %v918_v20, %v917_v16  ;;  %v982_v22 = vpop.f32.mrf.mxu1 }
  0xef   :  { %v793_v23 = vmax.f32 %v777_v18, 0.0  ;;  %v755_v24 = vmul.f32 %v1323_v7, %v637_v19  ;;  %v983_v25 = vadd.f32 %v982_v22, %v981_v17  ;;  %v920_v26 = vpop.f32.mrf.mxu0 }
  0xf0   :  { %v984_v27 = vpop.f32.mrf.mxu1 }
  0xf1   :  { %809 = vst [vmem:[%s1414_s4] sm:$0xff] %v793_v23  ;;  %v778_v28 = vadd.f32 %v1328_v11, %v755_v24  ;;  %v642_v29 = vadd.f32 %v983_v25, %v919_v21  ;;  %v921_v30 = vpop.f32.mrf.mxu0 }
  0xf2   :  { %v922_v31 = vadd.f32 %v921_v30, %v920_v26  ;;  %v985_v32 = vpop.f32.mrf.mxu1 }
  0xf3   :  { %v794_v33 = vmax.f32 %v778_v28, 0.0  ;;  %v756_v34 = vmul.f32 %v1323_v7, %v642_v29  ;;  %v986_v35 = vadd.f32 %v985_v32, %v984_v27  ;;  %v923_v36 = vpop.f32.mrf.mxu0 }
  0xf4   :  { %v987_v37 = vpop.f32.mrf.mxu1 }
  0xf5   :  { %810 = vst [vmem:[%s1414_s4 + $0x8] sm:$0xff] %v794_v33  ;;  %v779_v38 = vadd.f32 %v1328_v11, %v756_v34  ;;  %v645_v39 = vadd.f32 %v986_v35, %v922_v31  ;;  %v924_v40 = vpop.f32.mrf.mxu0 }
  0xf6   :  { %v925_v41 = vadd.f32 %v924_v40, %v923_v36  ;;  %v988_v42 = vpop.f32.mrf.mxu1 }
  0xf7   :  { %v795_v43 = vmax.f32 %v779_v38, 0.0  ;;  %v757_v44 = vmul.f32 %v1323_v7, %v645_v39  ;;  %v989_v45 = vadd.f32 %v988_v42, %v987_v37  ;;  %v926_v46 = vpop.f32.mrf.mxu0 }
  0xf8   :  { %v990_v47 = vpop.f32.mrf.mxu1 }
  0xf9   :  { %811 = vst [vmem:[%s1414_s4 + $0x10] sm:$0xff] %v795_v43  ;;  %v780_v48 = vadd.f32 %v1328_v11, %v757_v44  ;;  %v650_v49 = vadd.f32 %v989_v45, %v925_v41  ;;  %v927_v50 = vpop.f32.mrf.mxu0 }
  0xfa   :  { %v928_v51 = vadd.f32 %v927_v50, %v926_v46  ;;  %v991_v52 = vpop.f32.mrf.mxu1 }
  0xfb   :  { %v796_v53 = vmax.f32 %v780_v48, 0.0  ;;  %v758_v54 = vmul.f32 %v1323_v7, %v650_v49  ;;  %v992_v55 = vadd.f32 %v991_v52, %v990_v47  ;;  %v929_v56 = vpop.f32.mrf.mxu0 }
  0xfc   :  { %v993_v57 = vpop.f32.mrf.mxu1 }
  0xfd   :  { %812 = vst [vmem:[%s1414_s4 + $0x18] sm:$0xff] %v796_v53  ;;  %v781_v58 = vadd.f32 %v1328_v11, %v758_v54  ;;  %v653_v59 = vadd.f32 %v992_v55, %v928_v51  ;;  %v930_v60 = vpop.f32.mrf.mxu0 }
  0xfe   :  { %v931_v61 = vadd.f32 %v930_v60, %v929_v56  ;;  %v994_v62 = vpop.f32.mrf.mxu1 }
  0xff   :  { %v797_v63 = vmax.f32 %v781_v58, 0.0  ;;  %v759_v0 = vmul.f32 %v1323_v7, %v653_v59  ;;  %v995_v1 = vadd.f32 %v994_v62, %v993_v57  ;;  %v932_v2 = vpop.f32.mrf.mxu0 }
 0x100   :  { %v996_v3 = vpop.f32.mrf.mxu1 }
 0x101   :  { %813 = vst [vmem:[%s1414_s4 + $0x20] sm:$0xff] %v797_v63  ;;  %v782_v4 = vadd.f32 %v1328_v11, %v759_v0  ;;  %v658_v5 = vadd.f32 %v995_v1, %v931_v61  ;;  %v933_v6 = vpop.f32.mrf.mxu0 }
 0x102   :  { %v934_v8 = vadd.f32 %v933_v6, %v932_v2  ;;  %v997_v9 = vpop.f32.mrf.mxu1 }
 0x103   :  { %v798_v10 = vmax.f32 %v782_v4, 0.0  ;;  %v760_v12 = vmul.f32 %v1323_v7, %v658_v5  ;;  %v998_v13 = vadd.f32 %v997_v9, %v996_v3  ;;  %v935_v14 = vpop.f32.mrf.mxu0 }
 0x104   :  { %v999_v15 = vpop.f32.mrf.mxu1 }
 0x105   :  { %814 = vst [vmem:[%s1414_s4 + $0x28] sm:$0xff] %v798_v10  ;;  %v783_v16 = vadd.f32 %v1328_v11, %v760_v12  ;;  %v661_v17 = vadd.f32 %v998_v13, %v934_v8  ;;  %v936_v18 = vpop.f32.mrf.mxu0 }
 0x106   :  { %v937_v19 = vadd.f32 %v936_v18, %v935_v14  ;;  %v1000_v20 = vpop.f32.mrf.mxu1 }
 0x107   :  { %v799_v21 = vmax.f32 %v783_v16, 0.0  ;;  %v761_v22 = vmul.f32 %v1323_v7, %v661_v17  ;;  %v1001_v23 = vadd.f32 %v1000_v20, %v999_v15  ;;  %v938_v24 = vpop.f32.mrf.mxu0 }
 0x108   :  { %v1002_v25 = vpop.f32.mrf.mxu1 }
 0x109   :  { %815 = vst [vmem:[%s1414_s4 + $0x30] sm:$0xff] %v799_v21  ;;  %v784_v26 = vadd.f32 %v1328_v11, %v761_v22  ;;  %v666_v27 = vadd.f32 %v1001_v23, %v937_v19  ;;  %v939_v28 = vpop.f32.mrf.mxu0 }
 0x10a   :  { %v940_v29 = vadd.f32 %v939_v28, %v938_v24  ;;  %v1003_v30 = vpop.f32.mrf.mxu1 }
 0x10b   :  { %v800_v31 = vmax.f32 %v784_v26, 0.0  ;;  %v762_v32 = vmul.f32 %v1323_v7, %v666_v27  ;;  %v1004_v33 = vadd.f32 %v1003_v30, %v1002_v25  ;;  %v941_v34 = vpop.f32.mrf.mxu0 }
 0x10c   :  { %v1005_v35 = vpop.f32.mrf.mxu1 }
 0x10d   :  { %816 = vst [vmem:[%s1414_s4 + $0x38] sm:$0xff] %v800_v31  ;;  %v785_v36 = vadd.f32 %v1328_v11, %v762_v32  ;;  %v669_v37 = vadd.f32 %v1004_v33, %v940_v29  ;;  %v942_v38 = vpop.f32.mrf.mxu0 }
 0x10e   :  { %v943_v39 = vadd.f32 %v942_v38, %v941_v34  ;;  %v1006_v40 = vpop.f32.mrf.mxu1 }
 0x10f   :  { %v801_v41 = vmax.f32 %v785_v36, 0.0  ;;  %v763_v42 = vmul.f32 %v1323_v7, %v669_v37  ;;  %v1007_v43 = vadd.f32 %v1006_v40, %v1005_v35  ;;  %v944_v44 = vpop.f32.mrf.mxu0 }
 0x110   :  { %v1008_v45 = vpop.f32.mrf.mxu1 }
 0x111   :  { %817 = vst [vmem:[%s1414_s4 + $0x40] sm:$0xff] %v801_v41  ;;  %v786_v46 = vadd.f32 %v1328_v11, %v763_v42  ;;  %v674_v47 = vadd.f32 %v1007_v43, %v943_v39  ;;  %v945_v48 = vpop.f32.mrf.mxu0 }
 0x112   :  { %v946_v49 = vadd.f32 %v945_v48, %v944_v44  ;;  %v1009_v50 = vpop.f32.mrf.mxu1 }
 0x113   :  { %v802_v51 = vmax.f32 %v786_v46, 0.0  ;;  %v764_v52 = vmul.f32 %v1323_v7, %v674_v47  ;;  %v1010_v53 = vadd.f32 %v1009_v50, %v1008_v45  ;;  %v947_v54 = vpop.f32.mrf.mxu0 }
 0x114   :  { %v1011_v55 = vpop.f32.mrf.mxu1 }
 0x115   :  { %818 = vst [vmem:[%s1414_s4 + $0x48] sm:$0xff] %v802_v51  ;;  %v787_v56 = vadd.f32 %v1328_v11, %v764_v52  ;;  %v677_v57 = vadd.f32 %v1010_v53, %v946_v49  ;;  %v948_v58 = vpop.f32.mrf.mxu0 }
 0x116   :  { %v949_v59 = vadd.f32 %v948_v58, %v947_v54  ;;  %v1012_v60 = vpop.f32.mrf.mxu1 }
 0x117   :  { %v803_v61 = vmax.f32 %v787_v56, 0.0  ;;  %v765_v62 = vmul.f32 %v1323_v7, %v677_v57  ;;  %v1013_v63 = vadd.f32 %v1012_v60, %v1011_v55  ;;  %v950_v0 = vpop.f32.mrf.mxu0 }
 0x118   :  { %v1014_v1 = vpop.f32.mrf.mxu1 }
 0x119   :  { %819 = vst [vmem:[%s1414_s4 + $0x50] sm:$0xff] %v803_v61  ;;  %v788_v2 = vadd.f32 %v1328_v11, %v765_v62  ;;  %v682_v3 = vadd.f32 %v1013_v63, %v949_v59  ;;  %v951_v4 = vpop.f32.mrf.mxu0 }
 0x11a   :  { %v952_v5 = vadd.f32 %v951_v4, %v950_v0  ;;  %v1015_v6 = vpop.f32.mrf.mxu1 }
 0x11b   :  { %v804_v8 = vmax.f32 %v788_v2, 0.0  ;;  %v766_v9 = vmul.f32 %v1323_v7, %v682_v3  ;;  %v1016_v10 = vadd.f32 %v1015_v6, %v1014_v1  ;;  %v953_v12 = vpop.f32.mrf.mxu0 }
 0x11c   :  { %v1017_v13 = vpop.f32.mrf.mxu1 }
 0x11d   :  { %820 = vst [vmem:[%s1414_s4 + $0x58] sm:$0xff] %v804_v8  ;;  %v789_v14 = vadd.f32 %v1328_v11, %v766_v9  ;;  %v685_v15 = vadd.f32 %v1016_v10, %v952_v5  ;;  %v954_v16 = vpop.f32.mrf.mxu0 }
 0x11e   :  { %v955_v17 = vadd.f32 %v954_v16, %v953_v12  ;;  %v1018_v18 = vpop.f32.mrf.mxu1 }
 0x11f   :  { %v805_v19 = vmax.f32 %v789_v14, 0.0  ;;  %v767_v20 = vmul.f32 %v1323_v7, %v685_v15  ;;  %v1019_v21 = vadd.f32 %v1018_v18, %v1017_v13  ;;  %v956_v22 = vpop.f32.mrf.mxu0 }
 0x120   :  { %v1020_v23 = vpop.f32.mrf.mxu1 }
 0x121   :  { %821 = vst [vmem:[%s1414_s4 + $0x60] sm:$0xff] %v805_v19  ;;  %v790_v24 = vadd.f32 %v1328_v11, %v767_v20  ;;  %v690_v25 = vadd.f32 %v1019_v21, %v955_v17  ;;  %v957_v26 = vpop.f32.mrf.mxu0 }
 0x122   :  { %v958_v27 = vadd.f32 %v957_v26, %v956_v22  ;;  %v1021_v28 = vpop.f32.mrf.mxu1 }
 0x123   :  { %v806_v29 = vmax.f32 %v790_v24, 0.0  ;;  %v768_v30 = vmul.f32 %v1323_v7, %v690_v25  ;;  %v1022_v31 = vadd.f32 %v1021_v28, %v1020_v23 }
 0x125   :  { %822 = vst [vmem:[%s1414_s4 + $0x68] sm:$0xff] %v806_v29  ;;  %v791_v32 = vadd.f32 %v1328_v11, %v768_v30  ;;  %v693_v33 = vadd.f32 %v1022_v31, %v958_v27 }
 0x127   :  { %v807_v34 = vmax.f32 %v791_v32, 0.0  ;;  %v769_v35 = vmul.f32 %v1323_v7, %v693_v33 }
 0x129   :  { %823 = vst [vmem:[%s1414_s4 + $0x70] sm:$0xff] %v807_v34  ;;  %v792_v36 = vadd.f32 %v1328_v11, %v769_v35 }
 0x12b   :  { %v808_v37 = vmax.f32 %v792_v36, 0.0 }
 0x12d   :  { %824 = vst [vmem:[%s1414_s4 + $0x78] sm:$0xff] %v808_v37 }

// kernel: crnn_forward.11
= control target key start
LH: loop header
LB: loop body
LE: loop exit
PB: predicated region body
PF: predicated region fallthrough
CT: control target
= control target key end

     0   :  { %s1910_s15 = smov 0   ;;  %s1912_s16 = smov 0   ;;  %s2475_s0 = inlined_call_operand.vmem [shape: bf16[128,128], index: 0, kind: input, shape index: {}]   ;;  %s2476_s1 = inlined_call_operand.vmem [shape: bf16[128,1024], index: 1, kind: input, shape index: {}]   ;;  %s2477_s2 = inlined_call_operand.vmem [shape: f32[1,1024], index: 2, kind: input, shape index: {}]   ;;  %s2478_s3 = inlined_call_operand.vmem [shape: f32[1,1024], index: 3, kind: input, shape index: {}]   ;;  %s2479_s4 = inlined_call_operand.vmem [shape: f32[128,1024], index: 4, kind: output, shape index: {}]  }
   0x1   :  { %s1914_s17 = smov 0   ;;  %s1916_s18 = smov 0  }
   0x2   :  { %s1918_s19 = smov 0  }
   0x3 LB: > { %s29_s20 = sadd.s32 1, %s1878_s18  ;;  %s1687_s21 = sadd.s32 4294967295, %s1882_s19   ;;  %s1882_s19 = sphi %s1918_s19, %s14_s19   ;;  %s1878_s18 = sphi %s1916_s18, %s2484_s18   ;;  %s1874_s17 = sphi %s1914_s17, %s2483_s17   ;;  %s1870_s16 = sphi %s1912_s16, %s2482_s16   ;;  %s1866_s15 = sphi %s1910_s15, %s2481_s15  }
   0x4   : > { %p31_p0 = scmp.ge.s32.totalorder %s29_s20, 2  ;;  %p77_p1 = scmp.ne.s32.totalorder %s1870_s16, %s1866_s15 }
   0x5   : > { %p78_p2 = scmp.eq.s32.totalorder %s1882_s19, 0  ;;  %p161_p4 = scmp.eq.s32.totalorder %s1687_s21, 1 }
   0x6   : > { %s2486_s20 = smov (%p31_p0, %s29_s20), 0  ;;  %s70_s23 = sadd.s32 1, %s1870_s16 }
   0x7   : > { %p79_p3 = por %p78_p2, %p77_p1  ;;  %s66_s22 = ssub.s32 %s1878_s18, %s2486_s20 }
   0x8   : > { %p68_p5 = scmp.eq.s32.totalorder %s66_s22, 0  ;;  %p1945_p6 = por %p161_p4, %p77_p1 }
   0x9   : > { %p1691_p7 = scmp.ge.s32.totalorder %s1882_s19, 2 }
   0xa   : > { %s1950_s25 = scalar_select %p68_p5, %s1870_s16, %s70_s23  }
   0xb   : > { %195 = sbr.rel (%p1691_p7) target bundleno = 36 (0x24), region = 20 }
  0x10   : > { %198 = sbr.rel (!%p79_p3) target bundleno = 36 (0x24), region = 24  ;;  %s200_s26 = sand.u32 (%p79_p3), 1, %s1870_s16  }
  0x11   : > { %s1745_s27 = sshll.u32 (%p79_p3), %s1878_s18, 4  ;;  %s1692_s28 = sshll.u32 (%p79_p3), %s200_s26, 8 }
  0x12   : > { %s1958_s5 = scalar_lea.vmem (%p79_p3), %s2476_s1, %s1745_s27  ;;  %s1963_s6 = scalar_lea.vmem (%p79_p3), [#allocation3], %s1692_s28 }
  0x13   : > { %v221_v0 = vld [vmem:[%s1958_s5] sm:$0xff] (%p79_p3)  ;;  %v223_v1 = vld [vmem:[%s1958_s5 + $0x8] sm:$0xff] (%p79_p3) }
  0x14   : > { %v225_v2 = vld [vmem:[%s1958_s5 + $0x20] sm:$0xff] (%p79_p3)  ;;  %222 = vst [vmem:[%s1963_s6] sm:$0xff] (%p79_p3), %v221_v0  ;;  %224 = vst [vmem:[%s1963_s6 + $0x8] sm:$0xff] (%p79_p3), %v223_v1  ;;  %v227_v3 = vld [vmem:[%s1958_s5 + $0x28] sm:$0xff] (%p79_p3) }
  0x15   : > { %226 = vst [vmem:[%s1963_s6 + $0x10] sm:$0xff] %v225_v2  ;;  %v229_v4 = vld [vmem:[%s1958_s5 + $0x40] sm:$0xff]  ;;  %v231_v5 = vld [vmem:[%s1958_s5 + $0x48] sm:$0xff]  ;;  %228 = vst [vmem:[%s1963_s6 + $0x18] sm:$0xff] %v227_v3 }
  0x16   : > { %230 = vst [vmem:[%s1963_s6 + $0x20] sm:$0xff] %v229_v4  ;;  %232 = vst [vmem:[%s1963_s6 + $0x28] sm:$0xff] %v231_v5  ;;  %v233_v6 = vld [vmem:[%s1958_s5 + $0x60] sm:$0xff]  ;;  %v235_v7 = vld [vmem:[%s1958_s5 + $0x68] sm:$0xff] }
  0x17   : > { %v237_v8 = vld [vmem:[%s1958_s5 + $0x80] sm:$0xff]  ;;  %234 = vst [vmem:[%s1963_s6 + $0x30] sm:$0xff] %v233_v6  ;;  %236 = vst [vmem:[%s1963_s6 + $0x38] sm:$0xff] %v235_v7  ;;  %v239_v9 = vld [vmem:[%s1958_s5 + $0x88] sm:$0xff] }
  0x18   : > { %238 = vst [vmem:[%s1963_s6 + $0x40] sm:$0xff] %v237_v8  ;;  %v241_v10 = vld [vmem:[%s1958_s5 + $0xa0] sm:$0xff]  ;;  %v243_v11 = vld [vmem:[%s1958_s5 + $0xa8] sm:$0xff]  ;;  %240 = vst [vmem:[%s1963_s6 + $0x48] sm:$0xff] %v239_v9 }
  0x19   : > { %242 = vst [vmem:[%s1963_s6 + $0x50] sm:$0xff] %v241_v10  ;;  %244 = vst [vmem:[%s1963_s6 + $0x58] sm:$0xff] %v243_v11  ;;  %v245_v12 = vld [vmem:[%s1958_s5 + $0xc0] sm:$0xff]  ;;  %v247_v13 = vld [vmem:[%s1958_s5 + $0xc8] sm:$0xff] }
  0x1a   : > { %v249_v14 = vld [vmem:[%s1958_s5 + $0xe0] sm:$0xff]  ;;  %246 = vst [vmem:[%s1963_s6 + $0x60] sm:$0xff] %v245_v12  ;;  %248 = vst [vmem:[%s1963_s6 + $0x68] sm:$0xff] %v247_v13  ;;  %v251_v15 = vld [vmem:[%s1958_s5 + $0xe8] sm:$0xff] }
  0x1b   : > { %250 = vst [vmem:[%s1963_s6 + $0x70] sm:$0xff] %v249_v14  ;;  %v253_v16 = vld [vmem:[%s1958_s5 + $0x100] sm:$0xff]  ;;  %v255_v17 = vld [vmem:[%s1958_s5 + $0x108] sm:$0xff]  ;;  %252 = vst [vmem:[%s1963_s6 + $0x78] sm:$0xff] %v251_v15 }
  0x1c   : > { %254 = vst [vmem:[%s1963_s6 + $0x80] sm:$0xff] %v253_v16  ;;  %256 = vst [vmem:[%s1963_s6 + $0x88] sm:$0xff] %v255_v17  ;;  %v257_v18 = vld [vmem:[%s1958_s5 + $0x120] sm:$0xff]  ;;  %v259_v19 = vld [vmem:[%s1958_s5 + $0x128] sm:$0xff] }
  0x1d   : > { %v261_v20 = vld [vmem:[%s1958_s5 + $0x140] sm:$0xff]  ;;  %258 = vst [vmem:[%s1963_s6 + $0x90] sm:$0xff] %v257_v18  ;;  %260 = vst [vmem:[%s1963_s6 + $0x98] sm:$0xff] %v259_v19  ;;  %v263_v21 = vld [vmem:[%s1958_s5 + $0x148] sm:$0xff] }
  0x1e   : > { %262 = vst [vmem:[%s1963_s6 + $0xa0] sm:$0xff] %v261_v20  ;;  %v265_v22 = vld [vmem:[%s1958_s5 + $0x160] sm:$0xff]  ;;  %v267_v23 = vld [vmem:[%s1958_s5 + $0x168] sm:$0xff]  ;;  %264 = vst [vmem:[%s1963_s6 + $0xa8] sm:$0xff] %v263_v21 }
  0x1f   : > { %266 = vst [vmem:[%s1963_s6 + $0xb0] sm:$0xff] %v265_v22  ;;  %268 = vst [vmem:[%s1963_s6 + $0xb8] sm:$0xff] %v267_v23  ;;  %v269_v24 = vld [vmem:[%s1958_s5 + $0x180] sm:$0xff]  ;;  %v271_v25 = vld [vmem:[%s1958_s5 + $0x188] sm:$0xff] }
  0x20   : > { %v273_v26 = vld [vmem:[%s1958_s5 + $0x1a0] sm:$0xff]  ;;  %270 = vst [vmem:[%s1963_s6 + $0xc0] sm:$0xff] %v269_v24  ;;  %272 = vst [vmem:[%s1963_s6 + $0xc8] sm:$0xff] %v271_v25  ;;  %v275_v27 = vld [vmem:[%s1958_s5 + $0x1a8] sm:$0xff] }
  0x21   : > { %274 = vst [vmem:[%s1963_s6 + $0xd0] sm:$0xff] %v273_v26  ;;  %v277_v28 = vld [vmem:[%s1958_s5 + $0x1c0] sm:$0xff]  ;;  %v279_v29 = vld [vmem:[%s1958_s5 + $0x1c8] sm:$0xff]  ;;  %276 = vst [vmem:[%s1963_s6 + $0xd8] sm:$0xff] %v275_v27 }
  0x22   : > { %278 = vst [vmem:[%s1963_s6 + $0xe0] sm:$0xff] %v277_v28  ;;  %280 = vst [vmem:[%s1963_s6 + $0xe8] sm:$0xff] %v279_v29  ;;  %v281_v30 = vld [vmem:[%s1958_s5 + $0x1e0] sm:$0xff]  ;;  %v283_v31 = vld [vmem:[%s1958_s5 + $0x1e8] sm:$0xff] }
  0x23   : > { %282 = vst [vmem:[%s1963_s6 + $0xf0] sm:$0xff] %v281_v30  ;;  %284 = vst [vmem:[%s1963_s6 + $0xf8] sm:$0xff] %v283_v31 }
  0x24 PF: > { %p1695_p8 = scmp.ge.s32.totalorder %s1882_s19, 1  ;;  %p305_p9 = scmp.lt.s32.totalorder %s1882_s19, 3 }
  0x26   : > { %p306_p10 = pnand %p1695_p8, %p305_p9 }
  0x27   : > { %s312_s7 = sand.u32 (!%p306_p10), 1, %s1866_s15  }
  0x28   : > { %309 = sbr.rel (%p306_p10) target bundleno = 363 (0x16b), region = 55  ;;  %s1696_s8 = sshll.u32 (!%p306_p10), %s312_s7, 8 }
  0x29   : > { %s2033_s9 = scalar_lea.vmem (!%p306_p10), [#allocation3], %s1696_s8  ;;  %s1697_s22 = sshll.u32 (!%p306_p10), %s312_s7, 9 }
  0x2a   : > { %s2136_s15 = scalar_lea.vmem (!%p306_p10), [#allocation4], %s1697_s22 }
  0x2d   : > { %v1884_v32 = vmov 0   ;;  %v1788_v33 = vld [vmem:[%s2033_s9 + $0xe4] ss:$16 sps:$4 sm:$0xff]   ;;  %v1790_v34 = vld [vmem:[%s2033_s9 + $0xec] ss:$16 sps:$4 sm:$0xff]   ;;  %v1187_v9 = vlaneseq  ;;  %s1746_s7 = sshll.u32 (%p1945_p6), %s1874_s17, 5 }
  0x2e   : > { %796 = vmatprep.mubr.bf16.mxu0 %v1884_v32  ;;  %909 = vmatprep.mubr.bf16.mxu1 %v1884_v32  ;;  %v1792_v35 = vld [vmem:[%s2033_s9 + $0xe0] ss:$16 sps:$4 sm:$0xff]   ;;  %v1793_v36 = vld [vmem:[%s2033_s9 + $0xe8] ss:$16 sps:$4 sm:$0xff]   ;;  %v1794_v37 = vld [vmem:[%s2033_s9 + $0xc4] ss:$16 sps:$4 sm:$0xff]   ;;  %s2333_s27 = scalar_lea.vmem (%p1945_p6), %s2479_s4, %s1746_s7 }
  0x2f   : > { %764 = vmatprep.subr.bf16.mxu0 %v1788_v33  ;;  %877 = vmatprep.subr.bf16.mxu1 %v1790_v34  ;;  %v1796_v38 = vld [vmem:[%s2033_s9 + $0xcc] ss:$16 sps:$4 sm:$0xff]   ;;  %v1798_v39 = vld [vmem:[%s2033_s9 + $0xc0] ss:$16 sps:$4 sm:$0xff]   ;;  %v1799_v40 = vld [vmem:[%s2033_s9 + $0xc8] ss:$16 sps:$4 sm:$0xff]  }
  0x30   : > { %765 = vmatpush1.bf16.msra.mxu0 %v1792_v35  ;;  %878 = vmatpush1.bf16.msra.mxu1 %v1793_v36  ;;  %v1800_v41 = vld [vmem:[%s2033_s9 + $0xa4] ss:$16 sps:$4 sm:$0xff]   ;;  %v1802_v42 = vld [vmem:[%s2033_s9 + $0xac] ss:$16 sps:$4 sm:$0xff]   ;;  %v1804_v43 = vld [vmem:[%s2033_s9 + $0xa0] ss:$16 sps:$4 sm:$0xff]  }
  0x31   : > { %766 = vmatprep.subr.bf16.mxu0 %v1794_v37  ;;  %879 = vmatprep.subr.bf16.mxu1 %v1796_v38  ;;  %v1805_v44 = vld [vmem:[%s2033_s9 + $0xa8] ss:$16 sps:$4 sm:$0xff]   ;;  %v1806_v45 = vld [vmem:[%s2033_s9 + $0x84] ss:$16 sps:$4 sm:$0xff]   ;;  %v1808_v46 = vld [vmem:[%s2033_s9 + $0x8c] ss:$16 sps:$4 sm:$0xff]  }
  0x32   : > { %v1810_v47 = vld [vmem:[%s2033_s9 + $0x80] ss:$16 sps:$4 sm:$0xff]   ;;  %v1811_v48 = vld [vmem:[%s2033_s9 + $0x88] ss:$16 sps:$4 sm:$0xff]   ;;  %v1812_v49 = vld [vmem:[%s2033_s9 + $0x64] ss:$16 sps:$4 sm:$0xff]  }
  0x33   : > { %v1814_v50 = vld [vmem:[%s2033_s9 + $0x6c] ss:$16 sps:$4 sm:$0xff]   ;;  %v1816_v51 = vld [vmem:[%s2033_s9 + $0x60] ss:$16 sps:$4 sm:$0xff]   ;;  %v1817_v52 = vld [vmem:[%s2033_s9 + $0x68] ss:$16 sps:$4 sm:$0xff]  }
  0x34   : > { %767 = vmatpush1.bf16.msra.mxu0 %v1798_v39  ;;  %880 = vmatpush1.bf16.msra.mxu1 %v1799_v40  ;;  %v1818_v53 = vld [vmem:[%s2033_s9 + $0x44] ss:$16 sps:$4 sm:$0xff]   ;;  %v1820_v54 = vld [vmem:[%s2033_s9 + $0x4c] ss:$16 sps:$4 sm:$0xff]   ;;  %v1822_v55 = vld [vmem:[%s2033_s9 + $0x40] ss:$16 sps:$4 sm:$0xff]  }
  0x35   : > { %768 = vmatprep.subr.bf16.mxu0 %v1800_v41  ;;  %881 = vmatprep.subr.bf16.mxu1 %v1802_v42  ;;  %v1823_v56 = vld [vmem:[%s2033_s9 + $0x48] ss:$16 sps:$4 sm:$0xff]   ;;  %v1824_v57 = vld [vmem:[%s2033_s9 + $0x24] ss:$16 sps:$4 sm:$0xff]   ;;  %v1826_v58 = vld [vmem:[%s2033_s9 + $0x2c] ss:$16 sps:$4 sm:$0xff]  }
  0x36   : > { %v1828_v59 = vld [vmem:[%s2033_s9 + $0x20] ss:$16 sps:$4 sm:$0xff]   ;;  %v1829_v60 = vld [vmem:[%s2033_s9 + $0x28] ss:$16 sps:$4 sm:$0xff]   ;;  %v1830_v61 = vld [vmem:[%s2033_s9 + $0x4] ss:$16 sps:$4 sm:$0xff]  }
  0x37   : > { %v1832_v62 = vld [vmem:[%s2033_s9 + $0xc] ss:$16 sps:$4 sm:$0xff]   ;;  %v1834_v63 = vld [vmem:[%s2033_s9] ss:$16 sps:$4 sm:$0xff]   ;;  %v1835_v0 = vld [vmem:[%s2033_s9 + $0x8] ss:$16 sps:$4 sm:$0xff]  }
  0x38   : > { %769 = vmatpush1.bf16.msra.mxu0 %v1804_v43  ;;  %882 = vmatpush1.bf16.msra.mxu1 %v1805_v44  ;;  %v1836_v1 = vld [vmem:[%s2475_s0] sm:$0xff]   ;;  %v1837_v2 = vld [vmem:[%s2475_s0 + $0x8] sm:$0xff]   ;;  %v1838_v3 = vld [vmem:[%s2475_s0 + $0x10] sm:$0xff]   ;;  %s1698_s9 = sshll.u32 %s1874_s17, 2  ;;  %v1188_v10 = vshrl.u32 %v1187_v9, 7 }
  0x39   : > { %770 = vmatprep.subr.bf16.mxu0 %v1806_v45  ;;  %883 = vmatprep.subr.bf16.mxu1 %v1808_v46  ;;  %v1839_v4 = vld [vmem:[%s2475_s0 + $0x18] sm:$0xff]   ;;  %v1840_v5 = vld [vmem:[%s2475_s0 + $0x20] sm:$0xff]   ;;  %v1841_v6 = vld [vmem:[%s2475_s0 + $0x28] sm:$0xff]   ;;  %p364_p11 = scmp.lt.s32.totalorder %s1698_s9, 7 }
  0x3a   : > { %v1842_v7 = vld [vmem:[%s2475_s0 + $0x30] sm:$0xff]   ;;  %v1843_v8 = vld [vmem:[%s2475_s0 + $0x38] sm:$0xff]   ;;  %v1189_v11 = vsub.s32 0, %v1188_v10  ;;  %v1197_v12 = vsub.s32 2, %v1188_v10  ;;  %v1193_v14 = vsub.s32 1, %v1188_v10  ;;  %v1201_v15 = vsub.s32 3, %v1188_v10 }
  0x3b   : > { %s2488_s9 = smov (!%p364_p11, %s1698_s9), 7 }
  0x3c   : > { %771 = vmatpush1.bf16.msra.mxu0 %v1810_v47  ;;  %884 = vmatpush1.bf16.msra.mxu1 %v1811_v48  ;;  %s366_s12 = scalar_lea.vmem %s2477_s2, %s2488_s9  ;;  %s371_s21 = scalar_lea.vmem %s2478_s3, %s2488_s9 }
  0x3d   : > { %772 = vmatprep.subr.bf16.mxu0 %v1812_v49  ;;  %885 = vmatprep.subr.bf16.mxu1 %v1814_v50  ;;  %v1185_v13 = vld [vmem:[%s366_s12] sm:$0xf] }
  0x3e   : > { %v1271_v16 = vld [vmem:[%s371_s21] sm:$0xf]  ;;  %v2112_v17 = vrot.slane %v1185_v13, %v1189_v11  ;;  %v2114_v18 = vrot.slane %v1185_v13, %v1197_v12  ;;  %v2122_v21 = vrot.slane %v1185_v13, %v1193_v14  ;;  %v2124_v22 = vrot.slane %v1185_v13, %v1201_v15 }
  0x3f   : > { %v2118_v19 = vrot.slane %v1271_v16, %v1189_v11  ;;  %v2120_v20 = vrot.slane %v1271_v16, %v1197_v12  ;;  %v2128_v27 = vrot.slane %v1271_v16, %v1193_v14  ;;  %v2130_v28 = vrot.slane %v1271_v16, %v1201_v15 }
  0x40   : > { %773 = vmatpush1.bf16.msra.mxu0 %v1816_v51  ;;  %886 = vmatpush1.bf16.msra.mxu1 %v1817_v52 }
  0x41   : > { %774 = vmatprep.subr.bf16.mxu0 %v1818_v53  ;;  %887 = vmatprep.subr.bf16.mxu1 %v1820_v54 }
  0x44   : > { %775 = vmatpush1.bf16.msra.mxu0 %v1822_v55  ;;  %888 = vmatpush1.bf16.msra.mxu1 %v1823_v56 }
  0x45   : > { %776 = vmatprep.subr.bf16.mxu0 %v1824_v57  ;;  %889 = vmatprep.subr.bf16.mxu1 %v1826_v58 }
  0x48   : > { %777 = vmatpush1.bf16.msra.mxu0 %v1828_v59  ;;  %890 = vmatpush1.bf16.msra.mxu1 %v1829_v60 }
  0x49   : > { %778 = vmatprep.subr.bf16.mxu0 %v1830_v61  ;;  %891 = vmatprep.subr.bf16.mxu1 %v1832_v62 }
  0x4c   : > { %779 = vmatpush1.bf16.msra.mxu0 %v1834_v63  ;;  %892 = vmatpush1.bf16.msra.mxu1 %v1835_v0 }
  0x4f   : > { %797 = vmatmul.mubr.bf16.vlgmr.msra.gmra.mxu0 %v1836_v1  ;;  %910 = vmatmul.mubr.bf16.vlgmr.msra.gmra.mxu1 %v1836_v1 }
  0x50   : > { %806 = vmatprep.mubr.bf16.mxu0 %v1884_v32  ;;  %919 = vmatprep.mubr.bf16.mxu1 %v1884_v32 }
  0x57   : > { %807 = vmatmul.mubr.bf16.gmra.mxu0 %v1837_v2  ;;  %920 = vmatmul.mubr.bf16.gmra.mxu1 %v1837_v2 }
  0x58   : > { %816 = vmatprep.mubr.bf16.mxu0 %v1884_v32  ;;  %929 = vmatprep.mubr.bf16.mxu1 %v1884_v32 }
  0x5f   : > { %817 = vmatmul.mubr.bf16.gmra.mxu0 %v1838_v3  ;;  %930 = vmatmul.mubr.bf16.gmra.mxu1 %v1838_v3 }
  0x60   : > { %826 = vmatprep.mubr.bf16.mxu0 %v1884_v32  ;;  %939 = vmatprep.mubr.bf16.mxu1 %v1884_v32 }
  0x67   : > { %827 = vmatmul.mubr.bf16.gmra.mxu0 %v1839_v4  ;;  %940 = vmatmul.mubr.bf16.gmra.mxu1 %v1839_v4 }
  0x68   : > { %836 = vmatprep.mubr.bf16.mxu0 %v1884_v32  ;;  %949 = vmatprep.mubr.bf16.mxu1 %v1884_v32 }
  0x6f   : > { %837 = vmatmul.mubr.bf16.gmra.mxu0 %v1840_v5  ;;  %950 = vmatmul.mubr.bf16.gmra.mxu1 %v1840_v5 }
  0x70   : > { %846 = vmatprep.mubr.bf16.mxu0 %v1884_v32  ;;  %959 = vmatprep.mubr.bf16.mxu1 %v1884_v32 }
  0x77   : > { %847 = vmatmul.mubr.bf16.gmra.mxu0 %v1841_v6  ;;  %960 = vmatmul.mubr.bf16.gmra.mxu1 %v1841_v6 }
  0x78   : > { %856 = vmatprep.mubr.bf16.mxu0 %v1884_v32  ;;  %969 = vmatprep.mubr.bf16.mxu1 %v1884_v32 }
  0x7f   : > { %857 = vmatmul.mubr.bf16.gmra.mxu0 %v1842_v7  ;;  %970 = vmatmul.mubr.bf16.gmra.mxu1 %v1842_v7 }
  0x80   : > { %866 = vmatprep.mubr.bf16.mxu0 %v1884_v32  ;;  %979 = vmatprep.mubr.bf16.mxu1 %v1884_v32 }
  0x87   : > { %867 = vmatmul.mubr.bf16.gmra.mxu0 %v1843_v8  ;;  %980 = vmatmul.mubr.bf16.gmra.mxu1 %v1843_v8 }
 0x10f   : > { %v798_v23 = vpop.f32.mrf.mxu0  ;;  %v911_v24 = vpop.f32.mrf.mxu1 }
 0x110   : > { %v1207_v25 = vmul.f32 %v2112_v17, %v798_v23  ;;  %v1209_v26 = vmul.f32 %v2114_v18, %v911_v24 }
 0x111   : > { %v800_v29 = vpop.f32.mrf.mxu0  ;;  %v913_v30 = vpop.f32.mrf.mxu1 }
 0x112   : > { %v1293_v31 = vadd.f32 %v2118_v19, %v1207_v25  ;;  %v1295_v32 = vadd.f32 %v2120_v20, %v1209_v26  ;;  %v1208_v33 = vmul.f32 %v2122_v21, %v800_v29  ;;  %v1210_v34 = vmul.f32 %v2124_v22, %v913_v30 }
 0x113   : > { %v802_v35 = vpop.f32.mrf.mxu0  ;;  %v915_v36 = vpop.f32.mrf.mxu1 }
 0x114   : > { %1357 = vst [vmem:[%s2136_s15] sm:$0xff] %v1293_v31  ;;  %1359 = vst [vmem:[%s2136_s15 + $0x10] sm:$0xff] %v1295_v32  ;;  %v1294_v37 = vadd.f32 %v2128_v27, %v1208_v33  ;;  %v1296_v38 = vadd.f32 %v2130_v28, %v1210_v34  ;;  %v1211_v39 = vmul.f32 %v2112_v17, %v802_v35 }
 0x115   : > { %v1213_v40 = vmul.f32 %v2114_v18, %v915_v36  ;;  %v804_v41 = vpop.f32.mrf.mxu0  ;;  %v917_v42 = vpop.f32.mrf.mxu1 }
 0x116   : > { %1358 = vst [vmem:[%s2136_s15 + $0x8] sm:$0xff] %v1294_v37  ;;  %1360 = vst [vmem:[%s2136_s15 + $0x18] sm:$0xff] %v1296_v38  ;;  %v1297_v43 = vadd.f32 %v2118_v19, %v1211_v39  ;;  %v1212_v45 = vmul.f32 %v2122_v21, %v804_v41  ;;  %v1214_v46 = vmul.f32 %v2124_v22, %v917_v42 }
 0x117   : > { %v1299_v44 = vadd.f32 %v2120_v20, %v1213_v40  ;;  %v808_v47 = vpop.f32.mrf.mxu0  ;;  %v921_v48 = vpop.f32.mrf.mxu1 }
 0x118   : > { %1361 = vst [vmem:[%s2136_s15 + $0x20] sm:$0xff] %v1297_v43  ;;  %v1298_v49 = vadd.f32 %v2128_v27, %v1212_v45  ;;  %v1300_v50 = vadd.f32 %v2130_v28, %v1214_v46  ;;  %v1215_v51 = vmul.f32 %v2112_v17, %v808_v47  ;;  %v1217_v52 = vmul.f32 %v2114_v18, %v921_v48 }
 0x119   : > { %1363 = vst [vmem:[%s2136_s15 + $0x30] sm:$0xff] %v1299_v44  ;;  %v810_v53 = vpop.f32.mrf.mxu0  ;;  %v923_v54 = vpop.f32.mrf.mxu1 }
 0x11a   : > { %1362 = vst [vmem:[%s2136_s15 + $0x28] sm:$0xff] %v1298_v49  ;;  %1364 = vst [vmem:[%s2136_s15 + $0x38] sm:$0xff] %v1300_v50  ;;  %v1301_v55 = vadd.f32 %v2118_v19, %v1215_v51  ;;  %v1303_v56 = vadd.f32 %v2120_v20, %v1217_v52  ;;  %v1216_v57 = vmul.f32 %v2122_v21, %v810_v53 }
 0x11b   : > { %v1218_v58 = vmul.f32 %v2124_v22, %v923_v54  ;;  %v812_v59 = vpop.f32.mrf.mxu0  ;;  %v925_v60 = vpop.f32.mrf.mxu1 }
 0x11c   : > { %1365 = vst [vmem:[%s2136_s15 + $0x40] sm:$0xff] %v1301_v55  ;;  %1367 = vst [vmem:[%s2136_s15 + $0x50] sm:$0xff] %v1303_v56  ;;  %v1302_v61 = vadd.f32 %v2128_v27, %v1216_v57  ;;  %v1219_v63 = vmul.f32 %v2112_v17, %v812_v59  ;;  %v1221_v0 = vmul.f32 %v2114_v18, %v925_v60 }
 0x11d   : > { %v1304_v62 = vadd.f32 %v2130_v28, %v1218_v58  ;;  %v814_v1 = vpop.f32.mrf.mxu0  ;;  %v927_v2 = vpop.f32.mrf.mxu1 }
 0x11e   : > { %1366 = vst [vmem:[%s2136_s15 + $0x48] sm:$0xff] %v1302_v61  ;;  %v1305_v3 = vadd.f32 %v2118_v19, %v1219_v63  ;;  %v1307_v4 = vadd.f32 %v2120_v20, %v1221_v0  ;;  %v1220_v5 = vmul.f32 %v2122_v21, %v814_v1  ;;  %v1222_v6 = vmul.f32 %v2124_v22, %v927_v2 }
 0x11f   : > { %1368 = vst [vmem:[%s2136_s15 + $0x58] sm:$0xff] %v1304_v62  ;;  %v818_v7 = vpop.f32.mrf.mxu0  ;;  %v931_v8 = vpop.f32.mrf.mxu1 }
 0x120   : > { %1369 = vst [vmem:[%s2136_s15 + $0x60] sm:$0xff] %v1305_v3  ;;  %1371 = vst [vmem:[%s2136_s15 + $0x70] sm:$0xff] %v1307_v4  ;;  %v1306_v9 = vadd.f32 %v2128_v27, %v1220_v5  ;;  %v1308_v10 = vadd.f32 %v2130_v28, %v1222_v6  ;;  %v1223_v11 = vmul.f32 %v2112_v17, %v818_v7 }
 0x121   : > { %v1225_v12 = vmul.f32 %v2114_v18, %v931_v8  ;;  %v820_v13 = vpop.f32.mrf.mxu0  ;;  %v933_v14 = vpop.f32.mrf.mxu1 }
 0x122   : > { %1370 = vst [vmem:[%s2136_s15 + $0x68] sm:$0xff] %v1306_v9  ;;  %1372 = vst [vmem:[%s2136_s15 + $0x78] sm:$0xff] %v1308_v10  ;;  %v1309_v15 = vadd.f32 %v2118_v19, %v1223_v11  ;;  %v1224_v23 = vmul.f32 %v2122_v21, %v820_v13  ;;  %v1226_v24 = vmul.f32 %v2124_v22, %v933_v14 }
 0x123   : > { %v1311_v16 = vadd.f32 %v2120_v20, %v1225_v12  ;;  %v822_v25 = vpop.f32.mrf.mxu0  ;;  %v935_v26 = vpop.f32.mrf.mxu1 }
 0x124   : > { %1373 = vst [vmem:[%s2136_s15 + $0x80] sm:$0xff] %v1309_v15  ;;  %v1310_v29 = vadd.f32 %v2128_v27, %v1224_v23  ;;  %v1312_v30 = vadd.f32 %v2130_v28, %v1226_v24  ;;  %v1227_v31 = vmul.f32 %v2112_v17, %v822_v25  ;;  %v1229_v32 = vmul.f32 %v2114_v18, %v935_v26 }
 0x125   : > { %1375 = vst [vmem:[%s2136_s15 + $0x90] sm:$0xff] %v1311_v16  ;;  %v824_v33 = vpop.f32.mrf.mxu0  ;;  %v937_v34 = vpop.f32.mrf.mxu1 }
 0x126   : > { %1374 = vst [vmem:[%s2136_s15 + $0x88] sm:$0xff] %v1310_v29  ;;  %1376 = vst [vmem:[%s2136_s15 + $0x98] sm:$0xff] %v1312_v30  ;;  %v1313_v35 = vadd.f32 %v2118_v19, %v1227_v31  ;;  %v1315_v36 = vadd.f32 %v2120_v20, %v1229_v32  ;;  %v1228_v37 = vmul.f32 %v2122_v21, %v824_v33 }
 0x127   : > { %v1230_v38 = vmul.f32 %v2124_v22, %v937_v34  ;;  %v828_v39 = vpop.f32.mrf.mxu0  ;;  %v941_v40 = vpop.f32.mrf.mxu1 }
 0x128   : > { %1377 = vst [vmem:[%s2136_s15 + $0xa0] sm:$0xff] %v1313_v35  ;;  %1379 = vst [vmem:[%s2136_s15 + $0xb0] sm:$0xff] %v1315_v36  ;;  %v1314_v41 = vadd.f32 %v2128_v27, %v1228_v37  ;;  %v1231_v43 = vmul.f32 %v2112_v17, %v828_v39  ;;  %v1233_v44 = vmul.f32 %v2114_v18, %v941_v40 }
 0x129   : > { %v1316_v42 = vadd.f32 %v2130_v28, %v1230_v38  ;;  %v830_v45 = vpop.f32.mrf.mxu0  ;;  %v943_v46 = vpop.f32.mrf.mxu1 }
 0x12a   : > { %1378 = vst [vmem:[%s2136_s15 + $0xa8] sm:$0xff] %v1314_v41  ;;  %v1317_v47 = vadd.f32 %v2118_v19, %v1231_v43  ;;  %v1319_v48 = vadd.f32 %v2120_v20, %v1233_v44  ;;  %v1232_v49 = vmul.f32 %v2122_v21, %v830_v45  ;;  %v1234_v50 = vmul.f32 %v2124_v22, %v943_v46 }
 0x12b   : > { %1380 = vst [vmem:[%s2136_s15 + $0xb8] sm:$0xff] %v1316_v42  ;;  %v832_v51 = vpop.f32.mrf.mxu0  ;;  %v945_v52 = vpop.f32.mrf.mxu1 }
 0x12c   : > { %1381 = vst [vmem:[%s2136_s15 + $0xc0] sm:$0xff] %v1317_v47  ;;  %1383 = vst [vmem:[%s2136_s15 + $0xd0] sm:$0xff] %v1319_v48  ;;  %v1318_v53 = vadd.f32 %v2128_v27, %v1232_v49  ;;  %v1320_v54 = vadd.f32 %v2130_v28, %v1234_v50  ;;  %v1235_v55 = vmul.f32 %v2112_v17, %v832_v51 }
 0x12d   : > { %v1237_v56 = vmul.f32 %v2114_v18, %v945_v52  ;;  %v834_v57 = vpop.f32.mrf.mxu0  ;;  %v947_v58 = vpop.f32.mrf.mxu1 }
 0x12e   : > { %1382 = vst [vmem:[%s2136_s15 + $0xc8] sm:$0xff] %v1318_v53  ;;  %1384 = vst [vmem:[%s2136_s15 + $0xd8] sm:$0xff] %v1320_v54  ;;  %v1321_v59 = vadd.f32 %v2118_v19, %v1235_v55  ;;  %v1236_v61 = vmul.f32 %v2122_v21, %v834_v57  ;;  %v1238_v62 = vmul.f32 %v2124_v22, %v947_v58 }
 0x12f   : > { %v1323_v60 = vadd.f32 %v2120_v20, %v1237_v56  ;;  %v838_v63 = vpop.f32.mrf.mxu0  ;;  %v951_v0 = vpop.f32.mrf.mxu1 }
 0x130   : > { %1385 = vst [vmem:[%s2136_s15 + $0xe0] sm:$0xff] %v1321_v59  ;;  %v1322_v1 = vadd.f32 %v2128_v27, %v1236_v61  ;;  %v1324_v2 = vadd.f32 %v2130_v28, %v1238_v62  ;;  %v1239_v3 = vmul.f32 %v2112_v17, %v838_v63  ;;  %v1241_v4 = vmul.f32 %v2114_v18, %v951_v0 }
 0x131   : > { %1387 = vst [vmem:[%s2136_s15 + $0xf0] sm:$0xff] %v1323_v60  ;;  %v840_v5 = vpop.f32.mrf.mxu0  ;;  %v953_v6 = vpop.f32.mrf.mxu1 }
 0x132   : > { %1386 = vst [vmem:[%s2136_s15 + $0xe8] sm:$0xff] %v1322_v1  ;;  %1388 = vst [vmem:[%s2136_s15 + $0xf8] sm:$0xff] %v1324_v2  ;;  %v1325_v7 = vadd.f32 %v2118_v19, %v1239_v3  ;;  %v1327_v8 = vadd.f32 %v2120_v20, %v1241_v4  ;;  %v1240_v9 = vmul.f32 %v2122_v21, %v840_v5 }
 0x133   : > { %v1242_v10 = vmul.f32 %v2124_v22, %v953_v6  ;;  %v842_v11 = vpop.f32.mrf.mxu0  ;;  %v955_v12 = vpop.f32.mrf.mxu1 }
 0x134   : > { %1389 = vst [vmem:[%s2136_s15 + $0x100] sm:$0xff] %v1325_v7  ;;  %1391 = vst [vmem:[%s2136_s15 + $0x110] sm:$0xff] %v1327_v8  ;;  %v1326_v13 = vadd.f32 %v2128_v27, %v1240_v9  ;;  %v1243_v15 = vmul.f32 %v2112_v17, %v842_v11  ;;  %v1245_v16 = vmul.f32 %v2114_v18, %v955_v12 }
 0x135   : > { %v1328_v14 = vadd.f32 %v2130_v28, %v1242_v10  ;;  %v844_v23 = vpop.f32.mrf.mxu0  ;;  %v957_v24 = vpop.f32.mrf.mxu1 }
 0x136   : > { %1390 = vst [vmem:[%s2136_s15 + $0x108] sm:$0xff] %v1326_v13  ;;  %v1329_v25 = vadd.f32 %v2118_v19, %v1243_v15  ;;  %v1331_v26 = vadd.f32 %v2120_v20, %v1245_v16  ;;  %v1244_v29 = vmul.f32 %v2122_v21, %v844_v23  ;;  %v1246_v30 = vmul.f32 %v2124_v22, %v957_v24 }
 0x137   : > { %1392 = vst [vmem:[%s2136_s15 + $0x118] sm:$0xff] %v1328_v14  ;;  %v848_v31 = vpop.f32.mrf.mxu0  ;;  %v961_v32 = vpop.f32.mrf.mxu1 }
 0x138   : > { %1393 = vst [vmem:[%s2136_s15 + $0x120] sm:$0xff] %v1329_v25  ;;  %1395 = vst [vmem:[%s2136_s15 + $0x130] sm:$0xff] %v1331_v26  ;;  %v1330_v33 = vadd.f32 %v2128_v27, %v1244_v29  ;;  %v1332_v34 = vadd.f32 %v2130_v28, %v1246_v30  ;;  %v1247_v35 = vmul.f32 %v2112_v17, %v848_v31 }
 0x139   : > { %v1249_v36 = vmul.f32 %v2114_v18, %v961_v32  ;;  %v850_v37 = vpop.f32.mrf.mxu0  ;;  %v963_v38 = vpop.f32.mrf.mxu1 }
 0x13a   : > { %1394 = vst [vmem:[%s2136_s15 + $0x128] sm:$0xff] %v1330_v33  ;;  %1396 = vst [vmem:[%s2136_s15 + $0x138] sm:$0xff] %v1332_v34  ;;  %v1333_v39 = vadd.f32 %v2118_v19, %v1247_v35  ;;  %v1248_v41 = vmul.f32 %v2122_v21, %v850_v37  ;;  %v1250_v42 = vmul.f32 %v2124_v22, %v963_v38 }
 0x13b   : > { %v1335_v40 = vadd.f32 %v2120_v20, %v1249_v36  ;;  %v852_v43 = vpop.f32.mrf.mxu0  ;;  %v965_v44 = vpop.f32.mrf.mxu1 }
 0x13c   : > { %1397 = vst [vmem:[%s2136_s15 + $0x140] sm:$0xff] %v1333_v39  ;;  %v1334_v45 = vadd.f32 %v2128_v27, %v1248_v41  ;;  %v1336_v46 = vadd.f32 %v2130_v28, %v1250_v42  ;;  %v1251_v47 = vmul.f32 %v2112_v17, %v852_v43  ;;  %v1253_v48 = vmul.f32 %v2114_v18, %v965_v44 }
 0x13d   : > { %1399 = vst [vmem:[%s2136_s15 + $0x150] sm:$0xff] %v1335_v40  ;;  %v854_v49 = vpop.f32.mrf.mxu0  ;;  %v967_v50 = vpop.f32.mrf.mxu1 }
 0x13e   : > { %1398 = vst [vmem:[%s2136_s15 + $0x148] sm:$0xff] %v1334_v45  ;;  %1400 = vst [vmem:[%s2136_s15 + $0x158] sm:$0xff] %v1336_v46  ;;  %v1337_v51 = vadd.f32 %v2118_v19, %v1251_v47  ;;  %v1339_v52 = vadd.f32 %v2120_v20, %v1253_v48  ;;  %v1252_v53 = vmul.f32 %v2122_v21, %v854_v49  ;;  %v1460_v48 = vld [vmem:[%s2136_s15 + $0x38] sm:$0xff] (%p1945_p6)  ;;  %v1462_v49 = vld [vmem:[%s2136_s15 + $0x40] sm:$0xff] (%p1945_p6) }
 0x13f   : > { %v1254_v54 = vmul.f32 %v2124_v22, %v967_v50  ;;  %v858_v55 = vpop.f32.mrf.mxu0  ;;  %v971_v56 = vpop.f32.mrf.mxu1  ;;  %1461 = vst [vmem:[%s2333_s27 + $0x58] sm:$0xff] (%p1945_p6), %v1460_v48  ;;  %1463 = vst [vmem:[%s2333_s27 + $0x80] sm:$0xff] (%p1945_p6), %v1462_v49  ;;  %v1464_v50 = vld [vmem:[%s2136_s15 + $0x48] sm:$0xff] (%p1945_p6) }
 0x140   : > { %1401 = vst [vmem:[%s2136_s15 + $0x160] sm:$0xff] %v1337_v51  ;;  %1403 = vst [vmem:[%s2136_s15 + $0x170] sm:$0xff] %v1339_v52  ;;  %v1338_v57 = vadd.f32 %v2128_v27, %v1252_v53  ;;  %v1255_v59 = vmul.f32 %v2112_v17, %v858_v55  ;;  %v1257_v60 = vmul.f32 %v2114_v18, %v971_v56  ;;  %v1466_v51 = vld [vmem:[%s2136_s15 + $0x50] sm:$0xff] (%p1945_p6)  ;;  %v1468_v52 = vld [vmem:[%s2136_s15 + $0x58] sm:$0xff] (%p1945_p6) }
 0x141   : > { %v1340_v58 = vadd.f32 %v2130_v28, %v1254_v54  ;;  %v860_v61 = vpop.f32.mrf.mxu0  ;;  %v973_v62 = vpop.f32.mrf.mxu1  ;;  %1465 = vst [vmem:[%s2333_s27 + $0x88] sm:$0xff] (%p1945_p6), %v1464_v50  ;;  %1467 = vst [vmem:[%s2333_s27 + $0x90] sm:$0xff] (%p1945_p6), %v1466_v51  ;;  %v1470_v53 = vld [vmem:[%s2136_s15 + $0x60] sm:$0xff] (%p1945_p6)  ;;  %v1472_v54 = vld [vmem:[%s2136_s15 + $0x68] sm:$0xff] (%p1945_p6) }
 0x142   : > { %1402 = vst [vmem:[%s2136_s15 + $0x168] sm:$0xff] %v1338_v57  ;;  %v1341_v63 = vadd.f32 %v2118_v19, %v1255_v59  ;;  %v1343_v0 = vadd.f32 %v2120_v20, %v1257_v60  ;;  %v1256_v1 = vmul.f32 %v2122_v21, %v860_v61  ;;  %v1258_v2 = vmul.f32 %v2124_v22, %v973_v62  ;;  %v1474_v55 = vld [vmem:[%s2136_s15 + $0x70] sm:$0xff] (%p1945_p6)  ;;  %v1476_v56 = vld [vmem:[%s2136_s15 + $0x78] sm:$0xff] (%p1945_p6)  ;;  %v1478_v57 = vld [vmem:[%s2136_s15 + $0x80] sm:$0xff] (%p1945_p6) }
 0x143   : > { %1404 = vst [vmem:[%s2136_s15 + $0x178] sm:$0xff] %v1340_v58  ;;  %v862_v3 = vpop.f32.mrf.mxu0  ;;  %v975_v4 = vpop.f32.mrf.mxu1  ;;  %1469 = vst [vmem:[%s2333_s27 + $0x98] sm:$0xff] (%p1945_p6), %v1468_v52  ;;  %v1480_v58 = vld [vmem:[%s2136_s15 + $0x88] sm:$0xff] (%p1945_p6)  ;;  %v1482_v59 = vld [vmem:[%s2136_s15 + $0x90] sm:$0xff] (%p1945_p6) }
 0x144   : > { %1405 = vst [vmem:[%s2136_s15 + $0x180] sm:$0xff] %v1341_v63  ;;  %1407 = vst [vmem:[%s2136_s15 + $0x190] sm:$0xff] %v1343_v0  ;;  %v1342_v5 = vadd.f32 %v2128_v27, %v1256_v1  ;;  %v1344_v6 = vadd.f32 %v2130_v28, %v1258_v2  ;;  %v1259_v7 = vmul.f32 %v2112_v17, %v862_v3  ;;  %v1484_v60 = vld [vmem:[%s2136_s15 + $0x98] sm:$0xff] (%p1945_p6)  ;;  %v1486_v61 = vld [vmem:[%s2136_s15 + $0xa0] sm:$0xff] (%p1945_p6) }
 0x145   : > { %v1261_v8 = vmul.f32 %v2114_v18, %v975_v4  ;;  %v864_v9 = vpop.f32.mrf.mxu0  ;;  %v977_v10 = vpop.f32.mrf.mxu1  ;;  %1471 = vst [vmem:[%s2333_s27 + $0xc0] sm:$0xff] (%p1945_p6), %v1470_v53  ;;  %1473 = vst [vmem:[%s2333_s27 + $0xc8] sm:$0xff] (%p1945_p6), %v1472_v54  ;;  %v1488_v62 = vld [vmem:[%s2136_s15 + $0xa8] sm:$0xff] (%p1945_p6)  ;;  %v1490_v63 = vld [vmem:[%s2136_s15 + $0xb0] sm:$0xff] (%p1945_p6) }
 0x146   : > { %1406 = vst [vmem:[%s2136_s15 + $0x188] sm:$0xff] %v1342_v5  ;;  %1408 = vst [vmem:[%s2136_s15 + $0x198] sm:$0xff] %v1344_v6  ;;  %v1345_v11 = vadd.f32 %v2118_v19, %v1259_v7  ;;  %v1260_v13 = vmul.f32 %v2122_v21, %v864_v9  ;;  %v1262_v14 = vmul.f32 %v2124_v22, %v977_v10  ;;  %v1492_v0 = vld [vmem:[%s2136_s15 + $0xb8] sm:$0xff] (%p1945_p6)  ;;  %v1494_v1 = vld [vmem:[%s2136_s15 + $0xc0] sm:$0xff] (%p1945_p6) }
 0x147   : > { %v1347_v12 = vadd.f32 %v2120_v20, %v1261_v8  ;;  %v868_v15 = vpop.f32.mrf.mxu0  ;;  %v981_v16 = vpop.f32.mrf.mxu1  ;;  %1475 = vst [vmem:[%s2333_s27 + $0xd0] sm:$0xff] (%p1945_p6), %v1474_v55  ;;  %1477 = vst [vmem:[%s2333_s27 + $0xd8] sm:$0xff] (%p1945_p6), %v1476_v56  ;;  %v1496_v2 = vld [vmem:[%s2136_s15 + $0xc8] sm:$0xff] (%p1945_p6)  ;;  %v1498_v3 = vld [vmem:[%s2136_s15 + $0xd0] sm:$0xff] (%p1945_p6) }
 0x148   : > { %1409 = vst [vmem:[%s2136_s15 + $0x1a0] sm:$0xff] %v1345_v11  ;;  %v1346_v23 = vadd.f32 %v2128_v27, %v1260_v13  ;;  %v1348_v24 = vadd.f32 %v2130_v28, %v1262_v14  ;;  %v1263_v25 = vmul.f32 %v2112_v17, %v868_v15  ;;  %v1265_v26 = vmul.f32 %v2114_v18, %v981_v16  ;;  %v1500_v4 = vld [vmem:[%s2136_s15 + $0xd8] sm:$0xff] (%p1945_p6)  ;;  %v1502_v5 = vld [vmem:[%s2136_s15 + $0xe0] sm:$0xff] (%p1945_p6)  ;;  %v1504_v6 = vld [vmem:[%s2136_s15 + $0xe8] sm:$0xff] (%p1945_p6) }
 0x149   : > { %1411 = vst [vmem:[%s2136_s15 + $0x1b0] sm:$0xff] %v1347_v12  ;;  %v870_v29 = vpop.f32.mrf.mxu0  ;;  %v983_v30 = vpop.f32.mrf.mxu1  ;;  %1479 = vst [vmem:[%s2333_s27 + $0x100] sm:$0xff] (%p1945_p6), %v1478_v57  ;;  %v1506_v7 = vld [vmem:[%s2136_s15 + $0xf0] sm:$0xff] (%p1945_p6)  ;;  %v1508_v8 = vld [vmem:[%s2136_s15 + $0xf8] sm:$0xff] (%p1945_p6) }
 0x14a   : > { %1410 = vst [vmem:[%s2136_s15 + $0x1a8] sm:$0xff] %v1346_v23  ;;  %1412 = vst [vmem:[%s2136_s15 + $0x1b8] sm:$0xff] %v1348_v24  ;;  %v1349_v31 = vadd.f32 %v2118_v19, %v1263_v25  ;;  %v1351_v32 = vadd.f32 %v2120_v20, %v1265_v26  ;;  %v1264_v33 = vmul.f32 %v2122_v21, %v870_v29  ;;  %v1510_v9 = vld [vmem:[%s2136_s15 + $0x100] sm:$0xff] (%p1945_p6)  ;;  %v1512_v10 = vld [vmem:[%s2136_s15 + $0x108] sm:$0xff] (%p1945_p6) }
 0x14b   : > { %v1266_v34 = vmul.f32 %v2124_v22, %v983_v30  ;;  %v872_v35 = vpop.f32.mrf.mxu0  ;;  %v985_v36 = vpop.f32.mrf.mxu1  ;;  %1481 = vst [vmem:[%s2333_s27 + $0x108] sm:$0xff] (%p1945_p6), %v1480_v58  ;;  %1483 = vst [vmem:[%s2333_s27 + $0x110] sm:$0xff] (%p1945_p6), %v1482_v59  ;;  %v1514_v11 = vld [vmem:[%s2136_s15 + $0x110] sm:$0xff] (%p1945_p6)  ;;  %v1516_v12 = vld [vmem:[%s2136_s15 + $0x118] sm:$0xff] (%p1945_p6) }
 0x14c   : > { %1413 = vst [vmem:[%s2136_s15 + $0x1c0] sm:$0xff] %v1349_v31  ;;  %1415 = vst [vmem:[%s2136_s15 + $0x1d0] sm:$0xff] %v1351_v32  ;;  %v1350_v37 = vadd.f32 %v2128_v27, %v1264_v33  ;;  %v1267_v39 = vmul.f32 %v2112_v17, %v872_v35  ;;  %v1269_v40 = vmul.f32 %v2114_v18, %v985_v36  ;;  %v1446_v18 = vld [vmem:[%s2136_s15] sm:$0xff] (%p1945_p6)  ;;  %v1520_v14 = vld [vmem:[%s2136_s15 + $0x128] sm:$0xff] (%p1945_p6) }
 0x14d   : > { %v1352_v38 = vadd.f32 %v2130_v28, %v1266_v34  ;;  %v874_v41 = vpop.f32.mrf.mxu0  ;;  %v987_v42 = vpop.f32.mrf.mxu1  ;;  %1447 = vst [vmem:[%s2333_s27] sm:$0xff] (%p1945_p6), %v1446_v18  ;;  %1485 = vst [vmem:[%s2333_s27 + $0x118] sm:$0xff] (%p1945_p6), %v1484_v60  ;;  %v1518_v13 = vld [vmem:[%s2136_s15 + $0x120] sm:$0xff] (%p1945_p6)  ;;  %v1522_v15 = vld [vmem:[%s2136_s15 + $0x130] sm:$0xff] (%p1945_p6) }
 0x14e   : > { %1414 = vst [vmem:[%s2136_s15 + $0x1c8] sm:$0xff] %v1350_v37  ;;  %v1353_v43 = vadd.f32 %v2118_v19, %v1267_v39  ;;  %v1355_v44 = vadd.f32 %v2120_v20, %v1269_v40  ;;  %v1268_v45 = vmul.f32 %v2122_v21, %v874_v41  ;;  %v1270_v46 = vmul.f32 %v2124_v22, %v987_v42  ;;  %1427 = sbr.rel (!%p1945_p6) target bundleno = 363 (0x16b), region = 71  ;;  %v1448_v19 = vld [vmem:[%s2136_s15 + $0x8] sm:$0xff] (%p1945_p6)  ;;  %v1450_v20 = vld [vmem:[%s2136_s15 + $0x10] sm:$0xff] (%p1945_p6)  ;;  %v1452_v21 = vld [vmem:[%s2136_s15 + $0x18] sm:$0xff] (%p1945_p6) }
 0x14f   : > { %1416 = vst [vmem:[%s2136_s15 + $0x1d8] sm:$0xff] %v1352_v38  ;;  %v1454_v22 = vld [vmem:[%s2136_s15 + $0x20] sm:$0xff] (%p1945_p6)  ;;  %1449 = vst [vmem:[%s2333_s27 + $0x8] sm:$0xff] (%p1945_p6), %v1448_v19  ;;  %v1524_v16 = vld [vmem:[%s2136_s15 + $0x138] sm:$0xff] (%p1945_p6) }
 0x150   : > { %1417 = vst [vmem:[%s2136_s15 + $0x1e0] sm:$0xff] %v1353_v43  ;;  %1419 = vst [vmem:[%s2136_s15 + $0x1f0] sm:$0xff] %v1355_v44  ;;  %v1354_v47 = vadd.f32 %v2128_v27, %v1268_v45  ;;  %v1356_v17 = vadd.f32 %v2130_v28, %v1270_v46  ;;  %v1456_v27 = vld [vmem:[%s2136_s15 + $0x28] sm:$0xff] (%p1945_p6)  ;;  %v1458_v28 = vld [vmem:[%s2136_s15 + $0x30] sm:$0xff] (%p1945_p6) }
 0x151   : > { %1451 = vst [vmem:[%s2333_s27 + $0x10] sm:$0xff] (%p1945_p6), %v1450_v20  ;;  %1453 = vst [vmem:[%s2333_s27 + $0x18] sm:$0xff] (%p1945_p6), %v1452_v21  ;;  %v1526_v23 = vld [vmem:[%s2136_s15 + $0x140] sm:$0xff] (%p1945_p6)  ;;  %v1528_v24 = vld [vmem:[%s2136_s15 + $0x148] sm:$0xff] (%p1945_p6) }
 0x152   : > { %1418 = vst [vmem:[%s2136_s15 + $0x1e8] sm:$0xff] %v1354_v47  ;;  %1420 = vst [vmem:[%s2136_s15 + $0x1f8] sm:$0xff] %v1356_v17  ;;  %v1530_v25 = vld [vmem:[%s2136_s15 + $0x150] sm:$0xff] (%p1945_p6)  ;;  %v1532_v26 = vld [vmem:[%s2136_s15 + $0x158] sm:$0xff] (%p1945_p6) }
 0x153   : > { %1455 = vst [vmem:[%s2333_s27 + $0x40] sm:$0xff] %v1454_v22  ;;  %1457 = vst [vmem:[%s2333_s27 + $0x48] sm:$0xff] %v1456_v27  ;;  %v1534_v29 = vld [vmem:[%s2136_s15 + $0x160] sm:$0xff]  ;;  %v1536_v30 = vld [vmem:[%s2136_s15 + $0x168] sm:$0xff] }
 0x154   : > { %1459 = vst [vmem:[%s2333_s27 + $0x50] sm:$0xff] %v1458_v28  ;;  %1487 = vst [vmem:[%s2333_s27 + $0x140] sm:$0xff] %v1486_v61  ;;  %v1538_v31 = vld [vmem:[%s2136_s15 + $0x170] sm:$0xff]  ;;  %v1540_v32 = vld [vmem:[%s2136_s15 + $0x178] sm:$0xff] }
 0x155   : > { %1489 = vst [vmem:[%s2333_s27 + $0x148] sm:$0xff] %v1488_v62  ;;  %1491 = vst [vmem:[%s2333_s27 + $0x150] sm:$0xff] %v1490_v63  ;;  %v1542_v33 = vld [vmem:[%s2136_s15 + $0x180] sm:$0xff]  ;;  %v1544_v34 = vld [vmem:[%s2136_s15 + $0x188] sm:$0xff] }
 0x156   : > { %1493 = vst [vmem:[%s2333_s27 + $0x158] sm:$0xff] %v1492_v0  ;;  %1495 = vst [vmem:[%s2333_s27 + $0x180] sm:$0xff] %v1494_v1  ;;  %v1546_v35 = vld [vmem:[%s2136_s15 + $0x190] sm:$0xff]  ;;  %v1548_v36 = vld [vmem:[%s2136_s15 + $0x198] sm:$0xff] }
 0x157   : > { %1497 = vst [vmem:[%s2333_s27 + $0x188] sm:$0xff] %v1496_v2  ;;  %1499 = vst [vmem:[%s2333_s27 + $0x190] sm:$0xff] %v1498_v3  ;;  %v1550_v37 = vld [vmem:[%s2136_s15 + $0x1a0] sm:$0xff]  ;;  %v1552_v38 = vld [vmem:[%s2136_s15 + $0x1a8] sm:$0xff] }
 0x158   : > { %1501 = vst [vmem:[%s2333_s27 + $0x198] sm:$0xff] %v1500_v4  ;;  %1503 = vst [vmem:[%s2333_s27 + $0x1c0] sm:$0xff] %v1502_v5  ;;  %v1554_v39 = vld [vmem:[%s2136_s15 + $0x1b0] sm:$0xff]  ;;  %v1556_v40 = vld [vmem:[%s2136_s15 + $0x1b8] sm:$0xff] }
 0x159   : > { %1505 = vst [vmem:[%s2333_s27 + $0x1c8] sm:$0xff] %v1504_v6  ;;  %1507 = vst [vmem:[%s2333_s27 + $0x1d0] sm:$0xff] %v1506_v7  ;;  %v1558_v41 = vld [vmem:[%s2136_s15 + $0x1c0] sm:$0xff]  ;;  %v1560_v42 = vld [vmem:[%s2136_s15 + $0x1c8] sm:$0xff] }
 0x15a   : > { %1509 = vst [vmem:[%s2333_s27 + $0x1d8] sm:$0xff] %v1508_v8  ;;  %1511 = vst [vmem:[%s2333_s27 + $0x200] sm:$0xff] %v1510_v9  ;;  %v1562_v43 = vld [vmem:[%s2136_s15 + $0x1d0] sm:$0xff]  ;;  %v1564_v44 = vld [vmem:[%s2136_s15 + $0x1d8] sm:$0xff] }
 0x15b   : > { %1513 = vst [vmem:[%s2333_s27 + $0x208] sm:$0xff] %v1512_v10  ;;  %1515 = vst [vmem:[%s2333_s27 + $0x210] sm:$0xff] %v1514_v11  ;;  %v1566_v45 = vld [vmem:[%s2136_s15 + $0x1e0] sm:$0xff]  ;;  %v1568_v46 = vld [vmem:[%s2136_s15 + $0x1e8] sm:$0xff] }
 0x15c   : > { %1517 = vst [vmem:[%s2333_s27 + $0x218] sm:$0xff] %v1516_v12  ;;  %1519 = vst [vmem:[%s2333_s27 + $0x240] sm:$0xff] %v1518_v13  ;;  %v1570_v47 = vld [vmem:[%s2136_s15 + $0x1f0] sm:$0xff]  ;;  %v1572_v17 = vld [vmem:[%s2136_s15 + $0x1f8] sm:$0xff] }
 0x15d   : > { %1521 = vst [vmem:[%s2333_s27 + $0x248] sm:$0xff] %v1520_v14  ;;  %1523 = vst [vmem:[%s2333_s27 + $0x250] sm:$0xff] %v1522_v15 }
 0x15e   : > { %1525 = vst [vmem:[%s2333_s27 + $0x258] sm:$0xff] %v1524_v16  ;;  %1527 = vst [vmem:[%s2333_s27 + $0x280] sm:$0xff] %v1526_v23 }
 0x15f   : > { %1529 = vst [vmem:[%s2333_s27 + $0x288] sm:$0xff] %v1528_v24  ;;  %1531 = vst [vmem:[%s2333_s27 + $0x290] sm:$0xff] %v1530_v25 }
 0x160   : > { %1533 = vst [vmem:[%s2333_s27 + $0x298] sm:$0xff] %v1532_v26  ;;  %1535 = vst [vmem:[%s2333_s27 + $0x2c0] sm:$0xff] %v1534_v29 }
 0x161   : > { %1537 = vst [vmem:[%s2333_s27 + $0x2c8] sm:$0xff] %v1536_v30  ;;  %1539 = vst [vmem:[%s2333_s27 + $0x2d0] sm:$0xff] %v1538_v31 }
 0x162   : > { %1541 = vst [vmem:[%s2333_s27 + $0x2d8] sm:$0xff] %v1540_v32  ;;  %1543 = vst [vmem:[%s2333_s27 + $0x300] sm:$0xff] %v1542_v33 }
 0x163   : > { %1545 = vst [vmem:[%s2333_s27 + $0x308] sm:$0xff] %v1544_v34  ;;  %1547 = vst [vmem:[%s2333_s27 + $0x310] sm:$0xff] %v1546_v35 }
 0x164   : > { %1549 = vst [vmem:[%s2333_s27 + $0x318] sm:$0xff] %v1548_v36  ;;  %1551 = vst [vmem:[%s2333_s27 + $0x340] sm:$0xff] %v1550_v37 }
 0x165   : > { %1553 = vst [vmem:[%s2333_s27 + $0x348] sm:$0xff] %v1552_v38  ;;  %1555 = vst [vmem:[%s2333_s27 + $0x350] sm:$0xff] %v1554_v39 }
 0x166   : > { %1557 = vst [vmem:[%s2333_s27 + $0x358] sm:$0xff] %v1556_v40  ;;  %1559 = vst [vmem:[%s2333_s27 + $0x380] sm:$0xff] %v1558_v41 }
 0x167   : > { %1561 = vst [vmem:[%s2333_s27 + $0x388] sm:$0xff] %v1560_v42  ;;  %1563 = vst [vmem:[%s2333_s27 + $0x390] sm:$0xff] %v1562_v43 }
 0x168   : > { %1565 = vst [vmem:[%s2333_s27 + $0x398] sm:$0xff] %v1564_v44  ;;  %1567 = vst [vmem:[%s2333_s27 + $0x3c0] sm:$0xff] %v1566_v45 }
 0x169   : > { %1569 = vst [vmem:[%s2333_s27 + $0x3c8] sm:$0xff] %v1568_v46  ;;  %1571 = vst [vmem:[%s2333_s27 + $0x3d0] sm:$0xff] %v1570_v47 }
 0x16a   : > { %1573 = vst [vmem:[%s2333_s27 + $0x3d8] sm:$0xff] %v1572_v17 }
 0x16b PF: > { %s14_s19 = sadd.s32 1, %s1882_s19   ;;  %s2481_s15 = smov %s1870_s16 }
 0x16c   : > { %p11_p12 = scmp.ge.s32.totalorder %s14_s19, 4   ;;  %s2482_s16 = smov %s1950_s25 }
 0x16d   : > { %s2483_s17 = smov %s1878_s18  ;;  %s2484_s18 = smov %s2486_s20 }
 0x16e   :  { %13 = sbr.rel (!%p11_p12) target bundleno = 3 (0x3), region = 134 }

// kernel: crnn_forward.13
= control target key start
LH: loop header
LB: loop body
LE: loop exit
PB: predicated region body
PF: predicated region fallthrough
CT: control target
= control target key end

     0   :  { %s2310_s15 = smov 0   ;;  %s2312_s16 = smov 0   ;;  %s2979_s0 = inlined_call_operand.vmem [shape: bf16[128,256], index: 0, kind: input, shape index: {}]   ;;  %s2980_s1 = inlined_call_operand.vmem [shape: bf16[256,1024], index: 1, kind: input, shape index: {}]   ;;  %s2981_s2 = inlined_call_operand.vmem [shape: f32[1,1024], index: 2, kind: input, shape index: {}]   ;;  %s2982_s3 = inlined_call_operand.vmem [shape: f32[1,1024], index: 3, kind: input, shape index: {}]   ;;  %s2983_s4 = inlined_call_operand.vmem [shape: f32[128,1024], index: 4, kind: output, shape index: {}]  }
   0x1   :  { %s2314_s17 = smov 0   ;;  %s2316_s18 = smov 0  }
   0x2   :  { %s2318_s19 = smov 0  }
   0x3 LB: > { %s29_s20 = sadd.s32 1, %s2279_s18  ;;  %s1985_s21 = sadd.s32 4294967295, %s2283_s19   ;;  %s2283_s19 = sphi %s2318_s19, %s14_s19   ;;  %s2279_s18 = sphi %s2316_s18, %s2988_s18   ;;  %s2275_s17 = sphi %s2314_s17, %s2987_s17   ;;  %s2271_s16 = sphi %s2312_s16, %s2986_s16   ;;  %s2267_s15 = sphi %s2310_s15, %s2985_s15  }
   0x4   : > { %p31_p0 = scmp.ge.s32.totalorder %s29_s20, 2  ;;  %p77_p1 = scmp.ne.s32.totalorder %s2271_s16, %s2267_s15 }
   0x5   : > { %p78_p2 = scmp.eq.s32.totalorder %s2283_s19, 0  ;;  %p161_p4 = scmp.eq.s32.totalorder %s1985_s21, 1 }
   0x6   : > { %s2990_s20 = smov (%p31_p0, %s29_s20), 0  ;;  %s70_s23 = sadd.s32 1, %s2271_s16 }
   0x7   : > { %p79_p3 = por %p78_p2, %p77_p1  ;;  %s66_s22 = ssub.s32 %s2279_s18, %s2990_s20 }
   0x8   : > { %p68_p5 = scmp.eq.s32.totalorder %s66_s22, 0  ;;  %p2345_p6 = por %p161_p4, %p77_p1 }
   0x9   : > { %p1989_p7 = scmp.ge.s32.totalorder %s2283_s19, 2 }
   0xa   : > { %s2350_s25 = scalar_select %p68_p5, %s2271_s16, %s70_s23  }
   0xb   : > { %198 = sbr.rel (%p1989_p7) target bundleno = 52 (0x34), region = 20 }
  0x10   : > { %201 = sbr.rel (!%p79_p3) target bundleno = 52 (0x34), region = 24  ;;  %s203_s26 = sand.u32 (%p79_p3), 1, %s2271_s16  }
  0x11   : > { %s2083_s27 = sshll.u32 (%p79_p3), %s2279_s18, 4  ;;  %s1990_s28 = sshll.u32 (%p79_p3), %s203_s26, 9 }
  0x12   : > { %s2358_s5 = scalar_lea.vmem (%p79_p3), %s2980_s1, %s2083_s27  ;;  %s2363_s6 = scalar_lea.vmem (%p79_p3), [#allocation3], %s1990_s28 }
  0x13   : > { %v224_v0 = vld [vmem:[%s2358_s5] sm:$0xff] (%p79_p3)  ;;  %v226_v1 = vld [vmem:[%s2358_s5 + $0x8] sm:$0xff] (%p79_p3) }
  0x14   : > { %v228_v2 = vld [vmem:[%s2358_s5 + $0x20] sm:$0xff] (%p79_p3)  ;;  %225 = vst [vmem:[%s2363_s6] sm:$0xff] (%p79_p3), %v224_v0  ;;  %227 = vst [vmem:[%s2363_s6 + $0x8] sm:$0xff] (%p79_p3), %v226_v1  ;;  %v230_v3 = vld [vmem:[%s2358_s5 + $0x28] sm:$0xff] (%p79_p3) }
  0x15   : > { %229 = vst [vmem:[%s2363_s6 + $0x10] sm:$0xff] %v228_v2  ;;  %v232_v4 = vld [vmem:[%s2358_s5 + $0x40] sm:$0xff]  ;;  %v234_v5 = vld [vmem:[%s2358_s5 + $0x48] sm:$0xff]  ;;  %231 = vst [vmem:[%s2363_s6 + $0x18] sm:$0xff] %v230_v3 }
  0x16   : > { %233 = vst [vmem:[%s2363_s6 + $0x20] sm:$0xff] %v232_v4  ;;  %235 = vst [vmem:[%s2363_s6 + $0x28] sm:$0xff] %v234_v5  ;;  %v236_v6 = vld [vmem:[%s2358_s5 + $0x60] sm:$0xff]  ;;  %v238_v7 = vld [vmem:[%s2358_s5 + $0x68] sm:$0xff] }
  0x17   : > { %v240_v8 = vld [vmem:[%s2358_s5 + $0x80] sm:$0xff]  ;;  %237 = vst [vmem:[%s2363_s6 + $0x30] sm:$0xff] %v236_v6  ;;  %239 = vst [vmem:[%s2363_s6 + $0x38] sm:$0xff] %v238_v7  ;;  %v242_v9 = vld [vmem:[%s2358_s5 + $0x88] sm:$0xff] }
  0x18   : > { %241 = vst [vmem:[%s2363_s6 + $0x40] sm:$0xff] %v240_v8  ;;  %v244_v10 = vld [vmem:[%s2358_s5 + $0xa0] sm:$0xff]  ;;  %v246_v11 = vld [vmem:[%s2358_s5 + $0xa8] sm:$0xff]  ;;  %243 = vst [vmem:[%s2363_s6 + $0x48] sm:$0xff] %v242_v9 }
  0x19   : > { %245 = vst [vmem:[%s2363_s6 + $0x50] sm:$0xff] %v244_v10  ;;  %247 = vst [vmem:[%s2363_s6 + $0x58] sm:$0xff] %v246_v11  ;;  %v248_v12 = vld [vmem:[%s2358_s5 + $0xc0] sm:$0xff]  ;;  %v250_v13 = vld [vmem:[%s2358_s5 + $0xc8] sm:$0xff] }
  0x1a   : > { %v252_v14 = vld [vmem:[%s2358_s5 + $0xe0] sm:$0xff]  ;;  %249 = vst [vmem:[%s2363_s6 + $0x60] sm:$0xff] %v248_v12  ;;  %251 = vst [vmem:[%s2363_s6 + $0x68] sm:$0xff] %v250_v13  ;;  %v254_v15 = vld [vmem:[%s2358_s5 + $0xe8] sm:$0xff] }
  0x1b   : > { %253 = vst [vmem:[%s2363_s6 + $0x70] sm:$0xff] %v252_v14  ;;  %v256_v16 = vld [vmem:[%s2358_s5 + $0x100] sm:$0xff]  ;;  %v258_v17 = vld [vmem:[%s2358_s5 + $0x108] sm:$0xff]  ;;  %255 = vst [vmem:[%s2363_s6 + $0x78] sm:$0xff] %v254_v15 }
  0x1c   : > { %257 = vst [vmem:[%s2363_s6 + $0x80] sm:$0xff] %v256_v16  ;;  %259 = vst [vmem:[%s2363_s6 + $0x88] sm:$0xff] %v258_v17  ;;  %v260_v18 = vld [vmem:[%s2358_s5 + $0x120] sm:$0xff]  ;;  %v262_v19 = vld [vmem:[%s2358_s5 + $0x128] sm:$0xff] }
  0x1d   : > { %v264_v20 = vld [vmem:[%s2358_s5 + $0x140] sm:$0xff]  ;;  %261 = vst [vmem:[%s2363_s6 + $0x90] sm:$0xff] %v260_v18  ;;  %263 = vst [vmem:[%s2363_s6 + $0x98] sm:$0xff] %v262_v19  ;;  %v266_v21 = vld [vmem:[%s2358_s5 + $0x148] sm:$0xff] }
  0x1e   : > { %265 = vst [vmem:[%s2363_s6 + $0xa0] sm:$0xff] %v264_v20  ;;  %v268_v22 = vld [vmem:[%s2358_s5 + $0x160] sm:$0xff]  ;;  %v270_v23 = vld [vmem:[%s2358_s5 + $0x168] sm:$0xff]  ;;  %267 = vst [vmem:[%s2363_s6 + $0xa8] sm:$0xff] %v266_v21 }
  0x1f   : > { %269 = vst [vmem:[%s2363_s6 + $0xb0] sm:$0xff] %v268_v22  ;;  %271 = vst [vmem:[%s2363_s6 + $0xb8] sm:$0xff] %v270_v23  ;;  %v272_v24 = vld [vmem:[%s2358_s5 + $0x180] sm:$0xff]  ;;  %v274_v25 = vld [vmem:[%s2358_s5 + $0x188] sm:$0xff] }
  0x20   : > { %v276_v26 = vld [vmem:[%s2358_s5 + $0x1a0] sm:$0xff]  ;;  %273 = vst [vmem:[%s2363_s6 + $0xc0] sm:$0xff] %v272_v24  ;;  %275 = vst [vmem:[%s2363_s6 + $0xc8] sm:$0xff] %v274_v25  ;;  %v278_v27 = vld [vmem:[%s2358_s5 + $0x1a8] sm:$0xff] }
  0x21   : > { %277 = vst [vmem:[%s2363_s6 + $0xd0] sm:$0xff] %v276_v26  ;;  %v280_v28 = vld [vmem:[%s2358_s5 + $0x1c0] sm:$0xff]  ;;  %v282_v29 = vld [vmem:[%s2358_s5 + $0x1c8] sm:$0xff]  ;;  %279 = vst [vmem:[%s2363_s6 + $0xd8] sm:$0xff] %v278_v27 }
  0x22   : > { %281 = vst [vmem:[%s2363_s6 + $0xe0] sm:$0xff] %v280_v28  ;;  %283 = vst [vmem:[%s2363_s6 + $0xe8] sm:$0xff] %v282_v29  ;;  %v284_v30 = vld [vmem:[%s2358_s5 + $0x1e0] sm:$0xff]  ;;  %v286_v31 = vld [vmem:[%s2358_s5 + $0x1e8] sm:$0xff] }
  0x23   : > { %v288_v32 = vld [vmem:[%s2358_s5 + $0x200] sm:$0xff]  ;;  %285 = vst [vmem:[%s2363_s6 + $0xf0] sm:$0xff] %v284_v30  ;;  %287 = vst [vmem:[%s2363_s6 + $0xf8] sm:$0xff] %v286_v31  ;;  %v290_v33 = vld [vmem:[%s2358_s5 + $0x208] sm:$0xff] }
  0x24   : > { %289 = vst [vmem:[%s2363_s6 + $0x100] sm:$0xff] %v288_v32  ;;  %v292_v34 = vld [vmem:[%s2358_s5 + $0x220] sm:$0xff]  ;;  %v294_v35 = vld [vmem:[%s2358_s5 + $0x228] sm:$0xff]  ;;  %291 = vst [vmem:[%s2363_s6 + $0x108] sm:$0xff] %v290_v33 }
  0x25   : > { %293 = vst [vmem:[%s2363_s6 + $0x110] sm:$0xff] %v292_v34  ;;  %295 = vst [vmem:[%s2363_s6 + $0x118] sm:$0xff] %v294_v35  ;;  %v296_v36 = vld [vmem:[%s2358_s5 + $0x240] sm:$0xff]  ;;  %v298_v37 = vld [vmem:[%s2358_s5 + $0x248] sm:$0xff] }
  0x26   : > { %v300_v38 = vld [vmem:[%s2358_s5 + $0x260] sm:$0xff]  ;;  %297 = vst [vmem:[%s2363_s6 + $0x120] sm:$0xff] %v296_v36  ;;  %299 = vst [vmem:[%s2363_s6 + $0x128] sm:$0xff] %v298_v37  ;;  %v302_v39 = vld [vmem:[%s2358_s5 + $0x268] sm:$0xff] }
  0x27   : > { %301 = vst [vmem:[%s2363_s6 + $0x130] sm:$0xff] %v300_v38  ;;  %v304_v40 = vld [vmem:[%s2358_s5 + $0x280] sm:$0xff]  ;;  %v306_v41 = vld [vmem:[%s2358_s5 + $0x288] sm:$0xff]  ;;  %303 = vst [vmem:[%s2363_s6 + $0x138] sm:$0xff] %v302_v39 }
  0x28   : > { %305 = vst [vmem:[%s2363_s6 + $0x140] sm:$0xff] %v304_v40  ;;  %307 = vst [vmem:[%s2363_s6 + $0x148] sm:$0xff] %v306_v41  ;;  %v308_v42 = vld [vmem:[%s2358_s5 + $0x2a0] sm:$0xff]  ;;  %v310_v43 = vld [vmem:[%s2358_s5 + $0x2a8] sm:$0xff] }
  0x29   : > { %v312_v44 = vld [vmem:[%s2358_s5 + $0x2c0] sm:$0xff]  ;;  %309 = vst [vmem:[%s2363_s6 + $0x150] sm:$0xff] %v308_v42  ;;  %311 = vst [vmem:[%s2363_s6 + $0x158] sm:$0xff] %v310_v43  ;;  %v314_v45 = vld [vmem:[%s2358_s5 + $0x2c8] sm:$0xff] }
  0x2a   : > { %313 = vst [vmem:[%s2363_s6 + $0x160] sm:$0xff] %v312_v44  ;;  %v316_v46 = vld [vmem:[%s2358_s5 + $0x2e0] sm:$0xff]  ;;  %v318_v47 = vld [vmem:[%s2358_s5 + $0x2e8] sm:$0xff]  ;;  %315 = vst [vmem:[%s2363_s6 + $0x168] sm:$0xff] %v314_v45 }
  0x2b   : > { %317 = vst [vmem:[%s2363_s6 + $0x170] sm:$0xff] %v316_v46  ;;  %319 = vst [vmem:[%s2363_s6 + $0x178] sm:$0xff] %v318_v47  ;;  %v320_v48 = vld [vmem:[%s2358_s5 + $0x300] sm:$0xff]  ;;  %v322_v49 = vld [vmem:[%s2358_s5 + $0x308] sm:$0xff] }
  0x2c   : > { %v324_v50 = vld [vmem:[%s2358_s5 + $0x320] sm:$0xff]  ;;  %321 = vst [vmem:[%s2363_s6 + $0x180] sm:$0xff] %v320_v48  ;;  %323 = vst [vmem:[%s2363_s6 + $0x188] sm:$0xff] %v322_v49  ;;  %v326_v51 = vld [vmem:[%s2358_s5 + $0x328] sm:$0xff] }
  0x2d   : > { %325 = vst [vmem:[%s2363_s6 + $0x190] sm:$0xff] %v324_v50  ;;  %v328_v52 = vld [vmem:[%s2358_s5 + $0x340] sm:$0xff]  ;;  %v330_v53 = vld [vmem:[%s2358_s5 + $0x348] sm:$0xff]  ;;  %327 = vst [vmem:[%s2363_s6 + $0x198] sm:$0xff] %v326_v51 }
  0x2e   : > { %329 = vst [vmem:[%s2363_s6 + $0x1a0] sm:$0xff] %v328_v52  ;;  %331 = vst [vmem:[%s2363_s6 + $0x1a8] sm:$0xff] %v330_v53  ;;  %v332_v54 = vld [vmem:[%s2358_s5 + $0x360] sm:$0xff]  ;;  %v334_v55 = vld [vmem:[%s2358_s5 + $0x368] sm:$0xff] }
  0x2f   : > { %v336_v56 = vld [vmem:[%s2358_s5 + $0x380] sm:$0xff]  ;;  %333 = vst [vmem:[%s2363_s6 + $0x1b0] sm:$0xff] %v332_v54  ;;  %335 = vst [vmem:[%s2363_s6 + $0x1b8] sm:$0xff] %v334_v55  ;;  %v338_v57 = vld [vmem:[%s2358_s5 + $0x388] sm:$0xff] }
  0x30   : > { %337 = vst [vmem:[%s2363_s6 + $0x1c0] sm:$0xff] %v336_v56  ;;  %v340_v58 = vld [vmem:[%s2358_s5 + $0x3a0] sm:$0xff]  ;;  %v342_v59 = vld [vmem:[%s2358_s5 + $0x3a8] sm:$0xff]  ;;  %339 = vst [vmem:[%s2363_s6 + $0x1c8] sm:$0xff] %v338_v57 }
  0x31   : > { %341 = vst [vmem:[%s2363_s6 + $0x1d0] sm:$0xff] %v340_v58  ;;  %343 = vst [vmem:[%s2363_s6 + $0x1d8] sm:$0xff] %v342_v59  ;;  %v344_v60 = vld [vmem:[%s2358_s5 + $0x3c0] sm:$0xff]  ;;  %v346_v61 = vld [vmem:[%s2358_s5 + $0x3c8] sm:$0xff] }
  0x32   : > { %v348_v62 = vld [vmem:[%s2358_s5 + $0x3e0] sm:$0xff]  ;;  %345 = vst [vmem:[%s2363_s6 + $0x1e0] sm:$0xff] %v344_v60  ;;  %347 = vst [vmem:[%s2363_s6 + $0x1e8] sm:$0xff] %v346_v61  ;;  %v350_v63 = vld [vmem:[%s2358_s5 + $0x3e8] sm:$0xff] }
  0x33   : > { %349 = vst [vmem:[%s2363_s6 + $0x1f0] sm:$0xff] %v348_v62  ;;  %351 = vst [vmem:[%s2363_s6 + $0x1f8] sm:$0xff] %v350_v63 }
  0x34 PF: > { %p1993_p8 = scmp.ge.s32.totalorder %s2283_s19, 1  ;;  %p372_p9 = scmp.lt.s32.totalorder %s2283_s19, 3 }
  0x36   : > { %p373_p10 = pnand %p1993_p8, %p372_p9 }
  0x37   : > { %s379_s7 = sand.u32 (!%p373_p10), 1, %s2267_s15   ;;  %s1996_s5 = sshll.u32 (!%p373_p10), %s2275_s17, 2 }
  0x38   : > { %376 = sbr.rel (%p373_p10) target bundleno = 411 (0x19b), region = 55  ;;  %s2493_s8 = sshll.u32 (!%p373_p10), %s379_s7, 9 }
  0x39   : > { %s2499_s11 = scalar_lea.vmem (!%p373_p10), [#allocation3], %s2493_s8  ;;  %p436_p11 = scmp.lt.s32.totalorder (!%p373_p10), %s1996_s5, 7 }
  0x3a   : > { %s2640_s13 = scalar_lea.vmem (!%p373_p10), [#allocation4], %s2493_s8 }
  0x3d   : > { %v2223_v0 = vld [vmem:[%s2979_s0 + $0x4] ss:$8 sps:$4 sm:$0xff]   ;;  %v2129_v3 = vld [vmem:[%s2499_s11 + $0xe0] ss:$16 sps:$4 sm:$0xff]   ;;  %v2130_v4 = vld [vmem:[%s2499_s11 + $0xe8] ss:$16 sps:$4 sm:$0xff]  }
  0x3e   : > { %v2125_v1 = vld [vmem:[%s2499_s11 + $0xe4] ss:$16 sps:$4 sm:$0xff]   ;;  %1091 = vmatprep.mubr.bf16.mxu0 %v2223_v0  ;;  %1204 = vmatprep.mubr.bf16.mxu1 %v2223_v0  ;;  %v2127_v2 = vld [vmem:[%s2499_s11 + $0xec] ss:$16 sps:$4 sm:$0xff]   ;;  %v2135_v7 = vld [vmem:[%s2499_s11 + $0xc0] ss:$16 sps:$4 sm:$0xff]  }
  0x3f   : > { %1059 = vmatprep.subr.bf16.mxu0 %v2125_v1  ;;  %1172 = vmatprep.subr.bf16.mxu1 %v2127_v2  ;;  %v2131_v5 = vld [vmem:[%s2499_s11 + $0xc4] ss:$16 sps:$4 sm:$0xff]   ;;  %v2133_v6 = vld [vmem:[%s2499_s11 + $0xcc] ss:$16 sps:$4 sm:$0xff]   ;;  %v2136_v8 = vld [vmem:[%s2499_s11 + $0xc8] ss:$16 sps:$4 sm:$0xff]  }
  0x40   : > { %1060 = vmatpush1.bf16.msra.mxu0 %v2129_v3  ;;  %1173 = vmatpush1.bf16.msra.mxu1 %v2130_v4  ;;  %v2137_v9 = vld [vmem:[%s2499_s11 + $0xa4] ss:$16 sps:$4 sm:$0xff]   ;;  %v2139_v10 = vld [vmem:[%s2499_s11 + $0xac] ss:$16 sps:$4 sm:$0xff]   ;;  %v2141_v11 = vld [vmem:[%s2499_s11 + $0xa0] ss:$16 sps:$4 sm:$0xff]  }
  0x41   : > { %1061 = vmatprep.subr.bf16.mxu0 %v2131_v5  ;;  %1174 = vmatprep.subr.bf16.mxu1 %v2133_v6  ;;  %v2142_v12 = vld [vmem:[%s2499_s11 + $0xa8] ss:$16 sps:$4 sm:$0xff]   ;;  %v2143_v13 = vld [vmem:[%s2499_s11 + $0x84] ss:$16 sps:$4 sm:$0xff]   ;;  %v2145_v14 = vld [vmem:[%s2499_s11 + $0x8c] ss:$16 sps:$4 sm:$0xff]  }
  0x42   : > { %v2147_v15 = vld [vmem:[%s2499_s11 + $0x80] ss:$16 sps:$4 sm:$0xff]   ;;  %v2148_v16 = vld [vmem:[%s2499_s11 + $0x88] ss:$16 sps:$4 sm:$0xff]   ;;  %v2149_v17 = vld [vmem:[%s2499_s11 + $0x64] ss:$16 sps:$4 sm:$0xff]  }
  0x43   : > { %v2151_v18 = vld [vmem:[%s2499_s11 + $0x6c] ss:$16 sps:$4 sm:$0xff]   ;;  %v2153_v19 = vld [vmem:[%s2499_s11 + $0x60] ss:$16 sps:$4 sm:$0xff]   ;;  %v2154_v20 = vld [vmem:[%s2499_s11 + $0x68] ss:$16 sps:$4 sm:$0xff]  }
  0x44   : > { %1062 = vmatpush1.bf16.msra.mxu0 %v2135_v7  ;;  %1175 = vmatpush1.bf16.msra.mxu1 %v2136_v8  ;;  %v2155_v21 = vld [vmem:[%s2499_s11 + $0x44] ss:$16 sps:$4 sm:$0xff]   ;;  %v2157_v22 = vld [vmem:[%s2499_s11 + $0x4c] ss:$16 sps:$4 sm:$0xff]   ;;  %v2159_v23 = vld [vmem:[%s2499_s11 + $0x40] ss:$16 sps:$4 sm:$0xff]  }
  0x45   : > { %1063 = vmatprep.subr.bf16.mxu0 %v2137_v9  ;;  %1176 = vmatprep.subr.bf16.mxu1 %v2139_v10  ;;  %v2160_v24 = vld [vmem:[%s2499_s11 + $0x48] ss:$16 sps:$4 sm:$0xff]   ;;  %v2161_v25 = vld [vmem:[%s2499_s11 + $0x24] ss:$16 sps:$4 sm:$0xff]   ;;  %v2163_v26 = vld [vmem:[%s2499_s11 + $0x2c] ss:$16 sps:$4 sm:$0xff]  }
  0x46   : > { %v2165_v27 = vld [vmem:[%s2499_s11 + $0x20] ss:$16 sps:$4 sm:$0xff]   ;;  %v2166_v28 = vld [vmem:[%s2499_s11 + $0x28] ss:$16 sps:$4 sm:$0xff]   ;;  %v2167_v29 = vld [vmem:[%s2499_s11 + $0x4] ss:$16 sps:$4 sm:$0xff]  }
  0x47   : > { %v2169_v30 = vld [vmem:[%s2499_s11 + $0xc] ss:$16 sps:$4 sm:$0xff]   ;;  %v2171_v31 = vld [vmem:[%s2499_s11] ss:$16 sps:$4 sm:$0xff]   ;;  %v2172_v32 = vld [vmem:[%s2499_s11 + $0x8] ss:$16 sps:$4 sm:$0xff]  }
  0x48   : > { %1064 = vmatpush1.bf16.msra.mxu0 %v2141_v11  ;;  %1177 = vmatpush1.bf16.msra.mxu1 %v2142_v12  ;;  %v2173_v33 = vld [vmem:[%s2499_s11 + $0x1e4] ss:$16 sps:$4 sm:$0xff]   ;;  %v2175_v34 = vld [vmem:[%s2499_s11 + $0x1ec] ss:$16 sps:$4 sm:$0xff]   ;;  %v2177_v35 = vld [vmem:[%s2499_s11 + $0x1e0] ss:$16 sps:$4 sm:$0xff]  }
  0x49   : > { %1065 = vmatprep.subr.bf16.mxu0 %v2143_v13  ;;  %1178 = vmatprep.subr.bf16.mxu1 %v2145_v14  ;;  %v2178_v36 = vld [vmem:[%s2499_s11 + $0x1e8] ss:$16 sps:$4 sm:$0xff]   ;;  %v2179_v37 = vld [vmem:[%s2499_s11 + $0x1c4] ss:$16 sps:$4 sm:$0xff]   ;;  %v2181_v38 = vld [vmem:[%s2499_s11 + $0x1cc] ss:$16 sps:$4 sm:$0xff]  }
  0x4a   : > { %v2183_v39 = vld [vmem:[%s2499_s11 + $0x1c0] ss:$16 sps:$4 sm:$0xff]   ;;  %v2184_v40 = vld [vmem:[%s2499_s11 + $0x1c8] ss:$16 sps:$4 sm:$0xff]   ;;  %v2185_v41 = vld [vmem:[%s2499_s11 + $0x1a4] ss:$16 sps:$4 sm:$0xff]  }
  0x4b   : > { %v2187_v42 = vld [vmem:[%s2499_s11 + $0x1ac] ss:$16 sps:$4 sm:$0xff]   ;;  %v2189_v43 = vld [vmem:[%s2499_s11 + $0x1a0] ss:$16 sps:$4 sm:$0xff]   ;;  %v2190_v44 = vld [vmem:[%s2499_s11 + $0x1a8] ss:$16 sps:$4 sm:$0xff]  }
  0x4c   : > { %1066 = vmatpush1.bf16.msra.mxu0 %v2147_v15  ;;  %1179 = vmatpush1.bf16.msra.mxu1 %v2148_v16  ;;  %v2191_v45 = vld [vmem:[%s2499_s11 + $0x184] ss:$16 sps:$4 sm:$0xff]   ;;  %v2193_v46 = vld [vmem:[%s2499_s11 + $0x18c] ss:$16 sps:$4 sm:$0xff]   ;;  %v2195_v47 = vld [vmem:[%s2499_s11 + $0x180] ss:$16 sps:$4 sm:$0xff]   ;;  %v1482_v16 = vlaneseq }
  0x4d   : > { %1067 = vmatprep.subr.bf16.mxu0 %v2149_v17  ;;  %1180 = vmatprep.subr.bf16.mxu1 %v2151_v18  ;;  %v2196_v48 = vld [vmem:[%s2499_s11 + $0x188] ss:$16 sps:$4 sm:$0xff]   ;;  %v2197_v49 = vld [vmem:[%s2499_s11 + $0x164] ss:$16 sps:$4 sm:$0xff]   ;;  %v2199_v50 = vld [vmem:[%s2499_s11 + $0x16c] ss:$16 sps:$4 sm:$0xff]  }
  0x4e   : > { %v2201_v51 = vld [vmem:[%s2499_s11 + $0x160] ss:$16 sps:$4 sm:$0xff]   ;;  %v2202_v52 = vld [vmem:[%s2499_s11 + $0x168] ss:$16 sps:$4 sm:$0xff]   ;;  %v2203_v53 = vld [vmem:[%s2499_s11 + $0x144] ss:$16 sps:$4 sm:$0xff]  }
  0x4f   : > { %v2205_v54 = vld [vmem:[%s2499_s11 + $0x14c] ss:$16 sps:$4 sm:$0xff]   ;;  %v2207_v55 = vld [vmem:[%s2499_s11 + $0x140] ss:$16 sps:$4 sm:$0xff]   ;;  %v2208_v56 = vld [vmem:[%s2499_s11 + $0x148] ss:$16 sps:$4 sm:$0xff]  }
  0x50   : > { %1068 = vmatpush1.bf16.msra.mxu0 %v2153_v19  ;;  %1181 = vmatpush1.bf16.msra.mxu1 %v2154_v20  ;;  %v2209_v57 = vld [vmem:[%s2499_s11 + $0x124] ss:$16 sps:$4 sm:$0xff]   ;;  %v2211_v58 = vld [vmem:[%s2499_s11 + $0x12c] ss:$16 sps:$4 sm:$0xff]   ;;  %v2213_v59 = vld [vmem:[%s2499_s11 + $0x120] ss:$16 sps:$4 sm:$0xff]  }
  0x51   : > { %1069 = vmatprep.subr.bf16.mxu0 %v2155_v21  ;;  %1182 = vmatprep.subr.bf16.mxu1 %v2157_v22  ;;  %v2214_v60 = vld [vmem:[%s2499_s11 + $0x128] ss:$16 sps:$4 sm:$0xff]   ;;  %v2215_v61 = vld [vmem:[%s2499_s11 + $0x104] ss:$16 sps:$4 sm:$0xff]   ;;  %v2217_v62 = vld [vmem:[%s2499_s11 + $0x10c] ss:$16 sps:$4 sm:$0xff]  }
  0x52   : > { %v2219_v63 = vld [vmem:[%s2499_s11 + $0x100] ss:$16 sps:$4 sm:$0xff]   ;;  %v2220_v0 = vld [vmem:[%s2499_s11 + $0x108] ss:$16 sps:$4 sm:$0xff]   ;;  %v2224_v2 = vld [vmem:[%s2979_s0 + $0x14] ss:$8 sps:$4 sm:$0xff]  }
  0x53   : > { %v2221_v1 = vld [vmem:[%s2979_s0] ss:$8 sps:$4 sm:$0xff]   ;;  %v2226_v3 = vld [vmem:[%s2979_s0 + $0x10] ss:$8 sps:$4 sm:$0xff]   ;;  %v2227_v4 = vld [vmem:[%s2979_s0 + $0x24] ss:$8 sps:$4 sm:$0xff]  }
  0x54   : > { %1070 = vmatpush1.bf16.msra.mxu0 %v2159_v23  ;;  %1183 = vmatpush1.bf16.msra.mxu1 %v2160_v24  ;;  %v2229_v5 = vld [vmem:[%s2979_s0 + $0x20] ss:$8 sps:$4 sm:$0xff]   ;;  %v2230_v6 = vld [vmem:[%s2979_s0 + $0x34] ss:$8 sps:$4 sm:$0xff]   ;;  %v2232_v7 = vld [vmem:[%s2979_s0 + $0x30] ss:$8 sps:$4 sm:$0xff]  }
  0x55   : > { %1071 = vmatprep.subr.bf16.mxu0 %v2161_v25  ;;  %1184 = vmatprep.subr.bf16.mxu1 %v2163_v26  ;;  %v2233_v8 = vld [vmem:[%s2979_s0 + $0x44] ss:$8 sps:$4 sm:$0xff]   ;;  %v2235_v9 = vld [vmem:[%s2979_s0 + $0x40] ss:$8 sps:$4 sm:$0xff]   ;;  %v2236_v10 = vld [vmem:[%s2979_s0 + $0x54] ss:$8 sps:$4 sm:$0xff]  }
  0x56   : > { %v2238_v11 = vld [vmem:[%s2979_s0 + $0x50] ss:$8 sps:$4 sm:$0xff]   ;;  %v2239_v12 = vld [vmem:[%s2979_s0 + $0x64] ss:$8 sps:$4 sm:$0xff]   ;;  %v2241_v13 = vld [vmem:[%s2979_s0 + $0x60] ss:$8 sps:$4 sm:$0xff]  }
  0x57   : > { %v2242_v14 = vld [vmem:[%s2979_s0 + $0x74] ss:$8 sps:$4 sm:$0xff]   ;;  %v2244_v15 = vld [vmem:[%s2979_s0 + $0x70] ss:$8 sps:$4 sm:$0xff]   ;;  %s2992_s5 = smov (!%p436_p11, %s1996_s5), 7  ;;  %v1483_v17 = vshrl.u32 %v1482_v16, 7 }
  0x58   : > { %1072 = vmatpush1.bf16.msra.mxu0 %v2165_v27  ;;  %1185 = vmatpush1.bf16.msra.mxu1 %v2166_v28  ;;  %s438_s9 = scalar_lea.vmem %s2981_s2, %s2992_s5  ;;  %s443_s12 = scalar_lea.vmem %s2982_s3, %s2992_s5 }
  0x59   : > { %1073 = vmatprep.subr.bf16.mxu0 %v2167_v29  ;;  %1186 = vmatprep.subr.bf16.mxu1 %v2169_v30  ;;  %v1484_v18 = vsub.s32 0, %v1483_v17  ;;  %v1492_v19 = vsub.s32 2, %v1483_v17  ;;  %v1480_v20 = vld [vmem:[%s438_s9] sm:$0xf]  ;;  %v1488_v21 = vsub.s32 1, %v1483_v17  ;;  %v1496_v22 = vsub.s32 3, %v1483_v17 }
  0x5a   : > { %v1566_v23 = vld [vmem:[%s443_s12] sm:$0xf]  ;;  %s2084_s8 = sshll.u32 (%p2345_p6), %s2275_s17, 5 }
  0x5b   : > { %v2617_v24 = vrot.slane %v1480_v20, %v1484_v18  ;;  %v2619_v25 = vrot.slane %v1480_v20, %v1492_v19  ;;  %v2621_v26 = vrot.slane %v1566_v23, %v1484_v18  ;;  %v2623_v27 = vrot.slane %v1566_v23, %v1492_v19  ;;  %s2837_s21 = scalar_lea.vmem (%p2345_p6), %s2983_s4, %s2084_s8 }
  0x5c   : > { %1074 = vmatpush1.bf16.msra.mxu0 %v2171_v31  ;;  %1187 = vmatpush1.bf16.msra.mxu1 %v2172_v32  ;;  %v2625_v28 = vrot.slane %v1480_v20, %v1488_v21  ;;  %v2627_v29 = vrot.slane %v1480_v20, %v1496_v22 }
  0x5d   : > { %1075 = vmatprep.subr.bf16.mxu0 %v2173_v33  ;;  %1188 = vmatprep.subr.bf16.mxu1 %v2175_v34  ;;  %v2631_v34 = vrot.slane %v1566_v23, %v1488_v21 }
  0x60   : > { %1076 = vmatpush2.bf16.msra.mxu0 %v2177_v35  ;;  %1189 = vmatpush2.bf16.msra.mxu1 %v2178_v36  ;;  %v2633_v35 = vrot.slane %v1566_v23, %v1496_v22 }
  0x61   : > { %1077 = vmatprep.subr.bf16.mxu0 %v2179_v37  ;;  %1190 = vmatprep.subr.bf16.mxu1 %v2181_v38 }
  0x64   : > { %1078 = vmatpush2.bf16.msra.mxu0 %v2183_v39  ;;  %1191 = vmatpush2.bf16.msra.mxu1 %v2184_v40 }
  0x65   : > { %1079 = vmatprep.subr.bf16.mxu0 %v2185_v41  ;;  %1192 = vmatprep.subr.bf16.mxu1 %v2187_v42 }
  0x68   : > { %1080 = vmatpush2.bf16.msra.mxu0 %v2189_v43  ;;  %1193 = vmatpush2.bf16.msra.mxu1 %v2190_v44 }
  0x69   : > { %1081 = vmatprep.subr.bf16.mxu0 %v2191_v45  ;;  %1194 = vmatprep.subr.bf16.mxu1 %v2193_v46 }
  0x6c   : > { %1082 = vmatpush2.bf16.msra.mxu0 %v2195_v47  ;;  %1195 = vmatpush2.bf16.msra.mxu1 %v2196_v48 }
  0x6d   : > { %1083 = vmatprep.subr.bf16.mxu0 %v2197_v49  ;;  %1196 = vmatprep.subr.bf16.mxu1 %v2199_v50 }
  0x70   : > { %1084 = vmatpush2.bf16.msra.mxu0 %v2201_v51  ;;  %1197 = vmatpush2.bf16.msra.mxu1 %v2202_v52 }
  0x71   : > { %1085 = vmatprep.subr.bf16.mxu0 %v2203_v53  ;;  %1198 = vmatprep.subr.bf16.mxu1 %v2205_v54 }
  0x74   : > { %1086 = vmatpush2.bf16.msra.mxu0 %v2207_v55  ;;  %1199 = vmatpush2.bf16.msra.mxu1 %v2208_v56 }
  0x75   : > { %1087 = vmatprep.subr.bf16.mxu0 %v2209_v57  ;;  %1200 = vmatprep.subr.bf16.mxu1 %v2211_v58 }
  0x78   : > { %1088 = vmatpush2.bf16.msra.mxu0 %v2213_v59  ;;  %1201 = vmatpush2.bf16.msra.mxu1 %v2214_v60 }
  0x79   : > { %1089 = vmatprep.subr.bf16.mxu0 %v2215_v61  ;;  %1202 = vmatprep.subr.bf16.mxu1 %v2217_v62 }
  0x7c   : > { %1090 = vmatpush2.bf16.msra.mxu0 %v2219_v63  ;;  %1203 = vmatpush2.bf16.msra.mxu1 %v2220_v0 }
  0x7f   : > { %1092 = vmatmul.mubr.bf16.vlgmr.msra.gmra.mxu0 %v2221_v1  ;;  %1205 = vmatmul.mubr.bf16.vlgmr.msra.gmra.mxu1 %v2221_v1 }
  0x80   : > { %1101 = vmatprep.mubr.bf16.mxu0 %v2224_v2  ;;  %1214 = vmatprep.mubr.bf16.mxu1 %v2224_v2 }
  0x87   : > { %1102 = vmatmul.mubr.bf16.gmra.mxu0 %v2226_v3  ;;  %1215 = vmatmul.mubr.bf16.gmra.mxu1 %v2226_v3 }
  0x88   : > { %1111 = vmatprep.mubr.bf16.mxu0 %v2227_v4  ;;  %1224 = vmatprep.mubr.bf16.mxu1 %v2227_v4 }
  0x8f   : > { %1112 = vmatmul.mubr.bf16.gmra.mxu0 %v2229_v5  ;;  %1225 = vmatmul.mubr.bf16.gmra.mxu1 %v2229_v5 }
  0x90   : > { %1121 = vmatprep.mubr.bf16.mxu0 %v2230_v6  ;;  %1234 = vmatprep.mubr.bf16.mxu1 %v2230_v6 }
  0x97   : > { %1122 = vmatmul.mubr.bf16.gmra.mxu0 %v2232_v7  ;;  %1235 = vmatmul.mubr.bf16.gmra.mxu1 %v2232_v7 }
  0x98   : > { %1131 = vmatprep.mubr.bf16.mxu0 %v2233_v8  ;;  %1244 = vmatprep.mubr.bf16.mxu1 %v2233_v8 }
  0x9f   : > { %1132 = vmatmul.mubr.bf16.gmra.mxu0 %v2235_v9  ;;  %1245 = vmatmul.mubr.bf16.gmra.mxu1 %v2235_v9 }
  0xa0   : > { %1141 = vmatprep.mubr.bf16.mxu0 %v2236_v10  ;;  %1254 = vmatprep.mubr.bf16.mxu1 %v2236_v10 }
  0xa7   : > { %1142 = vmatmul.mubr.bf16.gmra.mxu0 %v2238_v11  ;;  %1255 = vmatmul.mubr.bf16.gmra.mxu1 %v2238_v11 }
  0xa8   : > { %1151 = vmatprep.mubr.bf16.mxu0 %v2239_v12  ;;  %1264 = vmatprep.mubr.bf16.mxu1 %v2239_v12 }
  0xaf   : > { %1152 = vmatmul.mubr.bf16.gmra.mxu0 %v2241_v13  ;;  %1265 = vmatmul.mubr.bf16.gmra.mxu1 %v2241_v13 }
  0xb0   : > { %1161 = vmatprep.mubr.bf16.mxu0 %v2242_v14  ;;  %1274 = vmatprep.mubr.bf16.mxu1 %v2242_v14 }
  0xb7   : > { %1162 = vmatmul.mubr.bf16.gmra.mxu0 %v2244_v15  ;;  %1275 = vmatmul.mubr.bf16.gmra.mxu1 %v2244_v15 }
 0x13f   : > { %v1093_v30 = vpop.f32.mrf.mxu0  ;;  %v1206_v31 = vpop.f32.mrf.mxu1 }
 0x140   : > { %v1502_v32 = vmul.f32 %v2617_v24, %v1093_v30  ;;  %v1504_v33 = vmul.f32 %v2619_v25, %v1206_v31 }
 0x141   : > { %v1095_v36 = vpop.f32.mrf.mxu0  ;;  %v1208_v37 = vpop.f32.mrf.mxu1 }
 0x142   : > { %v1588_v38 = vadd.f32 %v2621_v26, %v1502_v32  ;;  %v1590_v39 = vadd.f32 %v2623_v27, %v1504_v33  ;;  %v1503_v40 = vmul.f32 %v2625_v28, %v1095_v36  ;;  %v1505_v41 = vmul.f32 %v2627_v29, %v1208_v37 }
 0x143   : > { %v1097_v42 = vpop.f32.mrf.mxu0  ;;  %v1210_v43 = vpop.f32.mrf.mxu1 }
 0x144   : > { %1652 = vst [vmem:[%s2640_s13] sm:$0xff] %v1588_v38  ;;  %1654 = vst [vmem:[%s2640_s13 + $0x10] sm:$0xff] %v1590_v39  ;;  %v1589_v44 = vadd.f32 %v2631_v34, %v1503_v40  ;;  %v1591_v45 = vadd.f32 %v2633_v35, %v1505_v41  ;;  %v1506_v46 = vmul.f32 %v2617_v24, %v1097_v42 }
 0x145   : > { %v1508_v47 = vmul.f32 %v2619_v25, %v1210_v43  ;;  %v1099_v48 = vpop.f32.mrf.mxu0  ;;  %v1212_v49 = vpop.f32.mrf.mxu1 }
 0x146   : > { %1653 = vst [vmem:[%s2640_s13 + $0x8] sm:$0xff] %v1589_v44  ;;  %1655 = vst [vmem:[%s2640_s13 + $0x18] sm:$0xff] %v1591_v45  ;;  %v1592_v50 = vadd.f32 %v2621_v26, %v1506_v46  ;;  %v1507_v52 = vmul.f32 %v2625_v28, %v1099_v48  ;;  %v1509_v53 = vmul.f32 %v2627_v29, %v1212_v49 }
 0x147   : > { %v1594_v51 = vadd.f32 %v2623_v27, %v1508_v47  ;;  %v1103_v54 = vpop.f32.mrf.mxu0  ;;  %v1216_v55 = vpop.f32.mrf.mxu1 }
 0x148   : > { %1656 = vst [vmem:[%s2640_s13 + $0x20] sm:$0xff] %v1592_v50  ;;  %v1593_v56 = vadd.f32 %v2631_v34, %v1507_v52  ;;  %v1595_v57 = vadd.f32 %v2633_v35, %v1509_v53  ;;  %v1510_v58 = vmul.f32 %v2617_v24, %v1103_v54  ;;  %v1512_v59 = vmul.f32 %v2619_v25, %v1216_v55 }
 0x149   : > { %1658 = vst [vmem:[%s2640_s13 + $0x30] sm:$0xff] %v1594_v51  ;;  %v1105_v60 = vpop.f32.mrf.mxu0  ;;  %v1218_v61 = vpop.f32.mrf.mxu1 }
 0x14a   : > { %1657 = vst [vmem:[%s2640_s13 + $0x28] sm:$0xff] %v1593_v56  ;;  %1659 = vst [vmem:[%s2640_s13 + $0x38] sm:$0xff] %v1595_v57  ;;  %v1596_v62 = vadd.f32 %v2621_v26, %v1510_v58  ;;  %v1598_v63 = vadd.f32 %v2623_v27, %v1512_v59  ;;  %v1511_v0 = vmul.f32 %v2625_v28, %v1105_v60 }
 0x14b   : > { %v1513_v1 = vmul.f32 %v2627_v29, %v1218_v61  ;;  %v1107_v2 = vpop.f32.mrf.mxu0  ;;  %v1220_v3 = vpop.f32.mrf.mxu1 }
 0x14c   : > { %1660 = vst [vmem:[%s2640_s13 + $0x40] sm:$0xff] %v1596_v62  ;;  %1662 = vst [vmem:[%s2640_s13 + $0x50] sm:$0xff] %v1598_v63  ;;  %v1597_v4 = vadd.f32 %v2631_v34, %v1511_v0  ;;  %v1514_v6 = vmul.f32 %v2617_v24, %v1107_v2  ;;  %v1516_v7 = vmul.f32 %v2619_v25, %v1220_v3 }
 0x14d   : > { %v1599_v5 = vadd.f32 %v2633_v35, %v1513_v1  ;;  %v1109_v8 = vpop.f32.mrf.mxu0  ;;  %v1222_v9 = vpop.f32.mrf.mxu1 }
 0x14e   : > { %1661 = vst [vmem:[%s2640_s13 + $0x48] sm:$0xff] %v1597_v4  ;;  %v1600_v10 = vadd.f32 %v2621_v26, %v1514_v6  ;;  %v1602_v11 = vadd.f32 %v2623_v27, %v1516_v7  ;;  %v1515_v12 = vmul.f32 %v2625_v28, %v1109_v8  ;;  %v1517_v13 = vmul.f32 %v2627_v29, %v1222_v9 }
 0x14f   : > { %1663 = vst [vmem:[%s2640_s13 + $0x58] sm:$0xff] %v1599_v5  ;;  %v1113_v14 = vpop.f32.mrf.mxu0  ;;  %v1226_v15 = vpop.f32.mrf.mxu1 }
 0x150   : > { %1664 = vst [vmem:[%s2640_s13 + $0x60] sm:$0xff] %v1600_v10  ;;  %1666 = vst [vmem:[%s2640_s13 + $0x70] sm:$0xff] %v1602_v11  ;;  %v1601_v16 = vadd.f32 %v2631_v34, %v1515_v12  ;;  %v1603_v17 = vadd.f32 %v2633_v35, %v1517_v13  ;;  %v1518_v18 = vmul.f32 %v2617_v24, %v1113_v14 }
 0x151   : > { %v1520_v19 = vmul.f32 %v2619_v25, %v1226_v15  ;;  %v1115_v20 = vpop.f32.mrf.mxu0  ;;  %v1228_v21 = vpop.f32.mrf.mxu1 }
 0x152   : > { %1665 = vst [vmem:[%s2640_s13 + $0x68] sm:$0xff] %v1601_v16  ;;  %1667 = vst [vmem:[%s2640_s13 + $0x78] sm:$0xff] %v1603_v17  ;;  %v1604_v22 = vadd.f32 %v2621_v26, %v1518_v18  ;;  %v1519_v30 = vmul.f32 %v2625_v28, %v1115_v20  ;;  %v1521_v31 = vmul.f32 %v2627_v29, %v1228_v21 }
 0x153   : > { %v1606_v23 = vadd.f32 %v2623_v27, %v1520_v19  ;;  %v1117_v32 = vpop.f32.mrf.mxu0  ;;  %v1230_v33 = vpop.f32.mrf.mxu1 }
 0x154   : > { %1668 = vst [vmem:[%s2640_s13 + $0x80] sm:$0xff] %v1604_v22  ;;  %v1605_v36 = vadd.f32 %v2631_v34, %v1519_v30  ;;  %v1607_v37 = vadd.f32 %v2633_v35, %v1521_v31  ;;  %v1522_v38 = vmul.f32 %v2617_v24, %v1117_v32  ;;  %v1524_v39 = vmul.f32 %v2619_v25, %v1230_v33 }
 0x155   : > { %1670 = vst [vmem:[%s2640_s13 + $0x90] sm:$0xff] %v1606_v23  ;;  %v1119_v40 = vpop.f32.mrf.mxu0  ;;  %v1232_v41 = vpop.f32.mrf.mxu1 }
 0x156   : > { %1669 = vst [vmem:[%s2640_s13 + $0x88] sm:$0xff] %v1605_v36  ;;  %1671 = vst [vmem:[%s2640_s13 + $0x98] sm:$0xff] %v1607_v37  ;;  %v1608_v42 = vadd.f32 %v2621_v26, %v1522_v38  ;;  %v1610_v43 = vadd.f32 %v2623_v27, %v1524_v39  ;;  %v1523_v44 = vmul.f32 %v2625_v28, %v1119_v40 }
 0x157   : > { %v1525_v45 = vmul.f32 %v2627_v29, %v1232_v41  ;;  %v1123_v46 = vpop.f32.mrf.mxu0  ;;  %v1236_v47 = vpop.f32.mrf.mxu1 }
 0x158   : > { %1672 = vst [vmem:[%s2640_s13 + $0xa0] sm:$0xff] %v1608_v42  ;;  %1674 = vst [vmem:[%s2640_s13 + $0xb0] sm:$0xff] %v1610_v43  ;;  %v1609_v48 = vadd.f32 %v2631_v34, %v1523_v44  ;;  %v1526_v50 = vmul.f32 %v2617_v24, %v1123_v46  ;;  %v1528_v51 = vmul.f32 %v2619_v25, %v1236_v47 }
 0x159   : > { %v1611_v49 = vadd.f32 %v2633_v35, %v1525_v45  ;;  %v1125_v52 = vpop.f32.mrf.mxu0  ;;  %v1238_v53 = vpop.f32.mrf.mxu1 }
 0x15a   : > { %1673 = vst [vmem:[%s2640_s13 + $0xa8] sm:$0xff] %v1609_v48  ;;  %v1612_v54 = vadd.f32 %v2621_v26, %v1526_v50  ;;  %v1614_v55 = vadd.f32 %v2623_v27, %v1528_v51  ;;  %v1527_v56 = vmul.f32 %v2625_v28, %v1125_v52  ;;  %v1529_v57 = vmul.f32 %v2627_v29, %v1238_v53 }
 0x15b   : > { %1675 = vst [vmem:[%s2640_s13 + $0xb8] sm:$0xff] %v1611_v49  ;;  %v1127_v58 = vpop.f32.mrf.mxu0  ;;  %v1240_v59 = vpop.f32.mrf.mxu1 }
 0x15c   : > { %1676 = vst [vmem:[%s2640_s13 + $0xc0] sm:$0xff] %v1612_v54  ;;  %1678 = vst [vmem:[%s2640_s13 + $0xd0] sm:$0xff] %v1614_v55  ;;  %v1613_v60 = vadd.f32 %v2631_v34, %v1527_v56  ;;  %v1615_v61 = vadd.f32 %v2633_v35, %v1529_v57  ;;  %v1530_v62 = vmul.f32 %v2617_v24, %v1127_v58 }
 0x15d   : > { %v1532_v63 = vmul.f32 %v2619_v25, %v1240_v59  ;;  %v1129_v0 = vpop.f32.mrf.mxu0  ;;  %v1242_v1 = vpop.f32.mrf.mxu1 }
 0x15e   : > { %1677 = vst [vmem:[%s2640_s13 + $0xc8] sm:$0xff] %v1613_v60  ;;  %1679 = vst [vmem:[%s2640_s13 + $0xd8] sm:$0xff] %v1615_v61  ;;  %v1616_v2 = vadd.f32 %v2621_v26, %v1530_v62  ;;  %v1531_v4 = vmul.f32 %v2625_v28, %v1129_v0  ;;  %v1533_v5 = vmul.f32 %v2627_v29, %v1242_v1 }
 0x15f   : > { %v1618_v3 = vadd.f32 %v2623_v27, %v1532_v63  ;;  %v1133_v6 = vpop.f32.mrf.mxu0  ;;  %v1246_v7 = vpop.f32.mrf.mxu1 }
 0x160   : > { %1680 = vst [vmem:[%s2640_s13 + $0xe0] sm:$0xff] %v1616_v2  ;;  %v1617_v8 = vadd.f32 %v2631_v34, %v1531_v4  ;;  %v1619_v9 = vadd.f32 %v2633_v35, %v1533_v5  ;;  %v1534_v10 = vmul.f32 %v2617_v24, %v1133_v6  ;;  %v1536_v11 = vmul.f32 %v2619_v25, %v1246_v7 }
 0x161   : > { %1682 = vst [vmem:[%s2640_s13 + $0xf0] sm:$0xff] %v1618_v3  ;;  %v1135_v12 = vpop.f32.mrf.mxu0  ;;  %v1248_v13 = vpop.f32.mrf.mxu1 }
 0x162   : > { %1681 = vst [vmem:[%s2640_s13 + $0xe8] sm:$0xff] %v1617_v8  ;;  %1683 = vst [vmem:[%s2640_s13 + $0xf8] sm:$0xff] %v1619_v9  ;;  %v1620_v14 = vadd.f32 %v2621_v26, %v1534_v10  ;;  %v1622_v15 = vadd.f32 %v2623_v27, %v1536_v11  ;;  %v1535_v16 = vmul.f32 %v2625_v28, %v1135_v12 }
 0x163   : > { %v1537_v17 = vmul.f32 %v2627_v29, %v1248_v13  ;;  %v1137_v18 = vpop.f32.mrf.mxu0  ;;  %v1250_v19 = vpop.f32.mrf.mxu1 }
 0x164   : > { %1684 = vst [vmem:[%s2640_s13 + $0x100] sm:$0xff] %v1620_v14  ;;  %1686 = vst [vmem:[%s2640_s13 + $0x110] sm:$0xff] %v1622_v15  ;;  %v1621_v20 = vadd.f32 %v2631_v34, %v1535_v16  ;;  %v1538_v22 = vmul.f32 %v2617_v24, %v1137_v18  ;;  %v1540_v23 = vmul.f32 %v2619_v25, %v1250_v19 }
 0x165   : > { %v1623_v21 = vadd.f32 %v2633_v35, %v1537_v17  ;;  %v1139_v30 = vpop.f32.mrf.mxu0  ;;  %v1252_v31 = vpop.f32.mrf.mxu1 }
 0x166   : > { %1685 = vst [vmem:[%s2640_s13 + $0x108] sm:$0xff] %v1621_v20  ;;  %v1624_v32 = vadd.f32 %v2621_v26, %v1538_v22  ;;  %v1626_v33 = vadd.f32 %v2623_v27, %v1540_v23  ;;  %v1539_v36 = vmul.f32 %v2625_v28, %v1139_v30  ;;  %v1541_v37 = vmul.f32 %v2627_v29, %v1252_v31 }
 0x167   : > { %1687 = vst [vmem:[%s2640_s13 + $0x118] sm:$0xff] %v1623_v21  ;;  %v1143_v38 = vpop.f32.mrf.mxu0  ;;  %v1256_v39 = vpop.f32.mrf.mxu1 }
 0x168   : > { %1688 = vst [vmem:[%s2640_s13 + $0x120] sm:$0xff] %v1624_v32  ;;  %1690 = vst [vmem:[%s2640_s13 + $0x130] sm:$0xff] %v1626_v33  ;;  %v1625_v40 = vadd.f32 %v2631_v34, %v1539_v36  ;;  %v1627_v41 = vadd.f32 %v2633_v35, %v1541_v37  ;;  %v1542_v42 = vmul.f32 %v2617_v24, %v1143_v38 }
 0x169   : > { %v1544_v43 = vmul.f32 %v2619_v25, %v1256_v39  ;;  %v1145_v44 = vpop.f32.mrf.mxu0  ;;  %v1258_v45 = vpop.f32.mrf.mxu1 }
 0x16a   : > { %1689 = vst [vmem:[%s2640_s13 + $0x128] sm:$0xff] %v1625_v40  ;;  %1691 = vst [vmem:[%s2640_s13 + $0x138] sm:$0xff] %v1627_v41  ;;  %v1628_v46 = vadd.f32 %v2621_v26, %v1542_v42  ;;  %v1543_v48 = vmul.f32 %v2625_v28, %v1145_v44  ;;  %v1545_v49 = vmul.f32 %v2627_v29, %v1258_v45 }
 0x16b   : > { %v1630_v47 = vadd.f32 %v2623_v27, %v1544_v43  ;;  %v1147_v50 = vpop.f32.mrf.mxu0  ;;  %v1260_v51 = vpop.f32.mrf.mxu1 }
 0x16c   : > { %1692 = vst [vmem:[%s2640_s13 + $0x140] sm:$0xff] %v1628_v46  ;;  %v1629_v52 = vadd.f32 %v2631_v34, %v1543_v48  ;;  %v1631_v53 = vadd.f32 %v2633_v35, %v1545_v49  ;;  %v1546_v54 = vmul.f32 %v2617_v24, %v1147_v50  ;;  %v1548_v55 = vmul.f32 %v2619_v25, %v1260_v51 }
 0x16d   : > { %1694 = vst [vmem:[%s2640_s13 + $0x150] sm:$0xff] %v1630_v47  ;;  %v1149_v56 = vpop.f32.mrf.mxu0  ;;  %v1262_v57 = vpop.f32.mrf.mxu1 }
 0x16e   : > { %1693 = vst [vmem:[%s2640_s13 + $0x148] sm:$0xff] %v1629_v52  ;;  %1695 = vst [vmem:[%s2640_s13 + $0x158] sm:$0xff] %v1631_v53  ;;  %v1632_v58 = vadd.f32 %v2621_v26, %v1546_v54  ;;  %v1634_v59 = vadd.f32 %v2623_v27, %v1548_v55  ;;  %v1547_v60 = vmul.f32 %v2625_v28, %v1149_v56  ;;  %v1755_v55 = vld [vmem:[%s2640_s13 + $0x38] sm:$0xff] (%p2345_p6)  ;;  %v1757_v56 = vld [vmem:[%s2640_s13 + $0x40] sm:$0xff] (%p2345_p6) }
 0x16f   : > { %v1549_v61 = vmul.f32 %v2627_v29, %v1262_v57  ;;  %v1153_v62 = vpop.f32.mrf.mxu0  ;;  %v1266_v63 = vpop.f32.mrf.mxu1  ;;  %1756 = vst [vmem:[%s2837_s21 + $0x58] sm:$0xff] (%p2345_p6), %v1755_v55  ;;  %1758 = vst [vmem:[%s2837_s21 + $0x80] sm:$0xff] (%p2345_p6), %v1757_v56  ;;  %v1759_v57 = vld [vmem:[%s2640_s13 + $0x48] sm:$0xff] (%p2345_p6) }
 0x170   : > { %1696 = vst [vmem:[%s2640_s13 + $0x160] sm:$0xff] %v1632_v58  ;;  %1698 = vst [vmem:[%s2640_s13 + $0x170] sm:$0xff] %v1634_v59  ;;  %v1633_v0 = vadd.f32 %v2631_v34, %v1547_v60  ;;  %v1550_v2 = vmul.f32 %v2617_v24, %v1153_v62  ;;  %v1552_v3 = vmul.f32 %v2619_v25, %v1266_v63  ;;  %v1761_v58 = vld [vmem:[%s2640_s13 + $0x50] sm:$0xff] (%p2345_p6)  ;;  %v1763_v59 = vld [vmem:[%s2640_s13 + $0x58] sm:$0xff] (%p2345_p6) }
 0x171   : > { %v1635_v1 = vadd.f32 %v2633_v35, %v1549_v61  ;;  %v1155_v4 = vpop.f32.mrf.mxu0  ;;  %v1268_v5 = vpop.f32.mrf.mxu1  ;;  %1760 = vst [vmem:[%s2837_s21 + $0x88] sm:$0xff] (%p2345_p6), %v1759_v57  ;;  %1762 = vst [vmem:[%s2837_s21 + $0x90] sm:$0xff] (%p2345_p6), %v1761_v58  ;;  %v1765_v60 = vld [vmem:[%s2640_s13 + $0x60] sm:$0xff] (%p2345_p6)  ;;  %v1767_v61 = vld [vmem:[%s2640_s13 + $0x68] sm:$0xff] (%p2345_p6) }
 0x172   : > { %1697 = vst [vmem:[%s2640_s13 + $0x168] sm:$0xff] %v1633_v0  ;;  %v1636_v6 = vadd.f32 %v2621_v26, %v1550_v2  ;;  %v1638_v7 = vadd.f32 %v2623_v27, %v1552_v3  ;;  %v1551_v8 = vmul.f32 %v2625_v28, %v1155_v4  ;;  %v1553_v9 = vmul.f32 %v2627_v29, %v1268_v5  ;;  %v1769_v62 = vld [vmem:[%s2640_s13 + $0x70] sm:$0xff] (%p2345_p6)  ;;  %v1771_v63 = vld [vmem:[%s2640_s13 + $0x78] sm:$0xff] (%p2345_p6)  ;;  %v1773_v0 = vld [vmem:[%s2640_s13 + $0x80] sm:$0xff] (%p2345_p6) }
 0x173   : > { %1699 = vst [vmem:[%s2640_s13 + $0x178] sm:$0xff] %v1635_v1  ;;  %v1157_v10 = vpop.f32.mrf.mxu0  ;;  %v1270_v11 = vpop.f32.mrf.mxu1  ;;  %1764 = vst [vmem:[%s2837_s21 + $0x98] sm:$0xff] (%p2345_p6), %v1763_v59  ;;  %v1775_v1 = vld [vmem:[%s2640_s13 + $0x88] sm:$0xff] (%p2345_p6)  ;;  %v1777_v2 = vld [vmem:[%s2640_s13 + $0x90] sm:$0xff] (%p2345_p6) }
 0x174   : > { %1700 = vst [vmem:[%s2640_s13 + $0x180] sm:$0xff] %v1636_v6  ;;  %1702 = vst [vmem:[%s2640_s13 + $0x190] sm:$0xff] %v1638_v7  ;;  %v1637_v12 = vadd.f32 %v2631_v34, %v1551_v8  ;;  %v1639_v13 = vadd.f32 %v2633_v35, %v1553_v9  ;;  %v1554_v14 = vmul.f32 %v2617_v24, %v1157_v10  ;;  %v1779_v3 = vld [vmem:[%s2640_s13 + $0x98] sm:$0xff] (%p2345_p6)  ;;  %v1781_v4 = vld [vmem:[%s2640_s13 + $0xa0] sm:$0xff] (%p2345_p6) }
 0x175   : > { %v1556_v15 = vmul.f32 %v2619_v25, %v1270_v11  ;;  %v1159_v16 = vpop.f32.mrf.mxu0  ;;  %v1272_v17 = vpop.f32.mrf.mxu1  ;;  %1766 = vst [vmem:[%s2837_s21 + $0xc0] sm:$0xff] (%p2345_p6), %v1765_v60  ;;  %1768 = vst [vmem:[%s2837_s21 + $0xc8] sm:$0xff] (%p2345_p6), %v1767_v61  ;;  %v1783_v5 = vld [vmem:[%s2640_s13 + $0xa8] sm:$0xff] (%p2345_p6)  ;;  %v1785_v6 = vld [vmem:[%s2640_s13 + $0xb0] sm:$0xff] (%p2345_p6) }
 0x176   : > { %1701 = vst [vmem:[%s2640_s13 + $0x188] sm:$0xff] %v1637_v12  ;;  %1703 = vst [vmem:[%s2640_s13 + $0x198] sm:$0xff] %v1639_v13  ;;  %v1640_v18 = vadd.f32 %v2621_v26, %v1554_v14  ;;  %v1555_v20 = vmul.f32 %v2625_v28, %v1159_v16  ;;  %v1557_v21 = vmul.f32 %v2627_v29, %v1272_v17  ;;  %v1787_v7 = vld [vmem:[%s2640_s13 + $0xb8] sm:$0xff] (%p2345_p6)  ;;  %v1789_v8 = vld [vmem:[%s2640_s13 + $0xc0] sm:$0xff] (%p2345_p6) }
 0x177   : > { %v1642_v19 = vadd.f32 %v2623_v27, %v1556_v15  ;;  %v1163_v22 = vpop.f32.mrf.mxu0  ;;  %v1276_v23 = vpop.f32.mrf.mxu1  ;;  %1770 = vst [vmem:[%s2837_s21 + $0xd0] sm:$0xff] (%p2345_p6), %v1769_v62  ;;  %1772 = vst [vmem:[%s2837_s21 + $0xd8] sm:$0xff] (%p2345_p6), %v1771_v63  ;;  %v1791_v9 = vld [vmem:[%s2640_s13 + $0xc8] sm:$0xff] (%p2345_p6)  ;;  %v1793_v10 = vld [vmem:[%s2640_s13 + $0xd0] sm:$0xff] (%p2345_p6) }
 0x178   : > { %1704 = vst [vmem:[%s2640_s13 + $0x1a0] sm:$0xff] %v1640_v18  ;;  %v1641_v30 = vadd.f32 %v2631_v34, %v1555_v20  ;;  %v1643_v31 = vadd.f32 %v2633_v35, %v1557_v21  ;;  %v1558_v32 = vmul.f32 %v2617_v24, %v1163_v22  ;;  %v1560_v33 = vmul.f32 %v2619_v25, %v1276_v23  ;;  %v1795_v11 = vld [vmem:[%s2640_s13 + $0xd8] sm:$0xff] (%p2345_p6)  ;;  %v1797_v12 = vld [vmem:[%s2640_s13 + $0xe0] sm:$0xff] (%p2345_p6)  ;;  %v1799_v13 = vld [vmem:[%s2640_s13 + $0xe8] sm:$0xff] (%p2345_p6) }
 0x179   : > { %1706 = vst [vmem:[%s2640_s13 + $0x1b0] sm:$0xff] %v1642_v19  ;;  %v1165_v36 = vpop.f32.mrf.mxu0  ;;  %v1278_v37 = vpop.f32.mrf.mxu1  ;;  %1774 = vst [vmem:[%s2837_s21 + $0x100] sm:$0xff] (%p2345_p6), %v1773_v0  ;;  %v1801_v14 = vld [vmem:[%s2640_s13 + $0xf0] sm:$0xff] (%p2345_p6)  ;;  %v1803_v15 = vld [vmem:[%s2640_s13 + $0xf8] sm:$0xff] (%p2345_p6) }
 0x17a   : > { %1705 = vst [vmem:[%s2640_s13 + $0x1a8] sm:$0xff] %v1641_v30  ;;  %1707 = vst [vmem:[%s2640_s13 + $0x1b8] sm:$0xff] %v1643_v31  ;;  %v1644_v38 = vadd.f32 %v2621_v26, %v1558_v32  ;;  %v1646_v39 = vadd.f32 %v2623_v27, %v1560_v33  ;;  %v1559_v40 = vmul.f32 %v2625_v28, %v1165_v36  ;;  %v1805_v16 = vld [vmem:[%s2640_s13 + $0x100] sm:$0xff] (%p2345_p6)  ;;  %v1807_v17 = vld [vmem:[%s2640_s13 + $0x108] sm:$0xff] (%p2345_p6) }
 0x17b   : > { %v1561_v41 = vmul.f32 %v2627_v29, %v1278_v37  ;;  %v1167_v42 = vpop.f32.mrf.mxu0  ;;  %v1280_v43 = vpop.f32.mrf.mxu1  ;;  %1776 = vst [vmem:[%s2837_s21 + $0x108] sm:$0xff] (%p2345_p6), %v1775_v1  ;;  %1778 = vst [vmem:[%s2837_s21 + $0x110] sm:$0xff] (%p2345_p6), %v1777_v2  ;;  %v1809_v18 = vld [vmem:[%s2640_s13 + $0x110] sm:$0xff] (%p2345_p6)  ;;  %v1811_v19 = vld [vmem:[%s2640_s13 + $0x118] sm:$0xff] (%p2345_p6) }
 0x17c   : > { %1708 = vst [vmem:[%s2640_s13 + $0x1c0] sm:$0xff] %v1644_v38  ;;  %1710 = vst [vmem:[%s2640_s13 + $0x1d0] sm:$0xff] %v1646_v39  ;;  %v1645_v44 = vadd.f32 %v2631_v34, %v1559_v40  ;;  %v1562_v46 = vmul.f32 %v2617_v24, %v1167_v42  ;;  %v1564_v47 = vmul.f32 %v2619_v25, %v1280_v43  ;;  %v1741_v25 = vld [vmem:[%s2640_s13] sm:$0xff] (%p2345_p6)  ;;  %v1815_v21 = vld [vmem:[%s2640_s13 + $0x128] sm:$0xff] (%p2345_p6) }
 0x17d   : > { %v1647_v45 = vadd.f32 %v2633_v35, %v1561_v41  ;;  %v1169_v48 = vpop.f32.mrf.mxu0  ;;  %v1282_v49 = vpop.f32.mrf.mxu1  ;;  %1742 = vst [vmem:[%s2837_s21] sm:$0xff] (%p2345_p6), %v1741_v25  ;;  %1780 = vst [vmem:[%s2837_s21 + $0x118] sm:$0xff] (%p2345_p6), %v1779_v3  ;;  %v1813_v20 = vld [vmem:[%s2640_s13 + $0x120] sm:$0xff] (%p2345_p6)  ;;  %v1817_v22 = vld [vmem:[%s2640_s13 + $0x130] sm:$0xff] (%p2345_p6) }
 0x17e   : > { %1709 = vst [vmem:[%s2640_s13 + $0x1c8] sm:$0xff] %v1645_v44  ;;  %v1648_v50 = vadd.f32 %v2621_v26, %v1562_v46  ;;  %v1650_v51 = vadd.f32 %v2623_v27, %v1564_v47  ;;  %v1563_v52 = vmul.f32 %v2625_v28, %v1169_v48  ;;  %v1565_v53 = vmul.f32 %v2627_v29, %v1282_v49  ;;  %1722 = sbr.rel (!%p2345_p6) target bundleno = 411 (0x19b), region = 71  ;;  %v1743_v26 = vld [vmem:[%s2640_s13 + $0x8] sm:$0xff] (%p2345_p6)  ;;  %v1745_v27 = vld [vmem:[%s2640_s13 + $0x10] sm:$0xff] (%p2345_p6)  ;;  %v1747_v28 = vld [vmem:[%s2640_s13 + $0x18] sm:$0xff] (%p2345_p6) }
 0x17f   : > { %1711 = vst [vmem:[%s2640_s13 + $0x1d8] sm:$0xff] %v1647_v45  ;;  %v1749_v29 = vld [vmem:[%s2640_s13 + $0x20] sm:$0xff] (%p2345_p6)  ;;  %1744 = vst [vmem:[%s2837_s21 + $0x8] sm:$0xff] (%p2345_p6), %v1743_v26  ;;  %v1819_v23 = vld [vmem:[%s2640_s13 + $0x138] sm:$0xff] (%p2345_p6) }
 0x180   : > { %1712 = vst [vmem:[%s2640_s13 + $0x1e0] sm:$0xff] %v1648_v50  ;;  %1714 = vst [vmem:[%s2640_s13 + $0x1f0] sm:$0xff] %v1650_v51  ;;  %v1649_v54 = vadd.f32 %v2631_v34, %v1563_v52  ;;  %v1651_v24 = vadd.f32 %v2633_v35, %v1565_v53  ;;  %v1751_v34 = vld [vmem:[%s2640_s13 + $0x28] sm:$0xff] (%p2345_p6)  ;;  %v1753_v35 = vld [vmem:[%s2640_s13 + $0x30] sm:$0xff] (%p2345_p6) }
 0x181   : > { %1746 = vst [vmem:[%s2837_s21 + $0x10] sm:$0xff] (%p2345_p6), %v1745_v27  ;;  %1748 = vst [vmem:[%s2837_s21 + $0x18] sm:$0xff] (%p2345_p6), %v1747_v28  ;;  %v1821_v30 = vld [vmem:[%s2640_s13 + $0x140] sm:$0xff] (%p2345_p6)  ;;  %v1823_v31 = vld [vmem:[%s2640_s13 + $0x148] sm:$0xff] (%p2345_p6) }
 0x182   : > { %1713 = vst [vmem:[%s2640_s13 + $0x1e8] sm:$0xff] %v1649_v54  ;;  %1715 = vst [vmem:[%s2640_s13 + $0x1f8] sm:$0xff] %v1651_v24  ;;  %v1825_v32 = vld [vmem:[%s2640_s13 + $0x150] sm:$0xff] (%p2345_p6)  ;;  %v1827_v33 = vld [vmem:[%s2640_s13 + $0x158] sm:$0xff] (%p2345_p6) }
 0x183   : > { %1750 = vst [vmem:[%s2837_s21 + $0x40] sm:$0xff] %v1749_v29  ;;  %1752 = vst [vmem:[%s2837_s21 + $0x48] sm:$0xff] %v1751_v34  ;;  %v1829_v36 = vld [vmem:[%s2640_s13 + $0x160] sm:$0xff]  ;;  %v1831_v37 = vld [vmem:[%s2640_s13 + $0x168] sm:$0xff] }
 0x184   : > { %1754 = vst [vmem:[%s2837_s21 + $0x50] sm:$0xff] %v1753_v35  ;;  %1782 = vst [vmem:[%s2837_s21 + $0x140] sm:$0xff] %v1781_v4  ;;  %v1833_v38 = vld [vmem:[%s2640_s13 + $0x170] sm:$0xff]  ;;  %v1835_v39 = vld [vmem:[%s2640_s13 + $0x178] sm:$0xff] }
 0x185   : > { %1784 = vst [vmem:[%s2837_s21 + $0x148] sm:$0xff] %v1783_v5  ;;  %1786 = vst [vmem:[%s2837_s21 + $0x150] sm:$0xff] %v1785_v6  ;;  %v1837_v40 = vld [vmem:[%s2640_s13 + $0x180] sm:$0xff]  ;;  %v1839_v41 = vld [vmem:[%s2640_s13 + $0x188] sm:$0xff] }
 0x186   : > { %1788 = vst [vmem:[%s2837_s21 + $0x158] sm:$0xff] %v1787_v7  ;;  %1790 = vst [vmem:[%s2837_s21 + $0x180] sm:$0xff] %v1789_v8  ;;  %v1841_v42 = vld [vmem:[%s2640_s13 + $0x190] sm:$0xff]  ;;  %v1843_v43 = vld [vmem:[%s2640_s13 + $0x198] sm:$0xff] }
 0x187   : > { %1792 = vst [vmem:[%s2837_s21 + $0x188] sm:$0xff] %v1791_v9  ;;  %1794 = vst [vmem:[%s2837_s21 + $0x190] sm:$0xff] %v1793_v10  ;;  %v1845_v44 = vld [vmem:[%s2640_s13 + $0x1a0] sm:$0xff]  ;;  %v1847_v45 = vld [vmem:[%s2640_s13 + $0x1a8] sm:$0xff] }
 0x188   : > { %1796 = vst [vmem:[%s2837_s21 + $0x198] sm:$0xff] %v1795_v11  ;;  %1798 = vst [vmem:[%s2837_s21 + $0x1c0] sm:$0xff] %v1797_v12  ;;  %v1849_v46 = vld [vmem:[%s2640_s13 + $0x1b0] sm:$0xff]  ;;  %v1851_v47 = vld [vmem:[%s2640_s13 + $0x1b8] sm:$0xff] }
 0x189   : > { %1800 = vst [vmem:[%s2837_s21 + $0x1c8] sm:$0xff] %v1799_v13  ;;  %1802 = vst [vmem:[%s2837_s21 + $0x1d0] sm:$0xff] %v1801_v14  ;;  %v1853_v48 = vld [vmem:[%s2640_s13 + $0x1c0] sm:$0xff]  ;;  %v1855_v49 = vld [vmem:[%s2640_s13 + $0x1c8] sm:$0xff] }
 0x18a   : > { %1804 = vst [vmem:[%s2837_s21 + $0x1d8] sm:$0xff] %v1803_v15  ;;  %1806 = vst [vmem:[%s2837_s21 + $0x200] sm:$0xff] %v1805_v16  ;;  %v1857_v50 = vld [vmem:[%s2640_s13 + $0x1d0] sm:$0xff]  ;;  %v1859_v51 = vld [vmem:[%s2640_s13 + $0x1d8] sm:$0xff] }
 0x18b   : > { %1808 = vst [vmem:[%s2837_s21 + $0x208] sm:$0xff] %v1807_v17  ;;  %1810 = vst [vmem:[%s2837_s21 + $0x210] sm:$0xff] %v1809_v18  ;;  %v1861_v52 = vld [vmem:[%s2640_s13 + $0x1e0] sm:$0xff]  ;;  %v1863_v53 = vld [vmem:[%s2640_s13 + $0x1e8] sm:$0xff] }
 0x18c   : > { %1812 = vst [vmem:[%s2837_s21 + $0x218] sm:$0xff] %v1811_v19  ;;  %1814 = vst [vmem:[%s2837_s21 + $0x240] sm:$0xff] %v1813_v20  ;;  %v1865_v54 = vld [vmem:[%s2640_s13 + $0x1f0] sm:$0xff]  ;;  %v1867_v24 = vld [vmem:[%s2640_s13 + $0x1f8] sm:$0xff] }
 0x18d   : > { %1816 = vst [vmem:[%s2837_s21 + $0x248] sm:$0xff] %v1815_v21  ;;  %1818 = vst [vmem:[%s2837_s21 + $0x250] sm:$0xff] %v1817_v22 }
 0x18e   : > { %1820 = vst [vmem:[%s2837_s21 + $0x258] sm:$0xff] %v1819_v23  ;;  %1822 = vst [vmem:[%s2837_s21 + $0x280] sm:$0xff] %v1821_v30 }
 0x18f   : > { %1824 = vst [vmem:[%s2837_s21 + $0x288] sm:$0xff] %v1823_v31  ;;  %1826 = vst [vmem:[%s2837_s21 + $0x290] sm:$0xff] %v1825_v32 }
 0x190   : > { %1828 = vst [vmem:[%s2837_s21 + $0x298] sm:$0xff] %v1827_v33  ;;  %1830 = vst [vmem:[%s2837_s21 + $0x2c0] sm:$0xff] %v1829_v36 }
 0x191   : > { %1832 = vst [vmem:[%s2837_s21 + $0x2c8] sm:$0xff] %v1831_v37  ;;  %1834 = vst [vmem:[%s2837_s21 + $0x2d0] sm:$0xff] %v1833_v38 }
 0x192   : > { %1836 = vst [vmem:[%s2837_s21 + $0x2d8] sm:$0xff] %v1835_v39  ;;  %1838 = vst [vmem:[%s2837_s21 + $0x300] sm:$0xff] %v1837_v40 }
 0x193   : > { %1840 = vst [vmem:[%s2837_s21 + $0x308] sm:$0xff] %v1839_v41  ;;  %1842 = vst [vmem:[%s2837_s21 + $0x310] sm:$0xff] %v1841_v42 }
 0x194   : > { %1844 = vst [vmem:[%s2837_s21 + $0x318] sm:$0xff] %v1843_v43  ;;  %1846 = vst [vmem:[%s2837_s21 + $0x340] sm:$0xff] %v1845_v44 }
 0x195   : > { %1848 = vst [vmem:[%s2837_s21 + $0x348] sm:$0xff] %v1847_v45  ;;  %1850 = vst [vmem:[%s2837_s21 + $0x350] sm:$0xff] %v1849_v46 }
 0x196   : > { %1852 = vst [vmem:[%s2837_s21 + $0x358] sm:$0xff] %v1851_v47  ;;  %1854 = vst [vmem:[%s2837_s21 + $0x380] sm:$0xff] %v1853_v48 }
 0x197   : > { %1856 = vst [vmem:[%s2837_s21 + $0x388] sm:$0xff] %v1855_v49  ;;  %1858 = vst [vmem:[%s2837_s21 + $0x390] sm:$0xff] %v1857_v50 }
 0x198   : > { %1860 = vst [vmem:[%s2837_s21 + $0x398] sm:$0xff] %v1859_v51  ;;  %1862 = vst [vmem:[%s2837_s21 + $0x3c0] sm:$0xff] %v1861_v52 }
 0x199   : > { %1864 = vst [vmem:[%s2837_s21 + $0x3c8] sm:$0xff] %v1863_v53  ;;  %1866 = vst [vmem:[%s2837_s21 + $0x3d0] sm:$0xff] %v1865_v54 }
 0x19a   : > { %1868 = vst [vmem:[%s2837_s21 + $0x3d8] sm:$0xff] %v1867_v24 }
 0x19b PF: > { %s14_s19 = sadd.s32 1, %s2283_s19   ;;  %s2985_s15 = smov %s2271_s16 }
 0x19c   : > { %p11_p12 = scmp.ge.s32.totalorder %s14_s19, 4   ;;  %s2986_s16 = smov %s2350_s25 }
 0x19d   : > { %s2987_s17 = smov %s2279_s18  ;;  %s2988_s18 = smov %s2990_s20 }
 0x19e   :  { %13 = sbr.rel (!%p11_p12) target bundleno = 3 (0x3), region = 134 }

// kernel: crnn_forward.12
= control target key start
LH: loop header
LB: loop body
LE: loop exit
PB: predicated region body
PF: predicated region fallthrough
CT: control target
= control target key end

     0   :  { %v4214_v3 = vmov 0.0   ;;  %s4210_s1 = inlined_call_operand.vmem [shape: f32[128,512], index: 1, kind: input, shape index: {}]   ;;  %s4211_s2 = inlined_call_operand.vmem [shape: f32[128,512], index: 2, kind: input, shape index: {}]   ;;  %s4212_s0 = inlined_call_operand.vmem [shape: f32[4,2,1024], index: 0, kind: input, shape index: {}]   ;;  %s4213_s3 = inlined_call_operand.vmem [shape: f32[4,2,256], index: 3, kind: output, shape index: {}]  }
   0x1   :  { %v2311_v0 = vld [vmem:[%s4210_s1 + $0x1e8] sm:$0xff]  ;;  %v2316_v1 = vld [vmem:[%s4210_s1 + $0x1f8] sm:$0xff]  ;;  %v2321_v2 = vld [vmem:[%s4210_s1 + $0x1e0] sm:$0xff]  ;;  %143 = vmatprep.mubr.f32.mxu0 %v4214_v3  ;;  %214 = vmatprep.mubr.f32.mxu1 %v4214_v3 }
   0x2   :  { %79 = vmatprep.subr.mxu0 %v2311_v0  ;;  %150 = vmatprep.subr.mxu1 %v2316_v1  ;;  %v2330_v4 = vld [vmem:[%s4210_s1 + $0x1f0] sm:$0xff]  ;;  %v2335_v5 = vld [vmem:[%s4210_s1 + $0x1c8] sm:$0xff]  ;;  %v2340_v6 = vld [vmem:[%s4210_s1 + $0x1d8] sm:$0xff] }
   0x3   :  { %80 = vmatpush1.msra.mxu0 %v2321_v2  ;;  %151 = vmatpush1.msra.mxu1 %v2330_v4  ;;  %v2347_v7 = vld [vmem:[%s4210_s1 + $0x1c0] sm:$0xff]  ;;  %v2352_v8 = vld [vmem:[%s4210_s1 + $0x1d0] sm:$0xff]  ;;  %v2357_v9 = vld [vmem:[%s4210_s1 + $0x1a8] sm:$0xff] }
   0x4   :  { %81 = vmatprep.subr.mxu0 %v2335_v5  ;;  %152 = vmatprep.subr.mxu1 %v2340_v6  ;;  %v2364_v10 = vld [vmem:[%s4210_s1 + $0x1b8] sm:$0xff]  ;;  %v2369_v11 = vld [vmem:[%s4210_s1 + $0x1a0] sm:$0xff]  ;;  %v2374_v12 = vld [vmem:[%s4210_s1 + $0x1b0] sm:$0xff] }
   0x5   :  { %82 = vmatpush1.msra.mxu0 %v2347_v7  ;;  %153 = vmatpush1.msra.mxu1 %v2352_v8  ;;  %v2381_v13 = vld [vmem:[%s4210_s1 + $0x188] sm:$0xff]  ;;  %v2386_v14 = vld [vmem:[%s4210_s1 + $0x198] sm:$0xff]  ;;  %v2393_v15 = vld [vmem:[%s4210_s1 + $0x180] sm:$0xff] }
   0x6   :  { %83 = vmatprep.subr.mxu0 %v2357_v9  ;;  %154 = vmatprep.subr.mxu1 %v2364_v10  ;;  %v2398_v16 = vld [vmem:[%s4210_s1 + $0x190] sm:$0xff]  ;;  %v2405_v17 = vld [vmem:[%s4210_s1 + $0x168] sm:$0xff]  ;;  %v2410_v18 = vld [vmem:[%s4210_s1 + $0x178] sm:$0xff] }
   0x7   :  { %84 = vmatpush1.msra.mxu0 %v2369_v11  ;;  %155 = vmatpush1.msra.mxu1 %v2374_v12  ;;  %v2417_v19 = vld [vmem:[%s4210_s1 + $0x160] sm:$0xff]  ;;  %v2422_v20 = vld [vmem:[%s4210_s1 + $0x170] sm:$0xff]  ;;  %v2429_v21 = vld [vmem:[%s4210_s1 + $0x148] sm:$0xff] }
   0x8   :  { %85 = vmatprep.subr.mxu0 %v2381_v13  ;;  %156 = vmatprep.subr.mxu1 %v2386_v14  ;;  %v2434_v22 = vld [vmem:[%s4210_s1 + $0x158] sm:$0xff]  ;;  %v2441_v23 = vld [vmem:[%s4210_s1 + $0x140] sm:$0xff]  ;;  %v2446_v24 = vld [vmem:[%s4210_s1 + $0x150] sm:$0xff] }
   0x9   :  { %86 = vmatpush1.msra.mxu0 %v2393_v15  ;;  %157 = vmatpush1.msra.mxu1 %v2398_v16  ;;  %v2453_v25 = vld [vmem:[%s4210_s1 + $0x128] sm:$0xff]  ;;  %v2458_v26 = vld [vmem:[%s4210_s1 + $0x138] sm:$0xff]  ;;  %v2465_v27 = vld [vmem:[%s4210_s1 + $0x120] sm:$0xff] }
   0xa   :  { %87 = vmatprep.subr.mxu0 %v2405_v17  ;;  %158 = vmatprep.subr.mxu1 %v2410_v18  ;;  %v2470_v28 = vld [vmem:[%s4210_s1 + $0x130] sm:$0xff]  ;;  %v2477_v29 = vld [vmem:[%s4210_s1 + $0x108] sm:$0xff]  ;;  %v2482_v30 = vld [vmem:[%s4210_s1 + $0x118] sm:$0xff] }
   0xb   :  { %88 = vmatpush1.msra.mxu0 %v2417_v19  ;;  %159 = vmatpush1.msra.mxu1 %v2422_v20  ;;  %v2489_v31 = vld [vmem:[%s4210_s1 + $0x100] sm:$0xff]  ;;  %v2494_v32 = vld [vmem:[%s4210_s1 + $0x110] sm:$0xff]  ;;  %v2501_v33 = vld [vmem:[%s4210_s1 + $0xe8] sm:$0xff] }
   0xc   :  { %89 = vmatprep.subr.mxu0 %v2429_v21  ;;  %160 = vmatprep.subr.mxu1 %v2434_v22  ;;  %v2506_v34 = vld [vmem:[%s4210_s1 + $0xf8] sm:$0xff]  ;;  %v2513_v35 = vld [vmem:[%s4210_s1 + $0xe0] sm:$0xff]  ;;  %v2518_v36 = vld [vmem:[%s4210_s1 + $0xf0] sm:$0xff] }
   0xd   :  { %90 = vmatpush1.msra.mxu0 %v2441_v23  ;;  %161 = vmatpush1.msra.mxu1 %v2446_v24  ;;  %v2525_v37 = vld [vmem:[%s4210_s1 + $0xc8] sm:$0xff]  ;;  %v2530_v38 = vld [vmem:[%s4210_s1 + $0xd8] sm:$0xff]  ;;  %v2537_v39 = vld [vmem:[%s4210_s1 + $0xc0] sm:$0xff] }
   0xe   :  { %91 = vmatprep.subr.mxu0 %v2453_v25  ;;  %162 = vmatprep.subr.mxu1 %v2458_v26  ;;  %v2542_v40 = vld [vmem:[%s4210_s1 + $0xd0] sm:$0xff]  ;;  %v2549_v41 = vld [vmem:[%s4210_s1 + $0xa8] sm:$0xff]  ;;  %v2554_v42 = vld [vmem:[%s4210_s1 + $0xb8] sm:$0xff] }
   0xf   :  { %92 = vmatpush1.msra.mxu0 %v2465_v27  ;;  %163 = vmatpush1.msra.mxu1 %v2470_v28  ;;  %v2561_v43 = vld [vmem:[%s4210_s1 + $0xa0] sm:$0xff]  ;;  %v2566_v44 = vld [vmem:[%s4210_s1 + $0xb0] sm:$0xff]  ;;  %v2573_v45 = vld [vmem:[%s4210_s1 + $0x88] sm:$0xff] }
  0x10   :  { %93 = vmatprep.subr.mxu0 %v2477_v29  ;;  %164 = vmatprep.subr.mxu1 %v2482_v30  ;;  %v2578_v46 = vld [vmem:[%s4210_s1 + $0x98] sm:$0xff]  ;;  %v2585_v47 = vld [vmem:[%s4210_s1 + $0x80] sm:$0xff]  ;;  %v2590_v48 = vld [vmem:[%s4210_s1 + $0x90] sm:$0xff] }
  0x11   :  { %94 = vmatpush1.msra.mxu0 %v2489_v31  ;;  %165 = vmatpush1.msra.mxu1 %v2494_v32  ;;  %v2597_v49 = vld [vmem:[%s4210_s1 + $0x68] sm:$0xff]  ;;  %v2602_v50 = vld [vmem:[%s4210_s1 + $0x78] sm:$0xff]  ;;  %v2609_v51 = vld [vmem:[%s4210_s1 + $0x60] sm:$0xff] }
  0x12   :  { %95 = vmatprep.subr.mxu0 %v2501_v33  ;;  %166 = vmatprep.subr.mxu1 %v2506_v34  ;;  %v2614_v52 = vld [vmem:[%s4210_s1 + $0x70] sm:$0xff]  ;;  %v2621_v53 = vld [vmem:[%s4210_s1 + $0x48] sm:$0xff]  ;;  %v2626_v54 = vld [vmem:[%s4210_s1 + $0x58] sm:$0xff] }
  0x13   :  { %96 = vmatpush1.msra.mxu0 %v2513_v35  ;;  %167 = vmatpush1.msra.mxu1 %v2518_v36  ;;  %v2633_v55 = vld [vmem:[%s4210_s1 + $0x40] sm:$0xff]  ;;  %v2638_v56 = vld [vmem:[%s4210_s1 + $0x50] sm:$0xff]  ;;  %v2645_v57 = vld [vmem:[%s4210_s1 + $0x28] sm:$0xff] }
  0x14   :  { %97 = vmatprep.subr.mxu0 %v2525_v37  ;;  %168 = vmatprep.subr.mxu1 %v2530_v38  ;;  %4353 = vst [vmem:[#allocation2_spill] sm:$0xff] %v2638_v56  ;;  %4354 = vst [vmem:[#allocation3_spill] sm:$0xff] %v2645_v57  ;;  %v2650_v58 = vld [vmem:[%s4210_s1 + $0x38] sm:$0xff]  ;;  %v2657_v59 = vld [vmem:[%s4210_s1 + $0x20] sm:$0xff] }
  0x15   :  { %98 = vmatpush1.msra.mxu0 %v2537_v39  ;;  %169 = vmatpush1.msra.mxu1 %v2542_v40  ;;  %4355 = vst [vmem:[#allocation4_spill] sm:$0xff] %v2650_v58  ;;  %4356 = vst [vmem:[#allocation5_spill] sm:$0xff] %v2657_v59  ;;  %v2662_v60 = vld [vmem:[%s4210_s1 + $0x30] sm:$0xff]  ;;  %v2669_v61 = vld [vmem:[%s4210_s1 + $0x8] sm:$0xff] }
  0x16   :  { %99 = vmatprep.subr.mxu0 %v2549_v41  ;;  %170 = vmatprep.subr.mxu1 %v2554_v42  ;;  %4357 = vst [vmem:[#allocation6_spill] sm:$0xff] %v2662_v60  ;;  %4358 = vst [vmem:[#allocation7_spill] sm:$0xff] %v2669_v61  ;;  %v2674_v62 = vld [vmem:[%s4210_s1 + $0x18] sm:$0xff]  ;;  %v2681_v63 = vld [vmem:[%s4210_s1] sm:$0xff] }
  0x17   :  { %100 = vmatpush1.msra.mxu0 %v2561_v43  ;;  %171 = vmatpush1.msra.mxu1 %v2566_v44  ;;  %4359 = vst [vmem:[#allocation8_spill] sm:$0xff] %v2674_v62  ;;  %4360 = vst [vmem:[#allocation9_spill] sm:$0xff] %v2681_v63  ;;  %v2686_v3 = vld [vmem:[%s4210_s1 + $0x10] sm:$0xff] }
  0x18   :  { %101 = vmatprep.subr.mxu0 %v2573_v45  ;;  %172 = vmatprep.subr.mxu1 %v2578_v46  ;;  %4361 = vst [vmem:[#allocation10_spill] sm:$0xff] %v2686_v3 }
  0x19   :  { %102 = vmatpush1.msra.mxu0 %v2585_v47  ;;  %173 = vmatpush1.msra.mxu1 %v2590_v48 }
  0x1a   :  { %103 = vmatprep.subr.mxu0 %v2597_v49  ;;  %174 = vmatprep.subr.mxu1 %v2602_v50 }
  0x1b   :  { %104 = vmatpush1.msra.mxu0 %v2609_v51  ;;  %175 = vmatpush1.msra.mxu1 %v2614_v52 }
  0x1c   :  { %105 = vmatprep.subr.mxu0 %v2621_v53  ;;  %176 = vmatprep.subr.mxu1 %v2626_v54 }
  0x1d   :  { %106 = vmatpush1.msra.mxu0 %v2633_v55  ;;  %177 = vmatpush1.msra.mxu1 %v2638_v56  ;;  %v2736_v56 = vld [vmem:[%s4211_s2 + $0x1d0] sm:$0xff] }
  0x1e   :  { %107 = vmatprep.subr.mxu0 %v2645_v57  ;;  %178 = vmatprep.subr.mxu1 %v2650_v58  ;;  %v2695_v58 = vld [vmem:[%s4211_s2 + $0x1e8] sm:$0xff]  ;;  %v2700_v57 = vld [vmem:[%s4211_s2 + $0x1f8] sm:$0xff]  ;;  %4370 = vst [vmem:[#allocation18_spill] sm:$0xff] %v2736_v56 }
  0x1f   :  { %108 = vmatpush1.msra.mxu0 %v2657_v59  ;;  %179 = vmatpush1.msra.mxu1 %v2662_v60  ;;  %4362 = vst [vmem:[#allocation11_spill] sm:$0xff] %v2695_v58  ;;  %4363 = vst [vmem:[#allocation12_spill] sm:$0xff] %v2700_v57  ;;  %v4366_v60 = vmov 0.0   ;;  %v2731_v59 = vld [vmem:[%s4211_s2 + $0x1c0] sm:$0xff] }
  0x20   :  { %109 = vmatprep.subr.mxu0 %v2669_v61  ;;  %180 = vmatprep.subr.mxu1 %v2674_v62  ;;  %v2707_v61 = vld [vmem:[%s4211_s2 + $0x1e0] sm:$0xff]  ;;  %v2712_v62 = vld [vmem:[%s4211_s2 + $0x1f0] sm:$0xff]  ;;  %4369 = vst [vmem:[#allocation17_spill] sm:$0xff] %v2731_v59 }
  0x21   :  { %110 = vmatpush1.msra.mxu0 %v2681_v63  ;;  %181 = vmatpush1.msra.mxu1 %v2686_v3  ;;  %4364 = vst [vmem:[#allocation13_spill] sm:$0xff] %v2707_v61  ;;  %4365 = vst [vmem:[#allocation14_spill] sm:$0xff] %v2712_v62  ;;  %v2719_v63 = vld [vmem:[%s4211_s2 + $0x1c8] sm:$0xff]  ;;  %v2724_v3 = vld [vmem:[%s4211_s2 + $0x1d8] sm:$0xff] }
  0x22   :  { %144 = vmatmul.mubr.f32.vlgmr.msra.gmra.mxu0 %v4366_v60  ;;  %215 = vmatmul.mubr.f32.vlgmr.msra.gmra.mxu1 %v4366_v60  ;;  %4367 = vst [vmem:[#allocation15_spill] sm:$0xff] %v2719_v63  ;;  %4368 = vst [vmem:[#allocation16_spill] sm:$0xff] %v2724_v3 }
  0x23   :  { %310 = vmatprep.subr.mxu0 %v2695_v58  ;;  %381 = vmatprep.subr.mxu1 %v2700_v57  ;;  %v2743_v58 = vld [vmem:[%s4211_s2 + $0x1a8] sm:$0xff]  ;;  %v2748_v57 = vld [vmem:[%s4211_s2 + $0x1b8] sm:$0xff] }
  0x24   :  { %311 = vmatpush1.msra.mxu0 %v2707_v61  ;;  %382 = vmatpush1.msra.mxu1 %v2712_v62  ;;  %4371 = vst [vmem:[#allocation19_spill] sm:$0xff] %v2743_v58  ;;  %4372 = vst [vmem:[#allocation20_spill] sm:$0xff] %v2748_v57  ;;  %v2755_v61 = vld [vmem:[%s4211_s2 + $0x1a0] sm:$0xff]  ;;  %v2760_v62 = vld [vmem:[%s4211_s2 + $0x1b0] sm:$0xff] }
  0x25   :  { %312 = vmatprep.subr.mxu0 %v2719_v63  ;;  %383 = vmatprep.subr.mxu1 %v2724_v3  ;;  %4373 = vst [vmem:[#allocation21_spill] sm:$0xff] %v2755_v61  ;;  %4374 = vst [vmem:[#allocation22_spill] sm:$0xff] %v2760_v62  ;;  %v2767_v63 = vld [vmem:[%s4211_s2 + $0x188] sm:$0xff]  ;;  %v2772_v3 = vld [vmem:[%s4211_s2 + $0x198] sm:$0xff] }
  0x26   :  { %313 = vmatpush1.msra.mxu0 %v2731_v59  ;;  %384 = vmatpush1.msra.mxu1 %v2736_v56  ;;  %4375 = vst [vmem:[#allocation23_spill] sm:$0xff] %v2767_v63  ;;  %4376 = vst [vmem:[#allocation24_spill] sm:$0xff] %v2772_v3  ;;  %v2779_v59 = vld [vmem:[%s4211_s2 + $0x180] sm:$0xff]  ;;  %v2784_v56 = vld [vmem:[%s4211_s2 + $0x190] sm:$0xff] }
  0x27   :  { %314 = vmatprep.subr.mxu0 %v2743_v58  ;;  %385 = vmatprep.subr.mxu1 %v2748_v57  ;;  %4377 = vst [vmem:[#allocation25_spill] sm:$0xff] %v2779_v59  ;;  %4378 = vst [vmem:[#allocation26_spill] sm:$0xff] %v2784_v56  ;;  %v2791_v58 = vld [vmem:[%s4211_s2 + $0x168] sm:$0xff]  ;;  %v2796_v57 = vld [vmem:[%s4211_s2 + $0x178] sm:$0xff] }
  0x28   :  { %315 = vmatpush1.msra.mxu0 %v2755_v61  ;;  %386 = vmatpush1.msra.mxu1 %v2760_v62  ;;  %4379 = vst [vmem:[#allocation27_spill] sm:$0xff] %v2791_v58  ;;  %4380 = vst [vmem:[#allocation28_spill] sm:$0xff] %v2796_v57  ;;  %v2803_v61 = vld [vmem:[%s4211_s2 + $0x160] sm:$0xff]  ;;  %v2808_v62 = vld [vmem:[%s4211_s2 + $0x170] sm:$0xff] }
  0x29   :  { %316 = vmatprep.subr.mxu0 %v2767_v63  ;;  %387 = vmatprep.subr.mxu1 %v2772_v3  ;;  %4381 = vst [vmem:[#allocation29_spill] sm:$0xff] %v2803_v61  ;;  %4382 = vst [vmem:[#allocation30_spill] sm:$0xff] %v2808_v62  ;;  %v2815_v63 = vld [vmem:[%s4211_s2 + $0x148] sm:$0xff]  ;;  %v2820_v3 = vld [vmem:[%s4211_s2 + $0x158] sm:$0xff] }
  0x2a   :  { %317 = vmatpush1.msra.mxu0 %v2779_v59  ;;  %388 = vmatpush1.msra.mxu1 %v2784_v56  ;;  %4383 = vst [vmem:[#allocation31_spill] sm:$0xff] %v2815_v63  ;;  %4384 = vst [vmem:[#allocation32_spill] sm:$0xff] %v2820_v3  ;;  %v2827_v59 = vld [vmem:[%s4211_s2 + $0x140] sm:$0xff]  ;;  %v2832_v56 = vld [vmem:[%s4211_s2 + $0x150] sm:$0xff] }
  0x2b   :  { %318 = vmatprep.subr.mxu0 %v2791_v58  ;;  %389 = vmatprep.subr.mxu1 %v2796_v57  ;;  %4385 = vst [vmem:[#allocation33_spill] sm:$0xff] %v2827_v59  ;;  %4386 = vst [vmem:[#allocation34_spill] sm:$0xff] %v2832_v56  ;;  %v2839_v58 = vld [vmem:[%s4211_s2 + $0x128] sm:$0xff]  ;;  %v2844_v57 = vld [vmem:[%s4211_s2 + $0x138] sm:$0xff] }
  0x2c   :  { %319 = vmatpush1.msra.mxu0 %v2803_v61  ;;  %390 = vmatpush1.msra.mxu1 %v2808_v62  ;;  %4387 = vst [vmem:[#allocation35_spill] sm:$0xff] %v2839_v58  ;;  %4388 = vst [vmem:[#allocation36_spill] sm:$0xff] %v2844_v57  ;;  %v2851_v61 = vld [vmem:[%s4211_s2 + $0x120] sm:$0xff]  ;;  %v2856_v62 = vld [vmem:[%s4211_s2 + $0x130] sm:$0xff] }
  0x2d   :  { %320 = vmatprep.subr.mxu0 %v2815_v63  ;;  %391 = vmatprep.subr.mxu1 %v2820_v3  ;;  %4389 = vst [vmem:[#allocation37_spill] sm:$0xff] %v2851_v61  ;;  %4390 = vst [vmem:[#allocation38_spill] sm:$0xff] %v2856_v62  ;;  %v2863_v63 = vld [vmem:[%s4211_s2 + $0x108] sm:$0xff]  ;;  %v2868_v3 = vld [vmem:[%s4211_s2 + $0x118] sm:$0xff] }
  0x2e   :  { %321 = vmatpush1.msra.mxu0 %v2827_v59  ;;  %392 = vmatpush1.msra.mxu1 %v2832_v56  ;;  %4391 = vst [vmem:[#allocation39_spill] sm:$0xff] %v2863_v63  ;;  %4392 = vst [vmem:[#allocation40_spill] sm:$0xff] %v2868_v3  ;;  %v2875_v59 = vld [vmem:[%s4211_s2 + $0x100] sm:$0xff]  ;;  %v2880_v56 = vld [vmem:[%s4211_s2 + $0x110] sm:$0xff] }
  0x2f   :  { %322 = vmatprep.subr.mxu0 %v2839_v58  ;;  %393 = vmatprep.subr.mxu1 %v2844_v57  ;;  %4393 = vst [vmem:[#allocation41_spill] sm:$0xff] %v2875_v59  ;;  %4394 = vst [vmem:[#allocation42_spill] sm:$0xff] %v2880_v56  ;;  %v2887_v58 = vld [vmem:[%s4211_s2 + $0xe8] sm:$0xff]  ;;  %v2892_v57 = vld [vmem:[%s4211_s2 + $0xf8] sm:$0xff] }
  0x30   :  { %323 = vmatpush1.msra.mxu0 %v2851_v61  ;;  %394 = vmatpush1.msra.mxu1 %v2856_v62  ;;  %4395 = vst [vmem:[#allocation43_spill] sm:$0xff] %v2887_v58  ;;  %4396 = vst [vmem:[#allocation44_spill] sm:$0xff] %v2892_v57  ;;  %v2899_v61 = vld [vmem:[%s4211_s2 + $0xe0] sm:$0xff]  ;;  %v2904_v62 = vld [vmem:[%s4211_s2 + $0xf0] sm:$0xff] }
  0x31   :  { %324 = vmatprep.subr.mxu0 %v2863_v63  ;;  %395 = vmatprep.subr.mxu1 %v2868_v3  ;;  %4397 = vst [vmem:[#allocation45_spill] sm:$0xff] %v2899_v61  ;;  %4398 = vst [vmem:[#allocation46_spill] sm:$0xff] %v2904_v62  ;;  %v2911_v63 = vld [vmem:[%s4211_s2 + $0xc8] sm:$0xff]  ;;  %v2916_v3 = vld [vmem:[%s4211_s2 + $0xd8] sm:$0xff] }
  0x32   :  { %325 = vmatpush1.msra.mxu0 %v2875_v59  ;;  %396 = vmatpush1.msra.mxu1 %v2880_v56  ;;  %4399 = vst [vmem:[#allocation47_spill] sm:$0xff] %v2911_v63  ;;  %4400 = vst [vmem:[#allocation48_spill] sm:$0xff] %v2916_v3  ;;  %v2923_v59 = vld [vmem:[%s4211_s2 + $0xc0] sm:$0xff]  ;;  %v2928_v56 = vld [vmem:[%s4211_s2 + $0xd0] sm:$0xff] }
  0x33   :  { %326 = vmatprep.subr.mxu0 %v2887_v58  ;;  %397 = vmatprep.subr.mxu1 %v2892_v57  ;;  %4401 = vst [vmem:[#allocation49_spill] sm:$0xff] %v2923_v59  ;;  %4402 = vst [vmem:[#allocation50_spill] sm:$0xff] %v2928_v56  ;;  %v2935_v58 = vld [vmem:[%s4211_s2 + $0xa8] sm:$0xff]  ;;  %v2940_v57 = vld [vmem:[%s4211_s2 + $0xb8] sm:$0xff] }
  0x34   :  { %327 = vmatpush1.msra.mxu0 %v2899_v61  ;;  %398 = vmatpush1.msra.mxu1 %v2904_v62  ;;  %4403 = vst [vmem:[#allocation51_spill] sm:$0xff] %v2935_v58  ;;  %4404 = vst [vmem:[#allocation52_spill] sm:$0xff] %v2940_v57  ;;  %v2947_v61 = vld [vmem:[%s4211_s2 + $0xa0] sm:$0xff]  ;;  %v2952_v62 = vld [vmem:[%s4211_s2 + $0xb0] sm:$0xff] }
  0x35   :  { %328 = vmatprep.subr.mxu0 %v2911_v63  ;;  %399 = vmatprep.subr.mxu1 %v2916_v3  ;;  %4405 = vst [vmem:[#allocation53_spill] sm:$0xff] %v2947_v61  ;;  %4406 = vst [vmem:[#allocation54_spill] sm:$0xff] %v2952_v62  ;;  %v2959_v63 = vld [vmem:[%s4211_s2 + $0x88] sm:$0xff]  ;;  %v2964_v3 = vld [vmem:[%s4211_s2 + $0x98] sm:$0xff] }
  0x36   :  { %329 = vmatpush1.msra.mxu0 %v2923_v59  ;;  %400 = vmatpush1.msra.mxu1 %v2928_v56  ;;  %4407 = vst [vmem:[#allocation55_spill] sm:$0xff] %v2959_v63  ;;  %4408 = vst [vmem:[#allocation56_spill] sm:$0xff] %v2964_v3  ;;  %v2971_v59 = vld [vmem:[%s4211_s2 + $0x80] sm:$0xff]  ;;  %v2976_v56 = vld [vmem:[%s4211_s2 + $0x90] sm:$0xff] }
  0x37   :  { %330 = vmatprep.subr.mxu0 %v2935_v58  ;;  %401 = vmatprep.subr.mxu1 %v2940_v57  ;;  %4409 = vst [vmem:[#allocation57_spill] sm:$0xff] %v2971_v59  ;;  %4410 = vst [vmem:[#allocation58_spill] sm:$0xff] %v2976_v56  ;;  %v2983_v58 = vld [vmem:[%s4211_s2 + $0x68] sm:$0xff]  ;;  %v2988_v57 = vld [vmem:[%s4211_s2 + $0x78] sm:$0xff] }
  0x38   :  { %331 = vmatpush1.msra.mxu0 %v2947_v61  ;;  %402 = vmatpush1.msra.mxu1 %v2952_v62  ;;  %4411 = vst [vmem:[#allocation59_spill] sm:$0xff] %v2983_v58  ;;  %4412 = vst [vmem:[#allocation60_spill] sm:$0xff] %v2988_v57  ;;  %v2995_v61 = vld [vmem:[%s4211_s2 + $0x60] sm:$0xff]  ;;  %v3000_v62 = vld [vmem:[%s4211_s2 + $0x70] sm:$0xff] }
  0x39   :  { %332 = vmatprep.subr.mxu0 %v2959_v63  ;;  %403 = vmatprep.subr.mxu1 %v2964_v3  ;;  %4413 = vst [vmem:[#allocation61_spill] sm:$0xff] %v2995_v61  ;;  %4414 = vst [vmem:[#allocation62_spill] sm:$0xff] %v3000_v62  ;;  %v3007_v63 = vld [vmem:[%s4211_s2 + $0x48] sm:$0xff]  ;;  %v3012_v3 = vld [vmem:[%s4211_s2 + $0x58] sm:$0xff] }
  0x3a   :  { %333 = vmatpush1.msra.mxu0 %v2971_v59  ;;  %404 = vmatpush1.msra.mxu1 %v2976_v56  ;;  %4415 = vst [vmem:[#allocation63_spill] sm:$0xff] %v3007_v63  ;;  %4416 = vst [vmem:[#allocation64_spill] sm:$0xff] %v3012_v3  ;;  %v3019_v59 = vld [vmem:[%s4211_s2 + $0x40] sm:$0xff]  ;;  %v3024_v56 = vld [vmem:[%s4211_s2 + $0x50] sm:$0xff] }
  0x3b   :  { %334 = vmatprep.subr.mxu0 %v2983_v58  ;;  %405 = vmatprep.subr.mxu1 %v2988_v57  ;;  %4417 = vst [vmem:[#allocation65_spill] sm:$0xff] %v3019_v59  ;;  %4418 = vst [vmem:[#allocation66_spill] sm:$0xff] %v3024_v56  ;;  %v3031_v58 = vld [vmem:[%s4211_s2 + $0x28] sm:$0xff]  ;;  %v3036_v57 = vld [vmem:[%s4211_s2 + $0x38] sm:$0xff] }
  0x3c   :  { %335 = vmatpush1.msra.mxu0 %v2995_v61  ;;  %406 = vmatpush1.msra.mxu1 %v3000_v62  ;;  %v3043_v61 = vld [vmem:[%s4211_s2 + $0x20] sm:$0xff]  ;;  %v3048_v62 = vld [vmem:[%s4211_s2 + $0x30] sm:$0xff] }
  0x3d   :  { %336 = vmatprep.subr.mxu0 %v3007_v63  ;;  %407 = vmatprep.subr.mxu1 %v3012_v3  ;;  %v3055_v63 = vld [vmem:[%s4211_s2 + $0x8] sm:$0xff]  ;;  %v3060_v3 = vld [vmem:[%s4211_s2 + $0x18] sm:$0xff] }
  0x3e   :  { %337 = vmatpush1.msra.mxu0 %v3019_v59  ;;  %408 = vmatpush1.msra.mxu1 %v3024_v56  ;;  %v3067_v59 = vld [vmem:[%s4211_s2] sm:$0xff]  ;;  %v3074_v56 = vld [vmem:[%s4211_s2 + $0x10] sm:$0xff] }
  0x3f   :  { %338 = vmatprep.subr.mxu0 %v3031_v58  ;;  %409 = vmatprep.subr.mxu1 %v3036_v57 }
  0x40   :  { %339 = vmatpush1.msra.mxu0 %v3043_v61  ;;  %410 = vmatpush1.msra.mxu1 %v3048_v62 }
  0x41   :  { %340 = vmatprep.subr.mxu0 %v3055_v63  ;;  %411 = vmatprep.subr.mxu1 %v3060_v3 }
  0x42   :  { %341 = vmatpush1.msra.mxu0 %v3067_v59  ;;  %374 = vmatprep.mubr.f32.mxu0 %v4366_v60 }
  0x43   :  { %412 = vmatpush1.msra.mxu1 %v3074_v56  ;;  %445 = vmatprep.mubr.f32.mxu1 %v4366_v60 }
  0x44   :  { %375 = vmatmul.mubr.f32.vlgmr.msra.gmra.mxu0 %v4366_v60  ;;  %446 = vmatmul.mubr.f32.vlgmr.msra.gmra.mxu1 %v4366_v60 }
  0x45   :  { %606 = vmatprep.subr.mxu0 %v2311_v0  ;;  %677 = vmatprep.subr.mxu1 %v2316_v1  ;;  %v4419_v0 = vld [vmem:[#allocation2_spill] sm:$0xff]  ;;  %v4420_v1 = vld [vmem:[#allocation3_spill] sm:$0xff] }
  0x46   :  { %607 = vmatpush1.msra.mxu0 %v2321_v2  ;;  %678 = vmatpush1.msra.mxu1 %v2330_v4  ;;  %v4421_v2 = vld [vmem:[#allocation4_spill] sm:$0xff]  ;;  %v4422_v4 = vld [vmem:[#allocation5_spill] sm:$0xff] }
  0x47   :  { %608 = vmatprep.subr.mxu0 %v2335_v5  ;;  %679 = vmatprep.subr.mxu1 %v2340_v6  ;;  %v4423_v5 = vld [vmem:[#allocation6_spill] sm:$0xff]  ;;  %v4424_v6 = vld [vmem:[#allocation7_spill] sm:$0xff] }
  0x48   :  { %609 = vmatpush1.msra.mxu0 %v2347_v7  ;;  %680 = vmatpush1.msra.mxu1 %v2352_v8  ;;  %v4425_v7 = vld [vmem:[#allocation8_spill] sm:$0xff]  ;;  %v4426_v8 = vld [vmem:[#allocation9_spill] sm:$0xff] }
  0x49   :  { %610 = vmatprep.subr.mxu0 %v2357_v9  ;;  %681 = vmatprep.subr.mxu1 %v2364_v10  ;;  %v4427_v9 = vld [vmem:[#allocation10_spill] sm:$0xff]  ;;  %v4428_v10 = vld [vmem:[#allocation11_spill] sm:$0xff] }
  0x4a   :  { %611 = vmatpush1.msra.mxu0 %v2369_v11  ;;  %682 = vmatpush1.msra.mxu1 %v2374_v12  ;;  %v4429_v11 = vld [vmem:[#allocation12_spill] sm:$0xff]  ;;  %v2287_v12 = vmov 1983009808  }
  0x4b   :  { %612 = vmatprep.subr.mxu0 %v2381_v13  ;;  %683 = vmatprep.subr.mxu1 %v2386_v14  ;;  %v228_v13 = vunpack.c.l.s4 %v2287_v12  ;;  %v230_v14 = vlaneseq }
  0x4c   :  { %613 = vmatpush1.msra.mxu0 %v2393_v15  ;;  %684 = vmatpush1.msra.mxu1 %v2398_v16 }
  0x4d   :  { %614 = vmatprep.subr.mxu0 %v2405_v17  ;;  %685 = vmatprep.subr.mxu1 %v2410_v18  ;;  %v229_v15 = vunpack.c.0.s8 %v228_v13  ;;  %v231_v16 = vshrl.u32 %v230_v14, 7 }
  0x4e   :  { %615 = vmatpush1.msra.mxu0 %v2417_v19  ;;  %686 = vmatpush1.msra.mxu1 %v2422_v20 }
  0x4f   :  { %616 = vmatprep.subr.mxu0 %v2429_v21  ;;  %687 = vmatprep.subr.mxu1 %v2434_v22  ;;  %v3152_v19 = vsub.s32 %v229_v15, %v231_v16  ;;  %v4431_v16 = vld [vmem:[#allocation13_spill] sm:$0xff] }
  0x50   :  { %617 = vmatpush1.msra.mxu0 %v2441_v23  ;;  %688 = vmatpush1.msra.mxu1 %v2446_v24 }
  0x51   :  { %618 = vmatprep.subr.mxu0 %v2453_v25  ;;  %689 = vmatprep.subr.mxu1 %v2458_v26  ;;  %4430 = vst [vmem:[#allocation2_spill] sm:$0xff] %v3152_v19  ;;  %v14_v26 = vld [vmem:[%s4212_s0] sm:$0xff] }
  0x52   :  { %619 = vmatpush1.msra.mxu0 %v2465_v27  ;;  %690 = vmatpush1.msra.mxu1 %v2470_v28 }
  0x53   :  { %620 = vmatprep.subr.mxu0 %v2477_v29  ;;  %691 = vmatprep.subr.mxu1 %v2482_v30 }
  0x54   :  { %621 = vmatpush1.msra.mxu0 %v2489_v31  ;;  %692 = vmatpush1.msra.mxu1 %v2494_v32 }
  0x55   :  { %622 = vmatprep.subr.mxu0 %v2501_v33  ;;  %693 = vmatprep.subr.mxu1 %v2506_v34 }
  0x56   :  { %623 = vmatpush1.msra.mxu0 %v2513_v35  ;;  %694 = vmatpush1.msra.mxu1 %v2518_v36 }
  0x57   :  { %624 = vmatprep.subr.mxu0 %v2525_v37  ;;  %695 = vmatprep.subr.mxu1 %v2530_v38 }
  0x58   :  { %625 = vmatpush1.msra.mxu0 %v2537_v39  ;;  %696 = vmatpush1.msra.mxu1 %v2542_v40 }
  0x59   :  { %626 = vmatprep.subr.mxu0 %v2549_v41  ;;  %697 = vmatprep.subr.mxu1 %v2554_v42 }
  0x5a   :  { %627 = vmatpush1.msra.mxu0 %v2561_v43  ;;  %698 = vmatpush1.msra.mxu1 %v2566_v44 }
  0x5b   :  { %628 = vmatprep.subr.mxu0 %v2573_v45  ;;  %699 = vmatprep.subr.mxu1 %v2578_v46 }
  0x5c   :  { %629 = vmatpush1.msra.mxu0 %v2585_v47  ;;  %700 = vmatpush1.msra.mxu1 %v2590_v48  ;;  %v2120_v47 = vld [vmem:[%s4212_s0 + $0x38] sm:$0xff] }
  0x5d   :  { %630 = vmatprep.subr.mxu0 %v2597_v49  ;;  %701 = vmatprep.subr.mxu1 %v2602_v50 }
  0x5e   :  { %631 = vmatpush1.msra.mxu0 %v2609_v51  ;;  %702 = vmatpush1.msra.mxu1 %v2614_v52 }
  0x5f   :  { %632 = vmatprep.subr.mxu0 %v2621_v53  ;;  %703 = vmatprep.subr.mxu1 %v2626_v54 }
  0x60   :  { %633 = vmatpush1.msra.mxu0 %v2633_v55  ;;  %704 = vmatpush1.msra.mxu1 %v4419_v0 }
  0x61   :  { %634 = vmatprep.subr.mxu0 %v4420_v1  ;;  %705 = vmatprep.subr.mxu1 %v4421_v2 }
  0x62   :  { %635 = vmatpush1.msra.mxu0 %v4422_v4  ;;  %706 = vmatpush1.msra.mxu1 %v4423_v5 }
  0x63   :  { %636 = vmatprep.subr.mxu0 %v4424_v6  ;;  %707 = vmatprep.subr.mxu1 %v4425_v7 }
  0x64   :  { %637 = vmatpush1.msra.mxu0 %v4426_v8  ;;  %670 = vmatprep.mubr.f32.mxu0 %v4366_v60 }
  0x65   :  { %708 = vmatpush1.msra.mxu1 %v4427_v9  ;;  %741 = vmatprep.mubr.f32.mxu1 %v4366_v60 }
  0x66   :  { %837 = vmatprep.subr.mxu0 %v4428_v10  ;;  %908 = vmatprep.subr.mxu1 %v4429_v11 }
  0xe2   :  { %v145_v17 = vpop.f32.mrf.mxu0  ;;  %v216_v18 = vpop.f32.mrf.mxu1 }
  0xe4   :  { %v147_v20 = vpop.f32.mrf.mxu0  ;;  %v218_v21 = vpop.f32.mrf.mxu1 }
  0xe5   :  { %v225_v22 = vcombine.low %v145_v17, %v147_v20  ;;  %v226_v23 = vcombine.low %v216_v18, %v218_v21  ;;  %v4432_v17 = vld [vmem:[#allocation14_spill] sm:$0xff]  ;;  %v4433_v18 = vld [vmem:[#allocation15_spill] sm:$0xff]  ;;  %v4434_v20 = vld [vmem:[#allocation16_spill] sm:$0xff] }
  0xe6   :  { %v4435_v21 = vld [vmem:[#allocation17_spill] sm:$0xff] }
  0xe7   :  { %v233_v24 = vrot.slane %v225_v22, %v3152_v19  ;;  %v240_v25 = vrot.slane %v226_v23, %v3152_v19  ;;  %v4436_v22 = vld [vmem:[#allocation18_spill] sm:$0xff]  ;;  %v4437_v23 = vld [vmem:[#allocation19_spill] sm:$0xff] }
  0xe9   :  { %v241_v27 = vcombine.low %v233_v24, %v240_v25  ;;  %v4438_v24 = vld [vmem:[#allocation20_spill] sm:$0xff]  ;;  %v4439_v25 = vld [vmem:[#allocation21_spill] sm:$0xff] }
  0xeb   :  { %v243_v28 = vadd.f32 %v241_v27, %v14_v26  ;;  %v4440_v26 = vld [vmem:[#allocation22_spill] sm:$0xff]  ;;  %v4441_v27 = vld [vmem:[#allocation23_spill] sm:$0xff] }
  0xed   :  { %v2121_v29 = vmul.f32 -1.442695, %v243_v28  ;;  %v482_v30 = vrot.slane %v243_v28, 2  ;;  %v493_v32 = vrot.slane %v243_v28, 6  ;;  %v490_v33 = vrot.slane %v243_v28, 4  ;;  %v4442_v28 = vld [vmem:[#allocation24_spill] sm:$0xff] }
  0xef   :  { %2158 = vpow2.f32 %v2121_v29  ;;  %v2122_v31 = vmul.f32 -1.442695, %v482_v30  ;;  %v2123_v35 = vmul.f32 -1.442695, %v493_v32  ;;  %v4443_v29 = vld [vmem:[#allocation25_spill] sm:$0xff]  ;;  %v4444_v30 = vld [vmem:[#allocation26_spill] sm:$0xff] }
  0xf0   :  { %v4445_v32 = vld [vmem:[#allocation27_spill] sm:$0xff] }
  0xf1   :  { %2160 = vpow2.f32 %v2122_v31 }
  0xf2   :  { %2162 = vtanh.f32 %v490_v33  ;;  %v4446_v33 = vld [vmem:[#allocation28_spill] sm:$0xff] }
  0xfc   :  { %v2159_v34 = vpop.eup %2158 }
  0xfd   :  { %v478_v36 = vadd.f32 1.0, %v2159_v34 }
  0xfe   :  { %v2161_v37 = vpop.eup %2160 }
  0xff   :  { %2164 = vrcp.f32 %v478_v36  ;;  %v487_v38 = vadd.f32 1.0, %v2161_v37  ;;  %v2163_v48 = vpop.eup %2162  ;;  %v4448_v36 = vld [vmem:[#allocation30_spill] sm:$0xff] }
 0x100   :  { %2166 = vpow2.f32 %v2123_v35  ;;  %v4447_v35 = vld [vmem:[#allocation29_spill] sm:$0xff] }
 0x101   :  { %2168 = vrcp.f32 %v487_v38  ;;  %v4449_v38 = vld [vmem:[#allocation31_spill] sm:$0xff] }
 0x104   :  { %v376_v39 = vpop.f32.mrf.mxu0  ;;  %v447_v40 = vpop.f32.mrf.mxu1 }
 0x106   :  { %v378_v41 = vpop.f32.mrf.mxu0  ;;  %v449_v42 = vpop.f32.mrf.mxu1 }
 0x107   :  { %v456_v43 = vcombine.low %v376_v39, %v378_v41  ;;  %v457_v44 = vcombine.low %v447_v40, %v449_v42  ;;  %v4450_v39 = vld [vmem:[#allocation32_spill] sm:$0xff]  ;;  %v4451_v42 = vld [vmem:[#allocation33_spill] sm:$0xff] }
 0x109   :  { %v464_v45 = vrot.slane %v456_v43, %v3152_v19  ;;  %v471_v46 = vrot.slane %v457_v44, %v3152_v19  ;;  %v4452_v43 = vld [vmem:[#allocation34_spill] sm:$0xff] }
 0x10b   :  { %v472_v49 = vcombine.low %v464_v45, %v471_v46  ;;  %v4453_v45 = vld [vmem:[#allocation35_spill] sm:$0xff]  ;;  %v4454_v46 = vld [vmem:[#allocation36_spill] sm:$0xff] }
 0x10c   :  { %v2165_v50 = vpop.eup %2164 }
 0x10d   :  { %v2167_v51 = vpop.eup %2166  ;;  %v474_v52 = vadd.f32 %v2120_v47, %v472_v49  ;;  %v502_v1 = vmul.f32 %v2165_v50, %v2163_v48  ;;  %v4455_v48 = vld [vmem:[#allocation37_spill] sm:$0xff]  ;;  %v4456_v49 = vld [vmem:[#allocation38_spill] sm:$0xff]  ;;  %v4457_v50 = vld [vmem:[#allocation39_spill] sm:$0xff] }
 0x10e   :  { %v2169_v53 = vpop.eup %2168  ;;  %v498_v2 = vadd.f32 1.0, %v2167_v51  ;;  %v4458_v51 = vld [vmem:[#allocation40_spill] sm:$0xff] }
 0x10f   :  { %v501_v54 = vmul.f32 0.0, %v2169_v53  ;;  %v2124_v55 = vmul.f32 -1.442695, %v474_v52  ;;  %v513_v0 = vrot.slane %v474_v52, 2  ;;  %v524_v6 = vrot.slane %v474_v52, 6  ;;  %v4459_v53 = vld [vmem:[#allocation41_spill] sm:$0xff] }
 0x110   :  { %v521_v9 = vrot.slane %v474_v52, 4 }
 0x111   :  { %2170 = vpow2.f32 %v2124_v55  ;;  %v2125_v4 = vmul.f32 -1.442695, %v513_v0  ;;  %v3164_v5 = vadd.f32 %v502_v1, %v501_v54  ;;  %v2126_v7 = vmul.f32 -1.442695, %v524_v6  ;;  %v4460_v54 = vld [vmem:[#allocation42_spill] sm:$0xff]  ;;  %v4461_v55 = vld [vmem:[#allocation43_spill] sm:$0xff] }
 0x112   :  { %v4462_v0 = vld [vmem:[#allocation44_spill] sm:$0xff]  ;;  %v4463_v1 = vld [vmem:[#allocation45_spill] sm:$0xff] }
 0x113   :  { %2172 = vpow2.f32 %v2125_v4  ;;  %v4465_v4 = vld [vmem:[#allocation47_spill] sm:$0xff]  ;;  %v4466_v6 = vld [vmem:[#allocation48_spill] sm:$0xff] }
 0x114   :  { %2174 = vrcp.f32 %v498_v2  ;;  %v4464_v2 = vld [vmem:[#allocation46_spill] sm:$0xff] }
 0x115   :  { %2176 = vtanh.f32 %v3164_v5 }
 0x116   :  { %2178 = vpow2.f32 %v2126_v7  ;;  %v4467_v7 = vld [vmem:[#allocation49_spill] sm:$0xff] }
 0x11e   :  { %v2171_v8 = vpop.eup %2170 }
 0x11f   :  { %v509_v10 = vadd.f32 1.0, %v2171_v8  ;;  %v4468_v8 = vld [vmem:[#allocation50_spill] sm:$0xff] }
 0x120   :  { %v2173_v11 = vpop.eup %2172 }
 0x121   :  { %v2175_v12 = vpop.eup %2174  ;;  %2180 = vrcp.f32 %v509_v10  ;;  %v518_v13 = vadd.f32 1.0, %v2173_v11  ;;  %v4470_v10 = vld [vmem:[#allocation52_spill] sm:$0xff]  ;;  %v4471_v11 = vld [vmem:[#allocation53_spill] sm:$0xff] }
 0x122   :  { %v2177_v14 = vpop.eup %2176  ;;  %2182 = vtanh.f32 %v521_v9  ;;  %v4469_v9 = vld [vmem:[#allocation51_spill] sm:$0xff] }
 0x123   :  { %2184 = vrcp.f32 %v518_v13  ;;  %v505_v15 = vmul.f32 %v2177_v14, %v2175_v12  ;;  %v2179_v31 = vpop.eup %2178  ;;  %v4472_v12 = vld [vmem:[#allocation54_spill] sm:$0xff]  ;;  %v4473_v13 = vld [vmem:[#allocation55_spill] sm:$0xff]  ;;  %v4474_v14 = vld [vmem:[#allocation56_spill] sm:$0xff] }
 0x124   :  { %v529_v41 = vadd.f32 1.0, %v2179_v31  ;;  %v3305_v31 = vld [vmem:[%s4210_s1 + $0x1a0] sm:$0xff] }
 0x125   :  { %537 = vst [vmem:[%s4213_s3] sm:$0x3] %v505_v15  ;;  %671 = vmatmul.mubr.f32.vlgmr.msra.gmra.mxu0 %v505_v15  ;;  %742 = vmatmul.mubr.f32.vlgmr.msra.gmra.mxu1 %v505_v15  ;;  %v4475_v15 = vld [vmem:[#allocation57_spill] sm:$0xff] }
 0x126   :  { %838 = vmatpush1.msra.mxu0 %v4431_v16  ;;  %909 = vmatpush1.msra.mxu1 %v4432_v17  ;;  %2186 = vrcp.f32 %v529_v41  ;;  %v4476_v16 = vld [vmem:[#allocation58_spill] sm:$0xff]  ;;  %v4477_v17 = vld [vmem:[#allocation59_spill] sm:$0xff] }
 0x127   :  { %839 = vmatprep.subr.mxu0 %v4433_v18  ;;  %910 = vmatprep.subr.mxu1 %v4434_v20  ;;  %v4478_v18 = vld [vmem:[#allocation60_spill] sm:$0xff]  ;;  %v4479_v20 = vld [vmem:[#allocation61_spill] sm:$0xff]  ;;  %v3365_v41 = vld [vmem:[%s4210_s1 + $0x148] sm:$0xff] }
 0x128   :  { %840 = vmatpush1.msra.mxu0 %v4435_v21  ;;  %911 = vmatpush1.msra.mxu1 %v4436_v22  ;;  %v4480_v21 = vld [vmem:[#allocation62_spill] sm:$0xff]  ;;  %v4481_v22 = vld [vmem:[#allocation63_spill] sm:$0xff] }
 0x129   :  { %841 = vmatprep.subr.mxu0 %v4437_v23  ;;  %912 = vmatprep.subr.mxu1 %v4438_v24  ;;  %v4482_v23 = vld [vmem:[#allocation64_spill] sm:$0xff]  ;;  %v4483_v24 = vld [vmem:[#allocation65_spill] sm:$0xff] }
 0x12a   :  { %842 = vmatpush1.msra.mxu0 %v4439_v25  ;;  %913 = vmatpush1.msra.mxu1 %v4440_v26  ;;  %v4484_v25 = vld [vmem:[#allocation66_spill] sm:$0xff] }
 0x12b   :  { %843 = vmatprep.subr.mxu0 %v4441_v27  ;;  %914 = vmatprep.subr.mxu1 %v4442_v28 }
 0x12c   :  { %844 = vmatpush1.msra.mxu0 %v4443_v29  ;;  %915 = vmatpush1.msra.mxu1 %v4444_v30  ;;  %v3293_v29 = vld [vmem:[%s4210_s1 + $0x1a8] sm:$0xff]  ;;  %v3298_v30 = vld [vmem:[%s4210_s1 + $0x1b8] sm:$0xff] }
 0x12d   :  { %845 = vmatprep.subr.mxu0 %v4445_v32  ;;  %916 = vmatprep.subr.mxu1 %v4446_v33  ;;  %v3310_v32 = vld [vmem:[%s4210_s1 + $0x1b0] sm:$0xff]  ;;  %v3317_v33 = vld [vmem:[%s4210_s1 + $0x188] sm:$0xff] }
 0x12e   :  { %v2181_v34 = vpop.eup %2180  ;;  %846 = vmatpush1.msra.mxu0 %v4447_v35  ;;  %917 = vmatpush1.msra.mxu1 %v4448_v36  ;;  %v3329_v35 = vld [vmem:[%s4210_s1 + $0x180] sm:$0xff]  ;;  %v3334_v36 = vld [vmem:[%s4210_s1 + $0x190] sm:$0xff] }
 0x12f   :  { %v2183_v37 = vpop.eup %2182  ;;  %847 = vmatprep.subr.mxu0 %v4449_v38  ;;  %918 = vmatprep.subr.mxu1 %v4450_v39  ;;  %v3346_v38 = vld [vmem:[%s4210_s1 + $0x178] sm:$0xff]  ;;  %v3353_v39 = vld [vmem:[%s4210_s1 + $0x160] sm:$0xff] }
 0x130   :  { %v2185_v40 = vpop.eup %2184  ;;  %848 = vmatpush1.msra.mxu0 %v4451_v42  ;;  %919 = vmatpush1.msra.mxu1 %v4452_v43  ;;  %v533_v47 = vmul.f32 %v2183_v37, %v2181_v34  ;;  %v3322_v34 = vld [vmem:[%s4210_s1 + $0x198] sm:$0xff]  ;;  %v3341_v37 = vld [vmem:[%s4210_s1 + $0x168] sm:$0xff]  ;;  %v3377_v43 = vld [vmem:[%s4210_s1 + $0x140] sm:$0xff] }
 0x131   :  { %v532_v44 = vmul.f32 0.0, %v2185_v40  ;;  %849 = vmatprep.subr.mxu0 %v4453_v45  ;;  %920 = vmatprep.subr.mxu1 %v4454_v46  ;;  %v3358_v40 = vld [vmem:[%s4210_s1 + $0x170] sm:$0xff]  ;;  %v3370_v42 = vld [vmem:[%s4210_s1 + $0x158] sm:$0xff]  ;;  %v3389_v45 = vld [vmem:[%s4210_s1 + $0x128] sm:$0xff] }
 0x132   :  { %850 = vmatpush1.msra.mxu0 %v4455_v48  ;;  %921 = vmatpush1.msra.mxu1 %v4456_v49  ;;  %v3394_v46 = vld [vmem:[%s4210_s1 + $0x138] sm:$0xff]  ;;  %v3406_v48 = vld [vmem:[%s4210_s1 + $0x130] sm:$0xff]  ;;  %v3413_v49 = vld [vmem:[%s4210_s1 + $0x108] sm:$0xff] }
 0x133   :  { %851 = vmatprep.subr.mxu0 %v4457_v50  ;;  %922 = vmatprep.subr.mxu1 %v4458_v51  ;;  %v3198_v52 = vadd.f32 %v533_v47, %v532_v44  ;;  %v2187_v26 = vpop.eup %2186  ;;  %v3382_v44 = vld [vmem:[%s4210_s1 + $0x150] sm:$0xff]  ;;  %v3401_v47 = vld [vmem:[%s4210_s1 + $0x120] sm:$0xff]  ;;  %v3418_v50 = vld [vmem:[%s4210_s1 + $0x118] sm:$0xff] }
 0x134   :  { %852 = vmatpush1.msra.mxu0 %v4459_v53  ;;  %923 = vmatpush1.msra.mxu1 %v4460_v54  ;;  %v3425_v51 = vld [vmem:[%s4210_s1 + $0x100] sm:$0xff]  ;;  %v3430_v53 = vld [vmem:[%s4210_s1 + $0x110] sm:$0xff]  ;;  %v3437_v54 = vld [vmem:[%s4210_s1 + $0xe8] sm:$0xff] }
 0x135   :  { %853 = vmatprep.subr.mxu0 %v4461_v55  ;;  %924 = vmatprep.subr.mxu1 %v4462_v0  ;;  %2188 = vtanh.f32 %v3198_v52  ;;  %v3442_v55 = vld [vmem:[%s4210_s1 + $0xf8] sm:$0xff]  ;;  %v3449_v0 = vld [vmem:[%s4210_s1 + $0xe0] sm:$0xff] }
 0x136   :  { %854 = vmatpush1.msra.mxu0 %v4463_v1  ;;  %925 = vmatpush1.msra.mxu1 %v4464_v2  ;;  %v3454_v1 = vld [vmem:[%s4210_s1 + $0xf0] sm:$0xff]  ;;  %v3461_v2 = vld [vmem:[%s4210_s1 + $0xc8] sm:$0xff] }
 0x137   :  { %855 = vmatprep.subr.mxu0 %v4465_v4  ;;  %926 = vmatprep.subr.mxu1 %v4466_v6  ;;  %v3466_v4 = vld [vmem:[%s4210_s1 + $0xd8] sm:$0xff]  ;;  %v3473_v6 = vld [vmem:[%s4210_s1 + $0xc0] sm:$0xff] }
 0x138   :  { %856 = vmatpush1.msra.mxu0 %v4467_v7  ;;  %927 = vmatpush1.msra.mxu1 %v4468_v8  ;;  %v3478_v7 = vld [vmem:[%s4210_s1 + $0xd0] sm:$0xff]  ;;  %v3485_v8 = vld [vmem:[%s4210_s1 + $0xa8] sm:$0xff] }
 0x139   :  { %857 = vmatprep.subr.mxu0 %v4469_v9  ;;  %928 = vmatprep.subr.mxu1 %v4470_v10  ;;  %v3490_v9 = vld [vmem:[%s4210_s1 + $0xb8] sm:$0xff]  ;;  %v3497_v10 = vld [vmem:[%s4210_s1 + $0xa0] sm:$0xff] }
 0x13a   :  { %858 = vmatpush1.msra.mxu0 %v4471_v11  ;;  %929 = vmatpush1.msra.mxu1 %v4472_v12  ;;  %4485 = vst [vmem:[#allocation3_spill] sm:$0xff] %v3497_v10  ;;  %v3502_v11 = vld [vmem:[%s4210_s1 + $0xb0] sm:$0xff]  ;;  %v3509_v12 = vld [vmem:[%s4210_s1 + $0x88] sm:$0xff] }
 0x13b   :  { %859 = vmatprep.subr.mxu0 %v4473_v13  ;;  %930 = vmatprep.subr.mxu1 %v4474_v14  ;;  %4486 = vst [vmem:[#allocation4_spill] sm:$0xff] %v3502_v11  ;;  %4487 = vst [vmem:[#allocation5_spill] sm:$0xff] %v3509_v12  ;;  %v3514_v13 = vld [vmem:[%s4210_s1 + $0x98] sm:$0xff]  ;;  %v3521_v14 = vld [vmem:[%s4210_s1 + $0x80] sm:$0xff] }
 0x13c   :  { %860 = vmatpush1.msra.mxu0 %v4475_v15  ;;  %931 = vmatpush1.msra.mxu1 %v4476_v16  ;;  %4488 = vst [vmem:[#allocation6_spill] sm:$0xff] %v3514_v13  ;;  %4489 = vst [vmem:[#allocation7_spill] sm:$0xff] %v3521_v14  ;;  %v3526_v15 = vld [vmem:[%s4210_s1 + $0x90] sm:$0xff]  ;;  %v3533_v16 = vld [vmem:[%s4210_s1 + $0x68] sm:$0xff] }
 0x13d   :  { %861 = vmatprep.subr.mxu0 %v4477_v17  ;;  %932 = vmatprep.subr.mxu1 %v4478_v18  ;;  %4490 = vst [vmem:[#allocation8_spill] sm:$0xff] %v3526_v15  ;;  %4491 = vst [vmem:[#allocation9_spill] sm:$0xff] %v3533_v16  ;;  %v3538_v17 = vld [vmem:[%s4210_s1 + $0x78] sm:$0xff]  ;;  %v3545_v18 = vld [vmem:[%s4210_s1 + $0x60] sm:$0xff] }
 0x13e   :  { %862 = vmatpush1.msra.mxu0 %v4479_v20  ;;  %933 = vmatpush1.msra.mxu1 %v4480_v21  ;;  %4492 = vst [vmem:[#allocation10_spill] sm:$0xff] %v3538_v17  ;;  %4493 = vst [vmem:[#allocation11_spill] sm:$0xff] %v3545_v18  ;;  %v3550_v20 = vld [vmem:[%s4210_s1 + $0x70] sm:$0xff]  ;;  %v3557_v21 = vld [vmem:[%s4210_s1 + $0x48] sm:$0xff] }
 0x13f   :  { %863 = vmatprep.subr.mxu0 %v4481_v22  ;;  %934 = vmatprep.subr.mxu1 %v4482_v23  ;;  %4494 = vst [vmem:[#allocation12_spill] sm:$0xff] %v3550_v20  ;;  %4495 = vst [vmem:[#allocation13_spill] sm:$0xff] %v3557_v21  ;;  %v3562_v22 = vld [vmem:[%s4210_s1 + $0x58] sm:$0xff]  ;;  %v3569_v23 = vld [vmem:[%s4210_s1 + $0x40] sm:$0xff] }
 0x140   :  { %864 = vmatpush1.msra.mxu0 %v4483_v24  ;;  %935 = vmatpush1.msra.mxu1 %v4484_v25  ;;  %4496 = vst [vmem:[#allocation14_spill] sm:$0xff] %v3562_v22  ;;  %4497 = vst [vmem:[#allocation15_spill] sm:$0xff] %v3569_v23  ;;  %v3574_v24 = vld [vmem:[%s4210_s1 + $0x50] sm:$0xff]  ;;  %v3581_v25 = vld [vmem:[%s4210_s1 + $0x28] sm:$0xff] }
 0x141   :  { %865 = vmatprep.subr.mxu0 %v3031_v58  ;;  %936 = vmatprep.subr.mxu1 %v3036_v57  ;;  %v3257_v57 = vld [vmem:[%s4210_s1 + $0x1e0] sm:$0xff]  ;;  %v3262_v58 = vld [vmem:[%s4210_s1 + $0x1f0] sm:$0xff]  ;;  %4498 = vst [vmem:[#allocation16_spill] sm:$0xff] %v3574_v24  ;;  %4499 = vst [vmem:[#allocation17_spill] sm:$0xff] %v3581_v25 }
 0x142   :  { %v2189_v27 = vpop.eup %2188  ;;  %866 = vmatpush1.msra.mxu0 %v3043_v61  ;;  %937 = vmatpush1.msra.mxu1 %v3048_v62  ;;  %v3274_v61 = vld [vmem:[%s4210_s1 + $0x1d8] sm:$0xff]  ;;  %v3281_v62 = vld [vmem:[%s4210_s1 + $0x1c0] sm:$0xff] }
 0x143   :  { %867 = vmatprep.subr.mxu0 %v3055_v63  ;;  %938 = vmatprep.subr.mxu1 %v3060_v3  ;;  %v536_v28 = vmul.f32 %v2189_v27, %v2187_v26  ;;  %v3245_v3 = vld [vmem:[%s4210_s1 + $0x1e8] sm:$0xff]  ;;  %v3286_v63 = vld [vmem:[%s4210_s1 + $0x1d0] sm:$0xff]  ;;  %v3586_v26 = vld [vmem:[%s4210_s1 + $0x38] sm:$0xff] }
 0x144   :  { %868 = vmatpush1.msra.mxu0 %v3067_v59  ;;  %901 = vmatprep.mubr.f32.mxu0 %v4366_v60  ;;  %v3269_v59 = vld [vmem:[%s4210_s1 + $0x1c8] sm:$0xff]  ;;  %4500 = vst [vmem:[#allocation18_spill] sm:$0xff] %v3586_v26  ;;  %v3593_v27 = vld [vmem:[%s4210_s1 + $0x20] sm:$0xff] }
 0x145   :  { %939 = vmatpush1.msra.mxu1 %v3074_v56  ;;  %972 = vmatprep.mubr.f32.mxu1 %v4366_v60  ;;  %2127 = vst [vmem:[%s4213_s3 + $0xe] sm:$0x3] %v536_v28  ;;  %v3250_v56 = vld [vmem:[%s4210_s1 + $0x1f8] sm:$0xff]  ;;  %4501 = vst [vmem:[#allocation19_spill] sm:$0xff] %v3593_v27 }
 0x146   :  { %902 = vmatmul.mubr.f32.vlgmr.msra.gmra.mxu0 %v536_v28  ;;  %973 = vmatmul.mubr.f32.vlgmr.msra.gmra.mxu1 %v536_v28  ;;  %v3598_v28 = vld [vmem:[%s4210_s1 + $0x30] sm:$0xff] }
 0x147   :  { %1197 = vmatprep.mubr.f32.mxu0 %v4366_v60  ;;  %1268 = vmatprep.mubr.f32.mxu1 %v4366_v60  ;;  %4502 = vst [vmem:[#allocation20_spill] sm:$0xff] %v3598_v28 }
 0x148   :  { %1133 = vmatprep.subr.mxu0 %v3245_v3  ;;  %1204 = vmatprep.subr.mxu1 %v3250_v56 }
 0x149   :  { %1134 = vmatpush1.msra.mxu0 %v3257_v57  ;;  %1205 = vmatpush1.msra.mxu1 %v3262_v58 }
 0x14a   :  { %1135 = vmatprep.subr.mxu0 %v3269_v59  ;;  %1206 = vmatprep.subr.mxu1 %v3274_v61 }
 0x14b   :  { %1136 = vmatpush1.msra.mxu0 %v3281_v62  ;;  %1207 = vmatpush1.msra.mxu1 %v3286_v63 }
 0x14c   :  { %1137 = vmatprep.subr.mxu0 %v3293_v29  ;;  %1208 = vmatprep.subr.mxu1 %v3298_v30 }
 0x14d   :  { %1138 = vmatpush1.msra.mxu0 %v3305_v31  ;;  %1209 = vmatpush1.msra.mxu1 %v3310_v32 }
 0x14e   :  { %1139 = vmatprep.subr.mxu0 %v3317_v33  ;;  %1210 = vmatprep.subr.mxu1 %v3322_v34 }
 0x14f   :  { %1140 = vmatpush1.msra.mxu0 %v3329_v35  ;;  %1211 = vmatpush1.msra.mxu1 %v3334_v36 }
 0x150   :  { %1141 = vmatprep.subr.mxu0 %v3341_v37  ;;  %1212 = vmatprep.subr.mxu1 %v3346_v38 }
 0x151   :  { %1142 = vmatpush1.msra.mxu0 %v3353_v39  ;;  %1213 = vmatpush1.msra.mxu1 %v3358_v40 }
 0x152   :  { %1143 = vmatprep.subr.mxu0 %v3365_v41  ;;  %1214 = vmatprep.subr.mxu1 %v3370_v42 }
 0x153   :  { %1144 = vmatpush1.msra.mxu0 %v3377_v43  ;;  %1215 = vmatpush1.msra.mxu1 %v3382_v44 }
 0x154   :  { %1145 = vmatprep.subr.mxu0 %v3389_v45  ;;  %1216 = vmatprep.subr.mxu1 %v3394_v46 }
 0x155   :  { %1146 = vmatpush1.msra.mxu0 %v3401_v47  ;;  %1217 = vmatpush1.msra.mxu1 %v3406_v48 }
 0x156   :  { %1147 = vmatprep.subr.mxu0 %v3413_v49  ;;  %1218 = vmatprep.subr.mxu1 %v3418_v50 }
 0x157   :  { %1148 = vmatpush1.msra.mxu0 %v3425_v51  ;;  %1219 = vmatpush1.msra.mxu1 %v3430_v53 }
 0x158   :  { %1149 = vmatprep.subr.mxu0 %v3437_v54  ;;  %1220 = vmatprep.subr.mxu1 %v3442_v55 }
 0x159   :  { %1150 = vmatpush1.msra.mxu0 %v3449_v0  ;;  %1221 = vmatpush1.msra.mxu1 %v3454_v1 }
 0x15a   :  { %1151 = vmatprep.subr.mxu0 %v3461_v2  ;;  %1222 = vmatprep.subr.mxu1 %v3466_v4 }
 0x15b   :  { %1152 = vmatpush1.msra.mxu0 %v3473_v6  ;;  %1223 = vmatpush1.msra.mxu1 %v3478_v7 }
 0x15c   :  { %1153 = vmatprep.subr.mxu0 %v3485_v8  ;;  %1224 = vmatprep.subr.mxu1 %v3490_v9 }
 0x15d   :  { %1154 = vmatpush1.msra.mxu0 %v3497_v10  ;;  %1225 = vmatpush1.msra.mxu1 %v3502_v11 }
 0x15e   :  { %1155 = vmatprep.subr.mxu0 %v3509_v12  ;;  %1226 = vmatprep.subr.mxu1 %v3514_v13 }
 0x15f   :  { %1156 = vmatpush1.msra.mxu0 %v3521_v14  ;;  %1227 = vmatpush1.msra.mxu1 %v3526_v15 }
 0x160   :  { %1157 = vmatprep.subr.mxu0 %v3533_v16  ;;  %1228 = vmatprep.subr.mxu1 %v3538_v17  ;;  %v2128_v17 = vld [vmem:[%s4212_s0 + $0x10] sm:$0xff] }
 0x161   :  { %1158 = vmatpush1.msra.mxu0 %v3545_v18  ;;  %1229 = vmatpush1.msra.mxu1 %v3550_v20 }
 0x162   :  { %1159 = vmatprep.subr.mxu0 %v3557_v21  ;;  %1230 = vmatprep.subr.mxu1 %v3562_v22 }
 0x163   :  { %1160 = vmatpush1.msra.mxu0 %v3569_v23  ;;  %1231 = vmatpush1.msra.mxu1 %v3574_v24 }
 0x164   :  { %1161 = vmatprep.subr.mxu0 %v3581_v25  ;;  %1232 = vmatprep.subr.mxu1 %v3586_v26  ;;  %v3605_v25 = vld [vmem:[%s4210_s1 + $0x8] sm:$0xff]  ;;  %v3610_v26 = vld [vmem:[%s4210_s1 + $0x18] sm:$0xff] }
 0x165   :  { %1162 = vmatpush1.msra.mxu0 %v3593_v27  ;;  %1233 = vmatpush1.msra.mxu1 %v3598_v28  ;;  %4503 = vst [vmem:[#allocation21_spill] sm:$0xff] %v3605_v25  ;;  %4504 = vst [vmem:[#allocation22_spill] sm:$0xff] %v3610_v26  ;;  %v3617_v27 = vld [vmem:[%s4210_s1] sm:$0xff]  ;;  %v3622_v28 = vld [vmem:[%s4210_s1 + $0x10] sm:$0xff] }
 0x166   :  { %1163 = vmatprep.subr.mxu0 %v3605_v25  ;;  %1234 = vmatprep.subr.mxu1 %v3610_v26  ;;  %4505 = vst [vmem:[#allocation23_spill] sm:$0xff] %v3617_v27  ;;  %4506 = vst [vmem:[#allocation24_spill] sm:$0xff] %v3622_v28  ;;  %v3629_v25 = vld [vmem:[%s4211_s2 + $0x1e8] sm:$0xff]  ;;  %v3634_v26 = vld [vmem:[%s4211_s2 + $0x1f8] sm:$0xff] }
 0x167   :  { %1164 = vmatpush1.msra.mxu0 %v3617_v27  ;;  %1235 = vmatpush1.msra.mxu1 %v3622_v28  ;;  %4507 = vst [vmem:[#allocation25_spill] sm:$0xff] %v3629_v25  ;;  %4508 = vst [vmem:[#allocation26_spill] sm:$0xff] %v3634_v26 }
 0x168   :  { %1363 = vmatprep.subr.mxu0 %v3629_v25  ;;  %1434 = vmatprep.subr.mxu1 %v3634_v26 }
 0x1e5   :  { %v672_v24 = vpop.f32.mrf.mxu0  ;;  %v743_v23 = vpop.f32.mrf.mxu1 }
 0x1e7   :  { %v674_v22 = vpop.f32.mrf.mxu0  ;;  %v745_v27 = vpop.f32.mrf.mxu1 }
 0x1e8   :  { %v752_v21 = vcombine.low %v672_v24, %v674_v22  ;;  %v753_v28 = vcombine.low %v743_v23, %v745_v27 }
 0x1ea   :  { %v760_v20 = vrot.slane %v752_v21, %v3152_v19  ;;  %v767_v18 = vrot.slane %v753_v28, %v3152_v19 }
 0x1ec   :  { %v768_v16 = vcombine.low %v760_v20, %v767_v18 }
 0x1ee   :  { %v770_v15 = vadd.f32 %v2128_v17, %v768_v16 }
 0x1f0   :  { %v2130_v14 = vmul.f32 -1.442695, %v770_v15  ;;  %v1009_v25 = vrot.slane %v770_v15, 2  ;;  %v1020_v13 = vrot.slane %v770_v15, 6  ;;  %v1017_v22 = vrot.slane %v770_v15, 4 }
 0x1f2   :  { %2190 = vpow2.f32 %v2130_v14  ;;  %v2131_v26 = vmul.f32 -1.442695, %v1009_v25  ;;  %v2132_v12 = vmul.f32 -1.442695, %v1020_v13 }
 0x1f4   :  { %2192 = vpow2.f32 %v2131_v26 }
 0x1f5   :  { %2194 = vpow2.f32 %v2132_v12 }
 0x1ff   :  { %v2191_v11 = vpop.eup %2190 }
 0x200   :  { %v1005_v23 = vadd.f32 1.0, %v2191_v11  ;;  %v2129_v11 = vld [vmem:[%s4212_s0 + $0x28] sm:$0xff] }
 0x201   :  { %v2193_v24 = vpop.eup %2192 }
 0x202   :  { %2196 = vrcp.f32 %v1005_v23  ;;  %v1014_v21 = vadd.f32 1.0, %v2193_v24  ;;  %v2195_v12 = vpop.eup %2194 }
 0x203   :  { %2198 = vtanh.f32 %v1017_v22  ;;  %v1025_v10 = vadd.f32 1.0, %v2195_v12 }
 0x204   :  { %2200 = vrcp.f32 %v1014_v21 }
 0x206   :  { %v903_v27 = vpop.f32.mrf.mxu0  ;;  %v974_v28 = vpop.f32.mrf.mxu1 }
 0x208   :  { %v905_v18 = vpop.f32.mrf.mxu0  ;;  %v976_v16 = vpop.f32.mrf.mxu1 }
 0x209   :  { %v983_v17 = vcombine.low %v903_v27, %v905_v18  ;;  %v984_v20 = vcombine.low %v974_v28, %v976_v16 }
 0x20b   :  { %v991_v14 = vrot.slane %v983_v17, %v3152_v19  ;;  %v998_v25 = vrot.slane %v984_v20, %v3152_v19 }
 0x20d   :  { %v999_v13 = vcombine.low %v991_v14, %v998_v25 }
 0x20f   :  { %v2197_v15 = vpop.eup %2196  ;;  %v1001_v26 = vadd.f32 %v2129_v11, %v999_v13 }
 0x210   :  { %v2199_v22 = vpop.eup %2198 }
 0x211   :  { %v2201_v23 = vpop.eup %2200  ;;  %v2133_v24 = vmul.f32 -1.442695, %v1001_v26  ;;  %v1040_v21 = vrot.slane %v1001_v26, 2  ;;  %v1029_v28 = vmul.f32 %v2199_v22, %v2197_v15  ;;  %v1051_v17 = vrot.slane %v1001_v26, 6  ;;  %v3660_v22 = vld [vmem:[%s4211_s2 + $0x1f0] sm:$0xff] }
 0x212   :  { %v1028_v27 = vmul.f32 %v2201_v23, %v3164_v5  ;;  %v1048_v25 = vrot.slane %v1001_v26, 4  ;;  %v3665_v26 = vld [vmem:[%s4211_s2 + $0x1c8] sm:$0xff]  ;;  %v3670_v23 = vld [vmem:[%s4211_s2 + $0x1d8] sm:$0xff] }
 0x213   :  { %2202 = vpow2.f32 %v2133_v24  ;;  %v2134_v18 = vmul.f32 -1.442695, %v1040_v21  ;;  %v2135_v20 = vmul.f32 -1.442695, %v1051_v17  ;;  %v3683_v24 = vld [vmem:[%s4211_s2 + $0x1d0] sm:$0xff]  ;;  %v3690_v21 = vld [vmem:[%s4211_s2 + $0x1a8] sm:$0xff] }
 0x214   :  { %v3649_v16 = vadd.f32 %v1029_v28, %v1028_v27  ;;  %4509 = vst [vmem:[#allocation27_spill] sm:$0xff] %v3683_v24  ;;  %4510 = vst [vmem:[#allocation28_spill] sm:$0xff] %v3690_v21  ;;  %v3695_v27 = vld [vmem:[%s4211_s2 + $0x1b8] sm:$0xff]  ;;  %v3702_v28 = vld [vmem:[%s4211_s2 + $0x1a0] sm:$0xff] }
 0x215   :  { %2204 = vpow2.f32 %v2134_v18  ;;  %4511 = vst [vmem:[#allocation29_spill] sm:$0xff] %v3695_v27  ;;  %4512 = vst [vmem:[#allocation30_spill] sm:$0xff] %v3702_v28  ;;  %v3707_v18 = vld [vmem:[%s4211_s2 + $0x1b0] sm:$0xff]  ;;  %v3714_v17 = vld [vmem:[%s4211_s2 + $0x188] sm:$0xff] }
 0x216   :  { %2206 = vrcp.f32 %v1025_v10  ;;  %v3655_v10 = vld [vmem:[%s4211_s2 + $0x1e0] sm:$0xff]  ;;  %4513 = vst [vmem:[#allocation31_spill] sm:$0xff] %v3707_v18  ;;  %4514 = vst [vmem:[#allocation32_spill] sm:$0xff] %v3714_v17 }
 0x217   :  { %2208 = vtanh.f32 %v3649_v16 }
 0x218   :  { %2210 = vpow2.f32 %v2135_v20  ;;  %v3719_v20 = vld [vmem:[%s4211_s2 + $0x198] sm:$0xff] }
 0x219   :  { %4515 = vst [vmem:[#allocation33_spill] sm:$0xff] %v3719_v20 }
 0x220   :  { %v2203_v14 = vpop.eup %2202 }
 0x221   :  { %v1036_v11 = vadd.f32 1.0, %v2203_v14  ;;  %v3726_v14 = vld [vmem:[%s4211_s2 + $0x180] sm:$0xff] }
 0x222   :  { %v2205_v13 = vpop.eup %2204  ;;  %4516 = vst [vmem:[#allocation34_spill] sm:$0xff] %v3726_v14 }
 0x223   :  { %v2207_v19 = vpop.eup %2206  ;;  %2212 = vrcp.f32 %v1036_v11  ;;  %v1045_v12 = vadd.f32 1.0, %v2205_v13  ;;  %v3738_v11 = vld [vmem:[%s4211_s2 + $0x168] sm:$0xff]  ;;  %v3743_v13 = vld [vmem:[%s4211_s2 + $0x178] sm:$0xff] }
 0x224   :  { %v2209_v5 = vpop.eup %2208  ;;  %2214 = vtanh.f32 %v1048_v25  ;;  %v3731_v25 = vld [vmem:[%s4211_s2 + $0x190] sm:$0xff]  ;;  %4518 = vst [vmem:[#allocation36_spill] sm:$0xff] %v3738_v11  ;;  %4519 = vst [vmem:[#allocation37_spill] sm:$0xff] %v3743_v13 }
 0x225   :  { %2216 = vrcp.f32 %v1045_v12  ;;  %v1032_v15 = vmul.f32 %v2209_v5, %v2207_v19  ;;  %v3678_v19 = vld [vmem:[%s4211_s2 + $0x1c0] sm:$0xff]  ;;  %4517 = vst [vmem:[#allocation35_spill] sm:$0xff] %v3731_v25  ;;  %v3755_v5 = vld [vmem:[%s4211_s2 + $0x170] sm:$0xff] }
 0x226   :  { %v3750_v12 = vld [vmem:[%s4211_s2 + $0x160] sm:$0xff]  ;;  %4521 = vst [vmem:[#allocation39_spill] sm:$0xff] %v3755_v5 }
 0x227   :  { %2136 = vst [vmem:[%s4213_s3 + $0x4] sm:$0x3] %v1032_v15  ;;  %1198 = vmatmul.mubr.f32.vlgmr.msra.gmra.mxu0 %v1032_v15  ;;  %1269 = vmatmul.mubr.f32.vlgmr.msra.gmra.mxu1 %v1032_v15  ;;  %4520 = vst [vmem:[#allocation38_spill] sm:$0xff] %v3750_v12  ;;  %v3762_v15 = vld [vmem:[%s4211_s2 + $0x148] sm:$0xff] }
 0x228   :  { %1364 = vmatpush1.msra.mxu0 %v3655_v10  ;;  %1435 = vmatpush1.msra.mxu1 %v3660_v22  ;;  %4522 = vst [vmem:[#allocation40_spill] sm:$0xff] %v3762_v15 }
 0x229   :  { %1365 = vmatprep.subr.mxu0 %v3665_v26  ;;  %1436 = vmatprep.subr.mxu1 %v3670_v23 }
 0x22a   :  { %1366 = vmatpush1.msra.mxu0 %v3678_v19  ;;  %1437 = vmatpush1.msra.mxu1 %v3683_v24 }
 0x22b   :  { %1367 = vmatprep.subr.mxu0 %v3690_v21  ;;  %1438 = vmatprep.subr.mxu1 %v3695_v27 }
 0x22c   :  { %1368 = vmatpush1.msra.mxu0 %v3702_v28  ;;  %1439 = vmatpush1.msra.mxu1 %v3707_v18 }
 0x22d   :  { %1369 = vmatprep.subr.mxu0 %v3714_v17  ;;  %1440 = vmatprep.subr.mxu1 %v3719_v20  ;;  %v3767_v20 = vld [vmem:[%s4211_s2 + $0x158] sm:$0xff]  ;;  %v2211_v17 = vpop.eup %2210 }
 0x22e   :  { %1370 = vmatpush1.msra.mxu0 %v3726_v14  ;;  %1441 = vmatpush1.msra.mxu1 %v3731_v25  ;;  %4523 = vst [vmem:[#allocation41_spill] sm:$0xff] %v3767_v20  ;;  %v3774_v14 = vld [vmem:[%s4211_s2 + $0x140] sm:$0xff]  ;;  %v3779_v25 = vld [vmem:[%s4211_s2 + $0x150] sm:$0xff]  ;;  %v1056_v21 = vadd.f32 1.0, %v2211_v17 }
 0x22f   :  { %1371 = vmatprep.subr.mxu0 %v3738_v11  ;;  %1442 = vmatprep.subr.mxu1 %v3743_v13  ;;  %4524 = vst [vmem:[#allocation42_spill] sm:$0xff] %v3774_v14  ;;  %4525 = vst [vmem:[#allocation43_spill] sm:$0xff] %v3779_v25  ;;  %v3786_v11 = vld [vmem:[%s4211_s2 + $0x128] sm:$0xff]  ;;  %v3791_v13 = vld [vmem:[%s4211_s2 + $0x138] sm:$0xff] }
 0x230   :  { %v2213_v18 = vpop.eup %2212  ;;  %1372 = vmatpush1.msra.mxu0 %v3750_v12  ;;  %1443 = vmatpush1.msra.mxu1 %v3755_v5  ;;  %4526 = vst [vmem:[#allocation44_spill] sm:$0xff] %v3786_v11  ;;  %4527 = vst [vmem:[#allocation45_spill] sm:$0xff] %v3791_v13  ;;  %v3798_v12 = vld [vmem:[%s4211_s2 + $0x120] sm:$0xff]  ;;  %v3803_v5 = vld [vmem:[%s4211_s2 + $0x130] sm:$0xff]  ;;  %2218 = vrcp.f32 %v1056_v21 }
 0x231   :  { %v2215_v28 = vpop.eup %2214  ;;  %1373 = vmatprep.subr.mxu0 %v3762_v15  ;;  %1444 = vmatprep.subr.mxu1 %v3767_v20  ;;  %v3810_v20 = vld [vmem:[%s4211_s2 + $0x108] sm:$0xff]  ;;  %v3815_v15 = vld [vmem:[%s4211_s2 + $0x118] sm:$0xff]  ;;  %v3822_v17 = vld [vmem:[%s4211_s2 + $0x100] sm:$0xff] }
 0x232   :  { %v2217_v27 = vpop.eup %2216  ;;  %1374 = vmatpush1.msra.mxu0 %v3774_v14  ;;  %1445 = vmatpush1.msra.mxu1 %v3779_v25  ;;  %4528 = vst [vmem:[#allocation46_spill] sm:$0xff] %v3815_v15  ;;  %v3827_v25 = vld [vmem:[%s4211_s2 + $0x110] sm:$0xff]  ;;  %v1060_v24 = vmul.f32 %v2215_v28, %v2213_v18  ;;  %v3861_v18 = vld [vmem:[%s4211_s2 + $0xc8] sm:$0xff] }
 0x233   :  { %1375 = vmatprep.subr.mxu0 %v3786_v11  ;;  %1446 = vmatprep.subr.mxu1 %v3791_v13  ;;  %4529 = vst [vmem:[#allocation47_spill] sm:$0xff] %v3827_v25  ;;  %v1059_v14 = vmul.f32 %v2217_v27, %v3198_v52  ;;  %v3835_v13 = vld [vmem:[%s4211_s2 + $0xe8] sm:$0xff]  ;;  %v3840_v11 = vld [vmem:[%s4211_s2 + $0xf8] sm:$0xff]  ;;  %v3847_v52 = vld [vmem:[%s4211_s2 + $0xe0] sm:$0xff] }
 0x234   :  { %1376 = vmatpush1.msra.mxu0 %v3798_v12  ;;  %1447 = vmatpush1.msra.mxu1 %v3803_v5  ;;  %4530 = vst [vmem:[#allocation48_spill] sm:$0xff] %v3835_v13  ;;  %4531 = vst [vmem:[#allocation49_spill] sm:$0xff] %v3840_v11  ;;  %v3852_v27 = vld [vmem:[%s4211_s2 + $0xf0] sm:$0xff] }
 0x235   :  { %1377 = vmatprep.subr.mxu0 %v3810_v20  ;;  %1448 = vmatprep.subr.mxu1 %v3815_v15  ;;  %4532 = vst [vmem:[#allocation50_spill] sm:$0xff] %v3847_v52  ;;  %4533 = vst [vmem:[#allocation51_spill] sm:$0xff] %v3852_v27  ;;  %v3854_v28 = vadd.f32 %v1060_v24, %v1059_v14  ;;  %v3866_v15 = vld [vmem:[%s4211_s2 + $0xd8] sm:$0xff]  ;;  %v3873_v24 = vld [vmem:[%s4211_s2 + $0xc0] sm:$0xff] }
 0x236   :  { %1378 = vmatpush1.msra.mxu0 %v3822_v17  ;;  %1449 = vmatpush1.msra.mxu1 %v3827_v25  ;;  %4534 = vst [vmem:[#allocation52_spill] sm:$0xff] %v3861_v18  ;;  %4535 = vst [vmem:[#allocation53_spill] sm:$0xff] %v3866_v15  ;;  %v3878_v21 = vld [vmem:[%s4211_s2 + $0xd0] sm:$0xff]  ;;  %v3886_v14 = vld [vmem:[%s4211_s2 + $0xa8] sm:$0xff] }
 0x237   :  { %1379 = vmatprep.subr.mxu0 %v3835_v13  ;;  %1450 = vmatprep.subr.mxu1 %v3840_v11  ;;  %4536 = vst [vmem:[#allocation54_spill] sm:$0xff] %v3873_v24  ;;  %4537 = vst [vmem:[#allocation55_spill] sm:$0xff] %v3878_v21  ;;  %2220 = vtanh.f32 %v3854_v28  ;;  %v3891_v11 = vld [vmem:[%s4211_s2 + $0xb8] sm:$0xff]  ;;  %v4025_v25 = vld [vmem:[%s4211_s2 + $0x10] sm:$0xff] }
 0x238   :  { %1380 = vmatpush1.msra.mxu0 %v3847_v52  ;;  %1451 = vmatpush1.msra.mxu1 %v3852_v27  ;;  %4538 = vst [vmem:[#allocation56_spill] sm:$0xff] %v3886_v14  ;;  %4539 = vst [vmem:[#allocation57_spill] sm:$0xff] %v3891_v11  ;;  %v3898_v52 = vld [vmem:[%s4211_s2 + $0xa0] sm:$0xff]  ;;  %v3903_v27 = vld [vmem:[%s4211_s2 + $0xb0] sm:$0xff] }
 0x239   :  { %1381 = vmatprep.subr.mxu0 %v3861_v18  ;;  %1452 = vmatprep.subr.mxu1 %v3866_v15  ;;  %4540 = vst [vmem:[#allocation58_spill] sm:$0xff] %v3898_v52  ;;  %4541 = vst [vmem:[#allocation59_spill] sm:$0xff] %v3903_v27  ;;  %v3910_v18 = vld [vmem:[%s4211_s2 + $0x88] sm:$0xff]  ;;  %v3915_v15 = vld [vmem:[%s4211_s2 + $0x98] sm:$0xff] }
 0x23a   :  { %1382 = vmatpush1.msra.mxu0 %v3873_v24  ;;  %1453 = vmatpush1.msra.mxu1 %v3878_v21  ;;  %4542 = vst [vmem:[#allocation60_spill] sm:$0xff] %v3910_v18  ;;  %4543 = vst [vmem:[#allocation61_spill] sm:$0xff] %v3915_v15  ;;  %v3922_v24 = vld [vmem:[%s4211_s2 + $0x80] sm:$0xff]  ;;  %v3927_v21 = vld [vmem:[%s4211_s2 + $0x90] sm:$0xff] }
 0x23b   :  { %1383 = vmatprep.subr.mxu0 %v3886_v14  ;;  %1454 = vmatprep.subr.mxu1 %v3891_v11  ;;  %4544 = vst [vmem:[#allocation62_spill] sm:$0xff] %v3922_v24  ;;  %4545 = vst [vmem:[#allocation63_spill] sm:$0xff] %v3927_v21  ;;  %v3934_v14 = vld [vmem:[%s4211_s2 + $0x68] sm:$0xff]  ;;  %v3939_v11 = vld [vmem:[%s4211_s2 + $0x78] sm:$0xff] }
 0x23c   :  { %1384 = vmatpush1.msra.mxu0 %v3898_v52  ;;  %1455 = vmatpush1.msra.mxu1 %v3903_v27  ;;  %4546 = vst [vmem:[#allocation64_spill] sm:$0xff] %v3934_v14  ;;  %4547 = vst [vmem:[#allocation65_spill] sm:$0xff] %v3939_v11  ;;  %v3946_v52 = vld [vmem:[%s4211_s2 + $0x60] sm:$0xff]  ;;  %v3951_v27 = vld [vmem:[%s4211_s2 + $0x70] sm:$0xff] }
 0x23d   :  { %1385 = vmatprep.subr.mxu0 %v3910_v18  ;;  %1456 = vmatprep.subr.mxu1 %v3915_v15  ;;  %4548 = vst [vmem:[#allocation66_spill] sm:$0xff] %v3946_v52  ;;  %4549 = vst [vmem:[#allocation67_spill] sm:$0xff] %v3951_v27  ;;  %v3958_v18 = vld [vmem:[%s4211_s2 + $0x48] sm:$0xff]  ;;  %v3963_v15 = vld [vmem:[%s4211_s2 + $0x58] sm:$0xff]  ;;  %v2219_v13 = vpop.eup %2218 }
 0x23e   :  { %1386 = vmatpush1.msra.mxu0 %v3922_v24  ;;  %1457 = vmatpush1.msra.mxu1 %v3927_v21  ;;  %4550 = vst [vmem:[#allocation68_spill] sm:$0xff] %v3958_v18  ;;  %4551 = vst [vmem:[#allocation69_spill] sm:$0xff] %v3963_v15  ;;  %v3970_v24 = vld [vmem:[%s4211_s2 + $0x40] sm:$0xff]  ;;  %v3975_v21 = vld [vmem:[%s4211_s2 + $0x50] sm:$0xff] }
 0x23f   :  { %1387 = vmatprep.subr.mxu0 %v3934_v14  ;;  %1458 = vmatprep.subr.mxu1 %v3939_v11  ;;  %4552 = vst [vmem:[#allocation70_spill] sm:$0xff] %v3970_v24  ;;  %4553 = vst [vmem:[#allocation71_spill] sm:$0xff] %v3975_v21  ;;  %v3982_v14 = vld [vmem:[%s4211_s2 + $0x28] sm:$0xff]  ;;  %v3987_v11 = vld [vmem:[%s4211_s2 + $0x38] sm:$0xff] }
 0x240   :  { %1388 = vmatpush1.msra.mxu0 %v3946_v52  ;;  %1459 = vmatpush1.msra.mxu1 %v3951_v27  ;;  %4554 = vst [vmem:[#allocation72_spill] sm:$0xff] %v3987_v11  ;;  %v3994_v52 = vld [vmem:[%s4211_s2 + $0x20] sm:$0xff]  ;;  %v3999_v27 = vld [vmem:[%s4211_s2 + $0x30] sm:$0xff] }
 0x241   :  { %1389 = vmatprep.subr.mxu0 %v3958_v18  ;;  %1460 = vmatprep.subr.mxu1 %v3963_v15  ;;  %v4006_v18 = vld [vmem:[%s4211_s2 + $0x8] sm:$0xff]  ;;  %v4011_v15 = vld [vmem:[%s4211_s2 + $0x18] sm:$0xff] }
 0x242   :  { %1390 = vmatpush1.msra.mxu0 %v3970_v24  ;;  %1461 = vmatpush1.msra.mxu1 %v3975_v21  ;;  %v4018_v24 = vld [vmem:[%s4211_s2] sm:$0xff] }
 0x243   :  { %1391 = vmatprep.subr.mxu0 %v3982_v14  ;;  %1462 = vmatprep.subr.mxu1 %v3987_v11 }
 0x244   :  { %v2221_v21 = vpop.eup %2220  ;;  %1392 = vmatpush1.msra.mxu0 %v3994_v52  ;;  %1463 = vmatpush1.msra.mxu1 %v3999_v27 }
 0x245   :  { %1393 = vmatprep.subr.mxu0 %v4006_v18  ;;  %1464 = vmatprep.subr.mxu1 %v4011_v15  ;;  %v1063_v11 = vmul.f32 %v2221_v21, %v2219_v13 }
 0x246   :  { %1394 = vmatpush1.msra.mxu0 %v4018_v24  ;;  %1427 = vmatprep.mubr.f32.mxu0 %v4366_v60 }
 0x247   :  { %1465 = vmatpush1.msra.mxu1 %v4025_v25  ;;  %1498 = vmatprep.mubr.f32.mxu1 %v4366_v60  ;;  %2137 = vst [vmem:[%s4213_s3 + $0xa] sm:$0x3] %v1063_v11 }
 0x248   :  { %1428 = vmatmul.mubr.f32.vlgmr.msra.gmra.mxu0 %v1063_v11  ;;  %1499 = vmatmul.mubr.f32.vlgmr.msra.gmra.mxu1 %v1063_v11 }
 0x249   :  { %1657 = vmatprep.subr.mxu0 %v3245_v3  ;;  %1728 = vmatprep.subr.mxu1 %v3250_v56  ;;  %v4555_v3 = vld [vmem:[#allocation3_spill] sm:$0xff]  ;;  %v4556_v56 = vld [vmem:[#allocation4_spill] sm:$0xff] }
 0x24a   :  { %1658 = vmatpush1.msra.mxu0 %v3257_v57  ;;  %1729 = vmatpush1.msra.mxu1 %v3262_v58  ;;  %v4557_v57 = vld [vmem:[#allocation5_spill] sm:$0xff]  ;;  %v4558_v58 = vld [vmem:[#allocation6_spill] sm:$0xff] }
 0x24b   :  { %1659 = vmatprep.subr.mxu0 %v3269_v59  ;;  %1730 = vmatprep.subr.mxu1 %v3274_v61  ;;  %v4559_v59 = vld [vmem:[#allocation7_spill] sm:$0xff]  ;;  %v4560_v61 = vld [vmem:[#allocation8_spill] sm:$0xff] }
 0x24c   :  { %1660 = vmatpush1.msra.mxu0 %v3281_v62  ;;  %1731 = vmatpush1.msra.mxu1 %v3286_v63  ;;  %v4561_v62 = vld [vmem:[#allocation9_spill] sm:$0xff]  ;;  %v4562_v63 = vld [vmem:[#allocation10_spill] sm:$0xff] }
 0x24d   :  { %1661 = vmatprep.subr.mxu0 %v3293_v29  ;;  %1732 = vmatprep.subr.mxu1 %v3298_v30  ;;  %v4563_v29 = vld [vmem:[#allocation11_spill] sm:$0xff]  ;;  %v4564_v30 = vld [vmem:[#allocation12_spill] sm:$0xff] }
 0x24e   :  { %1662 = vmatpush1.msra.mxu0 %v3305_v31  ;;  %1733 = vmatpush1.msra.mxu1 %v3310_v32  ;;  %v4565_v31 = vld [vmem:[#allocation13_spill] sm:$0xff]  ;;  %v4566_v32 = vld [vmem:[#allocation14_spill] sm:$0xff] }
 0x24f   :  { %1663 = vmatprep.subr.mxu0 %v3317_v33  ;;  %1734 = vmatprep.subr.mxu1 %v3322_v34  ;;  %v4567_v33 = vld [vmem:[#allocation15_spill] sm:$0xff]  ;;  %v4568_v34 = vld [vmem:[#allocation16_spill] sm:$0xff] }
 0x250   :  { %1664 = vmatpush1.msra.mxu0 %v3329_v35  ;;  %1735 = vmatpush1.msra.mxu1 %v3334_v36  ;;  %v4569_v35 = vld [vmem:[#allocation17_spill] sm:$0xff]  ;;  %v4570_v36 = vld [vmem:[#allocation18_spill] sm:$0xff] }
 0x251   :  { %1665 = vmatprep.subr.mxu0 %v3341_v37  ;;  %1736 = vmatprep.subr.mxu1 %v3346_v38  ;;  %v4571_v37 = vld [vmem:[#allocation19_spill] sm:$0xff]  ;;  %v4572_v38 = vld [vmem:[#allocation20_spill] sm:$0xff] }
 0x252   :  { %1666 = vmatpush1.msra.mxu0 %v3353_v39  ;;  %1737 = vmatpush1.msra.mxu1 %v3358_v40  ;;  %v4573_v39 = vld [vmem:[#allocation21_spill] sm:$0xff]  ;;  %v4574_v40 = vld [vmem:[#allocation22_spill] sm:$0xff] }
 0x253   :  { %1667 = vmatprep.subr.mxu0 %v3365_v41  ;;  %1738 = vmatprep.subr.mxu1 %v3370_v42  ;;  %v4575_v41 = vld [vmem:[#allocation23_spill] sm:$0xff]  ;;  %v4576_v42 = vld [vmem:[#allocation24_spill] sm:$0xff] }
 0x254   :  { %1668 = vmatpush1.msra.mxu0 %v3377_v43  ;;  %1739 = vmatpush1.msra.mxu1 %v3382_v44  ;;  %v4577_v43 = vld [vmem:[#allocation25_spill] sm:$0xff]  ;;  %v4578_v44 = vld [vmem:[#allocation26_spill] sm:$0xff] }
 0x255   :  { %1669 = vmatprep.subr.mxu0 %v3389_v45  ;;  %1740 = vmatprep.subr.mxu1 %v3394_v46 }
 0x256   :  { %1670 = vmatpush1.msra.mxu0 %v3401_v47  ;;  %1741 = vmatpush1.msra.mxu1 %v3406_v48 }
 0x257   :  { %1671 = vmatprep.subr.mxu0 %v3413_v49  ;;  %1742 = vmatprep.subr.mxu1 %v3418_v50 }
 0x258   :  { %1672 = vmatpush1.msra.mxu0 %v3425_v51  ;;  %1743 = vmatpush1.msra.mxu1 %v3430_v53  ;;  %v4579_v51 = vld [vmem:[#allocation2_spill] sm:$0xff] }
 0x259   :  { %1673 = vmatprep.subr.mxu0 %v3437_v54  ;;  %1744 = vmatprep.subr.mxu1 %v3442_v55  ;;  %v2138_v55 = vld [vmem:[%s4212_s0 + $0x20] sm:$0xff] }
 0x25a   :  { %1674 = vmatpush1.msra.mxu0 %v3449_v0  ;;  %1745 = vmatpush1.msra.mxu1 %v3454_v1 }
 0x25b   :  { %1675 = vmatprep.subr.mxu0 %v3461_v2  ;;  %1746 = vmatprep.subr.mxu1 %v3466_v4 }
 0x25c   :  { %1676 = vmatpush1.msra.mxu0 %v3473_v6  ;;  %1747 = vmatpush1.msra.mxu1 %v3478_v7 }
 0x25d   :  { %1677 = vmatprep.subr.mxu0 %v3485_v8  ;;  %1748 = vmatprep.subr.mxu1 %v3490_v9 }
 0x25e   :  { %1678 = vmatpush1.msra.mxu0 %v4555_v3  ;;  %1749 = vmatpush1.msra.mxu1 %v4556_v56 }
 0x25f   :  { %1679 = vmatprep.subr.mxu0 %v4557_v57  ;;  %1750 = vmatprep.subr.mxu1 %v4558_v58 }
 0x260   :  { %1680 = vmatpush1.msra.mxu0 %v4559_v59  ;;  %1751 = vmatpush1.msra.mxu1 %v4560_v61 }
 0x261   :  { %1681 = vmatprep.subr.mxu0 %v4561_v62  ;;  %1752 = vmatprep.subr.mxu1 %v4562_v63 }
 0x262   :  { %1682 = vmatpush1.msra.mxu0 %v4563_v29  ;;  %1753 = vmatpush1.msra.mxu1 %v4564_v30  ;;  %v2139_v30 = vld [vmem:[%s4212_s0 + $0x18] sm:$0xff] }
 0x263   :  { %1683 = vmatprep.subr.mxu0 %v4565_v31  ;;  %1754 = vmatprep.subr.mxu1 %v4566_v32 }
 0x264   :  { %1684 = vmatpush1.msra.mxu0 %v4567_v33  ;;  %1755 = vmatpush1.msra.mxu1 %v4568_v34 }
 0x265   :  { %1685 = vmatprep.subr.mxu0 %v4569_v35  ;;  %1756 = vmatprep.subr.mxu1 %v4570_v36 }
 0x266   :  { %1686 = vmatpush1.msra.mxu0 %v4571_v37  ;;  %1757 = vmatpush1.msra.mxu1 %v4572_v38 }
 0x267   :  { %1687 = vmatprep.subr.mxu0 %v4573_v39  ;;  %1758 = vmatprep.subr.mxu1 %v4574_v40 }
 0x268   :  { %1688 = vmatpush1.msra.mxu0 %v4575_v41  ;;  %1721 = vmatprep.mubr.f32.mxu0 %v4366_v60 }
 0x269   :  { %1759 = vmatpush1.msra.mxu1 %v4576_v42  ;;  %1792 = vmatprep.mubr.f32.mxu1 %v4366_v60 }
 0x26a   :  { %1887 = vmatprep.subr.mxu0 %v4577_v43  ;;  %1958 = vmatprep.subr.mxu1 %v4578_v44 }
 0x2e7   :  { %v1199_v45 = vpop.f32.mrf.mxu0  ;;  %v1270_v46 = vpop.f32.mrf.mxu1 }
 0x2e9   :  { %v1201_v47 = vpop.f32.mrf.mxu0  ;;  %v1272_v48 = vpop.f32.mrf.mxu1 }
 0x2ea   :  { %v1279_v49 = vcombine.low %v1199_v45, %v1201_v47  ;;  %v1280_v50 = vcombine.low %v1270_v46, %v1272_v48 }
 0x2ec   :  { %v1287_v53 = vrot.slane %v1279_v49, %v4579_v51  ;;  %v1294_v54 = vrot.slane %v1280_v50, %v4579_v51 }
 0x2ee   :  { %v1295_v0 = vcombine.low %v1287_v53, %v1294_v54 }
 0x2f0   :  { %v1297_v1 = vadd.f32 %v2138_v55, %v1295_v0  ;;  %v4580_v55 = vld [vmem:[#allocation27_spill] sm:$0xff]  ;;  %v4581_v0 = vld [vmem:[#allocation28_spill] sm:$0xff] }
 0x2f2   :  { %v2140_v2 = vmul.f32 -1.442695, %v1297_v1  ;;  %v1535_v4 = vrot.slane %v1297_v1, 2  ;;  %v1546_v7 = vrot.slane %v1297_v1, 6  ;;  %v1543_v11 = vrot.slane %v1297_v1, 4  ;;  %v4582_v1 = vld [vmem:[#allocation29_spill] sm:$0xff] }
 0x2f4   :  { %2222 = vpow2.f32 %v2140_v2  ;;  %v2141_v6 = vmul.f32 -1.442695, %v1535_v4  ;;  %v2142_v8 = vmul.f32 -1.442695, %v1546_v7  ;;  %v4583_v2 = vld [vmem:[#allocation30_spill] sm:$0xff]  ;;  %v4584_v4 = vld [vmem:[#allocation31_spill] sm:$0xff] }
 0x2f5   :  { %v4590_v7 = vld [vmem:[#allocation37_spill] sm:$0xff] }
 0x2f6   :  { %2224 = vpow2.f32 %v2141_v6  ;;  %v4585_v6 = vld [vmem:[#allocation32_spill] sm:$0xff] }
 0x2f7   :  { %2226 = vpow2.f32 %v2142_v8 }
 0x301   :  { %v2223_v9 = vpop.eup %2222 }
 0x302   :  { %v1531_v13 = vadd.f32 1.0, %v2223_v9  ;;  %v4591_v9 = vld [vmem:[#allocation38_spill] sm:$0xff] }
 0x303   :  { %v2225_v21 = vpop.eup %2224 }
 0x304   :  { %2228 = vrcp.f32 %v1531_v13  ;;  %v1540_v3 = vadd.f32 1.0, %v2225_v21  ;;  %v2227_v32 = vpop.eup %2226  ;;  %v4593_v21 = vld [vmem:[#allocation40_spill] sm:$0xff] }
 0x305   :  { %2230 = vtanh.f32 %v1543_v11  ;;  %v1551_v39 = vadd.f32 1.0, %v2227_v32  ;;  %v4592_v11 = vld [vmem:[#allocation39_spill] sm:$0xff] }
 0x306   :  { %2232 = vrcp.f32 %v1540_v3  ;;  %v4594_v3 = vld [vmem:[#allocation41_spill] sm:$0xff]  ;;  %v4600_v32 = vld [vmem:[#allocation47_spill] sm:$0xff] }
 0x308   :  { %v1429_v56 = vpop.f32.mrf.mxu0  ;;  %v1500_v57 = vpop.f32.mrf.mxu1 }
 0x30a   :  { %v1431_v58 = vpop.f32.mrf.mxu0  ;;  %v1502_v59 = vpop.f32.mrf.mxu1 }
 0x30b   :  { %v1509_v61 = vcombine.low %v1429_v56, %v1431_v58  ;;  %v1510_v62 = vcombine.low %v1500_v57, %v1502_v59  ;;  %v4595_v58 = vld [vmem:[#allocation42_spill] sm:$0xff]  ;;  %v4596_v59 = vld [vmem:[#allocation43_spill] sm:$0xff] }
 0x30d   :  { %v1517_v63 = vrot.slane %v1509_v61, %v4579_v51  ;;  %v1524_v29 = vrot.slane %v1510_v62, %v4579_v51  ;;  %v4597_v61 = vld [vmem:[#allocation44_spill] sm:$0xff]  ;;  %v4598_v62 = vld [vmem:[#allocation45_spill] sm:$0xff] }
 0x30f   :  { %v1525_v31 = vcombine.low %v1517_v63, %v1524_v29 }
 0x311   :  { %v2229_v33 = vpop.eup %2228  ;;  %v1527_v34 = vadd.f32 %v2139_v30, %v1525_v31  ;;  %v4599_v30 = vld [vmem:[#allocation46_spill] sm:$0xff] }
 0x312   :  { %v2231_v35 = vpop.eup %2230 }
 0x313   :  { %v2233_v36 = vpop.eup %2232  ;;  %v2143_v37 = vmul.f32 -1.442695, %v1527_v34  ;;  %v1566_v38 = vrot.slane %v1527_v34, 2  ;;  %v1555_v41 = vmul.f32 %v2231_v35, %v2229_v33  ;;  %v1577_v44 = vrot.slane %v1527_v34, 6  ;;  %v4601_v33 = vld [vmem:[#allocation48_spill] sm:$0xff]  ;;  %v4607_v35 = vld [vmem:[#allocation54_spill] sm:$0xff] }
 0x314   :  { %v1554_v40 = vmul.f32 %v2233_v36, %v3649_v16  ;;  %v1574_v47 = vrot.slane %v1527_v34, 4  ;;  %v4602_v34 = vld [vmem:[#allocation49_spill] sm:$0xff]  ;;  %v4608_v36 = vld [vmem:[#allocation55_spill] sm:$0xff] }
 0x315   :  { %2234 = vpow2.f32 %v2143_v37  ;;  %v2144_v42 = vmul.f32 -1.442695, %v1566_v38  ;;  %v2145_v45 = vmul.f32 -1.442695, %v1577_v44  ;;  %v4610_v37 = vld [vmem:[#allocation57_spill] sm:$0xff]  ;;  %v4611_v38 = vld [vmem:[#allocation58_spill] sm:$0xff] }
 0x316   :  { %v4115_v43 = vadd.f32 %v1555_v41, %v1554_v40  ;;  %v4613_v40 = vld [vmem:[#allocation60_spill] sm:$0xff]  ;;  %v4614_v41 = vld [vmem:[#allocation61_spill] sm:$0xff]  ;;  %v4616_v44 = vld [vmem:[#allocation63_spill] sm:$0xff] }
 0x317   :  { %2236 = vpow2.f32 %v2144_v42  ;;  %v4615_v42 = vld [vmem:[#allocation62_spill] sm:$0xff] }
 0x318   :  { %2238 = vrcp.f32 %v1551_v39  ;;  %v4612_v39 = vld [vmem:[#allocation59_spill] sm:$0xff] }
 0x319   :  { %2240 = vtanh.f32 %v4115_v43 }
 0x31a   :  { %2242 = vpow2.f32 %v2145_v45  ;;  %v4617_v45 = vld [vmem:[#allocation64_spill] sm:$0xff] }
 0x322   :  { %v2235_v46 = vpop.eup %2234 }
 0x323   :  { %v1562_v48 = vadd.f32 1.0, %v2235_v46  ;;  %v4618_v46 = vld [vmem:[#allocation65_spill] sm:$0xff] }
 0x324   :  { %v2237_v49 = vpop.eup %2236 }
 0x325   :  { %v2239_v50 = vpop.eup %2238  ;;  %2244 = vrcp.f32 %v1562_v48  ;;  %v1571_v53 = vadd.f32 1.0, %v2237_v49  ;;  %v4620_v48 = vld [vmem:[#allocation67_spill] sm:$0xff]  ;;  %v4621_v49 = vld [vmem:[#allocation68_spill] sm:$0xff] }
 0x326   :  { %v2241_v16 = vpop.eup %2240  ;;  %2246 = vtanh.f32 %v1574_v47  ;;  %v4619_v47 = vld [vmem:[#allocation66_spill] sm:$0xff] }
 0x327   :  { %2248 = vrcp.f32 %v1571_v53  ;;  %v1558_v54 = vmul.f32 %v2241_v16, %v2239_v50  ;;  %v4622_v50 = vld [vmem:[#allocation69_spill] sm:$0xff]  ;;  %v4623_v53 = vld [vmem:[#allocation70_spill] sm:$0xff]  ;;  %v4624_v16 = vld [vmem:[#allocation71_spill] sm:$0xff] }
 0x329   :  { %2146 = vst [vmem:[%s4213_s3 + $0x8] sm:$0x3] %v1558_v54  ;;  %1722 = vmatmul.mubr.f32.vlgmr.msra.gmra.mxu0 %v1558_v54  ;;  %1793 = vmatmul.mubr.f32.vlgmr.msra.gmra.mxu1 %v1558_v54 }
 0x32a   :  { %1888 = vmatpush1.msra.mxu0 %v3655_v10  ;;  %1959 = vmatpush1.msra.mxu1 %v3660_v22  ;;  %v4586_v10 = vld [vmem:[#allocation33_spill] sm:$0xff]  ;;  %v4587_v22 = vld [vmem:[#allocation34_spill] sm:$0xff] }
 0x32b   :  { %1889 = vmatprep.subr.mxu0 %v3665_v26  ;;  %1960 = vmatprep.subr.mxu1 %v3670_v23  ;;  %v4588_v26 = vld [vmem:[#allocation35_spill] sm:$0xff]  ;;  %v2243_v23 = vpop.eup %2242 }
 0x32c   :  { %1890 = vmatpush1.msra.mxu0 %v3678_v19  ;;  %1961 = vmatpush1.msra.mxu1 %v4580_v55  ;;  %v4589_v19 = vld [vmem:[#allocation36_spill] sm:$0xff]  ;;  %v1582_v57 = vadd.f32 1.0, %v2243_v23 }
 0x32d   :  { %1891 = vmatprep.subr.mxu0 %v4581_v0  ;;  %1962 = vmatprep.subr.mxu1 %v4582_v1  ;;  %v4625_v55 = vld [vmem:[#allocation72_spill] sm:$0xff] }
 0x32e   :  { %1892 = vmatpush1.msra.mxu0 %v4583_v2  ;;  %1963 = vmatpush1.msra.mxu1 %v4584_v4  ;;  %2250 = vrcp.f32 %v1582_v57 }
 0x32f   :  { %1893 = vmatprep.subr.mxu0 %v4585_v6  ;;  %1964 = vmatprep.subr.mxu1 %v4586_v10 }
 0x330   :  { %1894 = vmatpush1.msra.mxu0 %v4587_v22  ;;  %1965 = vmatpush1.msra.mxu1 %v4588_v26 }
 0x331   :  { %1895 = vmatprep.subr.mxu0 %v4589_v19  ;;  %1966 = vmatprep.subr.mxu1 %v4590_v7 }
 0x332   :  { %v2245_v8 = vpop.eup %2244  ;;  %1896 = vmatpush1.msra.mxu0 %v4591_v9  ;;  %1967 = vmatpush1.msra.mxu1 %v4592_v11 }
 0x333   :  { %v2247_v13 = vpop.eup %2246  ;;  %1897 = vmatprep.subr.mxu0 %v4593_v21  ;;  %1968 = vmatprep.subr.mxu1 %v4594_v3 }
 0x334   :  { %v2249_v56 = vpop.eup %2248  ;;  %1898 = vmatpush1.msra.mxu0 %v4595_v58  ;;  %1969 = vmatpush1.msra.mxu1 %v4596_v59  ;;  %v1586_v29 = vmul.f32 %v2247_v13, %v2245_v8 }
 0x335   :  { %1899 = vmatprep.subr.mxu0 %v4597_v61  ;;  %1970 = vmatprep.subr.mxu1 %v4598_v62  ;;  %v1585_v63 = vmul.f32 %v2249_v56, %v3854_v28  ;;  %v4606_v28 = vld [vmem:[#allocation53_spill] sm:$0xff] }
 0x336   :  { %1900 = vmatpush1.msra.mxu0 %v3798_v12  ;;  %1971 = vmatpush1.msra.mxu1 %v3803_v5  ;;  %v4603_v12 = vld [vmem:[#allocation50_spill] sm:$0xff]  ;;  %v4604_v5 = vld [vmem:[#allocation51_spill] sm:$0xff] }
 0x337   :  { %1901 = vmatprep.subr.mxu0 %v3810_v20  ;;  %1972 = vmatprep.subr.mxu1 %v4599_v30  ;;  %v4150_v31 = vadd.f32 %v1586_v29, %v1585_v63  ;;  %v4605_v20 = vld [vmem:[#allocation52_spill] sm:$0xff]  ;;  %v1822_v63 = vld [vmem:[%s4212_s0 + $0x8] sm:$0xff] }
 0x338   :  { %1902 = vmatpush1.msra.mxu0 %v3822_v17  ;;  %1973 = vmatpush1.msra.mxu1 %v4600_v32  ;;  %v4609_v17 = vld [vmem:[#allocation56_spill] sm:$0xff] }
 0x339   :  { %1903 = vmatprep.subr.mxu0 %v4601_v33  ;;  %1974 = vmatprep.subr.mxu1 %v4602_v34  ;;  %2252 = vtanh.f32 %v4150_v31 }
 0x33a   :  { %1904 = vmatpush1.msra.mxu0 %v4603_v12  ;;  %1975 = vmatpush1.msra.mxu1 %v4604_v5 }
 0x33b   :  { %1905 = vmatprep.subr.mxu0 %v4605_v20  ;;  %1976 = vmatprep.subr.mxu1 %v4606_v28  ;;  %v2251_v54 = vpop.eup %2250 }
 0x33c   :  { %1906 = vmatpush1.msra.mxu0 %v4607_v35  ;;  %1977 = vmatpush1.msra.mxu1 %v4608_v36 }
 0x33d   :  { %1907 = vmatprep.subr.mxu0 %v4609_v17  ;;  %1978 = vmatprep.subr.mxu1 %v4610_v37 }
 0x33e   :  { %1908 = vmatpush1.msra.mxu0 %v4611_v38  ;;  %1979 = vmatpush1.msra.mxu1 %v4612_v39 }
 0x33f   :  { %1909 = vmatprep.subr.mxu0 %v4613_v40  ;;  %1980 = vmatprep.subr.mxu1 %v4614_v41 }
 0x340   :  { %1910 = vmatpush1.msra.mxu0 %v4615_v42  ;;  %1981 = vmatpush1.msra.mxu1 %v4616_v44 }
 0x341   :  { %1911 = vmatprep.subr.mxu0 %v4617_v45  ;;  %1982 = vmatprep.subr.mxu1 %v4618_v46 }
 0x342   :  { %1912 = vmatpush1.msra.mxu0 %v4619_v47  ;;  %1983 = vmatpush1.msra.mxu1 %v4620_v48 }
 0x343   :  { %1913 = vmatprep.subr.mxu0 %v4621_v49  ;;  %1984 = vmatprep.subr.mxu1 %v4622_v50 }
 0x344   :  { %1914 = vmatpush1.msra.mxu0 %v4623_v53  ;;  %1985 = vmatpush1.msra.mxu1 %v4624_v16 }
 0x345   :  { %1915 = vmatprep.subr.mxu0 %v3982_v14  ;;  %1986 = vmatprep.subr.mxu1 %v4625_v55 }
 0x346   :  { %v2253_v0 = vpop.eup %2252  ;;  %1916 = vmatpush1.msra.mxu0 %v3994_v52  ;;  %1987 = vmatpush1.msra.mxu1 %v3999_v27 }
 0x347   :  { %1917 = vmatprep.subr.mxu0 %v4006_v18  ;;  %1988 = vmatprep.subr.mxu1 %v4011_v15  ;;  %v1589_v1 = vmul.f32 %v2253_v0, %v2251_v54 }
 0x348   :  { %1918 = vmatpush1.msra.mxu0 %v4018_v24  ;;  %1951 = vmatprep.mubr.f32.mxu0 %v4366_v60 }
 0x349   :  { %1989 = vmatpush1.msra.mxu1 %v4025_v25  ;;  %2022 = vmatprep.mubr.f32.mxu1 %v4366_v60  ;;  %2147 = vst [vmem:[%s4213_s3 + $0x6] sm:$0x3] %v1589_v1  ;;  %v2148_v60 = vld [vmem:[%s4212_s0 + $0x30] sm:$0xff] }
 0x34a   :  { %1952 = vmatmul.mubr.f32.vlgmr.msra.gmra.mxu0 %v1589_v1  ;;  %2023 = vmatmul.mubr.f32.vlgmr.msra.gmra.mxu1 %v1589_v1 }
 0x3e9   :  { %v1723_v52 = vpop.f32.mrf.mxu0  ;;  %v1794_v27 = vpop.f32.mrf.mxu1 }
 0x3eb   :  { %v1725_v18 = vpop.f32.mrf.mxu0  ;;  %v1796_v14 = vpop.f32.mrf.mxu1 }
 0x3ec   :  { %v1803_v15 = vcombine.low %v1723_v52, %v1725_v18  ;;  %v1804_v2 = vcombine.low %v1794_v27, %v1796_v14 }
 0x3ee   :  { %v1811_v24 = vrot.slane %v1803_v15, %v4579_v51  ;;  %v1818_v4 = vrot.slane %v1804_v2, %v4579_v51 }
 0x3f0   :  { %v1819_v25 = vcombine.low %v1811_v24, %v1818_v4 }
 0x3f2   :  { %v1821_v6 = vadd.f32 %v2148_v60, %v1819_v25 }
 0x3f4   :  { %v2149_v10 = vmul.f32 -1.442695, %v1821_v6  ;;  %v2059_v22 = vrot.slane %v1821_v6, 2  ;;  %v2070_v23 = vrot.slane %v1821_v6, 6  ;;  %v2067_v8 = vrot.slane %v1821_v6, 4 }
 0x3f6   :  { %2254 = vpow2.f32 %v2149_v10  ;;  %v2150_v26 = vmul.f32 -1.442695, %v2059_v22  ;;  %v2151_v19 = vmul.f32 -1.442695, %v2070_v23 }
 0x3f8   :  { %2256 = vpow2.f32 %v2150_v26 }
 0x3f9   :  { %2258 = vpow2.f32 %v2151_v19 }
 0x403   :  { %v2255_v7 = vpop.eup %2254 }
 0x404   :  { %v2055_v9 = vadd.f32 1.0, %v2255_v7 }
 0x405   :  { %v2257_v11 = vpop.eup %2256 }
 0x406   :  { %2260 = vrcp.f32 %v2055_v9  ;;  %v2064_v13 = vadd.f32 1.0, %v2257_v11  ;;  %v2259_v29 = vpop.eup %2258 }
 0x407   :  { %2262 = vtanh.f32 %v2067_v8  ;;  %v2075_v12 = vadd.f32 1.0, %v2259_v29 }
 0x408   :  { %2264 = vrcp.f32 %v2064_v13 }
 0x40a   :  { %v1953_v21 = vpop.f32.mrf.mxu0  ;;  %v2024_v3 = vpop.f32.mrf.mxu1 }
 0x40c   :  { %v1955_v56 = vpop.f32.mrf.mxu0  ;;  %v2026_v57 = vpop.f32.mrf.mxu1 }
 0x40d   :  { %v2033_v58 = vcombine.low %v1953_v21, %v1955_v56  ;;  %v2034_v59 = vcombine.low %v2024_v3, %v2026_v57 }
 0x40f   :  { %v2041_v61 = vrot.slane %v2033_v58, %v4579_v51  ;;  %v2048_v62 = vrot.slane %v2034_v59, %v4579_v51 }
 0x411   :  { %v2049_v30 = vcombine.low %v2041_v61, %v2048_v62 }
 0x413   :  { %v2261_v32 = vpop.eup %2260  ;;  %v2051_v33 = vadd.f32 %v2049_v30, %v1822_v63 }
 0x414   :  { %v2263_v34 = vpop.eup %2262 }
 0x415   :  { %v2265_v5 = vpop.eup %2264  ;;  %v2152_v20 = vmul.f32 -1.442695, %v2051_v33  ;;  %v2090_v28 = vrot.slane %v2051_v33, 2  ;;  %v2079_v36 = vmul.f32 %v2263_v34, %v2261_v32  ;;  %v2101_v37 = vrot.slane %v2051_v33, 6 }
 0x416   :  { %v2078_v35 = vmul.f32 %v2265_v5, %v4115_v43  ;;  %v2098_v40 = vrot.slane %v2051_v33, 4 }
 0x417   :  { %2266 = vpow2.f32 %v2152_v20  ;;  %v2153_v17 = vmul.f32 -1.442695, %v2090_v28  ;;  %v2154_v38 = vmul.f32 -1.442695, %v2101_v37 }
 0x418   :  { %2268 = vrcp.f32 %v2075_v12  ;;  %v2080_v51 = vadd.f32 %v2079_v36, %v2078_v35 }
 0x419   :  { %2270 = vpow2.f32 %v2153_v17 }
 0x41a   :  { %2272 = vtanh.f32 %v2080_v51 }
 0x41b   :  { %2274 = vpow2.f32 %v2154_v38 }
 0x424   :  { %v2267_v39 = vpop.eup %2266 }
 0x425   :  { %v2269_v41 = vpop.eup %2268  ;;  %v2086_v42 = vadd.f32 1.0, %v2267_v39 }
 0x426   :  { %v2271_v44 = vpop.eup %2270 }
 0x427   :  { %v2273_v45 = vpop.eup %2272  ;;  %2276 = vrcp.f32 %v2086_v42  ;;  %v2095_v46 = vadd.f32 1.0, %v2271_v44 }
 0x428   :  { %v2082_v47 = vmul.f32 %v2273_v45, %v2269_v41  ;;  %2278 = vtanh.f32 %v2098_v40  ;;  %v2275_v43 = vpop.eup %2274 }
 0x429   :  { %2280 = vrcp.f32 %v2095_v46  ;;  %v2106_v53 = vadd.f32 1.0, %v2275_v43 }
 0x42a   :  { %2155 = vst [vmem:[%s4213_s3 + $0xc] sm:$0x3] %v2082_v47 }
 0x42b   :  { %2282 = vrcp.f32 %v2106_v53 }
 0x434   :  { %v2277_v48 = vpop.eup %2276 }
 0x435   :  { %v2279_v49 = vpop.eup %2278 }
 0x436   :  { %v2281_v50 = vpop.eup %2280  ;;  %v2110_v54 = vmul.f32 %v2279_v49, %v2277_v48 }
 0x437   :  { %v2109_v16 = vmul.f32 %v2281_v50, %v4150_v31 }
 0x438   :  { %v2283_v0 = vpop.eup %2282 }
 0x439   :  { %v2111_v55 = vadd.f32 %v2110_v54, %v2109_v16 }
 0x43b   :  { %2284 = vtanh.f32 %v2111_v55 }
 0x448   :  { %v2285_v1 = vpop.eup %2284 }
 0x449   :  { %v2113_v52 = vmul.f32 %v2285_v1, %v2283_v0 }
 0x44b   :  { %2115 = vst [vmem:[%s4213_s3 + $0x2] sm:$0x3] %v2113_v52 }

// kernel: crnn_forward.15
= control target key start
LH: loop header
LB: loop body
LE: loop exit
PB: predicated region body
PF: predicated region fallthrough
CT: control target
= control target key end

     0   :  { %s1692_s15 = smov 0   ;;  %s1694_s16 = smov 0   ;;  %s1949_s0 = inlined_call_operand.vmem [shape: bf16[128,1024], index: 0, kind: input, shape index: {}]   ;;  %s1950_s1 = inlined_call_operand.vmem [shape: bf16[1024,128], index: 1, kind: input, shape index: {}]   ;;  %s1951_s2 = inlined_call_operand.vmem [shape: f32[1,128], index: 2, kind: input, shape index: {}]   ;;  %s1952_s3 = inlined_call_operand.vmem [shape: f32[1,128], index: 3, kind: input, shape index: {}]   ;;  %s1953_s4 = inlined_call_operand.vmem [shape: f32[128,128], index: 4, kind: output, shape index: {}]  }
   0x1   :  { %s1696_s17 = smov 0   ;;  %s1698_s18 = smov 0  }
   0x2   :  { %s1700_s19 = smov 0  }
   0x3 LB: > { %s26_s20 = sadd.s32 1, %s1660_s18  ;;  %p49_p1 = scmp.ne.s32.totalorder %s1652_s16, %s1648_s15  ;;  %s1664_s19 = sphi %s1700_s19, %s14_s19   ;;  %s1660_s18 = sphi %s1698_s18, %s1957_s18   ;;  %s1656_s17 = sphi %s1696_s17, %s1956_s17   ;;  %s1652_s16 = sphi %s1694_s16, %s1955_s16   ;;  %s1648_s15 = sphi %s1692_s15, %s1954_s15  }
   0x4   : > { %p27_p0 = scmp.ge.s32.totalorder %s26_s20, 2  ;;  %p50_p2 = scmp.eq.s32.totalorder %s1664_s19, 0 }
   0x5   : > { %s42_s22 = sadd.s32 1, %s1652_s16  ;;  %p1296_p5 = scmp.ge.s32.totalorder %s1664_s19, 2 }
   0x6   : > { %s1959_s20 = smov (%p27_p0, %s26_s20), 0  ;;  %p51_p3 = por %p50_p2, %p49_p1 }
   0x7   : > { %s38_s21 = ssub.s32 %s1660_s18, %s1959_s20  ;;  %195 = sbr.rel (%p1296_p5) target bundleno = 32 (0x20), region = 24 }
   0x8   : > { %p40_p4 = scmp.eq.s32.totalorder %s38_s21, 0 }
   0xa   : > { %s1727_s23 = scalar_select %p40_p4, %s1652_s16, %s42_s22  }
   0xc   : > { %198 = sbr.rel (!%p51_p3) target bundleno = 32 (0x20), region = 28  ;;  %s200_s24 = sand.u32 (%p51_p3), 1, %s1652_s16  }
   0xd   : > { %s1376_s25 = sshll.u32 (%p51_p3), %s1660_s18, 4  ;;  %s1297_s26 = sshll.u32 (%p51_p3), %s200_s24, 8 }
   0xe   : > { %s1735_s29 = scalar_lea.vmem (%p51_p3), %s1949_s0, %s1376_s25  ;;  %s1740_s30 = scalar_lea.vmem (%p51_p3), [#allocation3], %s1297_s26 }
   0xf   : > { %v221_v0 = vld [vmem:[%s1735_s29] sm:$0xff] (%p51_p3)  ;;  %v223_v1 = vld [vmem:[%s1735_s29 + $0x8] sm:$0xff] (%p51_p3) }
  0x10   : > { %v225_v2 = vld [vmem:[%s1735_s29 + $0x20] sm:$0xff] (%p51_p3)  ;;  %222 = vst [vmem:[%s1740_s30] sm:$0xff] (%p51_p3), %v221_v0  ;;  %224 = vst [vmem:[%s1740_s30 + $0x8] sm:$0xff] (%p51_p3), %v223_v1  ;;  %v227_v3 = vld [vmem:[%s1735_s29 + $0x28] sm:$0xff] (%p51_p3) }
  0x11   : > { %226 = vst [vmem:[%s1740_s30 + $0x10] sm:$0xff] %v225_v2  ;;  %v229_v4 = vld [vmem:[%s1735_s29 + $0x40] sm:$0xff]  ;;  %v231_v5 = vld [vmem:[%s1735_s29 + $0x48] sm:$0xff]  ;;  %228 = vst [vmem:[%s1740_s30 + $0x18] sm:$0xff] %v227_v3 }
  0x12   : > { %230 = vst [vmem:[%s1740_s30 + $0x20] sm:$0xff] %v229_v4  ;;  %232 = vst [vmem:[%s1740_s30 + $0x28] sm:$0xff] %v231_v5  ;;  %v233_v6 = vld [vmem:[%s1735_s29 + $0x60] sm:$0xff]  ;;  %v235_v7 = vld [vmem:[%s1735_s29 + $0x68] sm:$0xff] }
  0x13   : > { %v237_v8 = vld [vmem:[%s1735_s29 + $0x80] sm:$0xff]  ;;  %234 = vst [vmem:[%s1740_s30 + $0x30] sm:$0xff] %v233_v6  ;;  %236 = vst [vmem:[%s1740_s30 + $0x38] sm:$0xff] %v235_v7  ;;  %v239_v9 = vld [vmem:[%s1735_s29 + $0x88] sm:$0xff] }
  0x14   : > { %238 = vst [vmem:[%s1740_s30 + $0x40] sm:$0xff] %v237_v8  ;;  %v241_v10 = vld [vmem:[%s1735_s29 + $0xa0] sm:$0xff]  ;;  %v243_v11 = vld [vmem:[%s1735_s29 + $0xa8] sm:$0xff]  ;;  %240 = vst [vmem:[%s1740_s30 + $0x48] sm:$0xff] %v239_v9 }
  0x15   : > { %242 = vst [vmem:[%s1740_s30 + $0x50] sm:$0xff] %v241_v10  ;;  %244 = vst [vmem:[%s1740_s30 + $0x58] sm:$0xff] %v243_v11  ;;  %v245_v12 = vld [vmem:[%s1735_s29 + $0xc0] sm:$0xff]  ;;  %v247_v13 = vld [vmem:[%s1735_s29 + $0xc8] sm:$0xff] }
  0x16   : > { %v249_v14 = vld [vmem:[%s1735_s29 + $0xe0] sm:$0xff]  ;;  %246 = vst [vmem:[%s1740_s30 + $0x60] sm:$0xff] %v245_v12  ;;  %248 = vst [vmem:[%s1740_s30 + $0x68] sm:$0xff] %v247_v13  ;;  %v251_v15 = vld [vmem:[%s1735_s29 + $0xe8] sm:$0xff] }
  0x17   : > { %250 = vst [vmem:[%s1740_s30 + $0x70] sm:$0xff] %v249_v14  ;;  %v253_v16 = vld [vmem:[%s1735_s29 + $0x100] sm:$0xff]  ;;  %v255_v17 = vld [vmem:[%s1735_s29 + $0x108] sm:$0xff]  ;;  %252 = vst [vmem:[%s1740_s30 + $0x78] sm:$0xff] %v251_v15 }
  0x18   : > { %254 = vst [vmem:[%s1740_s30 + $0x80] sm:$0xff] %v253_v16  ;;  %256 = vst [vmem:[%s1740_s30 + $0x88] sm:$0xff] %v255_v17  ;;  %v257_v18 = vld [vmem:[%s1735_s29 + $0x120] sm:$0xff]  ;;  %v259_v19 = vld [vmem:[%s1735_s29 + $0x128] sm:$0xff] }
  0x19   : > { %v261_v20 = vld [vmem:[%s1735_s29 + $0x140] sm:$0xff]  ;;  %258 = vst [vmem:[%s1740_s30 + $0x90] sm:$0xff] %v257_v18  ;;  %260 = vst [vmem:[%s1740_s30 + $0x98] sm:$0xff] %v259_v19  ;;  %v263_v21 = vld [vmem:[%s1735_s29 + $0x148] sm:$0xff] }
  0x1a   : > { %262 = vst [vmem:[%s1740_s30 + $0xa0] sm:$0xff] %v261_v20  ;;  %v265_v22 = vld [vmem:[%s1735_s29 + $0x160] sm:$0xff]  ;;  %v267_v23 = vld [vmem:[%s1735_s29 + $0x168] sm:$0xff]  ;;  %264 = vst [vmem:[%s1740_s30 + $0xa8] sm:$0xff] %v263_v21 }
  0x1b   : > { %266 = vst [vmem:[%s1740_s30 + $0xb0] sm:$0xff] %v265_v22  ;;  %268 = vst [vmem:[%s1740_s30 + $0xb8] sm:$0xff] %v267_v23  ;;  %v269_v24 = vld [vmem:[%s1735_s29 + $0x180] sm:$0xff]  ;;  %v271_v25 = vld [vmem:[%s1735_s29 + $0x188] sm:$0xff] }
  0x1c   : > { %v273_v26 = vld [vmem:[%s1735_s29 + $0x1a0] sm:$0xff]  ;;  %270 = vst [vmem:[%s1740_s30 + $0xc0] sm:$0xff] %v269_v24  ;;  %272 = vst [vmem:[%s1740_s30 + $0xc8] sm:$0xff] %v271_v25  ;;  %v275_v27 = vld [vmem:[%s1735_s29 + $0x1a8] sm:$0xff] }
  0x1d   : > { %274 = vst [vmem:[%s1740_s30 + $0xd0] sm:$0xff] %v273_v26  ;;  %v277_v28 = vld [vmem:[%s1735_s29 + $0x1c0] sm:$0xff]  ;;  %v279_v29 = vld [vmem:[%s1735_s29 + $0x1c8] sm:$0xff]  ;;  %276 = vst [vmem:[%s1740_s30 + $0xd8] sm:$0xff] %v275_v27 }
  0x1e   : > { %278 = vst [vmem:[%s1740_s30 + $0xe0] sm:$0xff] %v277_v28  ;;  %280 = vst [vmem:[%s1740_s30 + $0xe8] sm:$0xff] %v279_v29  ;;  %v281_v30 = vld [vmem:[%s1735_s29 + $0x1e0] sm:$0xff]  ;;  %v283_v31 = vld [vmem:[%s1735_s29 + $0x1e8] sm:$0xff] }
  0x1f   : > { %282 = vst [vmem:[%s1740_s30 + $0xf0] sm:$0xff] %v281_v30  ;;  %284 = vst [vmem:[%s1740_s30 + $0xf8] sm:$0xff] %v283_v31 }
  0x20 PF: > { %p1300_p6 = scmp.ge.s32.totalorder %s1664_s19, 1  ;;  %p301_p7 = scmp.lt.s32.totalorder %s1664_s19, 3 }
  0x22   : > { %p302_p8 = pnand %p1300_p6, %p301_p7 }
  0x23   : > { %s308_s5 = sand.u32 (!%p302_p8), 1, %s1648_s15   ;;  %s1302_s6 = sshll.u32 (!%p302_p8), %s1656_s17, 6 }
  0x24   : > { %305 = sbr.rel (%p302_p8) target bundleno = 366 (0x16e), region = 55  ;;  %s1301_s7 = sshll.u32 (!%p302_p8), %s308_s5, 8 }
  0x25   : > { %p353_p9 = scmp.lt.s32.totalorder (!%p302_p8), %s1302_s6, 127  ;;  %s1812_s12 = scalar_lea.vmem (!%p302_p8), [#allocation3], %s1301_s7 }
  0x26   : > { %p1304_p10 = scmp.ne.s32.totalorder (!%p302_p8), %s1656_s17, 0 }
  0x29   : > { %s1961_s6 = smov (!%p353_p9, %s1302_s6), 127  ;;  %380 = sbr.rel (%p1304_p10) target bundleno = 55 (0x37), region = 63 }
  0x2a   : > { %s1303_s8 = sshll.u32 %s1961_s6, 2 }
  0x2b   : > { %s1810_s11 = scalar_lea.vmem %s1950_s1, %s1303_s8 }
  0x2e   : > { %v1666_v32 = vmov 0.0  }
  0x2f   : > { %381 = vst [vmem:[#allocation2 + $0x30] sm:$0xff] %v1666_v32  ;;  %382 = vst [vmem:[#allocation2] sm:$0xff] %v1666_v32 }
  0x30   : > { %383 = vst [vmem:[#allocation2 + $0x58] sm:$0xff] %v1666_v32  ;;  %384 = vst [vmem:[#allocation2 + $0x18] sm:$0xff] %v1666_v32 }
  0x31   : > { %385 = vst [vmem:[#allocation2 + $0x50] sm:$0xff] %v1666_v32  ;;  %386 = vst [vmem:[#allocation2 + $0x68] sm:$0xff] %v1666_v32 }
  0x32   : > { %387 = vst [vmem:[#allocation2 + $0x8] sm:$0xff] %v1666_v32  ;;  %388 = vst [vmem:[#allocation2 + $0x48] sm:$0xff] %v1666_v32 }
  0x33   : > { %389 = vst [vmem:[#allocation2 + $0x40] sm:$0xff] %v1666_v32  ;;  %390 = vst [vmem:[#allocation2 + $0x20] sm:$0xff] %v1666_v32 }
  0x34   : > { %391 = vst [vmem:[#allocation2 + $0x10] sm:$0xff] %v1666_v32  ;;  %392 = vst [vmem:[#allocation2 + $0x38] sm:$0xff] %v1666_v32 }
  0x35   : > { %393 = vst [vmem:[#allocation2 + $0x60] sm:$0xff] %v1666_v32  ;;  %394 = vst [vmem:[#allocation2 + $0x70] sm:$0xff] %v1666_v32 }
  0x36   : > { %395 = vst [vmem:[#allocation2 + $0x78] sm:$0xff] %v1666_v32  ;;  %396 = vst [vmem:[#allocation2 + $0x28] sm:$0xff] %v1666_v32 }
  0x37 PF: > { %v1546_v33 = vld [vmem:[%s1810_s11 + $0x78] sm:$0xff]   ;;  %v1550_v37 = vld [vmem:[%s1810_s11 + $0x70] sm:$0xff]   ;;  %v1554_v41 = vld [vmem:[%s1810_s11 + $0x68] sm:$0xff]   ;;  %p1369_p11 = scmp.ne.s32.totalorder %s1656_s17, 1 }
  0x38   : > { %v1547_v34 = vld [vmem:[%s1810_s11 + $0xf8] sm:$0xff]   ;;  %1377 = vmatprep.subr.bf16.mxu0 %v1546_v33  ;;  %v1551_v38 = vld [vmem:[%s1810_s11 + $0xf0] sm:$0xff]   ;;  %v1555_v42 = vld [vmem:[%s1810_s11 + $0xe8] sm:$0xff]  }
  0x39   : > { %v1548_v35 = vld [vmem:[%s1810_s11 + $0x38] sm:$0xff]   ;;  %1441 = vmatprep.subr.bf16.mxu1 %v1547_v34  ;;  %v1552_v39 = vld [vmem:[%s1810_s11 + $0x30] sm:$0xff]   ;;  %v1556_v43 = vld [vmem:[%s1810_s11 + $0x28] sm:$0xff]  }
  0x3a   : > { %v1549_v36 = vld [vmem:[%s1810_s11 + $0xb8] sm:$0xff]   ;;  %1378 = vmatpush3.bf16.msra.mxu0 %v1548_v35  ;;  %v1553_v40 = vld [vmem:[%s1810_s11 + $0xb0] sm:$0xff]   ;;  %v1557_v44 = vld [vmem:[%s1810_s11 + $0xa8] sm:$0xff]  }
  0x3b   : > { %1442 = vmatpush3.bf16.msra.mxu1 %v1549_v36  ;;  %1379 = vmatprep.subr.bf16.mxu0 %v1550_v37  ;;  %v1558_v45 = vld [vmem:[%s1810_s11 + $0x60] sm:$0xff]   ;;  %v1562_v49 = vld [vmem:[%s1810_s11 + $0x58] sm:$0xff]   ;;  %v1566_v53 = vld [vmem:[%s1810_s11 + $0x50] sm:$0xff]  }
  0x3c   : > { %1443 = vmatprep.subr.bf16.mxu1 %v1551_v38  ;;  %v1559_v46 = vld [vmem:[%s1810_s11 + $0xe0] sm:$0xff]   ;;  %v1563_v50 = vld [vmem:[%s1810_s11 + $0xd8] sm:$0xff]   ;;  %v1567_v54 = vld [vmem:[%s1810_s11 + $0xd0] sm:$0xff]  }
  0x3d   : > { %v1560_v47 = vld [vmem:[%s1810_s11 + $0x20] sm:$0xff]   ;;  %v1564_v51 = vld [vmem:[%s1810_s11 + $0x18] sm:$0xff]   ;;  %v1568_v55 = vld [vmem:[%s1810_s11 + $0x10] sm:$0xff]  }
  0x3e   : > { %1380 = vmatpush3.bf16.msra.mxu0 %v1552_v39  ;;  %v1561_v48 = vld [vmem:[%s1810_s11 + $0xa0] sm:$0xff]   ;;  %v1565_v52 = vld [vmem:[%s1810_s11 + $0x98] sm:$0xff]   ;;  %v1569_v56 = vld [vmem:[%s1810_s11 + $0x90] sm:$0xff]  }
  0x3f   : > { %1444 = vmatpush3.bf16.msra.mxu1 %v1553_v40  ;;  %1381 = vmatprep.subr.bf16.mxu0 %v1554_v41  ;;  %v1570_v57 = vld [vmem:[%s1810_s11 + $0x48] sm:$0xff]   ;;  %v1574_v61 = vld [vmem:[%s1810_s11 + $0x40] sm:$0xff]   ;;  %v397_v40 = vld [vmem:[#allocation2 + $0x30] sm:$0xff] }
  0x40   : > { %1445 = vmatprep.subr.bf16.mxu1 %v1555_v42  ;;  %v1571_v58 = vld [vmem:[%s1810_s11 + $0xc8] sm:$0xff]   ;;  %v1575_v62 = vld [vmem:[%s1810_s11 + $0xc0] sm:$0xff]  }
  0x41   : > { %v1572_v59 = vld [vmem:[%s1810_s11 + $0x8] sm:$0xff]   ;;  %v1576_v63 = vld [vmem:[%s1810_s11] sm:$0xff]  }
  0x42   : > { %1382 = vmatpush3.bf16.msra.mxu0 %v1556_v43  ;;  %v1573_v60 = vld [vmem:[%s1810_s11 + $0x88] sm:$0xff]   ;;  %v1577_v0 = vld [vmem:[%s1810_s11 + $0x80] sm:$0xff]  }
  0x43   : > { %1446 = vmatpush3.bf16.msra.mxu1 %v1557_v44  ;;  %1383 = vmatprep.subr.bf16.mxu0 %v1558_v45  ;;  %v1578_v1 = vld [vmem:[%s1812_s12] ss:$16 sps:$4 sm:$0xff]   ;;  %v1580_v2 = vld [vmem:[%s1812_s12 + $0x4] ss:$16 sps:$4 sm:$0xff]   ;;  %v1581_v3 = vld [vmem:[%s1812_s12 + $0x8] ss:$16 sps:$4 sm:$0xff]  }
  0x44   : > { %1447 = vmatprep.subr.bf16.mxu1 %v1559_v46  ;;  %v1583_v4 = vld [vmem:[%s1812_s12 + $0xc] ss:$16 sps:$4 sm:$0xff]   ;;  %893 = vmatprep.mubr.bf16.mxu0 %v1580_v2  ;;  %v1584_v5 = vld [vmem:[%s1812_s12 + $0x24] ss:$16 sps:$4 sm:$0xff]   ;;  %v1588_v7 = vld [vmem:[%s1812_s12 + $0x20] ss:$16 sps:$4 sm:$0xff]  }
  0x45   : > { %990 = vmatprep.mubr.bf16.mxu1 %v1583_v4  ;;  %v1586_v6 = vld [vmem:[%s1812_s12 + $0x2c] ss:$16 sps:$4 sm:$0xff]   ;;  %v1589_v8 = vld [vmem:[%s1812_s12 + $0x28] ss:$16 sps:$4 sm:$0xff]   ;;  %v1590_v9 = vld [vmem:[%s1812_s12 + $0x44] ss:$16 sps:$4 sm:$0xff]  }
  0x46   : > { %1384 = vmatpush3.bf16.msra.mxu0 %v1560_v47  ;;  %v1592_v10 = vld [vmem:[%s1812_s12 + $0x4c] ss:$16 sps:$4 sm:$0xff]   ;;  %v1594_v11 = vld [vmem:[%s1812_s12 + $0x40] ss:$16 sps:$4 sm:$0xff]   ;;  %v1595_v12 = vld [vmem:[%s1812_s12 + $0x48] ss:$16 sps:$4 sm:$0xff]  }
  0x47   : > { %1448 = vmatpush3.bf16.msra.mxu1 %v1561_v48  ;;  %1385 = vmatprep.subr.bf16.mxu0 %v1562_v49  ;;  %v1596_v13 = vld [vmem:[%s1812_s12 + $0x64] ss:$16 sps:$4 sm:$0xff]   ;;  %v1598_v14 = vld [vmem:[%s1812_s12 + $0x6c] ss:$16 sps:$4 sm:$0xff]   ;;  %v1600_v15 = vld [vmem:[%s1812_s12 + $0x60] ss:$16 sps:$4 sm:$0xff]  }
  0x48   : > { %1449 = vmatprep.subr.bf16.mxu1 %v1563_v50  ;;  %v1601_v16 = vld [vmem:[%s1812_s12 + $0x68] ss:$16 sps:$4 sm:$0xff]   ;;  %v1602_v17 = vld [vmem:[%s1812_s12 + $0x84] ss:$16 sps:$4 sm:$0xff]   ;;  %v1604_v18 = vld [vmem:[%s1812_s12 + $0x8c] ss:$16 sps:$4 sm:$0xff]  }
  0x49   : > { %v1606_v19 = vld [vmem:[%s1812_s12 + $0x80] ss:$16 sps:$4 sm:$0xff]   ;;  %v1607_v20 = vld [vmem:[%s1812_s12 + $0x88] ss:$16 sps:$4 sm:$0xff]   ;;  %v1608_v21 = vld [vmem:[%s1812_s12 + $0xa4] ss:$16 sps:$4 sm:$0xff]  }
  0x4a   : > { %1386 = vmatpush3.bf16.msra.mxu0 %v1564_v51  ;;  %v1610_v22 = vld [vmem:[%s1812_s12 + $0xac] ss:$16 sps:$4 sm:$0xff]   ;;  %v1612_v23 = vld [vmem:[%s1812_s12 + $0xa0] ss:$16 sps:$4 sm:$0xff]   ;;  %v1613_v24 = vld [vmem:[%s1812_s12 + $0xa8] ss:$16 sps:$4 sm:$0xff]  }
  0x4b   : > { %1450 = vmatpush3.bf16.msra.mxu1 %v1565_v52  ;;  %1387 = vmatprep.subr.bf16.mxu0 %v1566_v53  ;;  %v1614_v25 = vld [vmem:[%s1812_s12 + $0xc4] ss:$16 sps:$4 sm:$0xff]   ;;  %v1616_v26 = vld [vmem:[%s1812_s12 + $0xcc] ss:$16 sps:$4 sm:$0xff]   ;;  %v1618_v27 = vld [vmem:[%s1812_s12 + $0xc0] ss:$16 sps:$4 sm:$0xff]  }
  0x4c   : > { %1451 = vmatprep.subr.bf16.mxu1 %v1567_v54  ;;  %v1619_v28 = vld [vmem:[%s1812_s12 + $0xc8] ss:$16 sps:$4 sm:$0xff]   ;;  %v1620_v29 = vld [vmem:[%s1812_s12 + $0xe4] ss:$16 sps:$4 sm:$0xff]   ;;  %v1622_v30 = vld [vmem:[%s1812_s12 + $0xec] ss:$16 sps:$4 sm:$0xff]  }
  0x4d   : > { %v1624_v31 = vld [vmem:[%s1812_s12 + $0xe0] ss:$16 sps:$4 sm:$0xff]   ;;  %v1625_v32 = vld [vmem:[%s1812_s12 + $0xe8] ss:$16 sps:$4 sm:$0xff]  }
  0x4e   : > { %1388 = vmatpush3.bf16.msra.mxu0 %v1568_v55  ;;  %v398_v49 = vld [vmem:[#allocation2] sm:$0xff] }
  0x4f   : > { %1452 = vmatpush3.bf16.msra.mxu1 %v1569_v56  ;;  %1389 = vmatprep.subr.bf16.mxu0 %v1570_v57 }
  0x50   : > { %1453 = vmatprep.subr.bf16.mxu1 %v1571_v58  ;;  %v399_v58 = vld [vmem:[#allocation2 + $0x58] sm:$0xff] }
  0x52   : > { %1390 = vmatpush3.bf16.msra.mxu0 %v1572_v59 }
  0x53   : > { %1454 = vmatpush3.bf16.msra.mxu1 %v1573_v60  ;;  %1391 = vmatprep.subr.bf16.mxu0 %v1574_v61 }
  0x54   : > { %1455 = vmatprep.subr.bf16.mxu1 %v1575_v62 }
  0x56   : > { %1392 = vmatpush3.bf16.msra.mxu0 %v1576_v63 }
  0x57   : > { %1456 = vmatpush3.bf16.msra.mxu1 %v1577_v0 }
  0x59   : > { %894 = vmatmul.mubr.bf16.vlgmr.msra.gmra.mxu0 %v1578_v1 }
  0x5a   : > { %991 = vmatmul.mubr.bf16.vlgmr.msra.gmra.mxu1 %v1581_v3  ;;  %901 = vmatprep.mubr.bf16.mxu0 %v1584_v5  ;;  %v400_v3 = vld [vmem:[#allocation2 + $0x18] sm:$0xff] }
  0x5b   : > { %998 = vmatprep.mubr.bf16.mxu1 %v1586_v6 }
  0x61   : > { %902 = vmatmul.mubr.bf16.gmra.mxu0 %v1588_v7 }
  0x62   : > { %999 = vmatmul.mubr.bf16.gmra.mxu1 %v1589_v8  ;;  %909 = vmatprep.mubr.bf16.mxu0 %v1590_v9 }
  0x63   : > { %1006 = vmatprep.mubr.bf16.mxu1 %v1592_v10 }
  0x69   : > { %910 = vmatmul.mubr.bf16.gmra.mxu0 %v1594_v11 }
  0x6a   : > { %1007 = vmatmul.mubr.bf16.gmra.mxu1 %v1595_v12  ;;  %917 = vmatprep.mubr.bf16.mxu0 %v1596_v13  ;;  %v401_v12 = vld [vmem:[#allocation2 + $0x50] sm:$0xff] }
  0x6b   : > { %1014 = vmatprep.mubr.bf16.mxu1 %v1598_v14 }
  0x71   : > { %918 = vmatmul.mubr.bf16.gmra.mxu0 %v1600_v15 }
  0x72   : > { %1015 = vmatmul.mubr.bf16.gmra.mxu1 %v1601_v16  ;;  %925 = vmatprep.mubr.bf16.mxu0 %v1602_v17 }
  0x73   : > { %1022 = vmatprep.mubr.bf16.mxu1 %v1604_v18 }
  0x79   : > { %926 = vmatmul.mubr.bf16.gmra.mxu0 %v1606_v19 }
  0x7a   : > { %1023 = vmatmul.mubr.bf16.gmra.mxu1 %v1607_v20  ;;  %933 = vmatprep.mubr.bf16.mxu0 %v1608_v21  ;;  %v402_v21 = vld [vmem:[#allocation2 + $0x68] sm:$0xff] }
  0x7b   : > { %1030 = vmatprep.mubr.bf16.mxu1 %v1610_v22 }
  0x81   : > { %934 = vmatmul.mubr.bf16.gmra.mxu0 %v1612_v23 }
  0x82   : > { %1031 = vmatmul.mubr.bf16.gmra.mxu1 %v1613_v24  ;;  %941 = vmatprep.mubr.bf16.mxu0 %v1614_v25 }
  0x83   : > { %1038 = vmatprep.mubr.bf16.mxu1 %v1616_v26 }
  0x89   : > { %942 = vmatmul.mubr.bf16.gmra.mxu0 %v1618_v27 }
  0x8a   : > { %1039 = vmatmul.mubr.bf16.gmra.mxu1 %v1619_v28  ;;  %949 = vmatprep.mubr.bf16.mxu0 %v1620_v29 }
  0x8b   : > { %1046 = vmatprep.mubr.bf16.mxu1 %v1622_v30  ;;  %v403_v30 = vld [vmem:[#allocation2 + $0x8] sm:$0xff] }
  0x91   : > { %950 = vmatmul.mubr.bf16.gmra.mxu0 %v1624_v31 }
  0x92   : > { %1047 = vmatmul.mubr.bf16.gmra.mxu1 %v1625_v32 }
 0x119   : > { %v1393_v33 = vpop.f32.mrf.mxu0 }
 0x11a   : > { %v1457_v34 = vpop.f32.mrf.mxu1 }
 0x11b   : > { %v1394_v35 = vpop.f32.mrf.mxu0 }
 0x11c   : > { %v1395_v36 = vadd.f32 %v1394_v35, %v1393_v33  ;;  %v1458_v37 = vpop.f32.mrf.mxu1 }
 0x11d   : > { %v1459_v38 = vadd.f32 %v1458_v37, %v1457_v34  ;;  %v1396_v39 = vpop.f32.mrf.mxu0 }
 0x11e   : > { %v1460_v41 = vpop.f32.mrf.mxu1 }
 0x11f   : > { %v993_v42 = vadd.f32 %v1459_v38, %v1395_v36  ;;  %v1397_v43 = vpop.f32.mrf.mxu0 }
 0x120   : > { %v1398_v44 = vadd.f32 %v1397_v43, %v1396_v39  ;;  %v1461_v45 = vpop.f32.mrf.mxu1  ;;  %v404_v39 = vld [vmem:[#allocation2 + $0x48] sm:$0xff] }
 0x121   : > { %v1055_v46 = vadd.f32 %v993_v42, %v397_v40  ;;  %v1462_v47 = vadd.f32 %v1461_v45, %v1460_v41  ;;  %v1399_v48 = vpop.f32.mrf.mxu0 }
 0x122   : > { %v1463_v50 = vpop.f32.mrf.mxu1 }
 0x123   : > { %1071 = vst [vmem:[#allocation2 + $0x30] sm:$0xff] %v1055_v46  ;;  %v996_v51 = vadd.f32 %v1462_v47, %v1398_v44  ;;  %v1400_v52 = vpop.f32.mrf.mxu0 }
 0x124   : > { %v1401_v53 = vadd.f32 %v1400_v52, %v1399_v48  ;;  %v1464_v54 = vpop.f32.mrf.mxu1  ;;  %v405_v48 = vld [vmem:[#allocation2 + $0x40] sm:$0xff] }
 0x125   : > { %v1056_v55 = vadd.f32 %v996_v51, %v398_v49  ;;  %v1465_v56 = vadd.f32 %v1464_v54, %v1463_v50  ;;  %v1402_v57 = vpop.f32.mrf.mxu0 }
 0x126   : > { %v1466_v59 = vpop.f32.mrf.mxu1 }
 0x127   : > { %1072 = vst [vmem:[#allocation2] sm:$0xff] %v1056_v55  ;;  %v1001_v60 = vadd.f32 %v1465_v56, %v1401_v53  ;;  %v1403_v61 = vpop.f32.mrf.mxu0 }
 0x128   : > { %v1404_v62 = vadd.f32 %v1403_v61, %v1402_v57  ;;  %v1467_v63 = vpop.f32.mrf.mxu1  ;;  %v406_v57 = vld [vmem:[#allocation2 + $0x20] sm:$0xff] }
 0x129   : > { %v1057_v0 = vadd.f32 %v1001_v60, %v399_v58  ;;  %v1468_v1 = vadd.f32 %v1467_v63, %v1466_v59  ;;  %v1405_v2 = vpop.f32.mrf.mxu0 }
 0x12a   : > { %v1469_v4 = vpop.f32.mrf.mxu1 }
 0x12b   : > { %1073 = vst [vmem:[#allocation2 + $0x58] sm:$0xff] %v1057_v0  ;;  %v1004_v5 = vadd.f32 %v1468_v1, %v1404_v62  ;;  %v1406_v6 = vpop.f32.mrf.mxu0 }
 0x12c   : > { %v1407_v7 = vadd.f32 %v1406_v6, %v1405_v2  ;;  %v1470_v8 = vpop.f32.mrf.mxu1  ;;  %v407_v2 = vld [vmem:[#allocation2 + $0x10] sm:$0xff] }
 0x12d   : > { %v1058_v9 = vadd.f32 %v1004_v5, %v400_v3  ;;  %v1471_v10 = vadd.f32 %v1470_v8, %v1469_v4  ;;  %v1408_v11 = vpop.f32.mrf.mxu0 }
 0x12e   : > { %v1472_v13 = vpop.f32.mrf.mxu1 }
 0x12f   : > { %1074 = vst [vmem:[#allocation2 + $0x18] sm:$0xff] %v1058_v9  ;;  %v1009_v14 = vadd.f32 %v1471_v10, %v1407_v7  ;;  %v1409_v15 = vpop.f32.mrf.mxu0 }
 0x130   : > { %v1410_v16 = vadd.f32 %v1409_v15, %v1408_v11  ;;  %v1473_v17 = vpop.f32.mrf.mxu1  ;;  %v408_v11 = vld [vmem:[#allocation2 + $0x38] sm:$0xff] }
 0x131   : > { %v1059_v18 = vadd.f32 %v1009_v14, %v401_v12  ;;  %v1474_v19 = vadd.f32 %v1473_v17, %v1472_v13  ;;  %v1411_v20 = vpop.f32.mrf.mxu0 }
 0x132   : > { %v1475_v22 = vpop.f32.mrf.mxu1 }
 0x133   : > { %1075 = vst [vmem:[#allocation2 + $0x50] sm:$0xff] %v1059_v18  ;;  %v1012_v23 = vadd.f32 %v1474_v19, %v1410_v16  ;;  %v1412_v24 = vpop.f32.mrf.mxu0 }
 0x134   : > { %v1413_v25 = vadd.f32 %v1412_v24, %v1411_v20  ;;  %v1476_v26 = vpop.f32.mrf.mxu1  ;;  %v409_v20 = vld [vmem:[#allocation2 + $0x60] sm:$0xff] }
 0x135   : > { %v1060_v27 = vadd.f32 %v1012_v23, %v402_v21  ;;  %v1477_v28 = vadd.f32 %v1476_v26, %v1475_v22  ;;  %v1414_v29 = vpop.f32.mrf.mxu0 }
 0x136   : > { %v1478_v31 = vpop.f32.mrf.mxu1 }
 0x137   : > { %1076 = vst [vmem:[#allocation2 + $0x68] sm:$0xff] %v1060_v27  ;;  %v1017_v32 = vadd.f32 %v1477_v28, %v1413_v25  ;;  %v1415_v33 = vpop.f32.mrf.mxu0 }
 0x138   : > { %v1416_v34 = vadd.f32 %v1415_v33, %v1414_v29  ;;  %v1479_v35 = vpop.f32.mrf.mxu1  ;;  %v410_v29 = vld [vmem:[#allocation2 + $0x70] sm:$0xff] }
 0x139   : > { %v1061_v36 = vadd.f32 %v1017_v32, %v403_v30  ;;  %v1480_v37 = vadd.f32 %v1479_v35, %v1478_v31  ;;  %v1417_v38 = vpop.f32.mrf.mxu0 }
 0x13a   : > { %v1481_v40 = vpop.f32.mrf.mxu1 }
 0x13b   : > { %1077 = vst [vmem:[#allocation2 + $0x8] sm:$0xff] %v1061_v36  ;;  %v1020_v41 = vadd.f32 %v1480_v37, %v1416_v34  ;;  %v1418_v42 = vpop.f32.mrf.mxu0 }
 0x13c   : > { %v1419_v43 = vadd.f32 %v1418_v42, %v1417_v38  ;;  %v1482_v44 = vpop.f32.mrf.mxu1  ;;  %v411_v38 = vld [vmem:[#allocation2 + $0x78] sm:$0xff] }
 0x13d   : > { %v1062_v45 = vadd.f32 %v1020_v41, %v404_v39  ;;  %v1483_v46 = vadd.f32 %v1482_v44, %v1481_v40  ;;  %v1420_v47 = vpop.f32.mrf.mxu0 }
 0x13e   : > { %v1484_v49 = vpop.f32.mrf.mxu1 }
 0x13f   : > { %1078 = vst [vmem:[#allocation2 + $0x48] sm:$0xff] %v1062_v45  ;;  %v1025_v50 = vadd.f32 %v1483_v46, %v1419_v43  ;;  %v1421_v51 = vpop.f32.mrf.mxu0  ;;  %v412_v46 = vld [vmem:[#allocation2 + $0x28] sm:$0xff] }
 0x140   : > { %v1422_v52 = vadd.f32 %v1421_v51, %v1420_v47  ;;  %v1485_v53 = vpop.f32.mrf.mxu1 }
 0x141   : > { %v1063_v54 = vadd.f32 %v1025_v50, %v405_v48  ;;  %v1486_v55 = vadd.f32 %v1485_v53, %v1484_v49  ;;  %v1423_v56 = vpop.f32.mrf.mxu0 }
 0x142   : > { %v1487_v58 = vpop.f32.mrf.mxu1 }
 0x143   : > { %1079 = vst [vmem:[#allocation2 + $0x40] sm:$0xff] %v1063_v54  ;;  %v1028_v59 = vadd.f32 %v1486_v55, %v1422_v52  ;;  %v1424_v60 = vpop.f32.mrf.mxu0 }
 0x144   : > { %v1425_v61 = vadd.f32 %v1424_v60, %v1423_v56  ;;  %v1488_v62 = vpop.f32.mrf.mxu1 }
 0x145   : > { %v1064_v63 = vadd.f32 %v1028_v59, %v406_v57  ;;  %v1489_v0 = vadd.f32 %v1488_v62, %v1487_v58  ;;  %v1426_v1 = vpop.f32.mrf.mxu0 }
 0x146   : > { %v1490_v3 = vpop.f32.mrf.mxu1 }
 0x147   : > { %1080 = vst [vmem:[#allocation2 + $0x20] sm:$0xff] %v1064_v63  ;;  %v1033_v4 = vadd.f32 %v1489_v0, %v1425_v61  ;;  %v1427_v5 = vpop.f32.mrf.mxu0 }
 0x148   : > { %v1428_v6 = vadd.f32 %v1427_v5, %v1426_v1  ;;  %v1491_v7 = vpop.f32.mrf.mxu1 }
 0x149   : > { %v1065_v8 = vadd.f32 %v1033_v4, %v407_v2  ;;  %v1492_v9 = vadd.f32 %v1491_v7, %v1490_v3  ;;  %v1429_v10 = vpop.f32.mrf.mxu0 }
 0x14a   : > { %v1493_v12 = vpop.f32.mrf.mxu1 }
 0x14b   : > { %1081 = vst [vmem:[#allocation2 + $0x10] sm:$0xff] %v1065_v8  ;;  %v1036_v13 = vadd.f32 %v1492_v9, %v1428_v6  ;;  %v1430_v14 = vpop.f32.mrf.mxu0 }
 0x14c   : > { %v1431_v15 = vadd.f32 %v1430_v14, %v1429_v10  ;;  %v1494_v16 = vpop.f32.mrf.mxu1 }
 0x14d   : > { %v1066_v17 = vadd.f32 %v1036_v13, %v408_v11  ;;  %v1495_v18 = vadd.f32 %v1494_v16, %v1493_v12  ;;  %v1432_v19 = vpop.f32.mrf.mxu0 }
 0x14e   : > { %v1496_v21 = vpop.f32.mrf.mxu1 }
 0x14f   : > { %1082 = vst [vmem:[#allocation2 + $0x38] sm:$0xff] %v1066_v17  ;;  %v1041_v22 = vadd.f32 %v1495_v18, %v1431_v15  ;;  %v1433_v23 = vpop.f32.mrf.mxu0 }
 0x150   : > { %v1434_v24 = vadd.f32 %v1433_v23, %v1432_v19  ;;  %v1497_v25 = vpop.f32.mrf.mxu1 }
 0x151   : > { %v1067_v26 = vadd.f32 %v1041_v22, %v409_v20  ;;  %v1498_v27 = vadd.f32 %v1497_v25, %v1496_v21  ;;  %v1435_v28 = vpop.f32.mrf.mxu0 }
 0x152   : > { %v1499_v30 = vpop.f32.mrf.mxu1 }
 0x153   : > { %1083 = vst [vmem:[#allocation2 + $0x60] sm:$0xff] %v1067_v26  ;;  %v1044_v31 = vadd.f32 %v1498_v27, %v1434_v24  ;;  %v1436_v32 = vpop.f32.mrf.mxu0 }
 0x154   : > { %v1437_v33 = vadd.f32 %v1436_v32, %v1435_v28  ;;  %v1500_v34 = vpop.f32.mrf.mxu1 }
 0x155   : > { %v1068_v35 = vadd.f32 %v1044_v31, %v410_v29  ;;  %v1501_v36 = vadd.f32 %v1500_v34, %v1499_v30  ;;  %v1438_v37 = vpop.f32.mrf.mxu0 }
 0x156   : > { %v1502_v39 = vpop.f32.mrf.mxu1 }
 0x157   : > { %1084 = vst [vmem:[#allocation2 + $0x70] sm:$0xff] %v1068_v35  ;;  %v1049_v40 = vadd.f32 %v1501_v36, %v1437_v33  ;;  %v1439_v41 = vpop.f32.mrf.mxu0 }
 0x158   : > { %v1440_v42 = vadd.f32 %v1439_v41, %v1438_v37  ;;  %v1503_v43 = vpop.f32.mrf.mxu1 }
 0x159   : > { %v1069_v44 = vadd.f32 %v1049_v40, %v411_v38  ;;  %v1504_v45 = vadd.f32 %v1503_v43, %v1502_v39 }
 0x15b   : > { %1085 = vst [vmem:[#allocation2 + $0x78] sm:$0xff] %v1069_v44  ;;  %v1052_v47 = vadd.f32 %v1504_v45, %v1440_v42  ;;  %1090 = sbr.rel (%p1369_p11) target bundleno = 366 (0x16e), region = 67 }
 0x15d   : > { %v1070_v48 = vadd.f32 %v1052_v47, %v412_v46 }
 0x15f   : > { %1086 = vst [vmem:[#allocation2 + $0x28] sm:$0xff] %v1070_v48 }
 0x160   : > { %v1091_v49 = vld [vmem:[#allocation2 + $0x30] sm:$0xff]  ;;  %v1370_v50 = vld [vmem:[%s1951_s2] ss:$0 sm:$0xff]  ;;  %v1093_v54 = vld [vmem:[#allocation2 + $0x58] sm:$0xff] }
 0x161   : > { %v1371_v51 = vld [vmem:[%s1952_s3] ss:$0 sm:$0xff]  ;;  %v1114_v52 = vmul.f32 %v1370_v50, %v1091_v49  ;;  %v1094_v55 = vld [vmem:[#allocation2 + $0x18] sm:$0xff]  ;;  %v1116_v57 = vmul.f32 %v1370_v50, %v1093_v54  ;;  %v1095_v59 = vld [vmem:[#allocation2 + $0x50] sm:$0xff] }
 0x162   : > { %v1092_v53 = vld [vmem:[#allocation2] sm:$0xff]  ;;  %v1117_v58 = vmul.f32 %v1370_v50, %v1094_v55  ;;  %v1096_v60 = vld [vmem:[#allocation2 + $0x68] sm:$0xff]  ;;  %v1118_v63 = vmul.f32 %v1370_v50, %v1095_v59  ;;  %v1101_v9 = vld [vmem:[#allocation2 + $0x10] sm:$0xff] }
 0x163   : > { %v1115_v56 = vmul.f32 %v1370_v50, %v1092_v53  ;;  %v1097_v61 = vld [vmem:[#allocation2 + $0x8] sm:$0xff]  ;;  %v1137_v62 = vadd.f32 %v1371_v51, %v1114_v52  ;;  %v1119_v0 = vmul.f32 %v1370_v50, %v1096_v60  ;;  %v1099_v3 = vld [vmem:[#allocation2 + $0x40] sm:$0xff]  ;;  %v1139_v6 = vadd.f32 %v1371_v51, %v1116_v57  ;;  %v1102_v10 = vld [vmem:[#allocation2 + $0x38] sm:$0xff] }
 0x164   : > { %v1120_v1 = vmul.f32 %v1370_v50, %v1097_v61  ;;  %v1098_v2 = vld [vmem:[#allocation2 + $0x48] sm:$0xff]  ;;  %v1100_v4 = vld [vmem:[#allocation2 + $0x20] sm:$0xff]  ;;  %v1140_v7 = vadd.f32 %v1371_v51, %v1117_v58  ;;  %v1141_v12 = vadd.f32 %v1371_v51, %v1118_v63  ;;  %v1122_v15 = vmul.f32 %v1370_v50, %v1099_v3  ;;  %v1104_v16 = vld [vmem:[#allocation2 + $0x70] sm:$0xff] }
 0x165   : > { %v1138_v5 = vadd.f32 %v1371_v51, %v1115_v56  ;;  %v1121_v8 = vmul.f32 %v1370_v50, %v1098_v2  ;;  %v1103_v11 = vld [vmem:[#allocation2 + $0x60] sm:$0xff]  ;;  %1153 = vst [vmem:[%s1953_s4] sm:$0xff] %v1137_v62  ;;  %v1142_v13 = vadd.f32 %v1371_v51, %v1119_v0  ;;  %v1105_v17 = vld [vmem:[#allocation2 + $0x78] sm:$0xff]  ;;  %1155 = vst [vmem:[%s1953_s4 + $0x10] sm:$0xff] %v1139_v6 }
 0x166   : > { %v1143_v14 = vadd.f32 %v1371_v51, %v1120_v1  ;;  %v1106_v18 = vld [vmem:[#allocation2 + $0x28] sm:$0xff]  ;;  %1156 = vst [vmem:[%s1953_s4 + $0x18] sm:$0xff] %v1140_v7  ;;  %v1123_v20 = vmul.f32 %v1370_v50, %v1100_v4  ;;  %v1124_v21 = vmul.f32 %v1370_v50, %v1101_v9  ;;  %v1125_v22 = vmul.f32 %v1370_v50, %v1102_v10 }
 0x167   : > { %1154 = vst [vmem:[%s1953_s4 + $0x8] sm:$0xff] %v1138_v5  ;;  %v1144_v19 = vadd.f32 %v1371_v51, %v1121_v8  ;;  %1157 = vst [vmem:[%s1953_s4 + $0x20] sm:$0xff] %v1141_v12  ;;  %v1145_v23 = vadd.f32 %v1371_v51, %v1122_v15  ;;  %v1126_v24 = vmul.f32 %v1370_v50, %v1103_v11 }
 0x168   : > { %1158 = vst [vmem:[%s1953_s4 + $0x28] sm:$0xff] %v1142_v13  ;;  %1159 = vst [vmem:[%s1953_s4 + $0x30] sm:$0xff] %v1143_v14  ;;  %v1127_v25 = vmul.f32 %v1370_v50, %v1104_v16  ;;  %v1128_v26 = vmul.f32 %v1370_v50, %v1105_v17  ;;  %v1146_v27 = vadd.f32 %v1371_v51, %v1123_v20 }
 0x169   : > { %1160 = vst [vmem:[%s1953_s4 + $0x38] sm:$0xff] %v1144_v19  ;;  %v1147_v28 = vadd.f32 %v1371_v51, %v1124_v21  ;;  %v1148_v29 = vadd.f32 %v1371_v51, %v1125_v22  ;;  %v1129_v30 = vmul.f32 %v1370_v50, %v1106_v18  ;;  %1161 = vst [vmem:[%s1953_s4 + $0x40] sm:$0xff] %v1145_v23 }
 0x16a   : > { %v1149_v31 = vadd.f32 %v1371_v51, %v1126_v24  ;;  %v1150_v32 = vadd.f32 %v1371_v51, %v1127_v25  ;;  %v1151_v33 = vadd.f32 %v1371_v51, %v1128_v26  ;;  %1162 = vst [vmem:[%s1953_s4 + $0x48] sm:$0xff] %v1146_v27 }
 0x16b   : > { %1163 = vst [vmem:[%s1953_s4 + $0x50] sm:$0xff] %v1147_v28  ;;  %1164 = vst [vmem:[%s1953_s4 + $0x58] sm:$0xff] %v1148_v29  ;;  %v1152_v34 = vadd.f32 %v1371_v51, %v1129_v30 }
 0x16c   : > { %1165 = vst [vmem:[%s1953_s4 + $0x60] sm:$0xff] %v1149_v31  ;;  %1166 = vst [vmem:[%s1953_s4 + $0x68] sm:$0xff] %v1150_v32 }
 0x16d   : > { %1167 = vst [vmem:[%s1953_s4 + $0x70] sm:$0xff] %v1151_v33  ;;  %1168 = vst [vmem:[%s1953_s4 + $0x78] sm:$0xff] %v1152_v34 }
 0x16e PF: > { %s14_s19 = sadd.s32 1, %s1664_s19   ;;  %s1954_s15 = smov %s1652_s16 }
 0x16f   : > { %p11_p12 = scmp.ge.s32.totalorder %s14_s19, 4   ;;  %s1955_s16 = smov %s1727_s23 }
 0x170   : > { %s1956_s17 = smov %s1660_s18  ;;  %s1957_s18 = smov %s1959_s20 }
 0x171   :  { %13 = sbr.rel (!%p11_p12) target bundleno = 3 (0x3), region = 111 }

</bundles_post_ra>
